<compile_context>
chip_gen: v6e
topology: v6e:2x2x1
jax: 0.10.0
libtpu: 0.0.40
codegen_flags: <defaults>
</compile_context>

<pallas_src>
import functools
import math

import jax
import jax.numpy as jnp
from jax.experimental import pallas as pl
from jax.experimental.pallas import tpu as pltpu

F32 = jnp.float32
BF16 = jnp.bfloat16
_VMEM = pl.BlockSpec(memory_space=pltpu.MemorySpace.VMEM)
_NEG_BIG = -1e30
_NT = 23  # number of refs per tower


# ------------------------------ in-kernel helpers ----------------------------

def _layernorm(x, g, b, eps=1e-5):
    mu = jnp.mean(x, axis=-1, keepdims=True)
    var = jnp.mean((x - mu) ** 2, axis=-1, keepdims=True)
    return (x - mu) * jax.lax.rsqrt(var + eps) * g + b


# ------------------------ single fused forward kernel ------------------------

def _fused_kernel(*refs, num_layers, num_heads, seq_d, seq_t):
    d_refs = refs[:_NT]
    t_refs = refs[_NT:2 * _NT]
    (idx_d_ref, idx_t_ref, w1_ref, b1_ref, w2_ref, b2_ref, w3_ref, b3_ref,
     o_ref) = refs[2 * _NT:]

    def tower(r, S):
        (feats, lin_w, lin_b, sim, node, gt_w, gt_b,
         wq, bq, wk, bk, wv, bv, wo, bo,
         ln1g, ln1b, wf1, bf1, wf2, bf2, ln2g, ln2b) = r
        H = lin_w.shape[1]
        dh = H // num_heads
        scale = 1.0 / math.sqrt(dh)

        # Modality token 0: linear embedding of raw features (nn.Linear).
        emb = (jnp.dot(feats[...].astype(BF16), lin_w[...],
                       preferred_element_type=F32) + lin_b[...])

        # Modality token 1: similarity-graph message passing.
        # TODO(synk): GraphTransformer_dru/_dis sources are not provided; stand-in
        #             is a single layer relu(A @ (E @ W) + b) on the similarity graph.
        g = jnp.dot(node[...], gt_w[...], preferred_element_type=F32)
        gnn = jnp.maximum(
            jnp.dot(sim[...].astype(BF16), g.astype(BF16),
                    preferred_element_type=F32) + gt_b[...], 0.0)

        # (2S, H), batch-major: rows [0,S) = embedding tokens (batch 0),
        # rows [S,2S) = graph tokens (batch 1).  seq = entities, batch = 2.
        x = jnp.concatenate([emb, gnn], axis=0)

        # Masks, hoisted out of the layer loop.
        col = jax.lax.broadcasted_iota(jnp.int32, (1, H), 1)
        head_masks = [((col >= h * dh) & (col < (h + 1) * dh)).astype(F32)
                      for h in range(num_heads)]
        ri = jax.lax.broadcasted_iota(jnp.int32, (2 * S, 2 * S), 0)
        ci = jax.lax.broadcasted_iota(jnp.int32, (2 * S, 2 * S), 1)
        bias = jnp.where(jnp.logical_xor(ri < S, ci < S), _NEG_BIG, 0.0).astype(F32)
        bias_all = jnp.concatenate([bias] * num_heads, axis=0)   # (nh*2S, 2S)

        for l in range(num_layers):
            # ---- multi-head self-attention (post-norm encoder layer) ----
            xb = x.astype(BF16)
            q = jnp.dot(xb, wq[l], preferred_element_type=F32) + bq[l]
            k = jnp.dot(xb, wk[l], preferred_element_type=F32) + bk[l]
            v = jnp.dot(xb, wv[l], preferred_element_type=F32) + bv[l]

            # One score matmul + ONE softmax pass for all heads:
            # stack (q * head_mask_h) along sublanes -> (nh*2S, H).
            q_all = jnp.concatenate([q * m for m in head_masks], axis=0)
            s_all = jax.lax.dot_general(
                q_all.astype(BF16), k.astype(BF16), (((1,), (1,)), ((), ())),
                preferred_element_type=F32)                       # (nh*2S, 2S)
            s_all = s_all * scale + bias_all
            s_all = s_all - jnp.max(s_all, axis=-1, keepdims=True)
            p_all = jnp.exp(s_all)
            p_all = p_all / jnp.sum(p_all, axis=-1, keepdims=True)

            # (p_h @ (v * m_h)) == (p_h @ v) * m_h -> one matmul + masked adds.
            ctx_all = jnp.dot(p_all.astype(BF16), v.astype(BF16),
                              preferred_element_type=F32)         # (nh*2S, H)
            attn = jnp.zeros((2 * S, H), F32)
            for h, m in enumerate(head_masks):
                attn = attn + ctx_all[h * 2 * S:(h + 1) * 2 * S, :] * m

            attn = jnp.dot(attn.astype(BF16), wo[l],
                           preferred_element_type=F32) + bo[l]
            x = _layernorm(x + attn, ln1g[l], ln1b[l])            # add + LN1

            # ---- FFN with VMEM-resident (2S, dim_feedforward) intermediate ----
            f = jnp.maximum(
                jnp.dot(x.astype(BF16), wf1[l], preferred_element_type=F32)
                + bf1[l], 0.0)
            f = jnp.dot(f.astype(BF16), wf2[l], preferred_element_type=F32) + bf2[l]
            x = _layernorm(x + f, ln2g[l], ln2b[l])               # add + LN2

        return x                                                  # (2S, H)

    dr = tower(d_refs, seq_d)     # drug tower   (2*seq_d, H)
    pro = tower(t_refs, seq_t)    # target tower (2*seq_t, H)
    H = dr.shape[1]

    # ---- head: pair gather (one-hot matmuls, exact in f32) + torch.mul + MLP ----
    # TODO(synk): at realistic pair/entity counts, replace one-hot gather with
    #             scalar-prefetched index gathers (PrefetchScalarGridSpec).
    P = idx_d_ref.shape[0]
    oh_d = (idx_d_ref[...] ==
            jax.lax.broadcasted_iota(jnp.int32, (P, seq_d), 1)).astype(F32)
    oh_t = (idx_t_ref[...] ==
            jax.lax.broadcasted_iota(jnp.int32, (P, seq_t), 1)).astype(F32)

    # Per-entity 2H feature = [embedding-token half | graph-token half].
    dr_lo = jnp.dot(oh_d, dr[0:seq_d, :], preferred_element_type=F32)
    dr_hi = jnp.dot(oh_d, dr[seq_d:2 * seq_d, :], preferred_element_type=F32)
    pr_lo = jnp.dot(oh_t, pro[0:seq_t, :], preferred_element_type=F32)
    pr_hi = jnp.dot(oh_t, pro[seq_t:2 * seq_t, :], preferred_element_type=F32)

    h_lo = dr_lo * pr_lo                                          # torch.mul, low half
    h_hi = dr_hi * pr_hi                                          # torch.mul, high half

    # Linear(2H -> H) as split matmul (avoids lane concatenation).
    z = (jnp.dot(h_lo.astype(BF16), w1_ref[0:H, :], preferred_element_type=F32) +
         jnp.dot(h_hi.astype(BF16), w1_ref[H:2 * H, :], preferred_element_type=F32) +
         b1_ref[...])
    z = jnp.maximum(z, 0.0)
    z = jnp.maximum(
        jnp.dot(z.astype(BF16), w2_ref[...], preferred_element_type=F32)
        + b2_ref[...], 0.0)
    z = jnp.dot(z.astype(BF16), w3_ref[...], preferred_element_type=F32) + b3_ref[...]
    o_ref[...] = z.astype(o_ref.dtype)


# -------------------------- parameter packing (once) -------------------------

def _stack_w(layers, name):
    return jnp.stack([lp[name] for lp in layers]).astype(BF16)


def _stack_b(layers, name):
    return jnp.stack([lp[name].reshape(1, -1) for lp in layers]).astype(F32)


def _pack_tower(lin_w, lin_b, node_emb, gt_w, gt_b, layers):
    return dict(
        lin_w=lin_w.astype(BF16), lin_b=lin_b.reshape(1, -1).astype(F32),
        node=node_emb.astype(BF16), gt_w=gt_w.astype(BF16),
        gt_b=gt_b.reshape(1, -1).astype(F32),
        wq=_stack_w(layers, "wq"), bq=_stack_b(layers, "bq"),
        wk=_stack_w(layers, "wk"), bk=_stack_b(layers, "bk"),
        wv=_stack_w(layers, "wv"), bv=_stack_b(layers, "bv"),
        wo=_stack_w(layers, "wo"), bo=_stack_b(layers, "bo"),
        ln1g=_stack_b(layers, "ln1_g"), ln1b=_stack_b(layers, "ln1_b"),
        wf1=_stack_w(layers, "w_ff1"), bf1=_stack_b(layers, "b_ff1"),
        wf2=_stack_w(layers, "w_ff2"), bf2=_stack_b(layers, "b_ff2"),
        ln2g=_stack_b(layers, "ln2_g"), ln2b=_stack_b(layers, "ln2_b"),
    )


def pack_params(params, cfg):
    """Pre-stack per-layer weights, pad w3 lane-dense, pre-cast to bf16 (once)."""
    h, labels = cfg["num_hiddens"], cfg["labels"]
    lanes = ((labels + 127) // 128) * 128
    mlp = params["mlp"]
    w3p = jnp.zeros((h, lanes), F32).at[:, :labels].set(mlp["w3"]).astype(BF16)
    b3p = jnp.zeros((1, lanes), F32).at[:, :labels].set(mlp["b3"].reshape(1, -1))
    return dict(
        drug=_pack_tower(params["lin1_w"], params["lin1_b"],
                         params["drug_node_emb"], params["drug_gt_w"],
                         params["drug_gt_b"], params["drug_trans"]),
        target=_pack_tower(params["lin2_w"], params["lin2_b"],
                           params["tgt_node_emb"], params["tgt_gt_w"],
                           params["tgt_gt_b"], params["target_trans"]),
        head=dict(w1=mlp["w1"].astype(BF16), b1=mlp["b1"].reshape(1, -1).astype(F32),
                  w2=mlp["w2"].astype(BF16), b2=mlp["b2"].reshape(1, -1).astype(F32),
                  w3=w3p, b3=b3p),
    )


def _tower_args(feats, sim, tw):
    return [feats, tw["lin_w"], tw["lin_b"], sim, tw["node"], tw["gt_w"], tw["gt_b"],
            tw["wq"], tw["bq"], tw["wk"], tw["bk"], tw["wv"], tw["bv"],
            tw["wo"], tw["bo"], tw["ln1g"], tw["ln1b"],
            tw["wf1"], tw["bf1"], tw["wf2"], tw["bf2"], tw["ln2g"], tw["ln2b"]]


# ------------------------------- full forward --------------------------------

def make_forward(packed, cfg):
    num_layers, num_heads = cfg["num_layers"], cfg["num_heads"]
    labels = cfg["labels"]
    lanes = packed["head"]["w3"].shape[1]

    def fwd(drug_feats, target_feats, drug_sim, target_sim, walks_embedding, ddi):
        del walks_embedding  # unused in the reference forward pass
        seq_d, seq_t, P = drug_feats.shape[0], target_feats.shape[0], ddi.shape[0]
        idx_d = ddi[:, 0:1].astype(jnp.int32)
        idx_t = ddi[:, 1:2].astype(jnp.int32)
        hd = packed["head"]
        args = (_tower_args(drug_feats, drug_sim, packed["drug"])
                + _tower_args(target_feats, target_sim, packed["target"])
                + [idx_d, idx_t, hd["w1"], hd["b1"], hd["w2"], hd["b2"],
                   hd["w3"], hd["b3"]])
        out = pl.pallas_call(
            functools.partial(_fused_kernel, num_layers=num_layers,
                              num_heads=num_heads, seq_d=seq_d, seq_t=seq_t),
            out_shape=jax.ShapeDtypeStruct((P, lanes), F32),
            in_specs=[_VMEM] * len(args),
            out_specs=_VMEM,
            compiler_params=pltpu.CompilerParams(
                vmem_limit_bytes=32 * 1024 * 1024),
        )(*args)
        return out[:, :labels]

    return jax.jit(fwd)


# ------------------------------ parameter init -------------------------------

def _dense(key, shape, scale=0.05):
    return (scale * jax.random.normal(key, shape)).astype(F32)


def init_encoder_layer(key, h, ff):
    ks = jax.random.split(key, 6)
    return dict(
        wq=_dense(ks[0], (h, h)), bq=jnp.zeros((h,), F32),
        wk=_dense(ks[1], (h, h)), bk=jnp.zeros((h,), F32),
        wv=_dense(ks[2], (h, h)), bv=jnp.zeros((h,), F32),
        wo=_dense(ks[3], (h, h)), bo=jnp.zeros((h,), F32),
        ln1_g=jnp.ones((h,), F32), ln1_b=jnp.zeros((h,), F32),
        ln2_g=jnp.ones((h,), F32), ln2_b=jnp.zeros((h,), F32),
        w_ff1=_dense(ks[4], (h, ff)), b_ff1=jnp.zeros((ff,), F32),
        w_ff2=_dense(ks[5], (ff, h)), b_ff2=jnp.zeros((h,), F32),
    )


def init_params(key, cfg):
    h, ff = cfg["num_hiddens"], cfg["dim_feedforward"]
    keys = jax.random.split(key, 12)
    drug_trans = [init_encoder_layer(k, h, ff)
                  for k in jax.random.split(keys[9], cfg["num_layers"])]
    target_trans = [init_encoder_layer(k, h, ff)
                    for k in jax.random.split(keys[10], cfg["num_layers"])]
    return dict(
        lin1_w=_dense(keys[0], (cfg["drug_in_dim"], cfg["embed_size"])),
        lin1_b=jnp.zeros((cfg["embed_size"],), F32),
        lin2_w=_dense(keys[1], (cfg["target_in_dim"], cfg["embed_size"])),
        lin2_b=jnp.zeros((cfg["embed_size"],), F32),
        drug_node_emb=_dense(keys[2], (cfg["num_drugs"], cfg["gt_out_dim"])),
        drug_gt_w=_dense(keys[3], (cfg["gt_out_dim"], cfg["gt_out_dim"])),
        drug_gt_b=jnp.zeros((cfg["gt_out_dim"],), F32),
        tgt_node_emb=_dense(keys[4], (cfg["num_targets"], cfg["gt_out_dim"])),
        tgt_gt_w=_dense(keys[5], (cfg["gt_out_dim"], cfg["gt_out_dim"])),
        tgt_gt_b=jnp.zeros((cfg["gt_out_dim"],), F32),
        drug_trans=drug_trans,
        target_trans=target_trans,
        mlp=dict(
            w1=_dense(keys[6], (2 * h, h)), b1=jnp.zeros((h,), F32),
            w2=_dense(keys[7], (h, h)), b2=jnp.zeros((h,), F32),
            w3=_dense(keys[8], (h, cfg["labels"])),
            b3=jnp.zeros((cfg["labels"],), F32),
        ),
    )


# ------------------------------------ main -----------------------------------

if __name__ == "__main__":
    cfg = dict(
        drug_in_dim=64, target_in_dim=48, embed_size=32, num_hiddens=32,
        num_layers=2, num_heads=4, labels=2, gt_out_dim=32,
        dim_feedforward=2048,            # PyTorch TransformerEncoderLayer default
        num_drugs=8, num_targets=8, num_pairs=16,
    )
    key = jax.random.PRNGKey(0)
    kp, kd = jax.random.split(key)
    params = init_params(kp, cfg)
    packed = pack_params(params, cfg)    # stacked / padded / bf16-cast ONCE
    forward = make_forward(packed, cfg)  # jitted

    ks = jax.random.split(kd, 7)
    drug_feats = jax.random.normal(ks[0], (cfg["num_drugs"], cfg["drug_in_dim"]), F32)
    target_feats = jax.random.normal(ks[1], (cfg["num_targets"], cfg["target_in_dim"]), F32)
    drug_sim = jax.nn.softmax(
        jax.random.normal(ks[2], (cfg["num_drugs"], cfg["num_drugs"]), F32), axis=-1)
    target_sim = jax.nn.softmax(
        jax.random.normal(ks[3], (cfg["num_targets"], cfg["num_targets"]), F32), axis=-1)
    walks_embedding = jax.random.normal(ks[4], (cfg["num_drugs"], 16), F32)  # unused
    ddi = jnp.stack(
        [jax.random.randint(ks[5], (cfg["num_pairs"],), 0, cfg["num_drugs"]),
         jax.random.randint(ks[6], (cfg["num_pairs"],), 0, cfg["num_targets"])],
        axis=1).astype(jnp.int32)

    out = forward(drug_feats, target_feats, drug_sim, target_sim,
                  walks_embedding, ddi)
    out = jax.block_until_ready(out)
    assert out.shape == (cfg["num_pairs"], cfg["labels"])
    assert bool(jnp.all(jnp.isfinite(out)))
    print("KERNEL_OK")
</pallas_src>

<mosaic_0001>
module attributes {stable_mosaic.version = 11 : i64} {
  func.func @_fused_kernel(%arg0: memref<8x64xf32, #tpu.memory_space<vmem>>, %arg1: memref<64x32xbf16, #tpu.memory_space<vmem>>, %arg2: memref<1x32xf32, #tpu.memory_space<vmem>>, %arg3: memref<8x8xf32, #tpu.memory_space<vmem>>, %arg4: memref<8x32xbf16, #tpu.memory_space<vmem>>, %arg5: memref<32x32xbf16, #tpu.memory_space<vmem>>, %arg6: memref<1x32xf32, #tpu.memory_space<vmem>>, %arg7: memref<2x32x32xbf16, #tpu.memory_space<vmem>>, %arg8: memref<2x1x32xf32, #tpu.memory_space<vmem>>, %arg9: memref<2x32x32xbf16, #tpu.memory_space<vmem>>, %arg10: memref<2x1x32xf32, #tpu.memory_space<vmem>>, %arg11: memref<2x32x32xbf16, #tpu.memory_space<vmem>>, %arg12: memref<2x1x32xf32, #tpu.memory_space<vmem>>, %arg13: memref<2x32x32xbf16, #tpu.memory_space<vmem>>, %arg14: memref<2x1x32xf32, #tpu.memory_space<vmem>>, %arg15: memref<2x1x32xf32, #tpu.memory_space<vmem>>, %arg16: memref<2x1x32xf32, #tpu.memory_space<vmem>>, %arg17: memref<2x32x2048xbf16, #tpu.memory_space<vmem>>, %arg18: memref<2x1x2048xf32, #tpu.memory_space<vmem>>, %arg19: memref<2x2048x32xbf16, #tpu.memory_space<vmem>>, %arg20: memref<2x1x32xf32, #tpu.memory_space<vmem>>, %arg21: memref<2x1x32xf32, #tpu.memory_space<vmem>>, %arg22: memref<2x1x32xf32, #tpu.memory_space<vmem>>, %arg23: memref<8x48xf32, #tpu.memory_space<vmem>>, %arg24: memref<48x32xbf16, #tpu.memory_space<vmem>>, %arg25: memref<1x32xf32, #tpu.memory_space<vmem>>, %arg26: memref<8x8xf32, #tpu.memory_space<vmem>>, %arg27: memref<8x32xbf16, #tpu.memory_space<vmem>>, %arg28: memref<32x32xbf16, #tpu.memory_space<vmem>>, %arg29: memref<1x32xf32, #tpu.memory_space<vmem>>, %arg30: memref<2x32x32xbf16, #tpu.memory_space<vmem>>, %arg31: memref<2x1x32xf32, #tpu.memory_space<vmem>>, %arg32: memref<2x32x32xbf16, #tpu.memory_space<vmem>>, %arg33: memref<2x1x32xf32, #tpu.memory_space<vmem>>, %arg34: memref<2x32x32xbf16, #tpu.memory_space<vmem>>, %arg35: memref<2x1x32xf32, #tpu.memory_space<vmem>>, %arg36: memref<2x32x32xbf16, #tpu.memory_space<vmem>>, %arg37: memref<2x1x32xf32, #tpu.memory_space<vmem>>, %arg38: memref<2x1x32xf32, #tpu.memory_space<vmem>>, %arg39: memref<2x1x32xf32, #tpu.memory_space<vmem>>, %arg40: memref<2x32x2048xbf16, #tpu.memory_space<vmem>>, %arg41: memref<2x1x2048xf32, #tpu.memory_space<vmem>>, %arg42: memref<2x2048x32xbf16, #tpu.memory_space<vmem>>, %arg43: memref<2x1x32xf32, #tpu.memory_space<vmem>>, %arg44: memref<2x1x32xf32, #tpu.memory_space<vmem>>, %arg45: memref<2x1x32xf32, #tpu.memory_space<vmem>>, %arg46: memref<16x1xi32, #tpu.memory_space<vmem>>, %arg47: memref<16x1xi32, #tpu.memory_space<vmem>>, %arg48: memref<64x32xbf16, #tpu.memory_space<vmem>>, %arg49: memref<1x32xf32, #tpu.memory_space<vmem>>, %arg50: memref<32x32xbf16, #tpu.memory_space<vmem>>, %arg51: memref<1x32xf32, #tpu.memory_space<vmem>>, %arg52: memref<32x128xbf16, #tpu.memory_space<vmem>>, %arg53: memref<1x128xf32, #tpu.memory_space<vmem>>, %arg54: memref<16x128xf32, #tpu.memory_space<vmem>>) attributes {dimension_semantics = [], scalar_prefetch = 0 : i64, scratch_operands = 0 : i64, tpu.core_type = #tpu.core_type<tc>} {
    %c0 = arith.constant 0 : index
    %c0_0 = arith.constant 0 : index
    %0 = vector.load %arg0[%c0, %c0_0] : memref<8x64xf32, #tpu.memory_space<vmem>>, vector<8x64xf32>
    %1 = arith.truncf %0 : vector<8x64xf32> to vector<8x64xbf16>
    %c0_1 = arith.constant 0 : index
    %c0_2 = arith.constant 0 : index
    %2 = vector.load %arg1[%c0_1, %c0_2] : memref<64x32xbf16, #tpu.memory_space<vmem>>, vector<64x32xbf16>
    %cst = arith.constant dense<0.000000e+00> : vector<8x32xf32>
    %3 = tpu.matmul %1, %2, %cst {dimension_numbers = #tpu.dot_dimension_numbers<[1], [0], [0], [1], [0, 0, 1, 1], [], []>} : vector<8x64xbf16>, vector<64x32xbf16>, vector<8x32xf32> -> vector<8x32xf32>
    %c0_3 = arith.constant 0 : index
    %c0_4 = arith.constant 0 : index
    %4 = vector.load %arg2[%c0_3, %c0_4] : memref<1x32xf32, #tpu.memory_space<vmem>>, vector<1x32xf32>
    %5 = vector.broadcast %4 : vector<1x32xf32> to vector<8x32xf32>
    %6 = arith.addf %3, %5 : vector<8x32xf32>
    %c0_5 = arith.constant 0 : index
    %c0_6 = arith.constant 0 : index
    %7 = vector.load %arg4[%c0_5, %c0_6] : memref<8x32xbf16, #tpu.memory_space<vmem>>, vector<8x32xbf16>
    %c0_7 = arith.constant 0 : index
    %c0_8 = arith.constant 0 : index
    %8 = vector.load %arg5[%c0_7, %c0_8] : memref<32x32xbf16, #tpu.memory_space<vmem>>, vector<32x32xbf16>
    %cst_9 = arith.constant dense<0.000000e+00> : vector<8x32xf32>
    %9 = tpu.matmul %7, %8, %cst_9 {dimension_numbers = #tpu.dot_dimension_numbers<[1], [0], [0], [1], [0, 0, 1, 1], [], []>} : vector<8x32xbf16>, vector<32x32xbf16>, vector<8x32xf32> -> vector<8x32xf32>
    %c0_10 = arith.constant 0 : index
    %c0_11 = arith.constant 0 : index
    %10 = vector.load %arg3[%c0_10, %c0_11] : memref<8x8xf32, #tpu.memory_space<vmem>>, vector<8x8xf32>
    %11 = arith.truncf %10 : vector<8x8xf32> to vector<8x8xbf16>
    %12 = arith.truncf %9 : vector<8x32xf32> to vector<8x32xbf16>
    %cst_12 = arith.constant dense<0.000000e+00> : vector<8x32xf32>
    %13 = tpu.matmul %11, %12, %cst_12 {dimension_numbers = #tpu.dot_dimension_numbers<[1], [0], [0], [1], [0, 0, 1, 1], [], []>} : vector<8x8xbf16>, vector<8x32xbf16>, vector<8x32xf32> -> vector<8x32xf32>
    %c0_13 = arith.constant 0 : index
    %c0_14 = arith.constant 0 : index
    %14 = vector.load %arg6[%c0_13, %c0_14] : memref<1x32xf32, #tpu.memory_space<vmem>>, vector<1x32xf32>
    %15 = vector.broadcast %14 : vector<1x32xf32> to vector<8x32xf32>
    %16 = arith.addf %13, %15 : vector<8x32xf32>
    %cst_15 = arith.constant 0.000000e+00 : f32
    %17 = vector.broadcast %cst_15 : f32 to vector<8x32xf32>
    %18 = arith.maximumf %16, %17 : vector<8x32xf32>
    %19 = tpu.concatenate %6, %18 in 0 : vector<8x32xf32>, vector<8x32xf32> -> vector<16x32xf32>
    %20 = tpu.iota {dimensions = array<i32: 1>} : vector<1x32xi32>
    %c0_i32 = arith.constant 0 : i32
    %21 = vector.broadcast %c0_i32 : i32 to vector<1x32xi32>
    %22 = arith.cmpi sge, %20, %21 : vector<1x32xi32>
    %c8_i32 = arith.constant 8 : i32
    %23 = vector.broadcast %c8_i32 : i32 to vector<1x32xi32>
    %24 = arith.cmpi slt, %20, %23 : vector<1x32xi32>
    %25 = arith.andi %22, %24 : vector<1x32xi1>
    %26 = arith.extui %25 : vector<1x32xi1> to vector<1x32xi32>
    %27 = arith.sitofp %26 : vector<1x32xi32> to vector<1x32xf32>
    %c8_i32_16 = arith.constant 8 : i32
    %28 = vector.broadcast %c8_i32_16 : i32 to vector<1x32xi32>
    %29 = arith.cmpi sge, %20, %28 : vector<1x32xi32>
    %c16_i32 = arith.constant 16 : i32
    %30 = vector.broadcast %c16_i32 : i32 to vector<1x32xi32>
    %31 = arith.cmpi slt, %20, %30 : vector<1x32xi32>
    %32 = arith.andi %29, %31 : vector<1x32xi1>
    %33 = arith.extui %32 : vector<1x32xi1> to vector<1x32xi32>
    %34 = arith.sitofp %33 : vector<1x32xi32> to vector<1x32xf32>
    %c16_i32_17 = arith.constant 16 : i32
    %35 = vector.broadcast %c16_i32_17 : i32 to vector<1x32xi32>
    %36 = arith.cmpi sge, %20, %35 : vector<1x32xi32>
    %c24_i32 = arith.constant 24 : i32
    %37 = vector.broadcast %c24_i32 : i32 to vector<1x32xi32>
    %38 = arith.cmpi slt, %20, %37 : vector<1x32xi32>
    %39 = arith.andi %36, %38 : vector<1x32xi1>
    %40 = arith.extui %39 : vector<1x32xi1> to vector<1x32xi32>
    %41 = arith.sitofp %40 : vector<1x32xi32> to vector<1x32xf32>
    %c24_i32_18 = arith.constant 24 : i32
    %42 = vector.broadcast %c24_i32_18 : i32 to vector<1x32xi32>
    %43 = arith.cmpi sge, %20, %42 : vector<1x32xi32>
    %c32_i32 = arith.constant 32 : i32
    %44 = vector.broadcast %c32_i32 : i32 to vector<1x32xi32>
    %45 = arith.cmpi slt, %20, %44 : vector<1x32xi32>
    %46 = arith.andi %43, %45 : vector<1x32xi1>
    %47 = arith.extui %46 : vector<1x32xi1> to vector<1x32xi32>
    %48 = arith.sitofp %47 : vector<1x32xi32> to vector<1x32xf32>
    %49 = tpu.iota {dimensions = array<i32: 0>} : vector<16x16xi32>
    %50 = tpu.iota {dimensions = array<i32: 1>} : vector<16x16xi32>
    %c8_i32_19 = arith.constant 8 : i32
    %51 = vector.broadcast %c8_i32_19 : i32 to vector<16x16xi32>
    %52 = arith.cmpi slt, %49, %51 : vector<16x16xi32>
    %c8_i32_20 = arith.constant 8 : i32
    %53 = vector.broadcast %c8_i32_20 : i32 to vector<16x16xi32>
    %54 = arith.cmpi slt, %50, %53 : vector<16x16xi32>
    %55 = arith.xori %52, %54 : vector<16x16xi1>
    %cst_21 = arith.constant -1.000000e+30 : f32
    %cst_22 = arith.constant 0.000000e+00 : f32
    %56 = vector.broadcast %cst_21 : f32 to vector<16x16xf32>
    %57 = vector.broadcast %cst_22 : f32 to vector<16x16xf32>
    %58 = arith.select %55, %56, %57 : vector<16x16xi1>, vector<16x16xf32>
    %59 = tpu.concatenate %58, %58, %58, %58 in 0 : vector<16x16xf32>, vector<16x16xf32>, vector<16x16xf32>, vector<16x16xf32> -> vector<64x16xf32>
    %60 = arith.truncf %19 : vector<16x32xf32> to vector<16x32xbf16>
    %c0_23 = arith.constant 0 : index
    %c0_24 = arith.constant 0 : index
    %c0_25 = arith.constant 0 : index
    %61 = vector.load %arg7[%c0_23, %c0_24, %c0_25] : memref<2x32x32xbf16, #tpu.memory_space<vmem>>, vector<1x32x32xbf16>
    %62 = vector.shape_cast %61 : vector<1x32x32xbf16> to vector<32x32xbf16>
    %cst_26 = arith.constant dense<0.000000e+00> : vector<16x32xf32>
    %63 = tpu.matmul %60, %62, %cst_26 {dimension_numbers = #tpu.dot_dimension_numbers<[1], [0], [0], [1], [0, 0, 1, 1], [], []>} : vector<16x32xbf16>, vector<32x32xbf16>, vector<16x32xf32> -> vector<16x32xf32>
    %c0_27 = arith.constant 0 : index
    %c0_28 = arith.constant 0 : index
    %c0_29 = arith.constant 0 : index
    %64 = vector.load %arg8[%c0_27, %c0_28, %c0_29] : memref<2x1x32xf32, #tpu.memory_space<vmem>>, vector<1x1x32xf32>
    %65 = vector.shape_cast %64 : vector<1x1x32xf32> to vector<1x32xf32>
    %66 = vector.broadcast %65 : vector<1x32xf32> to vector<16x32xf32>
    %67 = arith.addf %63, %66 : vector<16x32xf32>
    %c0_30 = arith.constant 0 : index
    %c0_31 = arith.constant 0 : index
    %c0_32 = arith.constant 0 : index
    %68 = vector.load %arg9[%c0_30, %c0_31, %c0_32] : memref<2x32x32xbf16, #tpu.memory_space<vmem>>, vector<1x32x32xbf16>
    %69 = vector.shape_cast %68 : vector<1x32x32xbf16> to vector<32x32xbf16>
    %cst_33 = arith.constant dense<0.000000e+00> : vector<16x32xf32>
    %70 = tpu.matmul %60, %69, %cst_33 {dimension_numbers = #tpu.dot_dimension_numbers<[1], [0], [0], [1], [0, 0, 1, 1], [], []>} : vector<16x32xbf16>, vector<32x32xbf16>, vector<16x32xf32> -> vector<16x32xf32>
    %c0_34 = arith.constant 0 : index
    %c0_35 = arith.constant 0 : index
    %c0_36 = arith.constant 0 : index
    %71 = vector.load %arg10[%c0_34, %c0_35, %c0_36] : memref<2x1x32xf32, #tpu.memory_space<vmem>>, vector<1x1x32xf32>
    %72 = vector.shape_cast %71 : vector<1x1x32xf32> to vector<1x32xf32>
    %73 = vector.broadcast %72 : vector<1x32xf32> to vector<16x32xf32>
    %74 = arith.addf %70, %73 : vector<16x32xf32>
    %c0_37 = arith.constant 0 : index
    %c0_38 = arith.constant 0 : index
    %c0_39 = arith.constant 0 : index
    %75 = vector.load %arg11[%c0_37, %c0_38, %c0_39] : memref<2x32x32xbf16, #tpu.memory_space<vmem>>, vector<1x32x32xbf16>
    %76 = vector.shape_cast %75 : vector<1x32x32xbf16> to vector<32x32xbf16>
    %cst_40 = arith.constant dense<0.000000e+00> : vector<16x32xf32>
    %77 = tpu.matmul %60, %76, %cst_40 {dimension_numbers = #tpu.dot_dimension_numbers<[1], [0], [0], [1], [0, 0, 1, 1], [], []>} : vector<16x32xbf16>, vector<32x32xbf16>, vector<16x32xf32> -> vector<16x32xf32>
    %c0_41 = arith.constant 0 : index
    %c0_42 = arith.constant 0 : index
    %c0_43 = arith.constant 0 : index
    %78 = vector.load %arg12[%c0_41, %c0_42, %c0_43] : memref<2x1x32xf32, #tpu.memory_space<vmem>>, vector<1x1x32xf32>
    %79 = vector.shape_cast %78 : vector<1x1x32xf32> to vector<1x32xf32>
    %80 = vector.broadcast %79 : vector<1x32xf32> to vector<16x32xf32>
    %81 = arith.addf %77, %80 : vector<16x32xf32>
    %82 = vector.broadcast %27 : vector<1x32xf32> to vector<16x32xf32>
    %83 = arith.mulf %67, %82 : vector<16x32xf32>
    %84 = vector.broadcast %34 : vector<1x32xf32> to vector<16x32xf32>
    %85 = arith.mulf %67, %84 : vector<16x32xf32>
    %86 = vector.broadcast %41 : vector<1x32xf32> to vector<16x32xf32>
    %87 = arith.mulf %67, %86 : vector<16x32xf32>
    %88 = vector.broadcast %48 : vector<1x32xf32> to vector<16x32xf32>
    %89 = arith.mulf %67, %88 : vector<16x32xf32>
    %90 = tpu.concatenate %83, %85, %87, %89 in 0 : vector<16x32xf32>, vector<16x32xf32>, vector<16x32xf32>, vector<16x32xf32> -> vector<64x32xf32>
    %91 = arith.truncf %90 : vector<64x32xf32> to vector<64x32xbf16>
    %92 = arith.truncf %74 : vector<16x32xf32> to vector<16x32xbf16>
    %cst_44 = arith.constant dense<0.000000e+00> : vector<64x16xf32>
    %93 = tpu.matmul %91, %92, %cst_44 {dimension_numbers = #tpu.dot_dimension_numbers<[1], [1], [0], [0], [0, 0, 1, 0], [], []>} : vector<64x32xbf16>, vector<16x32xbf16>, vector<64x16xf32> -> vector<64x16xf32>
    %cst_45 = arith.constant 0.353553385 : f32
    %94 = vector.broadcast %cst_45 : f32 to vector<64x16xf32>
    %95 = arith.mulf %93, %94 : vector<64x16xf32>
    %96 = arith.addf %95, %59 : vector<64x16xf32>
    %cst_46 = arith.constant dense<0xFF800000> : vector<64xf32>
    %97 = vector.multi_reduction <maximumf>, %96, %cst_46 [1] : vector<64x16xf32> to vector<64xf32>
    %98 = vector.shape_cast %97 : vector<64xf32> to vector<64x1xf32>
    %99 = vector.broadcast %98 : vector<64x1xf32> to vector<64x16xf32>
    %100 = arith.subf %96, %99 : vector<64x16xf32>
    %101 = math.exp %100 : vector<64x16xf32>
    %cst_47 = arith.constant dense<0.000000e+00> : vector<64xf32>
    %102 = vector.multi_reduction <add>, %101, %cst_47 [1] : vector<64x16xf32> to vector<64xf32>
    %103 = vector.shape_cast %102 : vector<64xf32> to vector<64x1xf32>
    %104 = vector.broadcast %103 : vector<64x1xf32> to vector<64x16xf32>
    %105 = arith.divf %101, %104 : vector<64x16xf32>
    %106 = arith.truncf %105 : vector<64x16xf32> to vector<64x16xbf16>
    %107 = arith.truncf %81 : vector<16x32xf32> to vector<16x32xbf16>
    %cst_48 = arith.constant dense<0.000000e+00> : vector<64x32xf32>
    %108 = tpu.matmul %106, %107, %cst_48 {dimension_numbers = #tpu.dot_dimension_numbers<[1], [0], [0], [1], [0, 0, 1, 1], [], []>} : vector<64x16xbf16>, vector<16x32xbf16>, vector<64x32xf32> -> vector<64x32xf32>
    %cst_49 = arith.constant 0.000000e+00 : f32
    %109 = vector.broadcast %cst_49 : f32 to vector<16x32xf32>
    %110 = vector.extract_strided_slice %108 {offsets = [0, 0], sizes = [16, 32], strides = [1, 1]} : vector<64x32xf32> to vector<16x32xf32>
    %111 = vector.broadcast %27 : vector<1x32xf32> to vector<16x32xf32>
    %112 = arith.mulf %110, %111 : vector<16x32xf32>
    %113 = arith.addf %109, %112 : vector<16x32xf32>
    %114 = vector.extract_strided_slice %108 {offsets = [16, 0], sizes = [16, 32], strides = [1, 1]} : vector<64x32xf32> to vector<16x32xf32>
    %115 = vector.broadcast %34 : vector<1x32xf32> to vector<16x32xf32>
    %116 = arith.mulf %114, %115 : vector<16x32xf32>
    %117 = arith.addf %113, %116 : vector<16x32xf32>
    %118 = vector.extract_strided_slice %108 {offsets = [32, 0], sizes = [16, 32], strides = [1, 1]} : vector<64x32xf32> to vector<16x32xf32>
    %119 = vector.broadcast %41 : vector<1x32xf32> to vector<16x32xf32>
    %120 = arith.mulf %118, %119 : vector<16x32xf32>
    %121 = arith.addf %117, %120 : vector<16x32xf32>
    %122 = vector.extract_strided_slice %108 {offsets = [48, 0], sizes = [16, 32], strides = [1, 1]} : vector<64x32xf32> to vector<16x32xf32>
    %123 = vector.broadcast %48 : vector<1x32xf32> to vector<16x32xf32>
    %124 = arith.mulf %122, %123 : vector<16x32xf32>
    %125 = arith.addf %121, %124 : vector<16x32xf32>
    %126 = arith.truncf %125 : vector<16x32xf32> to vector<16x32xbf16>
    %c0_50 = arith.constant 0 : index
    %c0_51 = arith.constant 0 : index
    %c0_52 = arith.constant 0 : index
    %127 = vector.load %arg13[%c0_50, %c0_51, %c0_52] : memref<2x32x32xbf16, #tpu.memory_space<vmem>>, vector<1x32x32xbf16>
    %128 = vector.shape_cast %127 : vector<1x32x32xbf16> to vector<32x32xbf16>
    %cst_53 = arith.constant dense<0.000000e+00> : vector<16x32xf32>
    %129 = tpu.matmul %126, %128, %cst_53 {dimension_numbers = #tpu.dot_dimension_numbers<[1], [0], [0], [1], [0, 0, 1, 1], [], []>} : vector<16x32xbf16>, vector<32x32xbf16>, vector<16x32xf32> -> vector<16x32xf32>
    %c0_54 = arith.constant 0 : index
    %c0_55 = arith.constant 0 : index
    %c0_56 = arith.constant 0 : index
    %130 = vector.load %arg14[%c0_54, %c0_55, %c0_56] : memref<2x1x32xf32, #tpu.memory_space<vmem>>, vector<1x1x32xf32>
    %131 = vector.shape_cast %130 : vector<1x1x32xf32> to vector<1x32xf32>
    %132 = vector.broadcast %131 : vector<1x32xf32> to vector<16x32xf32>
    %133 = arith.addf %129, %132 : vector<16x32xf32>
    %134 = arith.addf %19, %133 : vector<16x32xf32>
    %c0_57 = arith.constant 0 : index
    %c0_58 = arith.constant 0 : index
    %c0_59 = arith.constant 0 : index
    %135 = vector.load %arg15[%c0_57, %c0_58, %c0_59] : memref<2x1x32xf32, #tpu.memory_space<vmem>>, vector<1x1x32xf32>
    %136 = vector.shape_cast %135 : vector<1x1x32xf32> to vector<1x32xf32>
    %c0_60 = arith.constant 0 : index
    %c0_61 = arith.constant 0 : index
    %c0_62 = arith.constant 0 : index
    %137 = vector.load %arg16[%c0_60, %c0_61, %c0_62] : memref<2x1x32xf32, #tpu.memory_space<vmem>>, vector<1x1x32xf32>
    %138 = vector.shape_cast %137 : vector<1x1x32xf32> to vector<1x32xf32>
    %cst_63 = arith.constant dense<0.000000e+00> : vector<16xf32>
    %139 = vector.multi_reduction <add>, %134, %cst_63 [1] : vector<16x32xf32> to vector<16xf32>
    %140 = vector.shape_cast %139 : vector<16xf32> to vector<16x1xf32>
    %cst_64 = arith.constant 3.200000e+01 : f32
    %141 = vector.broadcast %cst_64 : f32 to vector<16x1xf32>
    %142 = arith.divf %140, %141 : vector<16x1xf32>
    %143 = vector.broadcast %142 : vector<16x1xf32> to vector<16x32xf32>
    %144 = arith.subf %134, %143 : vector<16x32xf32>
    %145 = arith.mulf %144, %144 : vector<16x32xf32>
    %cst_65 = arith.constant dense<0.000000e+00> : vector<16xf32>
    %146 = vector.multi_reduction <add>, %145, %cst_65 [1] : vector<16x32xf32> to vector<16xf32>
    %147 = vector.shape_cast %146 : vector<16xf32> to vector<16x1xf32>
    %cst_66 = arith.constant 3.200000e+01 : f32
    %148 = vector.broadcast %cst_66 : f32 to vector<16x1xf32>
    %149 = arith.divf %147, %148 : vector<16x1xf32>
    %150 = vector.broadcast %142 : vector<16x1xf32> to vector<16x32xf32>
    %151 = arith.subf %134, %150 : vector<16x32xf32>
    %cst_67 = arith.constant 9.99999974E-6 : f32
    %152 = vector.broadcast %cst_67 : f32 to vector<16x1xf32>
    %153 = arith.addf %149, %152 : vector<16x1xf32>
    %154 = math.rsqrt %153 : vector<16x1xf32>
    %155 = vector.broadcast %154 : vector<16x1xf32> to vector<16x32xf32>
    %156 = arith.mulf %151, %155 : vector<16x32xf32>
    %157 = vector.broadcast %136 : vector<1x32xf32> to vector<16x32xf32>
    %158 = arith.mulf %156, %157 : vector<16x32xf32>
    %159 = vector.broadcast %138 : vector<1x32xf32> to vector<16x32xf32>
    %160 = arith.addf %158, %159 : vector<16x32xf32>
    %161 = arith.truncf %160 : vector<16x32xf32> to vector<16x32xbf16>
    %c0_68 = arith.constant 0 : index
    %c0_69 = arith.constant 0 : index
    %c0_70 = arith.constant 0 : index
    %162 = vector.load %arg17[%c0_68, %c0_69, %c0_70] : memref<2x32x2048xbf16, #tpu.memory_space<vmem>>, vector<1x32x2048xbf16>
    %163 = vector.shape_cast %162 : vector<1x32x2048xbf16> to vector<32x2048xbf16>
    %cst_71 = arith.constant dense<0.000000e+00> : vector<16x2048xf32>
    %164 = tpu.matmul %161, %163, %cst_71 {dimension_numbers = #tpu.dot_dimension_numbers<[1], [0], [0], [1], [0, 0, 1, 1], [], []>} : vector<16x32xbf16>, vector<32x2048xbf16>, vector<16x2048xf32> -> vector<16x2048xf32>
    %c0_72 = arith.constant 0 : index
    %c0_73 = arith.constant 0 : index
    %c0_74 = arith.constant 0 : index
    %165 = vector.load %arg18[%c0_72, %c0_73, %c0_74] : memref<2x1x2048xf32, #tpu.memory_space<vmem>>, vector<1x1x2048xf32>
    %166 = vector.shape_cast %165 : vector<1x1x2048xf32> to vector<1x2048xf32>
    %167 = vector.broadcast %166 : vector<1x2048xf32> to vector<16x2048xf32>
    %168 = arith.addf %164, %167 : vector<16x2048xf32>
    %cst_75 = arith.constant 0.000000e+00 : f32
    %169 = vector.broadcast %cst_75 : f32 to vector<16x2048xf32>
    %170 = arith.maximumf %168, %169 : vector<16x2048xf32>
    %171 = arith.truncf %170 : vector<16x2048xf32> to vector<16x2048xbf16>
    %c0_76 = arith.constant 0 : index
    %c0_77 = arith.constant 0 : index
    %c0_78 = arith.constant 0 : index
    %172 = vector.load %arg19[%c0_76, %c0_77, %c0_78] : memref<2x2048x32xbf16, #tpu.memory_space<vmem>>, vector<1x2048x32xbf16>
    %173 = vector.shape_cast %172 : vector<1x2048x32xbf16> to vector<2048x32xbf16>
    %cst_79 = arith.constant dense<0.000000e+00> : vector<16x32xf32>
    %174 = tpu.matmul %171, %173, %cst_79 {dimension_numbers = #tpu.dot_dimension_numbers<[1], [0], [0], [1], [0, 0, 1, 1], [], []>} : vector<16x2048xbf16>, vector<2048x32xbf16>, vector<16x32xf32> -> vector<16x32xf32>
    %c0_80 = arith.constant 0 : index
    %c0_81 = arith.constant 0 : index
    %c0_82 = arith.constant 0 : index
    %175 = vector.load %arg20[%c0_80, %c0_81, %c0_82] : memref<2x1x32xf32, #tpu.memory_space<vmem>>, vector<1x1x32xf32>
    %176 = vector.shape_cast %175 : vector<1x1x32xf32> to vector<1x32xf32>
    %177 = vector.broadcast %176 : vector<1x32xf32> to vector<16x32xf32>
    %178 = arith.addf %174, %177 : vector<16x32xf32>
    %179 = arith.addf %160, %178 : vector<16x32xf32>
    %c0_83 = arith.constant 0 : index
    %c0_84 = arith.constant 0 : index
    %c0_85 = arith.constant 0 : index
    %180 = vector.load %arg21[%c0_83, %c0_84, %c0_85] : memref<2x1x32xf32, #tpu.memory_space<vmem>>, vector<1x1x32xf32>
    %181 = vector.shape_cast %180 : vector<1x1x32xf32> to vector<1x32xf32>
    %c0_86 = arith.constant 0 : index
    %c0_87 = arith.constant 0 : index
    %c0_88 = arith.constant 0 : index
    %182 = vector.load %arg22[%c0_86, %c0_87, %c0_88] : memref<2x1x32xf32, #tpu.memory_space<vmem>>, vector<1x1x32xf32>
    %183 = vector.shape_cast %182 : vector<1x1x32xf32> to vector<1x32xf32>
    %cst_89 = arith.constant dense<0.000000e+00> : vector<16xf32>
    %184 = vector.multi_reduction <add>, %179, %cst_89 [1] : vector<16x32xf32> to vector<16xf32>
    %185 = vector.shape_cast %184 : vector<16xf32> to vector<16x1xf32>
    %cst_90 = arith.constant 3.200000e+01 : f32
    %186 = vector.broadcast %cst_90 : f32 to vector<16x1xf32>
    %187 = arith.divf %185, %186 : vector<16x1xf32>
    %188 = vector.broadcast %187 : vector<16x1xf32> to vector<16x32xf32>
    %189 = arith.subf %179, %188 : vector<16x32xf32>
    %190 = arith.mulf %189, %189 : vector<16x32xf32>
    %cst_91 = arith.constant dense<0.000000e+00> : vector<16xf32>
    %191 = vector.multi_reduction <add>, %190, %cst_91 [1] : vector<16x32xf32> to vector<16xf32>
    %192 = vector.shape_cast %191 : vector<16xf32> to vector<16x1xf32>
    %cst_92 = arith.constant 3.200000e+01 : f32
    %193 = vector.broadcast %cst_92 : f32 to vector<16x1xf32>
    %194 = arith.divf %192, %193 : vector<16x1xf32>
    %195 = vector.broadcast %187 : vector<16x1xf32> to vector<16x32xf32>
    %196 = arith.subf %179, %195 : vector<16x32xf32>
    %cst_93 = arith.constant 9.99999974E-6 : f32
    %197 = vector.broadcast %cst_93 : f32 to vector<16x1xf32>
    %198 = arith.addf %194, %197 : vector<16x1xf32>
    %199 = math.rsqrt %198 : vector<16x1xf32>
    %200 = vector.broadcast %199 : vector<16x1xf32> to vector<16x32xf32>
    %201 = arith.mulf %196, %200 : vector<16x32xf32>
    %202 = vector.broadcast %181 : vector<1x32xf32> to vector<16x32xf32>
    %203 = arith.mulf %201, %202 : vector<16x32xf32>
    %204 = vector.broadcast %183 : vector<1x32xf32> to vector<16x32xf32>
    %205 = arith.addf %203, %204 : vector<16x32xf32>
    %206 = arith.truncf %205 : vector<16x32xf32> to vector<16x32xbf16>
    %c1 = arith.constant 1 : index
    %c0_94 = arith.constant 0 : index
    %c0_95 = arith.constant 0 : index
    %207 = vector.load %arg7[%c1, %c0_94, %c0_95] : memref<2x32x32xbf16, #tpu.memory_space<vmem>>, vector<1x32x32xbf16>
    %208 = vector.shape_cast %207 : vector<1x32x32xbf16> to vector<32x32xbf16>
    %cst_96 = arith.constant dense<0.000000e+00> : vector<16x32xf32>
    %209 = tpu.matmul %206, %208, %cst_96 {dimension_numbers = #tpu.dot_dimension_numbers<[1], [0], [0], [1], [0, 0, 1, 1], [], []>} : vector<16x32xbf16>, vector<32x32xbf16>, vector<16x32xf32> -> vector<16x32xf32>
    %c1_97 = arith.constant 1 : index
    %c0_98 = arith.constant 0 : index
    %c0_99 = arith.constant 0 : index
    %210 = vector.load %arg8[%c1_97, %c0_98, %c0_99] : memref<2x1x32xf32, #tpu.memory_space<vmem>>, vector<1x1x32xf32>
    %211 = vector.shape_cast %210 : vector<1x1x32xf32> to vector<1x32xf32>
    %212 = vector.broadcast %211 : vector<1x32xf32> to vector<16x32xf32>
    %213 = arith.addf %209, %212 : vector<16x32xf32>
    %c1_100 = arith.constant 1 : index
    %c0_101 = arith.constant 0 : index
    %c0_102 = arith.constant 0 : index
    %214 = vector.load %arg9[%c1_100, %c0_101, %c0_102] : memref<2x32x32xbf16, #tpu.memory_space<vmem>>, vector<1x32x32xbf16>
    %215 = vector.shape_cast %214 : vector<1x32x32xbf16> to vector<32x32xbf16>
    %cst_103 = arith.constant dense<0.000000e+00> : vector<16x32xf32>
    %216 = tpu.matmul %206, %215, %cst_103 {dimension_numbers = #tpu.dot_dimension_numbers<[1], [0], [0], [1], [0, 0, 1, 1], [], []>} : vector<16x32xbf16>, vector<32x32xbf16>, vector<16x32xf32> -> vector<16x32xf32>
    %c1_104 = arith.constant 1 : index
    %c0_105 = arith.constant 0 : index
    %c0_106 = arith.constant 0 : index
    %217 = vector.load %arg10[%c1_104, %c0_105, %c0_106] : memref<2x1x32xf32, #tpu.memory_space<vmem>>, vector<1x1x32xf32>
    %218 = vector.shape_cast %217 : vector<1x1x32xf32> to vector<1x32xf32>
    %219 = vector.broadcast %218 : vector<1x32xf32> to vector<16x32xf32>
    %220 = arith.addf %216, %219 : vector<16x32xf32>
    %c1_107 = arith.constant 1 : index
    %c0_108 = arith.constant 0 : index
    %c0_109 = arith.constant 0 : index
    %221 = vector.load %arg11[%c1_107, %c0_108, %c0_109] : memref<2x32x32xbf16, #tpu.memory_space<vmem>>, vector<1x32x32xbf16>
    %222 = vector.shape_cast %221 : vector<1x32x32xbf16> to vector<32x32xbf16>
    %cst_110 = arith.constant dense<0.000000e+00> : vector<16x32xf32>
    %223 = tpu.matmul %206, %222, %cst_110 {dimension_numbers = #tpu.dot_dimension_numbers<[1], [0], [0], [1], [0, 0, 1, 1], [], []>} : vector<16x32xbf16>, vector<32x32xbf16>, vector<16x32xf32> -> vector<16x32xf32>
    %c1_111 = arith.constant 1 : index
    %c0_112 = arith.constant 0 : index
    %c0_113 = arith.constant 0 : index
    %224 = vector.load %arg12[%c1_111, %c0_112, %c0_113] : memref<2x1x32xf32, #tpu.memory_space<vmem>>, vector<1x1x32xf32>
    %225 = vector.shape_cast %224 : vector<1x1x32xf32> to vector<1x32xf32>
    %226 = vector.broadcast %225 : vector<1x32xf32> to vector<16x32xf32>
    %227 = arith.addf %223, %226 : vector<16x32xf32>
    %228 = vector.broadcast %27 : vector<1x32xf32> to vector<16x32xf32>
    %229 = arith.mulf %213, %228 : vector<16x32xf32>
    %230 = vector.broadcast %34 : vector<1x32xf32> to vector<16x32xf32>
    %231 = arith.mulf %213, %230 : vector<16x32xf32>
    %232 = vector.broadcast %41 : vector<1x32xf32> to vector<16x32xf32>
    %233 = arith.mulf %213, %232 : vector<16x32xf32>
    %234 = vector.broadcast %48 : vector<1x32xf32> to vector<16x32xf32>
    %235 = arith.mulf %213, %234 : vector<16x32xf32>
    %236 = tpu.concatenate %229, %231, %233, %235 in 0 : vector<16x32xf32>, vector<16x32xf32>, vector<16x32xf32>, vector<16x32xf32> -> vector<64x32xf32>
    %237 = arith.truncf %236 : vector<64x32xf32> to vector<64x32xbf16>
    %238 = arith.truncf %220 : vector<16x32xf32> to vector<16x32xbf16>
    %cst_114 = arith.constant dense<0.000000e+00> : vector<64x16xf32>
    %239 = tpu.matmul %237, %238, %cst_114 {dimension_numbers = #tpu.dot_dimension_numbers<[1], [1], [0], [0], [0, 0, 1, 0], [], []>} : vector<64x32xbf16>, vector<16x32xbf16>, vector<64x16xf32> -> vector<64x16xf32>
    %cst_115 = arith.constant 0.353553385 : f32
    %240 = vector.broadcast %cst_115 : f32 to vector<64x16xf32>
    %241 = arith.mulf %239, %240 : vector<64x16xf32>
    %242 = arith.addf %241, %59 : vector<64x16xf32>
    %cst_116 = arith.constant dense<0xFF800000> : vector<64xf32>
    %243 = vector.multi_reduction <maximumf>, %242, %cst_116 [1] : vector<64x16xf32> to vector<64xf32>
    %244 = vector.shape_cast %243 : vector<64xf32> to vector<64x1xf32>
    %245 = vector.broadcast %244 : vector<64x1xf32> to vector<64x16xf32>
    %246 = arith.subf %242, %245 : vector<64x16xf32>
    %247 = math.exp %246 : vector<64x16xf32>
    %cst_117 = arith.constant dense<0.000000e+00> : vector<64xf32>
    %248 = vector.multi_reduction <add>, %247, %cst_117 [1] : vector<64x16xf32> to vector<64xf32>
    %249 = vector.shape_cast %248 : vector<64xf32> to vector<64x1xf32>
    %250 = vector.broadcast %249 : vector<64x1xf32> to vector<64x16xf32>
    %251 = arith.divf %247, %250 : vector<64x16xf32>
    %252 = arith.truncf %251 : vector<64x16xf32> to vector<64x16xbf16>
    %253 = arith.truncf %227 : vector<16x32xf32> to vector<16x32xbf16>
    %cst_118 = arith.constant dense<0.000000e+00> : vector<64x32xf32>
    %254 = tpu.matmul %252, %253, %cst_118 {dimension_numbers = #tpu.dot_dimension_numbers<[1], [0], [0], [1], [0, 0, 1, 1], [], []>} : vector<64x16xbf16>, vector<16x32xbf16>, vector<64x32xf32> -> vector<64x32xf32>
    %cst_119 = arith.constant 0.000000e+00 : f32
    %255 = vector.broadcast %cst_119 : f32 to vector<16x32xf32>
    %256 = vector.extract_strided_slice %254 {offsets = [0, 0], sizes = [16, 32], strides = [1, 1]} : vector<64x32xf32> to vector<16x32xf32>
    %257 = vector.broadcast %27 : vector<1x32xf32> to vector<16x32xf32>
    %258 = arith.mulf %256, %257 : vector<16x32xf32>
    %259 = arith.addf %255, %258 : vector<16x32xf32>
    %260 = vector.extract_strided_slice %254 {offsets = [16, 0], sizes = [16, 32], strides = [1, 1]} : vector<64x32xf32> to vector<16x32xf32>
    %261 = vector.broadcast %34 : vector<1x32xf32> to vector<16x32xf32>
    %262 = arith.mulf %260, %261 : vector<16x32xf32>
    %263 = arith.addf %259, %262 : vector<16x32xf32>
    %264 = vector.extract_strided_slice %254 {offsets = [32, 0], sizes = [16, 32], strides = [1, 1]} : vector<64x32xf32> to vector<16x32xf32>
    %265 = vector.broadcast %41 : vector<1x32xf32> to vector<16x32xf32>
    %266 = arith.mulf %264, %265 : vector<16x32xf32>
    %267 = arith.addf %263, %266 : vector<16x32xf32>
    %268 = vector.extract_strided_slice %254 {offsets = [48, 0], sizes = [16, 32], strides = [1, 1]} : vector<64x32xf32> to vector<16x32xf32>
    %269 = vector.broadcast %48 : vector<1x32xf32> to vector<16x32xf32>
    %270 = arith.mulf %268, %269 : vector<16x32xf32>
    %271 = arith.addf %267, %270 : vector<16x32xf32>
    %272 = arith.truncf %271 : vector<16x32xf32> to vector<16x32xbf16>
    %c1_120 = arith.constant 1 : index
    %c0_121 = arith.constant 0 : index
    %c0_122 = arith.constant 0 : index
    %273 = vector.load %arg13[%c1_120, %c0_121, %c0_122] : memref<2x32x32xbf16, #tpu.memory_space<vmem>>, vector<1x32x32xbf16>
    %274 = vector.shape_cast %273 : vector<1x32x32xbf16> to vector<32x32xbf16>
    %cst_123 = arith.constant dense<0.000000e+00> : vector<16x32xf32>
    %275 = tpu.matmul %272, %274, %cst_123 {dimension_numbers = #tpu.dot_dimension_numbers<[1], [0], [0], [1], [0, 0, 1, 1], [], []>} : vector<16x32xbf16>, vector<32x32xbf16>, vector<16x32xf32> -> vector<16x32xf32>
    %c1_124 = arith.constant 1 : index
    %c0_125 = arith.constant 0 : index
    %c0_126 = arith.constant 0 : index
    %276 = vector.load %arg14[%c1_124, %c0_125, %c0_126] : memref<2x1x32xf32, #tpu.memory_space<vmem>>, vector<1x1x32xf32>
    %277 = vector.shape_cast %276 : vector<1x1x32xf32> to vector<1x32xf32>
    %278 = vector.broadcast %277 : vector<1x32xf32> to vector<16x32xf32>
    %279 = arith.addf %275, %278 : vector<16x32xf32>
    %280 = arith.addf %205, %279 : vector<16x32xf32>
    %c1_127 = arith.constant 1 : index
    %c0_128 = arith.constant 0 : index
    %c0_129 = arith.constant 0 : index
    %281 = vector.load %arg15[%c1_127, %c0_128, %c0_129] : memref<2x1x32xf32, #tpu.memory_space<vmem>>, vector<1x1x32xf32>
    %282 = vector.shape_cast %281 : vector<1x1x32xf32> to vector<1x32xf32>
    %c1_130 = arith.constant 1 : index
    %c0_131 = arith.constant 0 : index
    %c0_132 = arith.constant 0 : index
    %283 = vector.load %arg16[%c1_130, %c0_131, %c0_132] : memref<2x1x32xf32, #tpu.memory_space<vmem>>, vector<1x1x32xf32>
    %284 = vector.shape_cast %283 : vector<1x1x32xf32> to vector<1x32xf32>
    %cst_133 = arith.constant dense<0.000000e+00> : vector<16xf32>
    %285 = vector.multi_reduction <add>, %280, %cst_133 [1] : vector<16x32xf32> to vector<16xf32>
    %286 = vector.shape_cast %285 : vector<16xf32> to vector<16x1xf32>
    %cst_134 = arith.constant 3.200000e+01 : f32
    %287 = vector.broadcast %cst_134 : f32 to vector<16x1xf32>
    %288 = arith.divf %286, %287 : vector<16x1xf32>
    %289 = vector.broadcast %288 : vector<16x1xf32> to vector<16x32xf32>
    %290 = arith.subf %280, %289 : vector<16x32xf32>
    %291 = arith.mulf %290, %290 : vector<16x32xf32>
    %cst_135 = arith.constant dense<0.000000e+00> : vector<16xf32>
    %292 = vector.multi_reduction <add>, %291, %cst_135 [1] : vector<16x32xf32> to vector<16xf32>
    %293 = vector.shape_cast %292 : vector<16xf32> to vector<16x1xf32>
    %cst_136 = arith.constant 3.200000e+01 : f32
    %294 = vector.broadcast %cst_136 : f32 to vector<16x1xf32>
    %295 = arith.divf %293, %294 : vector<16x1xf32>
    %296 = vector.broadcast %288 : vector<16x1xf32> to vector<16x32xf32>
    %297 = arith.subf %280, %296 : vector<16x32xf32>
    %cst_137 = arith.constant 9.99999974E-6 : f32
    %298 = vector.broadcast %cst_137 : f32 to vector<16x1xf32>
    %299 = arith.addf %295, %298 : vector<16x1xf32>
    %300 = math.rsqrt %299 : vector<16x1xf32>
    %301 = vector.broadcast %300 : vector<16x1xf32> to vector<16x32xf32>
    %302 = arith.mulf %297, %301 : vector<16x32xf32>
    %303 = vector.broadcast %282 : vector<1x32xf32> to vector<16x32xf32>
    %304 = arith.mulf %302, %303 : vector<16x32xf32>
    %305 = vector.broadcast %284 : vector<1x32xf32> to vector<16x32xf32>
    %306 = arith.addf %304, %305 : vector<16x32xf32>
    %307 = arith.truncf %306 : vector<16x32xf32> to vector<16x32xbf16>
    %c1_138 = arith.constant 1 : index
    %c0_139 = arith.constant 0 : index
    %c0_140 = arith.constant 0 : index
    %308 = vector.load %arg17[%c1_138, %c0_139, %c0_140] : memref<2x32x2048xbf16, #tpu.memory_space<vmem>>, vector<1x32x2048xbf16>
    %309 = vector.shape_cast %308 : vector<1x32x2048xbf16> to vector<32x2048xbf16>
    %cst_141 = arith.constant dense<0.000000e+00> : vector<16x2048xf32>
    %310 = tpu.matmul %307, %309, %cst_141 {dimension_numbers = #tpu.dot_dimension_numbers<[1], [0], [0], [1], [0, 0, 1, 1], [], []>} : vector<16x32xbf16>, vector<32x2048xbf16>, vector<16x2048xf32> -> vector<16x2048xf32>
    %c1_142 = arith.constant 1 : index
    %c0_143 = arith.constant 0 : index
    %c0_144 = arith.constant 0 : index
    %311 = vector.load %arg18[%c1_142, %c0_143, %c0_144] : memref<2x1x2048xf32, #tpu.memory_space<vmem>>, vector<1x1x2048xf32>
    %312 = vector.shape_cast %311 : vector<1x1x2048xf32> to vector<1x2048xf32>
    %313 = vector.broadcast %312 : vector<1x2048xf32> to vector<16x2048xf32>
    %314 = arith.addf %310, %313 : vector<16x2048xf32>
    %cst_145 = arith.constant 0.000000e+00 : f32
    %315 = vector.broadcast %cst_145 : f32 to vector<16x2048xf32>
    %316 = arith.maximumf %314, %315 : vector<16x2048xf32>
    %317 = arith.truncf %316 : vector<16x2048xf32> to vector<16x2048xbf16>
    %c1_146 = arith.constant 1 : index
    %c0_147 = arith.constant 0 : index
    %c0_148 = arith.constant 0 : index
    %318 = vector.load %arg19[%c1_146, %c0_147, %c0_148] : memref<2x2048x32xbf16, #tpu.memory_space<vmem>>, vector<1x2048x32xbf16>
    %319 = vector.shape_cast %318 : vector<1x2048x32xbf16> to vector<2048x32xbf16>
    %cst_149 = arith.constant dense<0.000000e+00> : vector<16x32xf32>
    %320 = tpu.matmul %317, %319, %cst_149 {dimension_numbers = #tpu.dot_dimension_numbers<[1], [0], [0], [1], [0, 0, 1, 1], [], []>} : vector<16x2048xbf16>, vector<2048x32xbf16>, vector<16x32xf32> -> vector<16x32xf32>
    %c1_150 = arith.constant 1 : index
    %c0_151 = arith.constant 0 : index
    %c0_152 = arith.constant 0 : index
    %321 = vector.load %arg20[%c1_150, %c0_151, %c0_152] : memref<2x1x32xf32, #tpu.memory_space<vmem>>, vector<1x1x32xf32>
    %322 = vector.shape_cast %321 : vector<1x1x32xf32> to vector<1x32xf32>
    %323 = vector.broadcast %322 : vector<1x32xf32> to vector<16x32xf32>
    %324 = arith.addf %320, %323 : vector<16x32xf32>
    %325 = arith.addf %306, %324 : vector<16x32xf32>
    %c1_153 = arith.constant 1 : index
    %c0_154 = arith.constant 0 : index
    %c0_155 = arith.constant 0 : index
    %326 = vector.load %arg21[%c1_153, %c0_154, %c0_155] : memref<2x1x32xf32, #tpu.memory_space<vmem>>, vector<1x1x32xf32>
    %327 = vector.shape_cast %326 : vector<1x1x32xf32> to vector<1x32xf32>
    %c1_156 = arith.constant 1 : index
    %c0_157 = arith.constant 0 : index
    %c0_158 = arith.constant 0 : index
    %328 = vector.load %arg22[%c1_156, %c0_157, %c0_158] : memref<2x1x32xf32, #tpu.memory_space<vmem>>, vector<1x1x32xf32>
    %329 = vector.shape_cast %328 : vector<1x1x32xf32> to vector<1x32xf32>
    %cst_159 = arith.constant dense<0.000000e+00> : vector<16xf32>
    %330 = vector.multi_reduction <add>, %325, %cst_159 [1] : vector<16x32xf32> to vector<16xf32>
    %331 = vector.shape_cast %330 : vector<16xf32> to vector<16x1xf32>
    %cst_160 = arith.constant 3.200000e+01 : f32
    %332 = vector.broadcast %cst_160 : f32 to vector<16x1xf32>
    %333 = arith.divf %331, %332 : vector<16x1xf32>
    %334 = vector.broadcast %333 : vector<16x1xf32> to vector<16x32xf32>
    %335 = arith.subf %325, %334 : vector<16x32xf32>
    %336 = arith.mulf %335, %335 : vector<16x32xf32>
    %cst_161 = arith.constant dense<0.000000e+00> : vector<16xf32>
    %337 = vector.multi_reduction <add>, %336, %cst_161 [1] : vector<16x32xf32> to vector<16xf32>
    %338 = vector.shape_cast %337 : vector<16xf32> to vector<16x1xf32>
    %cst_162 = arith.constant 3.200000e+01 : f32
    %339 = vector.broadcast %cst_162 : f32 to vector<16x1xf32>
    %340 = arith.divf %338, %339 : vector<16x1xf32>
    %341 = vector.broadcast %333 : vector<16x1xf32> to vector<16x32xf32>
    %342 = arith.subf %325, %341 : vector<16x32xf32>
    %cst_163 = arith.constant 9.99999974E-6 : f32
    %343 = vector.broadcast %cst_163 : f32 to vector<16x1xf32>
    %344 = arith.addf %340, %343 : vector<16x1xf32>
    %345 = math.rsqrt %344 : vector<16x1xf32>
    %346 = vector.broadcast %345 : vector<16x1xf32> to vector<16x32xf32>
    %347 = arith.mulf %342, %346 : vector<16x32xf32>
    %348 = vector.broadcast %327 : vector<1x32xf32> to vector<16x32xf32>
    %349 = arith.mulf %347, %348 : vector<16x32xf32>
    %350 = vector.broadcast %329 : vector<1x32xf32> to vector<16x32xf32>
    %351 = arith.addf %349, %350 : vector<16x32xf32>
    %c0_164 = arith.constant 0 : index
    %c0_165 = arith.constant 0 : index
    %352 = vector.load %arg23[%c0_164, %c0_165] : memref<8x48xf32, #tpu.memory_space<vmem>>, vector<8x48xf32>
    %353 = arith.truncf %352 : vector<8x48xf32> to vector<8x48xbf16>
    %c0_166 = arith.constant 0 : index
    %c0_167 = arith.constant 0 : index
    %354 = vector.load %arg24[%c0_166, %c0_167] : memref<48x32xbf16, #tpu.memory_space<vmem>>, vector<48x32xbf16>
    %cst_168 = arith.constant dense<0.000000e+00> : vector<8x32xf32>
    %355 = tpu.matmul %353, %354, %cst_168 {dimension_numbers = #tpu.dot_dimension_numbers<[1], [0], [0], [1], [0, 0, 1, 1], [], []>} : vector<8x48xbf16>, vector<48x32xbf16>, vector<8x32xf32> -> vector<8x32xf32>
    %c0_169 = arith.constant 0 : index
    %c0_170 = arith.constant 0 : index
    %356 = vector.load %arg25[%c0_169, %c0_170] : memref<1x32xf32, #tpu.memory_space<vmem>>, vector<1x32xf32>
    %357 = vector.broadcast %356 : vector<1x32xf32> to vector<8x32xf32>
    %358 = arith.addf %355, %357 : vector<8x32xf32>
    %c0_171 = arith.constant 0 : index
    %c0_172 = arith.constant 0 : index
    %359 = vector.load %arg27[%c0_171, %c0_172] : memref<8x32xbf16, #tpu.memory_space<vmem>>, vector<8x32xbf16>
    %c0_173 = arith.constant 0 : index
    %c0_174 = arith.constant 0 : index
    %360 = vector.load %arg28[%c0_173, %c0_174] : memref<32x32xbf16, #tpu.memory_space<vmem>>, vector<32x32xbf16>
    %cst_175 = arith.constant dense<0.000000e+00> : vector<8x32xf32>
    %361 = tpu.matmul %359, %360, %cst_175 {dimension_numbers = #tpu.dot_dimension_numbers<[1], [0], [0], [1], [0, 0, 1, 1], [], []>} : vector<8x32xbf16>, vector<32x32xbf16>, vector<8x32xf32> -> vector<8x32xf32>
    %c0_176 = arith.constant 0 : index
    %c0_177 = arith.constant 0 : index
    %362 = vector.load %arg26[%c0_176, %c0_177] : memref<8x8xf32, #tpu.memory_space<vmem>>, vector<8x8xf32>
    %363 = arith.truncf %362 : vector<8x8xf32> to vector<8x8xbf16>
    %364 = arith.truncf %361 : vector<8x32xf32> to vector<8x32xbf16>
    %cst_178 = arith.constant dense<0.000000e+00> : vector<8x32xf32>
    %365 = tpu.matmul %363, %364, %cst_178 {dimension_numbers = #tpu.dot_dimension_numbers<[1], [0], [0], [1], [0, 0, 1, 1], [], []>} : vector<8x8xbf16>, vector<8x32xbf16>, vector<8x32xf32> -> vector<8x32xf32>
    %c0_179 = arith.constant 0 : index
    %c0_180 = arith.constant 0 : index
    %366 = vector.load %arg29[%c0_179, %c0_180] : memref<1x32xf32, #tpu.memory_space<vmem>>, vector<1x32xf32>
    %367 = vector.broadcast %366 : vector<1x32xf32> to vector<8x32xf32>
    %368 = arith.addf %365, %367 : vector<8x32xf32>
    %cst_181 = arith.constant 0.000000e+00 : f32
    %369 = vector.broadcast %cst_181 : f32 to vector<8x32xf32>
    %370 = arith.maximumf %368, %369 : vector<8x32xf32>
    %371 = tpu.concatenate %358, %370 in 0 : vector<8x32xf32>, vector<8x32xf32> -> vector<16x32xf32>
    %372 = tpu.iota {dimensions = array<i32: 1>} : vector<1x32xi32>
    %c0_i32_182 = arith.constant 0 : i32
    %373 = vector.broadcast %c0_i32_182 : i32 to vector<1x32xi32>
    %374 = arith.cmpi sge, %372, %373 : vector<1x32xi32>
    %c8_i32_183 = arith.constant 8 : i32
    %375 = vector.broadcast %c8_i32_183 : i32 to vector<1x32xi32>
    %376 = arith.cmpi slt, %372, %375 : vector<1x32xi32>
    %377 = arith.andi %374, %376 : vector<1x32xi1>
    %378 = arith.extui %377 : vector<1x32xi1> to vector<1x32xi32>
    %379 = arith.sitofp %378 : vector<1x32xi32> to vector<1x32xf32>
    %c8_i32_184 = arith.constant 8 : i32
    %380 = vector.broadcast %c8_i32_184 : i32 to vector<1x32xi32>
    %381 = arith.cmpi sge, %372, %380 : vector<1x32xi32>
    %c16_i32_185 = arith.constant 16 : i32
    %382 = vector.broadcast %c16_i32_185 : i32 to vector<1x32xi32>
    %383 = arith.cmpi slt, %372, %382 : vector<1x32xi32>
    %384 = arith.andi %381, %383 : vector<1x32xi1>
    %385 = arith.extui %384 : vector<1x32xi1> to vector<1x32xi32>
    %386 = arith.sitofp %385 : vector<1x32xi32> to vector<1x32xf32>
    %c16_i32_186 = arith.constant 16 : i32
    %387 = vector.broadcast %c16_i32_186 : i32 to vector<1x32xi32>
    %388 = arith.cmpi sge, %372, %387 : vector<1x32xi32>
    %c24_i32_187 = arith.constant 24 : i32
    %389 = vector.broadcast %c24_i32_187 : i32 to vector<1x32xi32>
    %390 = arith.cmpi slt, %372, %389 : vector<1x32xi32>
    %391 = arith.andi %388, %390 : vector<1x32xi1>
    %392 = arith.extui %391 : vector<1x32xi1> to vector<1x32xi32>
    %393 = arith.sitofp %392 : vector<1x32xi32> to vector<1x32xf32>
    %c24_i32_188 = arith.constant 24 : i32
    %394 = vector.broadcast %c24_i32_188 : i32 to vector<1x32xi32>
    %395 = arith.cmpi sge, %372, %394 : vector<1x32xi32>
    %c32_i32_189 = arith.constant 32 : i32
    %396 = vector.broadcast %c32_i32_189 : i32 to vector<1x32xi32>
    %397 = arith.cmpi slt, %372, %396 : vector<1x32xi32>
    %398 = arith.andi %395, %397 : vector<1x32xi1>
    %399 = arith.extui %398 : vector<1x32xi1> to vector<1x32xi32>
    %400 = arith.sitofp %399 : vector<1x32xi32> to vector<1x32xf32>
    %401 = tpu.iota {dimensions = array<i32: 0>} : vector<16x16xi32>
    %402 = tpu.iota {dimensions = array<i32: 1>} : vector<16x16xi32>
    %c8_i32_190 = arith.constant 8 : i32
    %403 = vector.broadcast %c8_i32_190 : i32 to vector<16x16xi32>
    %404 = arith.cmpi slt, %401, %403 : vector<16x16xi32>
    %c8_i32_191 = arith.constant 8 : i32
    %405 = vector.broadcast %c8_i32_191 : i32 to vector<16x16xi32>
    %406 = arith.cmpi slt, %402, %405 : vector<16x16xi32>
    %407 = arith.xori %404, %406 : vector<16x16xi1>
    %cst_192 = arith.constant -1.000000e+30 : f32
    %cst_193 = arith.constant 0.000000e+00 : f32
    %408 = vector.broadcast %cst_192 : f32 to vector<16x16xf32>
    %409 = vector.broadcast %cst_193 : f32 to vector<16x16xf32>
    %410 = arith.select %407, %408, %409 : vector<16x16xi1>, vector<16x16xf32>
    %411 = tpu.concatenate %410, %410, %410, %410 in 0 : vector<16x16xf32>, vector<16x16xf32>, vector<16x16xf32>, vector<16x16xf32> -> vector<64x16xf32>
    %412 = arith.truncf %371 : vector<16x32xf32> to vector<16x32xbf16>
    %c0_194 = arith.constant 0 : index
    %c0_195 = arith.constant 0 : index
    %c0_196 = arith.constant 0 : index
    %413 = vector.load %arg30[%c0_194, %c0_195, %c0_196] : memref<2x32x32xbf16, #tpu.memory_space<vmem>>, vector<1x32x32xbf16>
    %414 = vector.shape_cast %413 : vector<1x32x32xbf16> to vector<32x32xbf16>
    %cst_197 = arith.constant dense<0.000000e+00> : vector<16x32xf32>
    %415 = tpu.matmul %412, %414, %cst_197 {dimension_numbers = #tpu.dot_dimension_numbers<[1], [0], [0], [1], [0, 0, 1, 1], [], []>} : vector<16x32xbf16>, vector<32x32xbf16>, vector<16x32xf32> -> vector<16x32xf32>
    %c0_198 = arith.constant 0 : index
    %c0_199 = arith.constant 0 : index
    %c0_200 = arith.constant 0 : index
    %416 = vector.load %arg31[%c0_198, %c0_199, %c0_200] : memref<2x1x32xf32, #tpu.memory_space<vmem>>, vector<1x1x32xf32>
    %417 = vector.shape_cast %416 : vector<1x1x32xf32> to vector<1x32xf32>
    %418 = vector.broadcast %417 : vector<1x32xf32> to vector<16x32xf32>
    %419 = arith.addf %415, %418 : vector<16x32xf32>
    %c0_201 = arith.constant 0 : index
    %c0_202 = arith.constant 0 : index
    %c0_203 = arith.constant 0 : index
    %420 = vector.load %arg32[%c0_201, %c0_202, %c0_203] : memref<2x32x32xbf16, #tpu.memory_space<vmem>>, vector<1x32x32xbf16>
    %421 = vector.shape_cast %420 : vector<1x32x32xbf16> to vector<32x32xbf16>
    %cst_204 = arith.constant dense<0.000000e+00> : vector<16x32xf32>
    %422 = tpu.matmul %412, %421, %cst_204 {dimension_numbers = #tpu.dot_dimension_numbers<[1], [0], [0], [1], [0, 0, 1, 1], [], []>} : vector<16x32xbf16>, vector<32x32xbf16>, vector<16x32xf32> -> vector<16x32xf32>
    %c0_205 = arith.constant 0 : index
    %c0_206 = arith.constant 0 : index
    %c0_207 = arith.constant 0 : index
    %423 = vector.load %arg33[%c0_205, %c0_206, %c0_207] : memref<2x1x32xf32, #tpu.memory_space<vmem>>, vector<1x1x32xf32>
    %424 = vector.shape_cast %423 : vector<1x1x32xf32> to vector<1x32xf32>
    %425 = vector.broadcast %424 : vector<1x32xf32> to vector<16x32xf32>
    %426 = arith.addf %422, %425 : vector<16x32xf32>
    %c0_208 = arith.constant 0 : index
    %c0_209 = arith.constant 0 : index
    %c0_210 = arith.constant 0 : index
    %427 = vector.load %arg34[%c0_208, %c0_209, %c0_210] : memref<2x32x32xbf16, #tpu.memory_space<vmem>>, vector<1x32x32xbf16>
    %428 = vector.shape_cast %427 : vector<1x32x32xbf16> to vector<32x32xbf16>
    %cst_211 = arith.constant dense<0.000000e+00> : vector<16x32xf32>
    %429 = tpu.matmul %412, %428, %cst_211 {dimension_numbers = #tpu.dot_dimension_numbers<[1], [0], [0], [1], [0, 0, 1, 1], [], []>} : vector<16x32xbf16>, vector<32x32xbf16>, vector<16x32xf32> -> vector<16x32xf32>
    %c0_212 = arith.constant 0 : index
    %c0_213 = arith.constant 0 : index
    %c0_214 = arith.constant 0 : index
    %430 = vector.load %arg35[%c0_212, %c0_213, %c0_214] : memref<2x1x32xf32, #tpu.memory_space<vmem>>, vector<1x1x32xf32>
    %431 = vector.shape_cast %430 : vector<1x1x32xf32> to vector<1x32xf32>
    %432 = vector.broadcast %431 : vector<1x32xf32> to vector<16x32xf32>
    %433 = arith.addf %429, %432 : vector<16x32xf32>
    %434 = vector.broadcast %379 : vector<1x32xf32> to vector<16x32xf32>
    %435 = arith.mulf %419, %434 : vector<16x32xf32>
    %436 = vector.broadcast %386 : vector<1x32xf32> to vector<16x32xf32>
    %437 = arith.mulf %419, %436 : vector<16x32xf32>
    %438 = vector.broadcast %393 : vector<1x32xf32> to vector<16x32xf32>
    %439 = arith.mulf %419, %438 : vector<16x32xf32>
    %440 = vector.broadcast %400 : vector<1x32xf32> to vector<16x32xf32>
    %441 = arith.mulf %419, %440 : vector<16x32xf32>
    %442 = tpu.concatenate %435, %437, %439, %441 in 0 : vector<16x32xf32>, vector<16x32xf32>, vector<16x32xf32>, vector<16x32xf32> -> vector<64x32xf32>
    %443 = arith.truncf %442 : vector<64x32xf32> to vector<64x32xbf16>
    %444 = arith.truncf %426 : vector<16x32xf32> to vector<16x32xbf16>
    %cst_215 = arith.constant dense<0.000000e+00> : vector<64x16xf32>
    %445 = tpu.matmul %443, %444, %cst_215 {dimension_numbers = #tpu.dot_dimension_numbers<[1], [1], [0], [0], [0, 0, 1, 0], [], []>} : vector<64x32xbf16>, vector<16x32xbf16>, vector<64x16xf32> -> vector<64x16xf32>
    %cst_216 = arith.constant 0.353553385 : f32
    %446 = vector.broadcast %cst_216 : f32 to vector<64x16xf32>
    %447 = arith.mulf %445, %446 : vector<64x16xf32>
    %448 = arith.addf %447, %411 : vector<64x16xf32>
    %cst_217 = arith.constant dense<0xFF800000> : vector<64xf32>
    %449 = vector.multi_reduction <maximumf>, %448, %cst_217 [1] : vector<64x16xf32> to vector<64xf32>
    %450 = vector.shape_cast %449 : vector<64xf32> to vector<64x1xf32>
    %451 = vector.broadcast %450 : vector<64x1xf32> to vector<64x16xf32>
    %452 = arith.subf %448, %451 : vector<64x16xf32>
    %453 = math.exp %452 : vector<64x16xf32>
    %cst_218 = arith.constant dense<0.000000e+00> : vector<64xf32>
    %454 = vector.multi_reduction <add>, %453, %cst_218 [1] : vector<64x16xf32> to vector<64xf32>
    %455 = vector.shape_cast %454 : vector<64xf32> to vector<64x1xf32>
    %456 = vector.broadcast %455 : vector<64x1xf32> to vector<64x16xf32>
    %457 = arith.divf %453, %456 : vector<64x16xf32>
    %458 = arith.truncf %457 : vector<64x16xf32> to vector<64x16xbf16>
    %459 = arith.truncf %433 : vector<16x32xf32> to vector<16x32xbf16>
    %cst_219 = arith.constant dense<0.000000e+00> : vector<64x32xf32>
    %460 = tpu.matmul %458, %459, %cst_219 {dimension_numbers = #tpu.dot_dimension_numbers<[1], [0], [0], [1], [0, 0, 1, 1], [], []>} : vector<64x16xbf16>, vector<16x32xbf16>, vector<64x32xf32> -> vector<64x32xf32>
    %cst_220 = arith.constant 0.000000e+00 : f32
    %461 = vector.broadcast %cst_220 : f32 to vector<16x32xf32>
    %462 = vector.extract_strided_slice %460 {offsets = [0, 0], sizes = [16, 32], strides = [1, 1]} : vector<64x32xf32> to vector<16x32xf32>
    %463 = vector.broadcast %379 : vector<1x32xf32> to vector<16x32xf32>
    %464 = arith.mulf %462, %463 : vector<16x32xf32>
    %465 = arith.addf %461, %464 : vector<16x32xf32>
    %466 = vector.extract_strided_slice %460 {offsets = [16, 0], sizes = [16, 32], strides = [1, 1]} : vector<64x32xf32> to vector<16x32xf32>
    %467 = vector.broadcast %386 : vector<1x32xf32> to vector<16x32xf32>
    %468 = arith.mulf %466, %467 : vector<16x32xf32>
    %469 = arith.addf %465, %468 : vector<16x32xf32>
    %470 = vector.extract_strided_slice %460 {offsets = [32, 0], sizes = [16, 32], strides = [1, 1]} : vector<64x32xf32> to vector<16x32xf32>
    %471 = vector.broadcast %393 : vector<1x32xf32> to vector<16x32xf32>
    %472 = arith.mulf %470, %471 : vector<16x32xf32>
    %473 = arith.addf %469, %472 : vector<16x32xf32>
    %474 = vector.extract_strided_slice %460 {offsets = [48, 0], sizes = [16, 32], strides = [1, 1]} : vector<64x32xf32> to vector<16x32xf32>
    %475 = vector.broadcast %400 : vector<1x32xf32> to vector<16x32xf32>
    %476 = arith.mulf %474, %475 : vector<16x32xf32>
    %477 = arith.addf %473, %476 : vector<16x32xf32>
    %478 = arith.truncf %477 : vector<16x32xf32> to vector<16x32xbf16>
    %c0_221 = arith.constant 0 : index
    %c0_222 = arith.constant 0 : index
    %c0_223 = arith.constant 0 : index
    %479 = vector.load %arg36[%c0_221, %c0_222, %c0_223] : memref<2x32x32xbf16, #tpu.memory_space<vmem>>, vector<1x32x32xbf16>
    %480 = vector.shape_cast %479 : vector<1x32x32xbf16> to vector<32x32xbf16>
    %cst_224 = arith.constant dense<0.000000e+00> : vector<16x32xf32>
    %481 = tpu.matmul %478, %480, %cst_224 {dimension_numbers = #tpu.dot_dimension_numbers<[1], [0], [0], [1], [0, 0, 1, 1], [], []>} : vector<16x32xbf16>, vector<32x32xbf16>, vector<16x32xf32> -> vector<16x32xf32>
    %c0_225 = arith.constant 0 : index
    %c0_226 = arith.constant 0 : index
    %c0_227 = arith.constant 0 : index
    %482 = vector.load %arg37[%c0_225, %c0_226, %c0_227] : memref<2x1x32xf32, #tpu.memory_space<vmem>>, vector<1x1x32xf32>
    %483 = vector.shape_cast %482 : vector<1x1x32xf32> to vector<1x32xf32>
    %484 = vector.broadcast %483 : vector<1x32xf32> to vector<16x32xf32>
    %485 = arith.addf %481, %484 : vector<16x32xf32>
    %486 = arith.addf %371, %485 : vector<16x32xf32>
    %c0_228 = arith.constant 0 : index
    %c0_229 = arith.constant 0 : index
    %c0_230 = arith.constant 0 : index
    %487 = vector.load %arg38[%c0_228, %c0_229, %c0_230] : memref<2x1x32xf32, #tpu.memory_space<vmem>>, vector<1x1x32xf32>
    %488 = vector.shape_cast %487 : vector<1x1x32xf32> to vector<1x32xf32>
    %c0_231 = arith.constant 0 : index
    %c0_232 = arith.constant 0 : index
    %c0_233 = arith.constant 0 : index
    %489 = vector.load %arg39[%c0_231, %c0_232, %c0_233] : memref<2x1x32xf32, #tpu.memory_space<vmem>>, vector<1x1x32xf32>
    %490 = vector.shape_cast %489 : vector<1x1x32xf32> to vector<1x32xf32>
    %cst_234 = arith.constant dense<0.000000e+00> : vector<16xf32>
    %491 = vector.multi_reduction <add>, %486, %cst_234 [1] : vector<16x32xf32> to vector<16xf32>
    %492 = vector.shape_cast %491 : vector<16xf32> to vector<16x1xf32>
    %cst_235 = arith.constant 3.200000e+01 : f32
    %493 = vector.broadcast %cst_235 : f32 to vector<16x1xf32>
    %494 = arith.divf %492, %493 : vector<16x1xf32>
    %495 = vector.broadcast %494 : vector<16x1xf32> to vector<16x32xf32>
    %496 = arith.subf %486, %495 : vector<16x32xf32>
    %497 = arith.mulf %496, %496 : vector<16x32xf32>
    %cst_236 = arith.constant dense<0.000000e+00> : vector<16xf32>
    %498 = vector.multi_reduction <add>, %497, %cst_236 [1] : vector<16x32xf32> to vector<16xf32>
    %499 = vector.shape_cast %498 : vector<16xf32> to vector<16x1xf32>
    %cst_237 = arith.constant 3.200000e+01 : f32
    %500 = vector.broadcast %cst_237 : f32 to vector<16x1xf32>
    %501 = arith.divf %499, %500 : vector<16x1xf32>
    %502 = vector.broadcast %494 : vector<16x1xf32> to vector<16x32xf32>
    %503 = arith.subf %486, %502 : vector<16x32xf32>
    %cst_238 = arith.constant 9.99999974E-6 : f32
    %504 = vector.broadcast %cst_238 : f32 to vector<16x1xf32>
    %505 = arith.addf %501, %504 : vector<16x1xf32>
    %506 = math.rsqrt %505 : vector<16x1xf32>
    %507 = vector.broadcast %506 : vector<16x1xf32> to vector<16x32xf32>
    %508 = arith.mulf %503, %507 : vector<16x32xf32>
    %509 = vector.broadcast %488 : vector<1x32xf32> to vector<16x32xf32>
    %510 = arith.mulf %508, %509 : vector<16x32xf32>
    %511 = vector.broadcast %490 : vector<1x32xf32> to vector<16x32xf32>
    %512 = arith.addf %510, %511 : vector<16x32xf32>
    %513 = arith.truncf %512 : vector<16x32xf32> to vector<16x32xbf16>
    %c0_239 = arith.constant 0 : index
    %c0_240 = arith.constant 0 : index
    %c0_241 = arith.constant 0 : index
    %514 = vector.load %arg40[%c0_239, %c0_240, %c0_241] : memref<2x32x2048xbf16, #tpu.memory_space<vmem>>, vector<1x32x2048xbf16>
    %515 = vector.shape_cast %514 : vector<1x32x2048xbf16> to vector<32x2048xbf16>
    %cst_242 = arith.constant dense<0.000000e+00> : vector<16x2048xf32>
    %516 = tpu.matmul %513, %515, %cst_242 {dimension_numbers = #tpu.dot_dimension_numbers<[1], [0], [0], [1], [0, 0, 1, 1], [], []>} : vector<16x32xbf16>, vector<32x2048xbf16>, vector<16x2048xf32> -> vector<16x2048xf32>
    %c0_243 = arith.constant 0 : index
    %c0_244 = arith.constant 0 : index
    %c0_245 = arith.constant 0 : index
    %517 = vector.load %arg41[%c0_243, %c0_244, %c0_245] : memref<2x1x2048xf32, #tpu.memory_space<vmem>>, vector<1x1x2048xf32>
    %518 = vector.shape_cast %517 : vector<1x1x2048xf32> to vector<1x2048xf32>
    %519 = vector.broadcast %518 : vector<1x2048xf32> to vector<16x2048xf32>
    %520 = arith.addf %516, %519 : vector<16x2048xf32>
    %cst_246 = arith.constant 0.000000e+00 : f32
    %521 = vector.broadcast %cst_246 : f32 to vector<16x2048xf32>
    %522 = arith.maximumf %520, %521 : vector<16x2048xf32>
    %523 = arith.truncf %522 : vector<16x2048xf32> to vector<16x2048xbf16>
    %c0_247 = arith.constant 0 : index
    %c0_248 = arith.constant 0 : index
    %c0_249 = arith.constant 0 : index
    %524 = vector.load %arg42[%c0_247, %c0_248, %c0_249] : memref<2x2048x32xbf16, #tpu.memory_space<vmem>>, vector<1x2048x32xbf16>
    %525 = vector.shape_cast %524 : vector<1x2048x32xbf16> to vector<2048x32xbf16>
    %cst_250 = arith.constant dense<0.000000e+00> : vector<16x32xf32>
    %526 = tpu.matmul %523, %525, %cst_250 {dimension_numbers = #tpu.dot_dimension_numbers<[1], [0], [0], [1], [0, 0, 1, 1], [], []>} : vector<16x2048xbf16>, vector<2048x32xbf16>, vector<16x32xf32> -> vector<16x32xf32>
    %c0_251 = arith.constant 0 : index
    %c0_252 = arith.constant 0 : index
    %c0_253 = arith.constant 0 : index
    %527 = vector.load %arg43[%c0_251, %c0_252, %c0_253] : memref<2x1x32xf32, #tpu.memory_space<vmem>>, vector<1x1x32xf32>
    %528 = vector.shape_cast %527 : vector<1x1x32xf32> to vector<1x32xf32>
    %529 = vector.broadcast %528 : vector<1x32xf32> to vector<16x32xf32>
    %530 = arith.addf %526, %529 : vector<16x32xf32>
    %531 = arith.addf %512, %530 : vector<16x32xf32>
    %c0_254 = arith.constant 0 : index
    %c0_255 = arith.constant 0 : index
    %c0_256 = arith.constant 0 : index
    %532 = vector.load %arg44[%c0_254, %c0_255, %c0_256] : memref<2x1x32xf32, #tpu.memory_space<vmem>>, vector<1x1x32xf32>
    %533 = vector.shape_cast %532 : vector<1x1x32xf32> to vector<1x32xf32>
    %c0_257 = arith.constant 0 : index
    %c0_258 = arith.constant 0 : index
    %c0_259 = arith.constant 0 : index
    %534 = vector.load %arg45[%c0_257, %c0_258, %c0_259] : memref<2x1x32xf32, #tpu.memory_space<vmem>>, vector<1x1x32xf32>
    %535 = vector.shape_cast %534 : vector<1x1x32xf32> to vector<1x32xf32>
    %cst_260 = arith.constant dense<0.000000e+00> : vector<16xf32>
    %536 = vector.multi_reduction <add>, %531, %cst_260 [1] : vector<16x32xf32> to vector<16xf32>
    %537 = vector.shape_cast %536 : vector<16xf32> to vector<16x1xf32>
    %cst_261 = arith.constant 3.200000e+01 : f32
    %538 = vector.broadcast %cst_261 : f32 to vector<16x1xf32>
    %539 = arith.divf %537, %538 : vector<16x1xf32>
    %540 = vector.broadcast %539 : vector<16x1xf32> to vector<16x32xf32>
    %541 = arith.subf %531, %540 : vector<16x32xf32>
    %542 = arith.mulf %541, %541 : vector<16x32xf32>
    %cst_262 = arith.constant dense<0.000000e+00> : vector<16xf32>
    %543 = vector.multi_reduction <add>, %542, %cst_262 [1] : vector<16x32xf32> to vector<16xf32>
    %544 = vector.shape_cast %543 : vector<16xf32> to vector<16x1xf32>
    %cst_263 = arith.constant 3.200000e+01 : f32
    %545 = vector.broadcast %cst_263 : f32 to vector<16x1xf32>
    %546 = arith.divf %544, %545 : vector<16x1xf32>
    %547 = vector.broadcast %539 : vector<16x1xf32> to vector<16x32xf32>
    %548 = arith.subf %531, %547 : vector<16x32xf32>
    %cst_264 = arith.constant 9.99999974E-6 : f32
    %549 = vector.broadcast %cst_264 : f32 to vector<16x1xf32>
    %550 = arith.addf %546, %549 : vector<16x1xf32>
    %551 = math.rsqrt %550 : vector<16x1xf32>
    %552 = vector.broadcast %551 : vector<16x1xf32> to vector<16x32xf32>
    %553 = arith.mulf %548, %552 : vector<16x32xf32>
    %554 = vector.broadcast %533 : vector<1x32xf32> to vector<16x32xf32>
    %555 = arith.mulf %553, %554 : vector<16x32xf32>
    %556 = vector.broadcast %535 : vector<1x32xf32> to vector<16x32xf32>
    %557 = arith.addf %555, %556 : vector<16x32xf32>
    %558 = arith.truncf %557 : vector<16x32xf32> to vector<16x32xbf16>
    %c1_265 = arith.constant 1 : index
    %c0_266 = arith.constant 0 : index
    %c0_267 = arith.constant 0 : index
    %559 = vector.load %arg30[%c1_265, %c0_266, %c0_267] : memref<2x32x32xbf16, #tpu.memory_space<vmem>>, vector<1x32x32xbf16>
    %560 = vector.shape_cast %559 : vector<1x32x32xbf16> to vector<32x32xbf16>
    %cst_268 = arith.constant dense<0.000000e+00> : vector<16x32xf32>
    %561 = tpu.matmul %558, %560, %cst_268 {dimension_numbers = #tpu.dot_dimension_numbers<[1], [0], [0], [1], [0, 0, 1, 1], [], []>} : vector<16x32xbf16>, vector<32x32xbf16>, vector<16x32xf32> -> vector<16x32xf32>
    %c1_269 = arith.constant 1 : index
    %c0_270 = arith.constant 0 : index
    %c0_271 = arith.constant 0 : index
    %562 = vector.load %arg31[%c1_269, %c0_270, %c0_271] : memref<2x1x32xf32, #tpu.memory_space<vmem>>, vector<1x1x32xf32>
    %563 = vector.shape_cast %562 : vector<1x1x32xf32> to vector<1x32xf32>
    %564 = vector.broadcast %563 : vector<1x32xf32> to vector<16x32xf32>
    %565 = arith.addf %561, %564 : vector<16x32xf32>
    %c1_272 = arith.constant 1 : index
    %c0_273 = arith.constant 0 : index
    %c0_274 = arith.constant 0 : index
    %566 = vector.load %arg32[%c1_272, %c0_273, %c0_274] : memref<2x32x32xbf16, #tpu.memory_space<vmem>>, vector<1x32x32xbf16>
    %567 = vector.shape_cast %566 : vector<1x32x32xbf16> to vector<32x32xbf16>
    %cst_275 = arith.constant dense<0.000000e+00> : vector<16x32xf32>
    %568 = tpu.matmul %558, %567, %cst_275 {dimension_numbers = #tpu.dot_dimension_numbers<[1], [0], [0], [1], [0, 0, 1, 1], [], []>} : vector<16x32xbf16>, vector<32x32xbf16>, vector<16x32xf32> -> vector<16x32xf32>
    %c1_276 = arith.constant 1 : index
    %c0_277 = arith.constant 0 : index
    %c0_278 = arith.constant 0 : index
    %569 = vector.load %arg33[%c1_276, %c0_277, %c0_278] : memref<2x1x32xf32, #tpu.memory_space<vmem>>, vector<1x1x32xf32>
    %570 = vector.shape_cast %569 : vector<1x1x32xf32> to vector<1x32xf32>
    %571 = vector.broadcast %570 : vector<1x32xf32> to vector<16x32xf32>
    %572 = arith.addf %568, %571 : vector<16x32xf32>
    %c1_279 = arith.constant 1 : index
    %c0_280 = arith.constant 0 : index
    %c0_281 = arith.constant 0 : index
    %573 = vector.load %arg34[%c1_279, %c0_280, %c0_281] : memref<2x32x32xbf16, #tpu.memory_space<vmem>>, vector<1x32x32xbf16>
    %574 = vector.shape_cast %573 : vector<1x32x32xbf16> to vector<32x32xbf16>
    %cst_282 = arith.constant dense<0.000000e+00> : vector<16x32xf32>
    %575 = tpu.matmul %558, %574, %cst_282 {dimension_numbers = #tpu.dot_dimension_numbers<[1], [0], [0], [1], [0, 0, 1, 1], [], []>} : vector<16x32xbf16>, vector<32x32xbf16>, vector<16x32xf32> -> vector<16x32xf32>
    %c1_283 = arith.constant 1 : index
    %c0_284 = arith.constant 0 : index
    %c0_285 = arith.constant 0 : index
    %576 = vector.load %arg35[%c1_283, %c0_284, %c0_285] : memref<2x1x32xf32, #tpu.memory_space<vmem>>, vector<1x1x32xf32>
    %577 = vector.shape_cast %576 : vector<1x1x32xf32> to vector<1x32xf32>
    %578 = vector.broadcast %577 : vector<1x32xf32> to vector<16x32xf32>
    %579 = arith.addf %575, %578 : vector<16x32xf32>
    %580 = vector.broadcast %379 : vector<1x32xf32> to vector<16x32xf32>
    %581 = arith.mulf %565, %580 : vector<16x32xf32>
    %582 = vector.broadcast %386 : vector<1x32xf32> to vector<16x32xf32>
    %583 = arith.mulf %565, %582 : vector<16x32xf32>
    %584 = vector.broadcast %393 : vector<1x32xf32> to vector<16x32xf32>
    %585 = arith.mulf %565, %584 : vector<16x32xf32>
    %586 = vector.broadcast %400 : vector<1x32xf32> to vector<16x32xf32>
    %587 = arith.mulf %565, %586 : vector<16x32xf32>
    %588 = tpu.concatenate %581, %583, %585, %587 in 0 : vector<16x32xf32>, vector<16x32xf32>, vector<16x32xf32>, vector<16x32xf32> -> vector<64x32xf32>
    %589 = arith.truncf %588 : vector<64x32xf32> to vector<64x32xbf16>
    %590 = arith.truncf %572 : vector<16x32xf32> to vector<16x32xbf16>
    %cst_286 = arith.constant dense<0.000000e+00> : vector<64x16xf32>
    %591 = tpu.matmul %589, %590, %cst_286 {dimension_numbers = #tpu.dot_dimension_numbers<[1], [1], [0], [0], [0, 0, 1, 0], [], []>} : vector<64x32xbf16>, vector<16x32xbf16>, vector<64x16xf32> -> vector<64x16xf32>
    %cst_287 = arith.constant 0.353553385 : f32
    %592 = vector.broadcast %cst_287 : f32 to vector<64x16xf32>
    %593 = arith.mulf %591, %592 : vector<64x16xf32>
    %594 = arith.addf %593, %411 : vector<64x16xf32>
    %cst_288 = arith.constant dense<0xFF800000> : vector<64xf32>
    %595 = vector.multi_reduction <maximumf>, %594, %cst_288 [1] : vector<64x16xf32> to vector<64xf32>
    %596 = vector.shape_cast %595 : vector<64xf32> to vector<64x1xf32>
    %597 = vector.broadcast %596 : vector<64x1xf32> to vector<64x16xf32>
    %598 = arith.subf %594, %597 : vector<64x16xf32>
    %599 = math.exp %598 : vector<64x16xf32>
    %cst_289 = arith.constant dense<0.000000e+00> : vector<64xf32>
    %600 = vector.multi_reduction <add>, %599, %cst_289 [1] : vector<64x16xf32> to vector<64xf32>
    %601 = vector.shape_cast %600 : vector<64xf32> to vector<64x1xf32>
    %602 = vector.broadcast %601 : vector<64x1xf32> to vector<64x16xf32>
    %603 = arith.divf %599, %602 : vector<64x16xf32>
    %604 = arith.truncf %603 : vector<64x16xf32> to vector<64x16xbf16>
    %605 = arith.truncf %579 : vector<16x32xf32> to vector<16x32xbf16>
    %cst_290 = arith.constant dense<0.000000e+00> : vector<64x32xf32>
    %606 = tpu.matmul %604, %605, %cst_290 {dimension_numbers = #tpu.dot_dimension_numbers<[1], [0], [0], [1], [0, 0, 1, 1], [], []>} : vector<64x16xbf16>, vector<16x32xbf16>, vector<64x32xf32> -> vector<64x32xf32>
    %cst_291 = arith.constant 0.000000e+00 : f32
    %607 = vector.broadcast %cst_291 : f32 to vector<16x32xf32>
    %608 = vector.extract_strided_slice %606 {offsets = [0, 0], sizes = [16, 32], strides = [1, 1]} : vector<64x32xf32> to vector<16x32xf32>
    %609 = vector.broadcast %379 : vector<1x32xf32> to vector<16x32xf32>
    %610 = arith.mulf %608, %609 : vector<16x32xf32>
    %611 = arith.addf %607, %610 : vector<16x32xf32>
    %612 = vector.extract_strided_slice %606 {offsets = [16, 0], sizes = [16, 32], strides = [1, 1]} : vector<64x32xf32> to vector<16x32xf32>
    %613 = vector.broadcast %386 : vector<1x32xf32> to vector<16x32xf32>
    %614 = arith.mulf %612, %613 : vector<16x32xf32>
    %615 = arith.addf %611, %614 : vector<16x32xf32>
    %616 = vector.extract_strided_slice %606 {offsets = [32, 0], sizes = [16, 32], strides = [1, 1]} : vector<64x32xf32> to vector<16x32xf32>
    %617 = vector.broadcast %393 : vector<1x32xf32> to vector<16x32xf32>
    %618 = arith.mulf %616, %617 : vector<16x32xf32>
    %619 = arith.addf %615, %618 : vector<16x32xf32>
    %620 = vector.extract_strided_slice %606 {offsets = [48, 0], sizes = [16, 32], strides = [1, 1]} : vector<64x32xf32> to vector<16x32xf32>
    %621 = vector.broadcast %400 : vector<1x32xf32> to vector<16x32xf32>
    %622 = arith.mulf %620, %621 : vector<16x32xf32>
    %623 = arith.addf %619, %622 : vector<16x32xf32>
    %624 = arith.truncf %623 : vector<16x32xf32> to vector<16x32xbf16>
    %c1_292 = arith.constant 1 : index
    %c0_293 = arith.constant 0 : index
    %c0_294 = arith.constant 0 : index
    %625 = vector.load %arg36[%c1_292, %c0_293, %c0_294] : memref<2x32x32xbf16, #tpu.memory_space<vmem>>, vector<1x32x32xbf16>
    %626 = vector.shape_cast %625 : vector<1x32x32xbf16> to vector<32x32xbf16>
    %cst_295 = arith.constant dense<0.000000e+00> : vector<16x32xf32>
    %627 = tpu.matmul %624, %626, %cst_295 {dimension_numbers = #tpu.dot_dimension_numbers<[1], [0], [0], [1], [0, 0, 1, 1], [], []>} : vector<16x32xbf16>, vector<32x32xbf16>, vector<16x32xf32> -> vector<16x32xf32>
    %c1_296 = arith.constant 1 : index
    %c0_297 = arith.constant 0 : index
    %c0_298 = arith.constant 0 : index
    %628 = vector.load %arg37[%c1_296, %c0_297, %c0_298] : memref<2x1x32xf32, #tpu.memory_space<vmem>>, vector<1x1x32xf32>
    %629 = vector.shape_cast %628 : vector<1x1x32xf32> to vector<1x32xf32>
    %630 = vector.broadcast %629 : vector<1x32xf32> to vector<16x32xf32>
    %631 = arith.addf %627, %630 : vector<16x32xf32>
    %632 = arith.addf %557, %631 : vector<16x32xf32>
    %c1_299 = arith.constant 1 : index
    %c0_300 = arith.constant 0 : index
    %c0_301 = arith.constant 0 : index
    %633 = vector.load %arg38[%c1_299, %c0_300, %c0_301] : memref<2x1x32xf32, #tpu.memory_space<vmem>>, vector<1x1x32xf32>
    %634 = vector.shape_cast %633 : vector<1x1x32xf32> to vector<1x32xf32>
    %c1_302 = arith.constant 1 : index
    %c0_303 = arith.constant 0 : index
    %c0_304 = arith.constant 0 : index
    %635 = vector.load %arg39[%c1_302, %c0_303, %c0_304] : memref<2x1x32xf32, #tpu.memory_space<vmem>>, vector<1x1x32xf32>
    %636 = vector.shape_cast %635 : vector<1x1x32xf32> to vector<1x32xf32>
    %cst_305 = arith.constant dense<0.000000e+00> : vector<16xf32>
    %637 = vector.multi_reduction <add>, %632, %cst_305 [1] : vector<16x32xf32> to vector<16xf32>
    %638 = vector.shape_cast %637 : vector<16xf32> to vector<16x1xf32>
    %cst_306 = arith.constant 3.200000e+01 : f32
    %639 = vector.broadcast %cst_306 : f32 to vector<16x1xf32>
    %640 = arith.divf %638, %639 : vector<16x1xf32>
    %641 = vector.broadcast %640 : vector<16x1xf32> to vector<16x32xf32>
    %642 = arith.subf %632, %641 : vector<16x32xf32>
    %643 = arith.mulf %642, %642 : vector<16x32xf32>
    %cst_307 = arith.constant dense<0.000000e+00> : vector<16xf32>
    %644 = vector.multi_reduction <add>, %643, %cst_307 [1] : vector<16x32xf32> to vector<16xf32>
    %645 = vector.shape_cast %644 : vector<16xf32> to vector<16x1xf32>
    %cst_308 = arith.constant 3.200000e+01 : f32
    %646 = vector.broadcast %cst_308 : f32 to vector<16x1xf32>
    %647 = arith.divf %645, %646 : vector<16x1xf32>
    %648 = vector.broadcast %640 : vector<16x1xf32> to vector<16x32xf32>
    %649 = arith.subf %632, %648 : vector<16x32xf32>
    %cst_309 = arith.constant 9.99999974E-6 : f32
    %650 = vector.broadcast %cst_309 : f32 to vector<16x1xf32>
    %651 = arith.addf %647, %650 : vector<16x1xf32>
    %652 = math.rsqrt %651 : vector<16x1xf32>
    %653 = vector.broadcast %652 : vector<16x1xf32> to vector<16x32xf32>
    %654 = arith.mulf %649, %653 : vector<16x32xf32>
    %655 = vector.broadcast %634 : vector<1x32xf32> to vector<16x32xf32>
    %656 = arith.mulf %654, %655 : vector<16x32xf32>
    %657 = vector.broadcast %636 : vector<1x32xf32> to vector<16x32xf32>
    %658 = arith.addf %656, %657 : vector<16x32xf32>
    %659 = arith.truncf %658 : vector<16x32xf32> to vector<16x32xbf16>
    %c1_310 = arith.constant 1 : index
    %c0_311 = arith.constant 0 : index
    %c0_312 = arith.constant 0 : index
    %660 = vector.load %arg40[%c1_310, %c0_311, %c0_312] : memref<2x32x2048xbf16, #tpu.memory_space<vmem>>, vector<1x32x2048xbf16>
    %661 = vector.shape_cast %660 : vector<1x32x2048xbf16> to vector<32x2048xbf16>
    %cst_313 = arith.constant dense<0.000000e+00> : vector<16x2048xf32>
    %662 = tpu.matmul %659, %661, %cst_313 {dimension_numbers = #tpu.dot_dimension_numbers<[1], [0], [0], [1], [0, 0, 1, 1], [], []>} : vector<16x32xbf16>, vector<32x2048xbf16>, vector<16x2048xf32> -> vector<16x2048xf32>
    %c1_314 = arith.constant 1 : index
    %c0_315 = arith.constant 0 : index
    %c0_316 = arith.constant 0 : index
    %663 = vector.load %arg41[%c1_314, %c0_315, %c0_316] : memref<2x1x2048xf32, #tpu.memory_space<vmem>>, vector<1x1x2048xf32>
    %664 = vector.shape_cast %663 : vector<1x1x2048xf32> to vector<1x2048xf32>
    %665 = vector.broadcast %664 : vector<1x2048xf32> to vector<16x2048xf32>
    %666 = arith.addf %662, %665 : vector<16x2048xf32>
    %cst_317 = arith.constant 0.000000e+00 : f32
    %667 = vector.broadcast %cst_317 : f32 to vector<16x2048xf32>
    %668 = arith.maximumf %666, %667 : vector<16x2048xf32>
    %669 = arith.truncf %668 : vector<16x2048xf32> to vector<16x2048xbf16>
    %c1_318 = arith.constant 1 : index
    %c0_319 = arith.constant 0 : index
    %c0_320 = arith.constant 0 : index
    %670 = vector.load %arg42[%c1_318, %c0_319, %c0_320] : memref<2x2048x32xbf16, #tpu.memory_space<vmem>>, vector<1x2048x32xbf16>
    %671 = vector.shape_cast %670 : vector<1x2048x32xbf16> to vector<2048x32xbf16>
    %cst_321 = arith.constant dense<0.000000e+00> : vector<16x32xf32>
    %672 = tpu.matmul %669, %671, %cst_321 {dimension_numbers = #tpu.dot_dimension_numbers<[1], [0], [0], [1], [0, 0, 1, 1], [], []>} : vector<16x2048xbf16>, vector<2048x32xbf16>, vector<16x32xf32> -> vector<16x32xf32>
    %c1_322 = arith.constant 1 : index
    %c0_323 = arith.constant 0 : index
    %c0_324 = arith.constant 0 : index
    %673 = vector.load %arg43[%c1_322, %c0_323, %c0_324] : memref<2x1x32xf32, #tpu.memory_space<vmem>>, vector<1x1x32xf32>
    %674 = vector.shape_cast %673 : vector<1x1x32xf32> to vector<1x32xf32>
    %675 = vector.broadcast %674 : vector<1x32xf32> to vector<16x32xf32>
    %676 = arith.addf %672, %675 : vector<16x32xf32>
    %677 = arith.addf %658, %676 : vector<16x32xf32>
    %c1_325 = arith.constant 1 : index
    %c0_326 = arith.constant 0 : index
    %c0_327 = arith.constant 0 : index
    %678 = vector.load %arg44[%c1_325, %c0_326, %c0_327] : memref<2x1x32xf32, #tpu.memory_space<vmem>>, vector<1x1x32xf32>
    %679 = vector.shape_cast %678 : vector<1x1x32xf32> to vector<1x32xf32>
    %c1_328 = arith.constant 1 : index
    %c0_329 = arith.constant 0 : index
    %c0_330 = arith.constant 0 : index
    %680 = vector.load %arg45[%c1_328, %c0_329, %c0_330] : memref<2x1x32xf32, #tpu.memory_space<vmem>>, vector<1x1x32xf32>
    %681 = vector.shape_cast %680 : vector<1x1x32xf32> to vector<1x32xf32>
    %cst_331 = arith.constant dense<0.000000e+00> : vector<16xf32>
    %682 = vector.multi_reduction <add>, %677, %cst_331 [1] : vector<16x32xf32> to vector<16xf32>
    %683 = vector.shape_cast %682 : vector<16xf32> to vector<16x1xf32>
    %cst_332 = arith.constant 3.200000e+01 : f32
    %684 = vector.broadcast %cst_332 : f32 to vector<16x1xf32>
    %685 = arith.divf %683, %684 : vector<16x1xf32>
    %686 = vector.broadcast %685 : vector<16x1xf32> to vector<16x32xf32>
    %687 = arith.subf %677, %686 : vector<16x32xf32>
    %688 = arith.mulf %687, %687 : vector<16x32xf32>
    %cst_333 = arith.constant dense<0.000000e+00> : vector<16xf32>
    %689 = vector.multi_reduction <add>, %688, %cst_333 [1] : vector<16x32xf32> to vector<16xf32>
    %690 = vector.shape_cast %689 : vector<16xf32> to vector<16x1xf32>
    %cst_334 = arith.constant 3.200000e+01 : f32
    %691 = vector.broadcast %cst_334 : f32 to vector<16x1xf32>
    %692 = arith.divf %690, %691 : vector<16x1xf32>
    %693 = vector.broadcast %685 : vector<16x1xf32> to vector<16x32xf32>
    %694 = arith.subf %677, %693 : vector<16x32xf32>
    %cst_335 = arith.constant 9.99999974E-6 : f32
    %695 = vector.broadcast %cst_335 : f32 to vector<16x1xf32>
    %696 = arith.addf %692, %695 : vector<16x1xf32>
    %697 = math.rsqrt %696 : vector<16x1xf32>
    %698 = vector.broadcast %697 : vector<16x1xf32> to vector<16x32xf32>
    %699 = arith.mulf %694, %698 : vector<16x32xf32>
    %700 = vector.broadcast %679 : vector<1x32xf32> to vector<16x32xf32>
    %701 = arith.mulf %699, %700 : vector<16x32xf32>
    %702 = vector.broadcast %681 : vector<1x32xf32> to vector<16x32xf32>
    %703 = arith.addf %701, %702 : vector<16x32xf32>
    %c0_336 = arith.constant 0 : index
    %c0_337 = arith.constant 0 : index
    %704 = vector.load %arg46[%c0_336, %c0_337] : memref<16x1xi32, #tpu.memory_space<vmem>>, vector<16x1xi32>
    %705 = tpu.iota {dimensions = array<i32: 1>} : vector<16x8xi32>
    %706 = vector.broadcast %704 : vector<16x1xi32> to vector<16x8xi32>
    %707 = arith.cmpi eq, %706, %705 : vector<16x8xi32>
    %708 = arith.extui %707 : vector<16x8xi1> to vector<16x8xi32>
    %709 = arith.sitofp %708 : vector<16x8xi32> to vector<16x8xf32>
    %c0_338 = arith.constant 0 : index
    %c0_339 = arith.constant 0 : index
    %710 = vector.load %arg47[%c0_338, %c0_339] : memref<16x1xi32, #tpu.memory_space<vmem>>, vector<16x1xi32>
    %711 = tpu.iota {dimensions = array<i32: 1>} : vector<16x8xi32>
    %712 = vector.broadcast %710 : vector<16x1xi32> to vector<16x8xi32>
    %713 = arith.cmpi eq, %712, %711 : vector<16x8xi32>
    %714 = arith.extui %713 : vector<16x8xi1> to vector<16x8xi32>
    %715 = arith.sitofp %714 : vector<16x8xi32> to vector<16x8xf32>
    %716 = vector.extract_strided_slice %351 {offsets = [0, 0], sizes = [8, 32], strides = [1, 1]} : vector<16x32xf32> to vector<8x32xf32>
    %cst_340 = arith.constant dense<0.000000e+00> : vector<16x32xf32>
    %717 = tpu.matmul %709, %716, %cst_340 {dimension_numbers = #tpu.dot_dimension_numbers<[1], [0], [0], [1], [0, 0, 1, 1], [], []>} : vector<16x8xf32>, vector<8x32xf32>, vector<16x32xf32> -> vector<16x32xf32>
    %718 = vector.extract_strided_slice %351 {offsets = [8, 0], sizes = [8, 32], strides = [1, 1]} : vector<16x32xf32> to vector<8x32xf32>
    %cst_341 = arith.constant dense<0.000000e+00> : vector<16x32xf32>
    %719 = tpu.matmul %709, %718, %cst_341 {dimension_numbers = #tpu.dot_dimension_numbers<[1], [0], [0], [1], [0, 0, 1, 1], [], []>} : vector<16x8xf32>, vector<8x32xf32>, vector<16x32xf32> -> vector<16x32xf32>
    %720 = vector.extract_strided_slice %703 {offsets = [0, 0], sizes = [8, 32], strides = [1, 1]} : vector<16x32xf32> to vector<8x32xf32>
    %cst_342 = arith.constant dense<0.000000e+00> : vector<16x32xf32>
    %721 = tpu.matmul %715, %720, %cst_342 {dimension_numbers = #tpu.dot_dimension_numbers<[1], [0], [0], [1], [0, 0, 1, 1], [], []>} : vector<16x8xf32>, vector<8x32xf32>, vector<16x32xf32> -> vector<16x32xf32>
    %722 = vector.extract_strided_slice %703 {offsets = [8, 0], sizes = [8, 32], strides = [1, 1]} : vector<16x32xf32> to vector<8x32xf32>
    %cst_343 = arith.constant dense<0.000000e+00> : vector<16x32xf32>
    %723 = tpu.matmul %715, %722, %cst_343 {dimension_numbers = #tpu.dot_dimension_numbers<[1], [0], [0], [1], [0, 0, 1, 1], [], []>} : vector<16x8xf32>, vector<8x32xf32>, vector<16x32xf32> -> vector<16x32xf32>
    %724 = arith.mulf %717, %721 : vector<16x32xf32>
    %725 = arith.mulf %719, %723 : vector<16x32xf32>
    %726 = arith.truncf %724 : vector<16x32xf32> to vector<16x32xbf16>
    %c0_344 = arith.constant 0 : index
    %c0_345 = arith.constant 0 : index
    %727 = vector.load %arg48[%c0_344, %c0_345] : memref<64x32xbf16, #tpu.memory_space<vmem>>, vector<32x32xbf16>
    %cst_346 = arith.constant dense<0.000000e+00> : vector<16x32xf32>
    %728 = tpu.matmul %726, %727, %cst_346 {dimension_numbers = #tpu.dot_dimension_numbers<[1], [0], [0], [1], [0, 0, 1, 1], [], []>} : vector<16x32xbf16>, vector<32x32xbf16>, vector<16x32xf32> -> vector<16x32xf32>
    %729 = arith.truncf %725 : vector<16x32xf32> to vector<16x32xbf16>
    %c32 = arith.constant 32 : index
    %c0_347 = arith.constant 0 : index
    %730 = vector.load %arg48[%c32, %c0_347] : memref<64x32xbf16, #tpu.memory_space<vmem>>, vector<32x32xbf16>
    %cst_348 = arith.constant dense<0.000000e+00> : vector<16x32xf32>
    %731 = tpu.matmul %729, %730, %cst_348 {dimension_numbers = #tpu.dot_dimension_numbers<[1], [0], [0], [1], [0, 0, 1, 1], [], []>} : vector<16x32xbf16>, vector<32x32xbf16>, vector<16x32xf32> -> vector<16x32xf32>
    %732 = arith.addf %728, %731 : vector<16x32xf32>
    %c0_349 = arith.constant 0 : index
    %c0_350 = arith.constant 0 : index
    %733 = vector.load %arg49[%c0_349, %c0_350] : memref<1x32xf32, #tpu.memory_space<vmem>>, vector<1x32xf32>
    %734 = vector.broadcast %733 : vector<1x32xf32> to vector<16x32xf32>
    %735 = arith.addf %732, %734 : vector<16x32xf32>
    %cst_351 = arith.constant 0.000000e+00 : f32
    %736 = vector.broadcast %cst_351 : f32 to vector<16x32xf32>
    %737 = arith.maximumf %735, %736 : vector<16x32xf32>
    %738 = arith.truncf %737 : vector<16x32xf32> to vector<16x32xbf16>
    %c0_352 = arith.constant 0 : index
    %c0_353 = arith.constant 0 : index
    %739 = vector.load %arg50[%c0_352, %c0_353] : memref<32x32xbf16, #tpu.memory_space<vmem>>, vector<32x32xbf16>
    %cst_354 = arith.constant dense<0.000000e+00> : vector<16x32xf32>
    %740 = tpu.matmul %738, %739, %cst_354 {dimension_numbers = #tpu.dot_dimension_numbers<[1], [0], [0], [1], [0, 0, 1, 1], [], []>} : vector<16x32xbf16>, vector<32x32xbf16>, vector<16x32xf32> -> vector<16x32xf32>
    %c0_355 = arith.constant 0 : index
    %c0_356 = arith.constant 0 : index
    %741 = vector.load %arg51[%c0_355, %c0_356] : memref<1x32xf32, #tpu.memory_space<vmem>>, vector<1x32xf32>
    %742 = vector.broadcast %741 : vector<1x32xf32> to vector<16x32xf32>
    %743 = arith.addf %740, %742 : vector<16x32xf32>
    %cst_357 = arith.constant 0.000000e+00 : f32
    %744 = vector.broadcast %cst_357 : f32 to vector<16x32xf32>
    %745 = arith.maximumf %743, %744 : vector<16x32xf32>
    %746 = arith.truncf %745 : vector<16x32xf32> to vector<16x32xbf16>
    %c0_358 = arith.constant 0 : index
    %c0_359 = arith.constant 0 : index
    %747 = vector.load %arg52[%c0_358, %c0_359] : memref<32x128xbf16, #tpu.memory_space<vmem>>, vector<32x128xbf16>
    %cst_360 = arith.constant dense<0.000000e+00> : vector<16x128xf32>
    %748 = tpu.matmul %746, %747, %cst_360 {dimension_numbers = #tpu.dot_dimension_numbers<[1], [0], [0], [1], [0, 0, 1, 1], [], []>} : vector<16x32xbf16>, vector<32x128xbf16>, vector<16x128xf32> -> vector<16x128xf32>
    %c0_361 = arith.constant 0 : index
    %c0_362 = arith.constant 0 : index
    %749 = vector.load %arg53[%c0_361, %c0_362] : memref<1x128xf32, #tpu.memory_space<vmem>>, vector<1x128xf32>
    %750 = vector.broadcast %749 : vector<1x128xf32> to vector<16x128xf32>
    %751 = arith.addf %748, %750 : vector<16x128xf32>
    %c0_363 = arith.constant 0 : index
    %c0_364 = arith.constant 0 : index
    %752 = vector.load %arg54[%c0_363, %c0_364] : memref<16x128xf32, #tpu.memory_space<vmem>>, vector<16x128xf32>
    tpu.vector_store %arg54[%c0_363, %c0_364], %751 {strides = array<i32>} : memref<16x128xf32, #tpu.memory_space<vmem>>, vector<16x128xf32>,
    return
  }
}

</mosaic_0001>

<bundles_post_ra>
// kernel: fwd.1
= control target key start
LH: loop header
LB: loop body
LE: loop exit
PB: predicated region body
PF: predicated region fallthrough
CT: control target
= control target key end

     0   :  { %s15607_s6 = smov 1   ;;  %s15608_s10 = smov 2   ;;  %s17021_s0 = inlined_call_operand.smem [shape: u32[55], index: -1, kind: input, shape index: {}] }
   0x1   :  { %s15696_s5 = sld [smem:[%s17021_s0]]   ;;  %s15609_s14 = smov 3  }
   0x2   :  { %s15701_s9 = sld [smem:[%s17021_s0 + %s15607_s6]]   ;;  %s15610_s18 = smov 4  }
   0x3   :  { %s15706_s13 = sld [smem:[%s17021_s0 + %s15608_s10]]   ;;  %s15611_s22 = smov 5  }
   0x4   :  { %s15711_s17 = sld [smem:[%s17021_s0 + %s15609_s14]]   ;;  %s15612_s26 = smov 6  }
   0x5   :  { %s15716_s21 = sld [smem:[%s17021_s0 + %s15610_s18]]   ;;  %s15613_s30 = smov 7  }
   0x6   :  { %s15721_s25 = sld [smem:[%s17021_s0 + %s15611_s22]]   ;;  %s15614_s4 = smov 8  }
   0x7   :  { %s15726_s29 = sld [smem:[%s17021_s0 + %s15612_s26]]   ;;  %s15615_s10 = smov 9  }
   0x8   :  { %s15731_s3 = sld [smem:[%s17021_s0 + %s15613_s30]]   ;;  %s15616_s15 = smov 10  }
   0x9   :  { %17048 = sst [smem:[#allocation44_spill]] %s15706_s13  ;;  %s15617_s20 = smov 11  }
   0xa   :  { %s15736_s8 = sld [smem:[%s17021_s0 + %s15614_s4]]   ;;  %s15618_s26 = smov 12  }
   0xb   :  { %s15741_s14 = sld [smem:[%s17021_s0 + %s15615_s10]]   ;;  %s15619_s1 = smov 13  }
   0xc   :  { %s15746_s19 = sld [smem:[%s17021_s0 + %s15616_s15]]   ;;  %s15620_s7 = smov 14  }
   0xd   :  { %17049 = sst [smem:[#allocation45_spill]] %s15726_s29  ;;  %s15621_s15 = smov 15  }
   0xe   :  { %s15751_s24 = sld [smem:[%s17021_s0 + %s15617_s20]]   ;;  %s15622_s22 = smov 16  }
   0xf   :  { %s15756_s30 = sld [smem:[%s17021_s0 + %s15618_s26]]   ;;  %s15623_s28 = smov 17  }
  0x10   :  { %17050 = sst [smem:[#allocation46_spill]] %s15736_s8 }
  0x11   :  { %s15761_s6 = sld [smem:[%s17021_s0 + %s15619_s1]]  }
  0x12   :  { %17051 = sst [smem:[#allocation47_spill]] %s15746_s19 }
  0x13   :  { %s15766_s12 = sld [smem:[%s17021_s0 + %s15620_s7]]   ;;  %s15624_s7 = smov 18  }
  0x14   :  { %s15771_s20 = sld [smem:[%s17021_s0 + %s15621_s15]]   ;;  %s15625_s15 = smov 19  }
  0x15   :  { %17052 = sst [smem:[#allocation48_spill]] %s15756_s30 }
  0x16   :  { %s15776_s27 = sld [smem:[%s17021_s0 + %s15622_s22]]   ;;  %s15626_s22 = smov 20  }
  0x17   :  { %s15781_s4 = sld [smem:[%s17021_s0 + %s15623_s28]]   ;;  %s15627_s28 = smov 21  }
  0x18   :  { %s15801_s30 = sld [smem:[%s17021_s0 + %s15627_s28]]   ;;  %s15631_s28 = smov 25  }
  0x19   :  { %17053 = sst [smem:[#allocation49_spill]] %s15766_s12 }
  0x1a   :  { %17054 = sst [smem:[#allocation50_spill]] %s15771_s20 }
  0x1b   :  { %s15786_s12 = sld [smem:[%s17021_s0 + %s15624_s7]]   ;;  %s15628_s7 = smov 22  }
  0x1c   :  { %17055 = sst [smem:[#allocation51_spill]] %s15776_s27 }
  0x1d   :  { %s15791_s20 = sld [smem:[%s17021_s0 + %s15625_s15]]   ;;  %s15629_s15 = smov 23  }
  0x1e   :  { %s15796_s27 = sld [smem:[%s17021_s0 + %s15626_s22]]   ;;  %s15630_s22 = smov 24  }
  0x1f   :  { %17059 = sst [smem:[#allocation55_spill]] %s15801_s30 }
  0x20   :  { %s15811_s19 = sld [smem:[%s17021_s0 + %s15629_s15]]   ;;  %s15633_s15 = smov 27  }
  0x21   :  { %17056 = sst [smem:[#allocation52_spill]] %s15786_s12 }
  0x22   :  { %s15806_s12 = sld [smem:[%s17021_s0 + %s15628_s7]]   ;;  %s15632_s7 = smov 26  }
  0x23   :  { %17057 = sst [smem:[#allocation53_spill]] %s15791_s20 }
  0x24   :  { %17058 = sst [smem:[#allocation54_spill]] %s15796_s27 }
  0x25   :  { %s15816_s27 = sld [smem:[%s17021_s0 + %s15630_s22]]   ;;  %s15634_s22 = smov 28  }
  0x26   :  { %s15821_s30 = sld [smem:[%s17021_s0 + %s15631_s28]]   ;;  %s15635_s28 = smov 29  }
  0x27   :  { %s15831_s8 = sld [smem:[%s17021_s0 + %s15633_s15]]   ;;  %s15637_s15 = smov 31  }
  0x28   :  { %17060 = sst [smem:[#allocation56_spill]] %s15806_s12 }
  0x29   :  { %s15826_s12 = sld [smem:[%s17021_s0 + %s15632_s7]]   ;;  %s15636_s7 = smov 30  }
  0x2a   :  { %s15836_s29 = sld [smem:[%s17021_s0 + %s15634_s22]]   ;;  %s15638_s22 = smov 32  }
  0x2b   :  { %17061 = sst [smem:[#allocation57_spill]] %s15816_s27 }
  0x2c   :  { %17062 = sst [smem:[#allocation58_spill]] %s15821_s30 }
  0x2d   :  { %17063 = sst [smem:[#allocation59_spill]] %s15831_s8 }
  0x2e   :  { %s15841_s30 = sld [smem:[%s17021_s0 + %s15635_s28]]   ;;  %s15639_s28 = smov 33  }
  0x2f   :  { %s15846_s13 = sld [smem:[%s17021_s0 + %s15636_s7]]   ;;  %s15640_s7 = smov 34  }
  0x30   :  { %s15851_s8 = sld [smem:[%s17021_s0 + %s15637_s15]]   ;;  %s15641_s15 = smov 35  }
  0x31   :  { %s15856_s27 = sld [smem:[%s17021_s0 + %s15638_s22]]   ;;  %s15642_s22 = smov 36  }
  0x32   :  { %s15876_s20 = sld [smem:[%s17021_s0 + %s15642_s22]]   ;;  %s15646_s22 = smov 40  }
  0x34   :  { %17064 = sst [smem:[#allocation60_spill]] %s15841_s30 }
  0x35   :  { %17065 = sst [smem:[#allocation61_spill]] %s15846_s13 }
  0x36   :  { %17066 = sst [smem:[#allocation62_spill]] %s15851_s8 }
  0x37   :  { %s15861_s30 = sld [smem:[%s17021_s0 + %s15639_s28]]   ;;  %s15643_s28 = smov 37  }
  0x38   :  { %s15866_s13 = sld [smem:[%s17021_s0 + %s15640_s7]]   ;;  %s15644_s7 = smov 38  }
  0x39   :  { %s15871_s8 = sld [smem:[%s17021_s0 + %s15641_s15]]   ;;  %s15645_s15 = smov 39  }
  0x3a   :  { %17070 = sst [smem:[#allocation66_spill]] %s15876_s20 }
  0x3b   :  { %s15896_s20 = sld [smem:[%s17021_s0 + %s15646_s22]]   ;;  %s15650_s22 = smov 44  }
  0x3d   :  { %17067 = sst [smem:[#allocation63_spill]] %s15861_s30 }
  0x3e   :  { %17068 = sst [smem:[#allocation64_spill]] %s15866_s13 }
  0x3f   :  { %17069 = sst [smem:[#allocation65_spill]] %s15871_s8 }
  0x40   :  { %s15881_s30 = sld [smem:[%s17021_s0 + %s15643_s28]]   ;;  %s15647_s28 = smov 41  }
  0x41   :  { %s15886_s13 = sld [smem:[%s17021_s0 + %s15644_s7]]   ;;  %s15648_s7 = smov 42  }
  0x42   :  { %s15891_s8 = sld [smem:[%s17021_s0 + %s15645_s15]]   ;;  %s15649_s15 = smov 43  }
  0x43   :  { %17074 = sst [smem:[#allocation70_spill]] %s15896_s20 }
  0x44   :  { %s15916_s20 = sld [smem:[%s17021_s0 + %s15650_s22]]   ;;  %s15654_s22 = smov 48  }
  0x46   :  { %17071 = sst [smem:[#allocation67_spill]] %s15881_s30 }
  0x47   :  { %17072 = sst [smem:[#allocation68_spill]] %s15886_s13 }
  0x48   :  { %17073 = sst [smem:[#allocation69_spill]] %s15891_s8 }
  0x49   :  { %s15901_s30 = sld [smem:[%s17021_s0 + %s15647_s28]]   ;;  %s15651_s28 = smov 45  }
  0x4a   :  { %s15906_s13 = sld [smem:[%s17021_s0 + %s15648_s7]]   ;;  %s15652_s7 = smov 46  }
  0x4b   :  { %s15911_s8 = sld [smem:[%s17021_s0 + %s15649_s15]]   ;;  %s15653_s15 = smov 47  }
  0x4c   :  { %17078 = sst [smem:[#allocation74_spill]] %s15916_s20 }
  0x4d   :  { %s15936_s20 = sld [smem:[%s17021_s0 + %s15654_s22]]   ;;  %s15658_s22 = smov 52  }
  0x4f   :  { %17075 = sst [smem:[#allocation71_spill]] %s15901_s30 }
  0x50   :  { %17076 = sst [smem:[#allocation72_spill]] %s15906_s13 }
  0x51   :  { %17077 = sst [smem:[#allocation73_spill]] %s15911_s8 }
  0x52   :  { %s15921_s30 = sld [smem:[%s17021_s0 + %s15651_s28]]   ;;  %s15655_s28 = smov 49  }
  0x53   :  { %s15926_s13 = sld [smem:[%s17021_s0 + %s15652_s7]]   ;;  %s15656_s7 = smov 50  }
  0x54   :  { %s15931_s8 = sld [smem:[%s17021_s0 + %s15653_s15]]   ;;  %s15657_s15 = smov 51  }
  0x55   :  { %17082 = sst [smem:[#allocation78_spill]] %s15936_s20 }
  0x56   :  { %s15956_s20 = sld [smem:[%s17021_s0 + %s15658_s22]]  }
  0x58   :  { %17079 = sst [smem:[#allocation75_spill]] %s15921_s30 }
  0x59   :  { %17080 = sst [smem:[#allocation76_spill]] %s15926_s13 }
  0x5a   :  { %17081 = sst [smem:[#allocation77_spill]] %s15931_s8 }
  0x5b   :  { %s15941_s30 = sld [smem:[%s17021_s0 + %s15655_s28]]   ;;  %s15659_s28 = smov 53  }
  0x5c   :  { %s15946_s13 = sld [smem:[%s17021_s0 + %s15656_s7]]   ;;  %s15660_s7 = smov 54  }
  0x5d   :  { %s15951_s8 = sld [smem:[%s17021_s0 + %s15657_s15]]  }
  0x61   :  { %17083 = sst [smem:[#allocation79_spill]] %s15941_s30 }
  0x62   :  { %17084 = sst [smem:[#allocation80_spill]] %s15946_s13 }
  0x63   :  { %s15961_s30 = sld [smem:[%s17021_s0 + %s15659_s28]]  }
  0x64   :  { %s15966_s13 = sld [smem:[%s17021_s0 + %s15660_s7]]  }
  0x65   :  { %114 = vsyncpa [#allocation3], 0 }
  0x66   :  { %115 = vsyncpa [#allocation5], 0 }
  0x67   :  { %116 = vsyncpa [#allocation8], 0 }
  0x68   :  { %117 = vsyncpa [#allocation11], 0 }
  0x69   :  { %118 = vsyncpa [#allocation14], 0 }
  0x6a   :  { %119 = vsyncpa [#allocation17], 0 }
  0x6b   :  { %120 = vsyncpa [#allocation20], 0 }
  0x6c   :  { %121 = vsyncpa [#allocation23], 0 }
  0x6d   :  { %122 = vsyncpa [#allocation26], 0 }
  0x6e   :  { %123 = vsyncpa [#allocation29], 0 }
  0x6f   :  { %124 = vsyncpa [#allocation32], 0  ;;  %s15661_s15 = smov [#allocation4]  }
  0x70   :  { %s140_s16 = sshll.u32 %s15661_s15, 4  ;;  %s141_s16 = int_to_ptr.vmem [resolvable:$true] %s140_s16 }
  0x71   :  { %s15193_s18 = scalar_lea.vmem %s141_s16, 512  ;;  %p15198_p1 = scmp.lt.s32.totalorder %s141_s16, %s141_s16 }
  0x72   :  { %p15194_p0 = scmp.ne.s32.totalorder %s141_s16, %s15193_s18  ;;  %p15199_p2 = scmp.lt.s32.totalorder %s15193_s18, %s15193_s18 }
  0x74   :  { %p15200_p3 = por %p15199_p2, %p15198_p1 }
  0x76   :  { %p15201_p4 = pnand %p15200_p3, %p15194_p0 }
  0x78   :  { %15204 = shalt.err (!%p15201_p4)
}
  0x79   :  { %s15662_s0 = smov 64   ;;  %s15663_s22 = smov 4  }
  0x7a   :  { %146 = dma.hbm_to_vmem [thread:$0]  %s15701_s9, 512, %s141_s16, [#allocation5], %s15662_s0, %s15662_s0, %s15663_s22  }
  0x7b   :  { %s15664_s23 = smov [#allocation7]   ;;  %s15665_s28 = smov [#allocation10]  }
  0x7c   :  { %s165_s26 = sshll.u32 %s15664_s23, 4  ;;  %s188_s1 = sshll.u32 %s15665_s28, 4  ;;  %s166_s26 = int_to_ptr.vmem [resolvable:$true] %s165_s26  ;;  %s189_s1 = int_to_ptr.vmem [resolvable:$true] %s188_s1 }
  0x7d   :  { %s15213_s2 = scalar_lea.vmem %s166_s26, 64  ;;  %p15218_p6 = scmp.lt.s32.totalorder %s166_s26, %s166_s26 }
  0x7e   :  { %p15214_p5 = scmp.ne.s32.totalorder %s166_s26, %s15213_s2  ;;  %p15219_p7 = scmp.lt.s32.totalorder %s15213_s2, %s15213_s2 }
  0x80   :  { %p15220_p8 = por %p15219_p7, %p15218_p6 }
  0x82   :  { %p15221_p9 = pnand %p15220_p8, %p15214_p5 }
  0x84   :  { %15224 = shalt.err (!%p15221_p9)
}
  0x85   :  { %168 = dma.hbm_to_vmem [thread:$0]  %s15716_s21, 64, %s166_s26, [#allocation8]  }
  0x86   :  { %s15233_s7 = scalar_lea.vmem %s189_s1, 512  ;;  %p15238_p11 = scmp.lt.s32.totalorder %s189_s1, %s189_s1 }
  0x87   :  { %p15234_p10 = scmp.ne.s32.totalorder %s189_s1, %s15233_s7  ;;  %p15239_p12 = scmp.lt.s32.totalorder %s15233_s7, %s15233_s7 }
  0x89   :  { %p15240_p13 = por %p15239_p12, %p15238_p11 }
  0x8b   :  { %p15241_p0 = pnand %p15240_p13, %p15234_p10 }
  0x8d   :  { %15244 = shalt.err (!%p15241_p0)
}
  0x8e   :  { %194 = dma.hbm_to_vmem [thread:$0]  %s15731_s3, 512, %s189_s1, [#allocation11], %s15662_s0, %s15662_s0, %s15663_s22  }
  0x8f   :  { %s15666_s9 = smov [#allocation13]   ;;  %s15667_s11 = smov [#allocation16]  }
  0x90   :  { %s216_s10 = sshll.u32 %s15666_s9, 4  ;;  %s248_s15 = sshll.u32 %s15667_s11, 4  ;;  %s217_s10 = int_to_ptr.vmem [resolvable:$true] %s216_s10  ;;  %s249_s15 = int_to_ptr.vmem [resolvable:$true] %s248_s15 }
  0x91   :  { %s15253_s16 = scalar_lea.vmem %s217_s10, 512  ;;  %p15258_p2 = scmp.lt.s32.totalorder %s217_s10, %s217_s10 }
  0x92   :  { %p15254_p1 = scmp.ne.s32.totalorder %s217_s10, %s15253_s16  ;;  %p15259_p3 = scmp.lt.s32.totalorder %s15253_s16, %s15253_s16 }
  0x94   :  { %p15260_p4 = por %p15259_p3, %p15258_p2 }
  0x96   :  { %p15261_p5 = pnand %p15260_p4, %p15254_p1 }
  0x98   :  { %15264 = shalt.err (!%p15261_p5)
}
  0x99   :  { %222 = dma.hbm_to_vmem [thread:$0]  %s15751_s24, 512, %s217_s10, [#allocation14], %s15662_s0, %s15662_s0, %s15663_s22  }
  0x9a   :  { %s15273_s21 = scalar_lea.vmem %s249_s15, 8192  ;;  %p15278_p7 = scmp.lt.s32.totalorder %s249_s15, %s249_s15 }
  0x9b   :  { %p15274_p6 = scmp.ne.s32.totalorder %s249_s15, %s15273_s21  ;;  %p15279_p8 = scmp.lt.s32.totalorder %s15273_s21, %s15273_s21 }
  0x9d   :  { %p15280_p9 = por %p15279_p8, %p15278_p7 }
  0x9f   :  { %p15281_p10 = pnand %p15280_p9, %p15274_p6 }
  0xa1   :  { %15284 = shalt.err (!%p15281_p10)
}
  0xa2   :  { %s15668_s3 = smov 1024   ;;  %s15669_s18 = smov [#allocation19]  }
  0xa3   :  { %254 = dma.hbm_to_vmem [thread:$0]  %s15781_s4, 8192, %s249_s15, [#allocation17], %s15668_s3, %s15668_s3, %s15662_s0  }
  0xa4   :  { %s281_s23 = sshll.u32 %s15669_s18, 4  ;;  %s15670_s26 = smov [#allocation22]   ;;  %s282_s23 = int_to_ptr.vmem [resolvable:$true] %s281_s23 }
  0xa5   :  { %s305_s28 = sshll.u32 %s15670_s26, 4  ;;  %s15293_s24 = scalar_lea.vmem %s282_s23, 128  ;;  %s306_s28 = int_to_ptr.vmem [resolvable:$true] %s305_s28 }
  0xa6   :  { %p15294_p11 = scmp.ne.s32.totalorder %s282_s23, %s15293_s24  ;;  %p15298_p12 = scmp.lt.s32.totalorder %s282_s23, %s282_s23 }
  0xa7   :  { %p15299_p13 = scmp.lt.s32.totalorder %s15293_s24, %s15293_s24 }
  0xa9   :  { %p15300_p0 = por %p15299_p13, %p15298_p12 }
  0xab   :  { %p15301_p1 = pnand %p15300_p0, %p15294_p11 }
  0xad   :  { %15304 = shalt.err (!%p15301_p1)
}
  0xae   :  { %284 = dma.hbm_to_vmem [thread:$0]  %s15811_s19, 128, %s282_s23, [#allocation20]  }
  0xaf   :  { %s15313_s1 = scalar_lea.vmem %s306_s28, 128  ;;  %p15318_p3 = scmp.lt.s32.totalorder %s306_s28, %s306_s28 }
  0xb0   :  { %p15314_p2 = scmp.ne.s32.totalorder %s306_s28, %s15313_s1  ;;  %p15319_p4 = scmp.lt.s32.totalorder %s15313_s1, %s15313_s1 }
  0xb2   :  { %p15320_p5 = por %p15319_p4, %p15318_p3 }
  0xb4   :  { %p15321_p6 = pnand %p15320_p5, %p15314_p2 }
  0xb6   :  { %15324 = shalt.err (!%p15321_p6)
}
  0xb7   :  { %308 = dma.hbm_to_vmem [thread:$0]  %s15826_s12, 128, %s306_s28, [#allocation23]  }
  0xb8   :  { %s15671_s4 = smov [#allocation25]   ;;  %s15672_s7 = smov [#allocation28]  }
  0xb9   :  { %s324_s2 = sshll.u32 %s15671_s4, 4  ;;  %s352_s9 = sshll.u32 %s15672_s7, 4  ;;  %s325_s2 = int_to_ptr.vmem [resolvable:$true] %s324_s2  ;;  %s353_s9 = int_to_ptr.vmem [resolvable:$true] %s352_s9 }
  0xba   :  { %s15333_s10 = scalar_lea.vmem %s325_s2, 256  ;;  %p15338_p8 = scmp.lt.s32.totalorder %s325_s2, %s325_s2 }
  0xbb   :  { %p15334_p7 = scmp.ne.s32.totalorder %s325_s2, %s15333_s10  ;;  %p15339_p9 = scmp.lt.s32.totalorder %s15333_s10, %s15333_s10 }
  0xbd   :  { %p15340_p10 = por %p15339_p9, %p15338_p8 }
  0xbf   :  { %p15341_p11 = pnand %p15340_p10, %p15334_p7 }
  0xc1   :  { %15344 = shalt.err (!%p15341_p11)
}
  0xc2   :  { %330 = dma.hbm_to_vmem [thread:$0]  %s15836_s29, 256, %s325_s2, [#allocation26], %s15662_s0, %s15662_s0, %s15663_s22  }
  0xc3   :  { %s15353_s19 = scalar_lea.vmem %s353_s9, 512  ;;  %p15358_p13 = scmp.lt.s32.totalorder %s353_s9, %s353_s9 }
  0xc4   :  { %p15354_p12 = scmp.ne.s32.totalorder %s353_s9, %s15353_s19  ;;  %p15359_p0 = scmp.lt.s32.totalorder %s15353_s19, %s15353_s19 }
  0xc6   :  { %p15360_p1 = por %p15359_p0, %p15358_p13 }
  0xc8   :  { %p15361_p2 = pnand %p15360_p1, %p15354_p12 }
  0xca   :  { %15364 = shalt.err (!%p15361_p2)
}
  0xcb   :  { %358 = dma.hbm_to_vmem [thread:$0]  %s15856_s27, 512, %s353_s9, [#allocation29], %s15662_s0, %s15662_s0, %s15663_s22  }
  0xcc   :  { %s15673_s12 = smov [#allocation2]   ;;  %s15674_s15 = smov [#allocation6]  }
  0xcd   :  { %s131_s11 = sshll.u32 %s15673_s12, 4  ;;  %s155_s16 = sshll.u32 %s15674_s15, 4  ;;  %s132_s11 = int_to_ptr.vmem [resolvable:$true] %s131_s11  ;;  %s156_s16 = int_to_ptr.vmem [resolvable:$true] %s155_s16 }
  0xce   :  { %s15373_s21 = scalar_lea.vmem %s132_s11, 128  ;;  %p15378_p4 = scmp.lt.s32.totalorder %s132_s11, %s132_s11 }
  0xcf   :  { %p15374_p3 = scmp.ne.s32.totalorder %s132_s11, %s15373_s21  ;;  %p15379_p5 = scmp.lt.s32.totalorder %s15373_s21, %s15373_s21 }
  0xd1   :  { %p15380_p6 = por %p15379_p5, %p15378_p4 }
  0xd3   :  { %p15381_p7 = pnand %p15380_p6, %p15374_p3 }
  0xd5   :  { %15384 = shalt.err (!%p15381_p7)
}
  0xd6   :  { %134 = dma.hbm_to_vmem [thread:$0]  %s15696_s5, 128, %s132_s11, [#allocation3]  }
  0xd7   :  { %s15393_s29 = scalar_lea.vmem %s156_s16, 128  ;;  %p15398_p9 = scmp.lt.s32.totalorder %s156_s16, %s156_s16 }
  0xd8   :  { %p15394_p8 = scmp.ne.s32.totalorder %s156_s16, %s15393_s29  ;;  %p15399_p10 = scmp.lt.s32.totalorder %s15393_s29, %s15393_s29 }
  0xda   :  { %p15400_p11 = por %p15399_p10, %p15398_p9 }
  0xdc   :  { %p15401_p12 = pnand %p15400_p11, %p15394_p8 }
  0xde   :  { %15404 = shalt.err (!%p15401_p12)
}
  0xdf   :  { %158 = dma.hbm_to_vmem [thread:$0]  %s15711_s17, 128, %s156_s16, [#allocation5]  }
  0xe0   :  { %s15675_s27 = smov [#allocation9]   ;;  %s15676_s23 = smov [#allocation12]  }
  0xe1   :  { %s174_s18 = sshll.u32 %s15675_s27, 4  ;;  %s202_s26 = sshll.u32 %s15676_s23, 4  ;;  %s175_s18 = int_to_ptr.vmem [resolvable:$true] %s174_s18  ;;  %s203_s26 = int_to_ptr.vmem [resolvable:$true] %s202_s26 }
  0xe2   :  { %s15413_s28 = scalar_lea.vmem %s175_s18, 256  ;;  %p15418_p0 = scmp.lt.s32.totalorder %s175_s18, %s175_s18 }
  0xe3   :  { %p15414_p13 = scmp.ne.s32.totalorder %s175_s18, %s15413_s28  ;;  %p15419_p1 = scmp.lt.s32.totalorder %s15413_s28, %s15413_s28 }
  0xe5   :  { %p15420_p2 = por %p15419_p1, %p15418_p0 }
  0xe7   :  { %p15421_p3 = pnand %p15420_p2, %p15414_p13 }
  0xe9   :  { %15424 = shalt.err (!%p15421_p3)
}
  0xea   :  { %180 = dma.hbm_to_vmem [thread:$0]  %s15721_s25, 256, %s175_s18, [#allocation8], %s15662_s0, %s15662_s0, %s15663_s22  }
  0xeb   :  { %s15433_s5 = scalar_lea.vmem %s203_s26, 512  ;;  %p15438_p5 = scmp.lt.s32.totalorder %s203_s26, %s203_s26 }
  0xec   :  { %p15434_p4 = scmp.ne.s32.totalorder %s203_s26, %s15433_s5  ;;  %p15439_p6 = scmp.lt.s32.totalorder %s15433_s5, %s15433_s5 }
  0xee   :  { %p15440_p7 = por %p15439_p6, %p15438_p5 }
  0xf0   :  { %p15441_p8 = pnand %p15440_p7, %p15434_p4 }
  0xf2   :  { %15444 = shalt.err (!%p15441_p8)
}
  0xf3   :  { %208 = dma.hbm_to_vmem [thread:$0]  %s15741_s14, 512, %s203_s26, [#allocation11], %s15662_s0, %s15662_s0, %s15663_s22  }
  0xf4   :  { %s15677_s17 = smov [#allocation15]   ;;  %s15678_s1 = smov [#allocation18]  }
  0xf5   :  { %s230_s24 = sshll.u32 %s15677_s17, 4  ;;  %s262_s4 = sshll.u32 %s15678_s1, 4  ;;  %s231_s24 = int_to_ptr.vmem [resolvable:$true] %s230_s24  ;;  %s263_s4 = int_to_ptr.vmem [resolvable:$true] %s262_s4 }
  0xf6   :  { %s15453_s2 = scalar_lea.vmem %s231_s24, 512  ;;  %p15458_p10 = scmp.lt.s32.totalorder %s231_s24, %s231_s24 }
  0xf7   :  { %p15454_p9 = scmp.ne.s32.totalorder %s231_s24, %s15453_s2  ;;  %p15459_p11 = scmp.lt.s32.totalorder %s15453_s2, %s15453_s2 }
  0xf9   :  { %p15460_p12 = por %p15459_p11, %p15458_p10 }
  0xfb   :  { %p15461_p13 = pnand %p15460_p12, %p15454_p9 }
  0xfd   :  { %15464 = shalt.err (!%p15461_p13)
}
  0xfe   :  { %236 = dma.hbm_to_vmem [thread:$0]  %s15761_s6, 512, %s231_s24, [#allocation14], %s15662_s0, %s15662_s0, %s15663_s22  }
  0xff   :  { %s15473_s25 = scalar_lea.vmem %s263_s4, 32768  ;;  %p15478_p1 = scmp.lt.s32.totalorder %s263_s4, %s263_s4 }
 0x100   :  { %p15474_p0 = scmp.ne.s32.totalorder %s263_s4, %s15473_s25  ;;  %p15479_p2 = scmp.lt.s32.totalorder %s15473_s25, %s15473_s25 }
 0x102   :  { %p15480_p3 = por %p15479_p2, %p15478_p1 }
 0x104   :  { %p15481_p4 = pnand %p15480_p3, %p15474_p0 }
 0x106   :  { %15484 = shalt.err (!%p15481_p4)
}
 0x107   :  { %s17085_s14 = sld [smem:[#allocation53_spill]]  ;;  %s15679_s7 = smov [#allocation21]  }
 0x108   :  { %s290_s9 = sshll.u32 %s15679_s7, 4  ;;  %s15680_s10 = smov [#allocation24]   ;;  %s291_s9 = int_to_ptr.vmem [resolvable:$true] %s290_s9 }
 0x109   :  { %s315_s19 = sshll.u32 %s15680_s10, 4  ;;  %s15493_s12 = scalar_lea.vmem %s291_s9, 384  ;;  %s316_s19 = int_to_ptr.vmem [resolvable:$true] %s315_s19 }
 0x10a   :  { %p15494_p5 = scmp.ne.s32.totalorder %s291_s9, %s15493_s12  ;;  %p15498_p6 = scmp.lt.s32.totalorder %s291_s9, %s291_s9 }
 0x10b   :  { %p15499_p7 = scmp.lt.s32.totalorder %s15493_s12, %s15493_s12 }
 0x10d   :  { %268 = dma.hbm_to_vmem [thread:$0]  %s17085_s14, 32768, %s263_s4, [#allocation17], %s15662_s0, %s15662_s0, %s15663_s22  }
 0x10e   :  { %p15500_p8 = por %p15499_p7, %p15498_p6 }
 0x110   :  { %p15501_p9 = pnand %p15500_p8, %p15494_p5 }
 0x112   :  { %15504 = shalt.err (!%p15501_p9)
}
 0x113   :  { %s17086_s6 = sld [smem:[#allocation57_spill]]  ;;  %s15513_s11 = scalar_lea.vmem %s316_s19, 64 }
 0x114   :  { %p15514_p10 = scmp.ne.s32.totalorder %s316_s19, %s15513_s11  ;;  %p15518_p11 = scmp.lt.s32.totalorder %s316_s19, %s316_s19 }
 0x115   :  { %p15519_p12 = scmp.lt.s32.totalorder %s15513_s11, %s15513_s11 }
 0x117   :  { %p15520_p13 = por %p15519_p12, %p15518_p11 }
 0x119   :  { %296 = dma.hbm_to_vmem [thread:$0]  %s17086_s6, 384, %s291_s9, [#allocation20], %s15662_s0, %s15662_s0, %s15663_s22  }
 0x11a   :  { %p15521_p0 = pnand %p15520_p13, %p15514_p10 }
 0x11c   :  { %15524 = shalt.err (!%p15521_p0)
}
 0x11d   :  { %s17087_s15 = sld [smem:[#allocation59_spill]]  ;;  %s15681_s16 = smov [#allocation27]  }
 0x11e   :  { %s338_s21 = sshll.u32 %s15681_s16, 4  ;;  %s15682_s29 = smov [#allocation30]   ;;  %s339_s21 = int_to_ptr.vmem [resolvable:$true] %s338_s21 }
 0x11f   :  { %s378_s27 = sshll.u32 %s15682_s29, 4  ;;  %s15533_s18 = scalar_lea.vmem %s339_s21, 512  ;;  %s379_s27 = int_to_ptr.vmem [resolvable:$true] %s378_s27 }
 0x120   :  { %p15534_p1 = scmp.ne.s32.totalorder %s339_s21, %s15533_s18  ;;  %p15538_p2 = scmp.lt.s32.totalorder %s339_s21, %s339_s21 }
 0x121   :  { %p15539_p3 = scmp.lt.s32.totalorder %s15533_s18, %s15533_s18 }
 0x123   :  { %318 = dma.hbm_to_vmem [thread:$0]  %s17087_s15, 64, %s316_s19, [#allocation23]  }
 0x124   :  { %p15540_p4 = por %p15539_p3, %p15538_p2 }
 0x126   :  { %p15541_p5 = pnand %p15540_p4, %p15534_p1 }
 0x128   :  { %15544 = shalt.err (!%p15541_p5)
}
 0x129   :  { %s17088_s23 = sld [smem:[#allocation61_spill]]  ;;  %s15553_s26 = scalar_lea.vmem %s379_s27, 8192 }
 0x12a   :  { %p15554_p6 = scmp.ne.s32.totalorder %s379_s27, %s15553_s26  ;;  %p15558_p7 = scmp.lt.s32.totalorder %s379_s27, %s379_s27 }
 0x12b   :  { %p15559_p8 = scmp.lt.s32.totalorder %s15553_s26, %s15553_s26 }
 0x12d   :  { %p15560_p9 = por %p15559_p8, %p15558_p7 }
 0x12f   :  { %344 = dma.hbm_to_vmem [thread:$0]  %s17088_s23, 512, %s339_s21, [#allocation26], %s15662_s0, %s15662_s0, %s15663_s22  }
 0x130   :  { %p15561_p10 = pnand %p15560_p9, %p15554_p6 }
 0x132   :  { %15564 = shalt.err (!%p15561_p10)
}
 0x133   :  { %s17089_s28 = sld [smem:[#allocation70_spill]]  ;;  %s15683_s5 = smov [#allocation31]  }
 0x134   :  { %s392_s17 = sshll.u32 %s15683_s5, 4  ;;  %s393_s17 = int_to_ptr.vmem [resolvable:$true] %s392_s17 }
 0x135   :  { %s15573_s24 = scalar_lea.vmem %s393_s17, 32768  ;;  %p15578_p12 = scmp.lt.s32.totalorder %s393_s17, %s393_s17 }
 0x136   :  { %p15574_p11 = scmp.ne.s32.totalorder %s393_s17, %s15573_s24  ;;  %p15579_p13 = scmp.lt.s32.totalorder %s15573_s24, %s15573_s24 }
 0x138   :  { %p15580_p0 = por %p15579_p13, %p15578_p12 }
 0x139   :  { %384 = dma.hbm_to_vmem [thread:$0]  %s17089_s28, 8192, %s379_s27, [#allocation29], %s15668_s3, %s15668_s3, %s15662_s0  }
 0x13a   :  { %p15581_p1 = pnand %p15580_p0, %p15574_p11 }
 0x13c   :  { %15584 = shalt.err (!%p15581_p1)
}
 0x13d   :  { %s17090_s1 = sld [smem:[#allocation72_spill]] }
 0x143   :  { %398 = dma.hbm_to_vmem [thread:$0]  %s17090_s1, 32768, %s393_s17, [#allocation32], %s15662_s0, %s15662_s0, %s15663_s22  }
 0x144   :  { %15585 = dma.done.wait [#allocation3], 128  }
 0x145   :  { %15586 = vsyncadd [#allocation3], 4294967168 }
 0x146   :  { %15587 = dma.done.wait [#allocation5], 640  }
 0x147   :  { %15588 = vsyncadd [#allocation5], 4294966656 }
 0x148   :  { %15589 = dma.done.wait [#allocation8], 320  }
 0x149   :  { %15590 = vsyncadd [#allocation8], 4294966976 }
 0x14a   :  { %15591 = dma.done.wait [#allocation11], 1024  }
 0x14b   :  { %15592 = vsyncadd [#allocation11], 4294966272 }
 0x14c   :  { %15593 = dma.done.wait [#allocation14], 1024  }
 0x14d   :  { %15594 = vsyncadd [#allocation14], 4294966272 }
 0x14e   :  { %15595 = dma.done.wait [#allocation17], 40960  }
 0x14f   :  { %15596 = vsyncadd [#allocation17], 4294926336 }
 0x150   :  { %15597 = dma.done.wait [#allocation20], 512  }
 0x151   :  { %15598 = vsyncadd [#allocation20], 4294966784 }
 0x152   :  { %15599 = dma.done.wait [#allocation23], 192  }
 0x153   :  { %15600 = vsyncadd [#allocation23], 4294967104 }
 0x154   :  { %15601 = dma.done.wait [#allocation26], 768  }
 0x155   :  { %15602 = vsyncadd [#allocation26], 4294966528 }
 0x156   :  { %15603 = dma.done.wait [#allocation29], 8704  }
 0x157   :  { %15604 = vsyncadd [#allocation29], 4294958592 }
 0x158   :  { %15605 = dma.done.wait [#allocation32], 32768  }
 0x159   :  { %15606 = vsyncadd [#allocation32], 4294934528  ;;  %v15684_v0 = vmov 0.0   ;;  %vm15685_vm0 = vmmov 0   ;;  %v14462_v1 = vld [vmem:[#allocation9 + $0x8] sm:$0xff]   ;;  %v14463_v2 = vld [vmem:[#allocation9] sm:$0xff]   ;;  %v687_v38 = vlaneseq }
 0x15a   :  { %14077 = vmatprep.subr.bf16.mxu1 %v15684_v0  ;;  %14081 = vmatprep.mubr.msk.bf16.mxu1 %vm15685_vm0, %v15684_v0  ;;  %v14464_v3 = vld [vmem:[#allocation4 + $0x18] sm:$0xff]   ;;  %vm584_vm1 = vcmask 261120   ;;  %v14465_v4 = vld [vmem:[#allocation4 + $0x10] sm:$0xff]   ;;  %v567_v5 = vld [vmem:[#allocation7] sm:$0xf]  ;;  %vm523_vm2 = vcmask 523264  }
 0x15b   :  { %14065 = vmatprep.subr.bf16.mxu0 %v15684_v0  ;;  %14073 = vmatprep.mubr.msk.bf16.mxu0 %vm15685_vm0, %v15684_v0  ;;  %v14466_v6 = vld [vmem:[#allocation4 + $0x8] sm:$0xff]   ;;  %v14467_v7 = vld [vmem:[#allocation4] sm:$0xff]   ;;  %v482_v8 = vld [vmem:[#allocation2] sm:$0xff]  ;;  %vm642_vm3 = vcmask 1043456   ;;  %vm638_vm4 = vcmask 64512   ;;  %s17091_s0 = sld [smem:[#allocation44_spill]] }
 0x15c   :  { %14078 = vmatpush3.bf16.msra.mxu1 %v14462_v1  ;;  %14066 = vmatpush3.bf16.msra.mxu0 %v14464_v3  ;;  %v483_v9 = vpack.c.bf16 %v482_v8, %v482_v8  ;;  %v628_v10 = vld [vmem:[#allocation6] sm:$0xff]  ;;  %s17092_s22 = sld [smem:[#allocation45_spill]]  ;;  %v16072_v39 = vand.u32 127, %v687_v38  ;;  %vm15686_vm15 = vmmov 1  }
 0x15d   :  { %14079 = vmatprep.subr.bf16.mxu1 %v15684_v0  ;;  %14067 = vmatprep.subr.bf16.mxu0 %v15684_v0  ;;  %v629_v15 = vpack.c.bf16 %v628_v10, %v628_v10  ;;  %v14468_v20 = vld [vmem:[#allocation10 + $0x8] sm:$0xff]   ;;  %v14470_v24 = vld [vmem:[#allocation10] sm:$0xff]   ;;  %s17093_s3 = sld [smem:[#allocation46_spill]] }
 0x15e   :  { %v14469_v21 = vld [vmem:[#allocation12 + $0x8] sm:$0xff]   ;;  %v14471_v25 = vld [vmem:[#allocation12] sm:$0xff]   ;;  %s17094_s4 = sld [smem:[#allocation47_spill]]  ;;  %vm690_vm5 = vcmp.lt.s32.totalorder %v16072_v39, 8  ;;  %vm694_vm6 = vcmp.ge.s32.totalorder %v16072_v39, 8  ;;  %vm695_vm7 = vcmp.lt.s32.totalorder %v16072_v39, 16 }
 0x15f   :  { %v14472_v34 = vld [vmem:[#allocation13 + $0x8] sm:$0xff]   ;;  %v14473_v37 = vld [vmem:[#allocation13] sm:$0xff]   ;;  %v16080_v47 = vsel %vm690_vm5, 1.0, %v15684_v0  ;;  %s17095_s2 = sld [smem:[#allocation48_spill]]  ;;  %vm699_vm8 = vcmp.ge.s32.totalorder %v16072_v39, 16  ;;  %vm700_vm9 = vcmp.lt.s32.totalorder %v16072_v39, 24  ;;  %vm696_vm10 = vmand %vm694_vm6, %vm695_vm7 }
 0x160   :  { %14080 = vmatpush3.bf16.msra.mxu1 %v14463_v2  ;;  %14068 = vmatpush3.bf16.msra.mxu0 %v14465_v4  ;;  %vm701_vm11 = vmand %vm699_vm8, %vm700_vm9  ;;  %v16092_v63 = vsel %vm696_vm10, 1.0, %v15684_v0  ;;  %vm704_vm12 = vcmp.ge.s32.totalorder %v16072_v39, 24  ;;  %vm705_vm13 = vcmp.lt.s32.totalorder %v16072_v39, 32  ;;  %vm1023_vm6 = vcmask 130048   ;;  %s17096_s25 = sld [smem:[#allocation49_spill]] }
 0x161   :  { %14085 = vmatprep.subr.bf16.mxu1 %v15684_v0  ;;  %14069 = vmatprep.subr.bf16.mxu0 %v15684_v0  ;;  %v12360_v26 = vld [vmem:[%s17091_s0] ss:$0 sm:$0xff]  ;;  %v16096_v1 = vsel %vm701_vm11, 1.0, %v15684_v0  ;;  %vm706_vm14 = vmand %vm704_vm12, %vm705_vm13  ;;  %s17097_s14 = sld [smem:[#allocation50_spill]] }
 0x162   :  { %v12369_v27 = vld [vmem:[%s17092_s22] ss:$0 sm:$0xff]  ;;  %s17098_s7 = sld [smem:[#allocation51_spill]] }
 0x163   :  { %14082 = vmatmul.mubr.msk.bf16.vlgmr.msra.gmra.mxu1 %vm584_vm1, %v567_v5  ;;  %v12375_v40 = vld [vmem:[%s17093_s3] ss:$0 sm:$0xff]  ;;  %s17099_s9 = sld [smem:[#allocation52_spill]] }
 0x164   :  { %14087 = vmatprep.mubr.msk.bf16.mxu1 %vm15685_vm0, %v15684_v0  ;;  %14070 = vmatpush3.bf16.msra.mxu0 %v14466_v6  ;;  %v12379_v46 = vld [vmem:[%s17094_s4] ss:$0 sm:$0xff]  ;;  %s17100_s10 = sld [smem:[#allocation54_spill]] }
 0x165   :  { %14071 = vmatprep.subr.bf16.mxu0 %v15684_v0  ;;  %v12383_v60 = vld [vmem:[%s17095_s2] ss:$0 sm:$0xff]  ;;  %s17101_s19 = sld [smem:[#allocation55_spill]] }
 0x166   :  { %s17102_s12 = sld [smem:[#allocation56_spill]] }
 0x167   :  { %s17103_s6 = sld [smem:[#allocation58_spill]] }
 0x168   :  { %14072 = vmatpush3.bf16.msra.mxu0 %v14467_v7  ;;  %s17104_s11 = sld [smem:[#allocation60_spill]] }
 0x169   :  { %14091 = vmatprep.subr.bf16.mxu0 %v15684_v0  ;;  %s17105_s15 = sld [smem:[#allocation64_spill]] }
 0x16a   :  { %s17106_s16 = sld [smem:[#allocation62_spill]] }
 0x16b   :  { %14074 = vmatmul.mubr.msk.bf16.vlgmr.msra.gmra.mxu0 %vm523_vm2, %v483_v9  ;;  %vm714_vm2 = vmxor %vm15686_vm15, %vm690_vm5  ;;  %s17107_s21 = sld [smem:[#allocation63_spill]] }
 0x16c   :  { %14095 = vmatprep.mubr.msk.bf16.mxu0 %vm15685_vm0, %v15684_v0  ;;  %14092 = vmatpush3.bf16.msra.mxu0 %v14468_v20  ;;  %s17108_s29 = sld [smem:[#allocation65_spill]] }
 0x16d   :  { %14093 = vmatprep.subr.bf16.mxu0 %v15684_v0  ;;  %s17109_s27 = sld [smem:[#allocation66_spill]] }
 0x16e   :  { %s17110_s18 = sld [smem:[#allocation67_spill]] }
 0x16f   :  { %s17111_s23 = sld [smem:[#allocation68_spill]] }
 0x170   :  { %14094 = vmatpush3.bf16.msra.mxu0 %v14470_v24  ;;  %v16124_v24 = vsel %vm690_vm5, -1e+30, %v15684_v0  ;;  %vm6133_vm5 = vcmask 392192   ;;  %s17112_s26 = sld [smem:[#allocation69_spill]] }
 0x171   :  { %14107 = vmatprep.subr.bf16.mxu0 %v15684_v0  ;;  %s17113_s28 = sld [smem:[#allocation71_spill]] }
 0x172   :  { %s17114_s5 = sld [smem:[#allocation73_spill]] }
 0x173   :  { %s17115_s17 = sld [smem:[#allocation74_spill]] }
 0x174   :  { %s17116_s24 = sld [smem:[#allocation75_spill]] }
 0x175   :  { %s17117_s1 = sld [smem:[#allocation76_spill]] }
 0x176   :  { %s17118_s0 = sld [smem:[#allocation77_spill]] }
 0x177   :  { %s17119_s22 = sld [smem:[#allocation78_spill]] }
 0x223   :  { %v622_v11 = vpop.f32.mrf.mxu1 }
 0x224   :  { %v630_v12 = vpack.c.bf16 %v622_v11, %v622_v11 }
 0x225   :  { %v14083_v13 = vpop.f32.mrf.mxu1 }
 0x226   :  { %v644_v14 = vsel %vm642_vm3, %v630_v12, 0  ;;  %v16107_v13 = vsel %vm706_vm14, 1.0, %v15684_v0 }
 0x227   :  { %v625_v16 = vpop.f32.mrf.mxu1  ;;  %14086 = vmatpush3.bf16.msra.mxu1 %v644_v14 }
 0x228   :  { %14099 = vmatprep.subr.bf16.mxu1 %v15684_v0 }
 0x229   :  { %v14084_v17 = vpop.f32.mrf.mxu1 }
 0x22a   :  { %14088 = vmatmul.mubr.msk.bf16.vlgmr.msra.gmra.mxu1 %vm638_vm4, %v629_v15 }
 0x22b   :  { %14103 = vmatprep.mubr.msk.bf16.mxu1 %vm15685_vm0, %v15684_v0  ;;  %v561_v18 = vpop.f32.mrf.mxu0  ;;  %14100 = vmatpush3.bf16.msra.mxu1 %v14469_v21 }
 0x22c   :  { %14101 = vmatprep.subr.bf16.mxu1 %v15684_v0  ;;  %v16057_v29 = vadd.f32 %v12360_v26, %v561_v18  ;;  %v16118_v18 = vsel %vm714_vm2, -1e+30, %v15684_v0 }
 0x22d   :  { %v14075_v19 = vpop.f32.mrf.mxu0 }
 0x22f   :  { %v564_v22 = vpop.f32.mrf.mxu0  ;;  %14102 = vmatpush3.bf16.msra.mxu1 %v14471_v25 }
 0x231   :  { %v14076_v23 = vpop.f32.mrf.mxu0 }
 0x2ea   :  { %v680_v28 = vpop.f32.mrf.mxu1 }
 0x2eb   :  { %v16059_v30 = vadd.f32 %v12369_v27, %v680_v28 }
 0x2ec   :  { %v14089_v31 = vpop.f32.mrf.mxu1 }
 0x2ed   :  { %v686_v32 = vmax.f32 %v16059_v30, 0.0  ;;  %v1350_v30 = vld [vmem:[#allocation16 + $0xc0] sm:$0xff] }
 0x2ee   :  { %v683_v33 = vpop.f32.mrf.mxu1 }
 0x2ef   :  { %v718_v35 = vpack.c.bf16 %v686_v32, %v16057_v29 }
 0x2f0   :  { %v14090_v36 = vpop.f32.mrf.mxu1 }
 0x2f1   :  { %14096 = vmatmul.mubr.msk.bf16.vlgmr.msra.gmra.mxu0 %vm584_vm1, %v718_v35  ;;  %14104 = vmatmul.mubr.msk.bf16.vlgmr.msra.gmra.mxu1 %vm584_vm1, %v718_v35 }
 0x2f2   :  { %14108 = vmatpush3.bf16.msra.mxu0 %v14472_v34  ;;  %14111 = vmatprep.mubr.msk.bf16.mxu0 %vm15685_vm0, %v15684_v0 }
 0x2f3   :  { %14109 = vmatprep.subr.bf16.mxu0 %v15684_v0 }
 0x2f6   :  { %14110 = vmatpush3.bf16.msra.mxu0 %v14473_v37 }
 0x2f9   :  { %14112 = vmatmul.mubr.msk.bf16.vlgmr.msra.gmra.mxu0 %vm584_vm1, %v718_v35 }
 0x3b1   :  { %v779_v41 = vpop.f32.mrf.mxu0  ;;  %v843_v42 = vpop.f32.mrf.mxu1 }
 0x3b2   :  { %v780_v45 = vadd.f32 %v12375_v40, %v779_v41  ;;  %v844_v52 = vadd.f32 %v12379_v46, %v843_v42 }
 0x3b3   :  { %v14097_v43 = vpop.f32.mrf.mxu0  ;;  %v14105_v44 = vpop.f32.mrf.mxu1 }
 0x3b4   :  { %v914_v55 = vmul.f32 %v16080_v47, %v780_v45  ;;  %v916_v7 = vmul.f32 %v16092_v63, %v780_v45  ;;  %v918_v9 = vmul.f32 %v16096_v1, %v780_v45  ;;  %v920_v15 = vmul.f32 %v16107_v13, %v780_v45 }
 0x3b5   :  { %v782_v48 = vpop.f32.mrf.mxu0  ;;  %v846_v49 = vpop.f32.mrf.mxu1 }
 0x3b6   :  { %v783_v50 = vadd.f32 %v12375_v40, %v782_v48  ;;  %v847_v51 = vadd.f32 %v12379_v46, %v846_v49 }
 0x3b7   :  { %v14098_v53 = vpop.f32.mrf.mxu0  ;;  %v14106_v54 = vpop.f32.mrf.mxu1 }
 0x3b8   :  { %v915_v56 = vmul.f32 %v16080_v47, %v783_v50  ;;  %v926_v57 = vpack.c.bf16 %v847_v51, %v844_v52  ;;  %v917_v2 = vmul.f32 %v16092_v63, %v783_v50  ;;  %v919_v4 = vmul.f32 %v16096_v1, %v783_v50 }
 0x3b9   :  { %v907_v58 = vpop.f32.mrf.mxu0  ;;  %v921_v14 = vmul.f32 %v16107_v13, %v783_v50 }
 0x3ba   :  { %v922_v59 = vpack.c.bf16 %v915_v56, %v914_v55  ;;  %14375 = vmatprep.subr.msk.bf16.mxu1 %vm584_vm1, %v926_v57  ;;  %v940_v62 = vsel %vm584_vm1, %v926_v57, 0  ;;  %v908_v5 = vadd.f32 %v12383_v60, %v907_v58  ;;  %v923_v11 = vpack.c.bf16 %v917_v2, %v916_v7 }
 0x3bb   :  { %v14113_v61 = vpop.f32.mrf.mxu0  ;;  %14116 = vmatpush3.bf16.xpose.msra.mxu1 %v940_v62  ;;  %v924_v12 = vpack.c.bf16 %v919_v4, %v918_v9  ;;  %v925_v16 = vpack.c.bf16 %v921_v14, %v920_v15 }
 0x3bc   :  { %14117 = vmatprep.mubr.msk.bf16.mxu1 %vm584_vm1, %v922_v59  ;;  %14135 = vmatprep.subr.bf16.mxu1 %v15684_v0 }
 0x3bd   :  { %v910_v3 = vpop.f32.mrf.mxu0 }
 0x3be   :  { %v911_v6 = vadd.f32 %v12383_v60, %v910_v3 }
 0x3bf   :  { %v14114_v8 = vpop.f32.mrf.mxu0 }
 0x3c0   :  { %v1116_v10 = vpack.c.bf16 %v911_v6, %v908_v5 }
 0x3c2   :  { %14125 = vmatprep.subr.bf16.mxu0 %v1116_v10  ;;  %14118 = vmatmul.mubr.msk.bf16.vlgmr.msra.gmra.mxu1 %vm584_vm1, %v923_v11 }
 0x3c3   :  { %14126 = vmatpush3.bf16.msra.mxu0 %v1116_v10  ;;  %14121 = vmatprep.mubr.msk.bf16.mxu1 %vm584_vm1, %v924_v12 }
 0x3ca   :  { %14122 = vmatmul.mubr.msk.bf16.gmra.mxu1 %vm584_vm1, %v925_v16 }
 0x3cb   :  { %14139 = vmatprep.mubr.msk.bf16.mxu1 %vm15685_vm0, %v15684_v0 }
 0x482   :  { %v14119_v17 = vpop.f32.mrf.mxu1 }
 0x483   :  { %v1009_v19 = vmul.f32 0.35355338, %v14119_v17 }
 0x484   :  { %v976_v20 = vpop.f32.mrf.mxu1 }
 0x485   :  { %v1007_v21 = vmul.f32 0.35355338, %v976_v20  ;;  %v1017_v22 = vadd.f32 %v1009_v19, %v16118_v18 }
 0x486   :  { %v14120_v23 = vpop.f32.mrf.mxu1 }
 0x487   :  { %v1010_v25 = vmul.f32 0.35355338, %v14120_v23  ;;  %v1030_v26 = vsel %vm1023_vm6, %v1017_v22, -inf  ;;  %v1015_v27 = vadd.f32 %v1007_v21, %v16118_v18 }
 0x488   :  { %1031 = vmax.xlane.f32.xlu1 %v1030_v26  ;;  %v979_v28 = vpop.f32.mrf.mxu1 }
 0x489   :  { %v1008_v31 = vmul.f32 0.35355338, %v979_v28  ;;  %v1024_v33 = vsel %vm1023_vm6, %v1015_v27, -inf  ;;  %v1018_v34 = vadd.f32 %v1010_v25, %v16124_v24 }
 0x48a   :  { %1025 = vmax.xlane.f32.xlu0 %v1024_v33  ;;  %v14123_v35 = vpop.f32.mrf.mxu1 }
 0x48b   :  { %v1033_v36 = vsel %vm1023_vm6, %v1018_v34, -inf  ;;  %v1016_v37 = vadd.f32 %v1008_v31, %v16124_v24  ;;  %v1013_v41 = vmul.f32 0.35355338, %v14123_v35 }
 0x48c   :  { %1034 = vmax.xlane.f32.xlu1 %v1033_v36  ;;  %v992_v40 = vpop.f32.mrf.mxu1 }
 0x48d   :  { %v1011_v42 = vmul.f32 0.35355338, %v992_v40  ;;  %v1027_v43 = vsel %vm1023_vm6, %v1016_v37, -inf  ;;  %v1021_v51 = vadd.f32 %v1013_v41, %v16118_v18 }
 0x48e   :  { %1028 = vmax.xlane.f32.xlu0 %v1027_v43  ;;  %v14124_v44 = vpop.f32.mrf.mxu1 }
 0x48f   :  { %v1019_v45 = vadd.f32 %v1011_v42, %v16118_v18  ;;  %v1014_v48 = vmul.f32 0.35355338, %v14124_v44  ;;  %v1042_v53 = vsel %vm1023_vm6, %v1021_v51, -inf }
 0x490   :  { %v995_v46 = vpop.f32.mrf.mxu1 }
 0x491   :  { %v1012_v49 = vmul.f32 0.35355338, %v995_v46  ;;  %v1036_v50 = vsel %vm1023_vm6, %v1019_v45, -inf  ;;  %v1022_v55 = vadd.f32 %v1014_v48, %v16124_v24 }
 0x492   :  { %1037 = vmax.xlane.f32.xlu0 %v1036_v50 }
 0x493   :  { %v1020_v52 = vadd.f32 %v1012_v49, %v16124_v24  ;;  %v1045_v56 = vsel %vm1023_vm6, %v1022_v55, -inf }
 0x495   :  { %v1039_v54 = vsel %vm1023_vm6, %v1020_v52, -inf }
 0x496   :  { %1043 = vmax.xlane.f32.xlu0 %v1042_v53  ;;  %1040 = vmax.xlane.f32.xlu1 %v1039_v54 }
 0x49a   :  { %1046 = vmax.xlane.f32.xlu1 %v1045_v56 }
 0x511   :  { %v1032_v57 = vpop.xlane.xlu1 %1031 }
 0x512   :  { %v1050_v58 = vsub.f32 %v1017_v22, %v1032_v57 }
 0x513   :  { %v1026_v59 = vpop.xlane.xlu0 %1025 }
 0x514   :  { %v1048_v60 = vsub.f32 %v1015_v27, %v1026_v59  ;;  %v1060_v62 = vmul.f32 1.442695, %v1050_v58 }
 0x515   :  { %v1035_v61 = vpop.xlane.xlu1 %1034 }
 0x516   :  { %v1056_v2 = vmul.f32 1.442695, %v1048_v60  ;;  %v1051_v3 = vsub.f32 %v1018_v34, %v1035_v61 }
 0x517   :  { %v1029_v4 = vpop.xlane.xlu0 %1028 }
 0x518   :  { %15025 = vpow2.f32 %v1056_v2  ;;  %v1049_v5 = vsub.f32 %v1016_v37, %v1029_v4  ;;  %v1062_v6 = vmul.f32 1.442695, %v1051_v3 }
 0x519   :  { %15027 = vpow2.f32 %v1060_v62 }
 0x51a   :  { %v1058_v7 = vmul.f32 1.442695, %v1049_v5 }
 0x51b   :  { %v1038_v8 = vpop.xlane.xlu0 %1037 }
 0x51c   :  { %15029 = vpow2.f32 %v1058_v7  ;;  %v1052_v9 = vsub.f32 %v1019_v45, %v1038_v8 }
 0x51d   :  { %15031 = vpow2.f32 %v1062_v6 }
 0x51e   :  { %v1064_v10 = vmul.f32 1.442695, %v1052_v9 }
 0x51f   :  { %v1044_v11 = vpop.xlane.xlu0 %1043  ;;  %v1041_v12 = vpop.xlane.xlu1 %1040 }
 0x520   :  { %15033 = vpow2.f32 %v1064_v10  ;;  %v1054_v14 = vsub.f32 %v1021_v51, %v1044_v11  ;;  %v1053_v15 = vsub.f32 %v1020_v52, %v1041_v12  ;;  %v14474_v12 = vld [vmem:[#allocation15 + $0x8] sm:$0xff]  }
 0x521   :  { %14136 = vmatpush3.bf16.msra.mxu1 %v14474_v12  ;;  %v1334_v12 = vld [vmem:[#allocation16 + $0x40] sm:$0xff] }
 0x522   :  { %v1068_v16 = vmul.f32 1.442695, %v1054_v14  ;;  %v1066_v17 = vmul.f32 1.442695, %v1053_v15  ;;  %14137 = vmatprep.subr.bf16.mxu1 %v15684_v0  ;;  %v14475_v14 = vld [vmem:[#allocation15] sm:$0xff]  }
 0x523   :  { %v1047_v19 = vpop.xlane.xlu1 %1046 }
 0x524   :  { %15035 = vpow2.f32 %v1068_v16  ;;  %v1055_v20 = vsub.f32 %v1022_v55, %v1047_v19 }
 0x525   :  { %v15026_v21 = vpop.eup %15025  ;;  %15037 = vpow2.f32 %v1066_v17  ;;  %14138 = vmatpush3.bf16.msra.mxu1 %v14475_v14  ;;  %v1327_v14 = vld [vmem:[#allocation16 + $0x8] sm:$0xff] }
 0x526   :  { %v1070_v22 = vmul.f32 1.442695, %v1055_v20  ;;  %v1072_v23 = vsel %vm1023_vm6, %v15026_v21, 0.0  ;;  %v15028_v25 = vpop.eup %15027 }
 0x527   :  { %1073 = vadd.xlane.f32.xlu0 %v1072_v23  ;;  %v1078_v27 = vsel %vm1023_vm6, %v15028_v25, 0.0 }
 0x528   :  { %15039 = vpow2.f32 %v1070_v22 }
 0x529   :  { %v15030_v26 = vpop.eup %15029 }
 0x52a   :  { %v1075_v28 = vsel %vm1023_vm6, %v15030_v26, 0.0  ;;  %v15032_v31 = vpop.eup %15031 }
 0x52b   :  { %1079 = vadd.xlane.f32.xlu0 %v1078_v27  ;;  %1076 = vadd.xlane.f32.xlu1 %v1075_v28  ;;  %v1081_v35 = vsel %vm1023_vm6, %v15032_v31, 0.0 }
 0x52d   :  { %v15034_v33 = vpop.eup %15033 }
 0x52e   :  { %v1084_v34 = vsel %vm1023_vm6, %v15034_v33, 0.0 }
 0x52f   :  { %1085 = vadd.xlane.f32.xlu0 %v1084_v34  ;;  %1082 = vadd.xlane.f32.xlu1 %v1081_v35 }
 0x531   :  { %v15036_v36 = vpop.eup %15035 }
 0x532   :  { %v15038_v37 = vpop.eup %15037  ;;  %v1090_v40 = vsel %vm1023_vm6, %v15036_v36, 0.0 }
 0x533   :  { %1091 = vadd.xlane.f32.xlu0 %v1090_v40  ;;  %v1087_v41 = vsel %vm1023_vm6, %v15038_v37, 0.0 }
 0x534   :  { %1088 = vadd.xlane.f32.xlu1 %v1087_v41 }
 0x535   :  { %v15040_v42 = vpop.eup %15039 }
 0x536   :  { %v1093_v43 = vsel %vm1023_vm6, %v15040_v42, 0.0 }
 0x538   :  { %1094 = vadd.xlane.f32.xlu1 %v1093_v43 }
 0x5b0   :  { %v1074_v44 = vpop.xlane.xlu0 %1073 }
 0x5b1   :  { %15041 = vrcp.f32 %v1074_v44 }
 0x5b4   :  { %v1080_v45 = vpop.xlane.xlu0 %1079  ;;  %v1077_v46 = vpop.xlane.xlu1 %1076 }
 0x5b5   :  { %15043 = vrcp.f32 %v1077_v46 }
 0x5b6   :  { %15045 = vrcp.f32 %v1080_v45  ;;  %v12395_v45 = vld [vmem:[%s17096_s25] ss:$0 sm:$0xff] }
 0x5b8   :  { %v1086_v48 = vpop.xlane.xlu0 %1085  ;;  %v1083_v49 = vpop.xlane.xlu1 %1082 }
 0x5b9   :  { %15047 = vrcp.f32 %v1083_v49 }
 0x5ba   :  { %15049 = vrcp.f32 %v1086_v48 }
 0x5bc   :  { %v1092_v50 = vpop.xlane.xlu0 %1091 }
 0x5bd   :  { %v1089_v51 = vpop.xlane.xlu1 %1088 }
 0x5be   :  { %15051 = vrcp.f32 %v1089_v51  ;;  %v15042_v52 = vpop.eup %15041 }
 0x5bf   :  { %15053 = vrcp.f32 %v1092_v50  ;;  %v1097_v55 = vmul.f32 %v15042_v52, %v15026_v21 }
 0x5c1   :  { %v1095_v53 = vpop.xlane.xlu1 %1094 }
 0x5c2   :  { %15055 = vrcp.f32 %v1095_v53  ;;  %v15044_v54 = vpop.eup %15043 }
 0x5c3   :  { %v1099_v56 = vmul.f32 %v15044_v54, %v15030_v26  ;;  %v15046_v57 = vpop.eup %15045 }
 0x5c4   :  { %v1101_v60 = vmul.f32 %v15046_v57, %v15028_v25 }
 0x5c5   :  { %v1112_v58 = vpack.c.bf16 %v1099_v56, %v1097_v55 }
 0x5c6   :  { %v15048_v59 = vpop.eup %15047 }
 0x5c7   :  { %14127 = vmatprep.mubr.msk.bf16.mxu0 %vm1023_vm6, %v1112_v58  ;;  %v1103_v61 = vmul.f32 %v15048_v59, %v15032_v31  ;;  %v15050_v62 = vpop.eup %15049 }
 0x5c8   :  { %v1105_v4 = vmul.f32 %v15050_v62, %v15034_v33 }
 0x5c9   :  { %v1113_v2 = vpack.c.bf16 %v1103_v61, %v1101_v60 }
 0x5cb   :  { %v15052_v3 = vpop.eup %15051  ;;  %14128 = vmatmul.mubr.msk.bf16.vlgmr.msra.gmra.mxu0 %vm1023_vm6, %v1113_v2 }
 0x5cc   :  { %v1107_v5 = vmul.f32 %v15052_v3, %v15038_v37  ;;  %v15054_v6 = vpop.eup %15053 }
 0x5cd   :  { %v1109_v9 = vmul.f32 %v15054_v6, %v15036_v36 }
 0x5ce   :  { %v1114_v7 = vpack.c.bf16 %v1107_v5, %v1105_v4  ;;  %v1342_v5 = vld [vmem:[#allocation16 + $0x80] sm:$0xff] }
 0x5cf   :  { %v15056_v8 = vpop.eup %15055  ;;  %v12418_v6 = vcombine.high %v1342_v5, %v1350_v30 }
 0x5d0   :  { %14131 = vmatprep.mubr.msk.bf16.mxu0 %vm1023_vm6, %v1114_v7  ;;  %v1111_v10 = vmul.f32 %v15056_v8, %v15040_v42  ;;  %v1351_v7 = vld [vmem:[#allocation16 + $0xc8] sm:$0xff]  ;;  %v12417_v8 = vcombine.low %v1342_v5, %v1350_v30  ;;  %v1330_v30 = vld [vmem:[#allocation16 + $0x20] sm:$0xff] }
 0x5d1   :  { %1617 = vmatprep.subr.bf16.mxu0 %v12418_v6  ;;  %v1331_v6 = vld [vmem:[#allocation16 + $0x28] sm:$0xff] }
 0x5d2   :  { %v1115_v11 = vpack.c.bf16 %v1111_v10, %v1109_v9  ;;  %1618 = vmatpush1.bf16.msra.mxu0 %v12417_v8 }
 0x5d4   :  { %14132 = vmatmul.mubr.msk.bf16.gmra.mxu0 %vm1023_vm6, %v1115_v11  ;;  %v1326_v11 = vld [vmem:[#allocation16] sm:$0xff] }
 0x68b   :  { %v14129_v15 = vpop.f32.mrf.mxu0 }
 0x68c   :  { %v1198_v23 = vmul.f32 %v14129_v15, %v16092_v63  ;;  %v12402_v15 = vcombine.high %v1326_v11, %v1334_v12 }
 0x68d   :  { %v1163_v16 = vpop.f32.mrf.mxu0 }
 0x68e   :  { %v1194_v21 = vmul.f32 %v16080_v47, %v1163_v16  ;;  %v1335_v16 = vld [vmem:[#allocation16 + $0x48] sm:$0xff]  ;;  %1619 = vmatprep.subr.bf16.mxu0 %v12402_v15  ;;  %v1349_v15 = vld [vmem:[#allocation16 + $0xb8] sm:$0xff] }
 0x68f   :  { %v14130_v17 = vpop.f32.mrf.mxu0 }
 0x690   :  { %v1200_v28 = vadd.f32 %v1198_v23, %v1194_v21  ;;  %v1199_v31 = vmul.f32 %v14130_v17, %v16092_v63  ;;  %v12401_v17 = vcombine.low %v1326_v11, %v1334_v12  ;;  %v1344_v21 = vld [vmem:[#allocation16 + $0x90] sm:$0xff]  ;;  %v1345_v23 = vld [vmem:[#allocation16 + $0x98] sm:$0xff] }
 0x691   :  { %v1166_v19 = vpop.f32.mrf.mxu0  ;;  %v1348_v12 = vld [vmem:[#allocation16 + $0xb0] sm:$0xff] }
 0x692   :  { %v1195_v25 = vmul.f32 %v16080_v47, %v1166_v19  ;;  %v12403_v19 = vcombine.low %v1327_v14, %v1335_v16  ;;  %1620 = vmatpush1.bf16.msra.mxu0 %v12401_v17 }
 0x694   :  { %v14133_v20 = vpop.f32.mrf.mxu0  ;;  %v1201_v34 = vadd.f32 %v1199_v31, %v1195_v25 }
 0x695   :  { %v1206_v37 = vmul.f32 %v14133_v20, %v16107_v13  ;;  %v12404_v20 = vcombine.high %v1327_v14, %v1335_v16  ;;  %v1356_v14 = vld [vmem:[#allocation16 + $0xf0] sm:$0xff]  ;;  %v1357_v16 = vld [vmem:[#allocation16 + $0xf8] sm:$0xff] }
 0x696   :  { %v1179_v22 = vpop.f32.mrf.mxu0 }
 0x697   :  { %v1202_v26 = vmul.f32 %v16096_v1, %v1179_v22  ;;  %v1352_v22 = vld [vmem:[#allocation16 + $0xd0] sm:$0xff] }
 0x698   :  { %v14134_v27 = vpop.f32.mrf.mxu0  ;;  %v12422_v25 = vcombine.high %v1344_v21, %v1352_v22 }
 0x699   :  { %v1204_v35 = vadd.f32 %v1202_v26, %v1200_v28  ;;  %v1207_v40 = vmul.f32 %v14134_v27, %v16107_v13  ;;  %v1353_v26 = vld [vmem:[#allocation16 + $0xd8] sm:$0xff]  ;;  %v15687_v27 = vmov 0   ;;  %v12421_v28 = vcombine.low %v1344_v21, %v1352_v22  ;;  %v1332_v22 = vld [vmem:[#allocation16 + $0x30] sm:$0xff] }
 0x69a   :  { %v1182_v33 = vpop.f32.mrf.mxu0  ;;  %1637 = vmatprep.mubr.bf16.mxu0 %v15687_v27  ;;  %v12423_v31 = vcombine.low %v1345_v23, %v1353_v26  ;;  %1703 = vmatprep.subr.bf16.mxu0 %v12422_v25  ;;  %v12432_v21 = vcombine.high %v1349_v15, %v1357_v16  ;;  %v1333_v25 = vld [vmem:[#allocation16 + $0x38] sm:$0xff] }
 0x69b   :  { %v1203_v36 = vmul.f32 %v16096_v1, %v1182_v33  ;;  %v1208_v42 = vadd.f32 %v1206_v37, %v1204_v35  ;;  %v12424_v33 = vcombine.high %v1345_v23, %v1353_v26  ;;  %14461 = vset.pattern.permute.xlu1 %v15687_v27  ;;  %14460 = vset.pattern.permute.xlu0 %v15687_v27  ;;  %v1340_v23 = vld [vmem:[#allocation16 + $0x70] sm:$0xff]  ;;  %v1341_v26 = vld [vmem:[#allocation16 + $0x78] sm:$0xff] }
 0x69d   :  { %v1205_v41 = vadd.f32 %v1203_v36, %v1201_v34 }
 0x69f   :  { %v1209_v43 = vadd.f32 %v1207_v40, %v1205_v41 }
 0x6a1   :  { %v1210_v44 = vpack.c.bf16 %v1209_v43, %v1208_v42 }
 0x6a3   :  { %14140 = vmatmul.mubr.msk.bf16.vlgmr.msra.gmra.mxu1 %vm584_vm1, %v1210_v44  ;;  %v12399_v44 = vld [vmem:[%s17097_s14] ss:$0 sm:$0xff] }
 0x6a4   :  { %1680 = vmatprep.mubr.bf16.mxu1 %v15687_v27 }
 0x763   :  { %v1271_v46 = vpop.f32.mrf.mxu1 }
 0x764   :  { %v1272_v48 = vadd.f32 %v12395_v45, %v1271_v46 }
 0x765   :  { %v14141_v49 = vpop.f32.mrf.mxu1 }
 0x766   :  { %v1278_v50 = vadd.f32 %v1272_v48, %v16057_v29  ;;  %v12400_v49 = vld [vmem:[%s17098_s7] ss:$0 sm:$0xff] }
 0x767   :  { %v1274_v51 = vpop.f32.mrf.mxu1 }
 0x768   :  { %v1275_v52 = vadd.f32 %v12395_v45, %v1274_v51  ;;  %v1282_v53 = vsel %vm584_vm1, %v1278_v50, 0.0  ;;  %v1328_v51 = vld [vmem:[#allocation16 + $0x10] sm:$0xff] }
 0x769   :  { %1283 = vadd.xlane.f32.xlu0 %v1282_v53  ;;  %v14142_v54 = vpop.f32.mrf.mxu1  ;;  %v1329_v53 = vld [vmem:[#allocation16 + $0x18] sm:$0xff] }
 0x76a   :  { %v1279_v55 = vadd.f32 %v1275_v52, %v686_v32  ;;  %v1343_v32 = vld [vmem:[#allocation16 + $0x88] sm:$0xff]  ;;  %v1336_v52 = vld [vmem:[#allocation16 + $0x50] sm:$0xff]  ;;  %v1337_v54 = vld [vmem:[#allocation16 + $0x58] sm:$0xff] }
 0x76b   :  { %v12419_v9 = vcombine.low %v1343_v32, %v1351_v7  ;;  %v12420_v10 = vcombine.high %v1343_v32, %v1351_v7  ;;  %v1338_v32 = vld [vmem:[#allocation16 + $0x60] sm:$0xff]  ;;  %v1339_v7 = vld [vmem:[#allocation16 + $0x68] sm:$0xff] }
 0x76c   :  { %v1285_v56 = vsel %vm584_vm1, %v1279_v55, 0.0  ;;  %v12412_v11 = vcombine.high %v1331_v6, %v1339_v7  ;;  %v12409_v17 = vcombine.low %v1330_v30, %v1338_v32 }
 0x76d   :  { %1286 = vadd.xlane.f32.xlu1 %v1285_v56  ;;  %1660 = vmatprep.subr.bf16.mxu1 %v12420_v10  ;;  %v12410_v10 = vcombine.high %v1330_v30, %v1338_v32  ;;  %v14502_v30 = vld [vmem:[#allocation18 + $0x8] sm:$0xff]  }
 0x76e   :  { %1661 = vmatpush1.bf16.msra.mxu1 %v12419_v9  ;;  %v14503_v32 = vld [vmem:[#allocation18 + $0x88] sm:$0xff]  }
 0x76f   :  { %1662 = vmatprep.subr.bf16.mxu1 %v12404_v20  ;;  %v12430_v20 = vcombine.high %v1348_v12, %v1356_v14 }
 0x772   :  { %1663 = vmatpush1.bf16.msra.mxu1 %v12403_v19  ;;  %v12411_v19 = vcombine.low %v1331_v6, %v1339_v7  ;;  %v14504_v6 = vld [vmem:[#allocation18 + $0x40] sm:$0xff]  }
 0x773   :  { %1746 = vmatprep.subr.bf16.mxu1 %v12424_v33  ;;  %v12414_v33 = vcombine.high %v1332_v22, %v1340_v23  ;;  %v14505_v7 = vld [vmem:[#allocation18 + $0xc0] sm:$0xff]  }
 0x7f2   :  { %v1284_v57 = vpop.xlane.xlu0 %1283 }
 0x7f3   :  { %v1289_v58 = vmul.f32 0.03125, %v1284_v57 }
 0x7f5   :  { %v1291_v59 = vsub.f32 %v1278_v50, %v1289_v58  ;;  %v12406_v58 = vcombine.high %v1328_v51, %v1336_v52 }
 0x7f6   :  { %v1287_v60 = vpop.xlane.xlu1 %1286 }
 0x7f7   :  { %v1290_v61 = vmul.f32 0.03125, %v1287_v60  ;;  %v1293_v62 = vmul.f32 %v1291_v59, %v1291_v59  ;;  %v1346_v60 = vld [vmem:[#allocation16 + $0xa0] sm:$0xff] }
 0x7f9   :  { %v1292_v2 = vsub.f32 %v1279_v55, %v1290_v61  ;;  %v1295_v29 = vsel %vm584_vm1, %v1293_v62, 0.0  ;;  %v1354_v61 = vld [vmem:[#allocation16 + $0xe0] sm:$0xff]  ;;  %v1347_v62 = vld [vmem:[#allocation16 + $0xa8] sm:$0xff] }
 0x7fa   :  { %1296 = vadd.xlane.f32.xlu0 %v1295_v29  ;;  %v12405_v29 = vcombine.low %v1328_v51, %v1336_v52  ;;  %v12425_v8 = vcombine.low %v1346_v60, %v1354_v61  ;;  %v14487_v51 = vld [vmem:[#allocation18 + $0xa8] sm:$0xff]   ;;  %v14488_v52 = vld [vmem:[#allocation18 + $0x60] sm:$0xff]  }
 0x7fb   :  { %v1294_v3 = vmul.f32 %v1292_v2, %v1292_v2 }
 0x7fd   :  { %v1298_v4 = vsel %vm584_vm1, %v1294_v3, 0.0  ;;  %v12407_v3 = vcombine.low %v1329_v53, %v1337_v54 }
 0x7fe   :  { %1299 = vadd.xlane.f32.xlu1 %v1298_v4  ;;  %v12426_v4 = vcombine.high %v1346_v60, %v1354_v61  ;;  %v14494_v60 = vld [vmem:[#allocation18 + $0x18] sm:$0xff]  }
 0x7ff   :  { %v14495_v61 = vld [vmem:[#allocation18 + $0x98] sm:$0xff]  }
 0x883   :  { %v1297_v34 = vpop.xlane.xlu0 %1296 }
 0x884   :  { %v1301_v35 = vmul.f32 0.03125, %v1297_v34  ;;  %v12416_v34 = vcombine.high %v1333_v25, %v1341_v26 }
 0x886   :  { %v1303_v36 = vadd.f32 1e-05, %v1301_v35  ;;  %v12413_v35 = vcombine.low %v1332_v22, %v1340_v23 }
 0x887   :  { %v1300_v37 = vpop.xlane.xlu1 %1299 }
 0x888   :  { %15057 = vrsqrt.f32 %v1303_v36  ;;  %v1302_v40 = vmul.f32 0.03125, %v1300_v37  ;;  %v12415_v36 = vcombine.low %v1333_v25, %v1341_v26  ;;  %v14476_v37 = vld [vmem:[#allocation18 + $0x78] sm:$0xff]  }
 0x88a   :  { %v1304_v41 = vadd.f32 1e-05, %v1302_v40  ;;  %v14477_v40 = vld [vmem:[#allocation18 + $0xf8] sm:$0xff]  }
 0x88c   :  { %15059 = vrsqrt.f32 %v1304_v41  ;;  %v14478_v41 = vld [vmem:[#allocation18 + $0x38] sm:$0xff]  }
 0x895   :  { %v15058_v42 = vpop.eup %15057 }
 0x896   :  { %v1307_v43 = vmul.f32 %v15058_v42, %v1291_v59  ;;  %v12408_v59 = vcombine.high %v1329_v53, %v1337_v54  ;;  %v14479_v42 = vld [vmem:[#allocation18 + $0xb8] sm:$0xff]   ;;  %v14489_v53 = vld [vmem:[#allocation18 + $0xe0] sm:$0xff]  }
 0x897   :  { %v14490_v54 = vld [vmem:[#allocation18 + $0x20] sm:$0xff]  }
 0x898   :  { %v1315_v46 = vmul.f32 %v12399_v44, %v1307_v43  ;;  %v14480_v43 = vld [vmem:[#allocation18 + $0x70] sm:$0xff]  }
 0x899   :  { %v15060_v45 = vpop.eup %15059 }
 0x89a   :  { %v1308_v48 = vmul.f32 %v15060_v45, %v1292_v2  ;;  %v16177_v55 = vadd.f32 %v12400_v49, %v1315_v46  ;;  %v1355_v2 = vld [vmem:[#allocation16 + $0xe8] sm:$0xff]  ;;  %v14482_v45 = vld [vmem:[#allocation18 + $0x30] sm:$0xff]  }
 0x89b   :  { %v12428_v5 = vcombine.high %v1347_v62, %v1355_v2  ;;  %v12427_v9 = vcombine.low %v1347_v62, %v1355_v2  ;;  %v14483_v46 = vld [vmem:[#allocation18 + $0xb0] sm:$0xff]  }
 0x89c   :  { %v1316_v50 = vmul.f32 %v12399_v44, %v1308_v48  ;;  %v14481_v44 = vld [vmem:[#allocation18 + $0xf0] sm:$0xff]   ;;  %v14484_v48 = vld [vmem:[#allocation18 + $0x68] sm:$0xff]  }
 0x89d   :  { %v14496_v62 = vld [vmem:[#allocation18 + $0x50] sm:$0xff]  }
 0x89e   :  { %v16179_v56 = vadd.f32 %v12400_v49, %v1316_v50  ;;  %v14485_v49 = vld [vmem:[#allocation18 + $0xe8] sm:$0xff]   ;;  %v14497_v2 = vld [vmem:[#allocation18 + $0xd0] sm:$0xff]  }
 0x89f   :  { %v14486_v50 = vld [vmem:[#allocation18 + $0x28] sm:$0xff]  }
 0x8a0   :  { %v16183_v57 = vpack.c.bf16 %v16179_v56, %v16177_v55 }
 0x8a2   :  { %12433 = vmatmul.mubr.msk.bf16.vlgmr.msra.gmra.mxu0 %vm584_vm1, %v16183_v57  ;;  %12434 = vmatmul.mubr.msk.bf16.vlgmr.msra.gmra.mxu1 %vm584_vm1, %v16183_v57 }
 0x8a3   :  { %1704 = vmatpush1.bf16.msra.mxu0 %v12421_v28  ;;  %1747 = vmatpush1.bf16.msra.mxu1 %v12423_v31  ;;  %v12429_v28 = vcombine.low %v1348_v12, %v1356_v14  ;;  %v12431_v31 = vcombine.low %v1349_v15, %v1357_v16  ;;  %v16208_v12 = vshrl.u32 %v687_v38, 7 }
 0x8a4   :  { %1705 = vmatprep.subr.bf16.mxu0 %v12406_v58  ;;  %1748 = vmatprep.subr.bf16.mxu1 %v12408_v59  ;;  %v14492_v58 = vld [vmem:[#allocation18 + $0x58] sm:$0xff]  }
 0x8a5   :  { %1723 = vmatprep.mubr.bf16.mxu0 %v15687_v27  ;;  %1766 = vmatprep.mubr.bf16.mxu1 %v15687_v27  ;;  %v14493_v59 = vld [vmem:[#allocation18 + $0xd8] sm:$0xff]   ;;  %v16211_v14 = vsub.s32 1, %v16208_v12  ;;  %v16214_v15 = vsub.s32 3, %v16208_v12  ;;  %v16217_v16 = vsub.s32 0, %v16208_v12 }
 0x8a7   :  { %1706 = vmatpush1.bf16.msra.mxu0 %v12405_v29  ;;  %1749 = vmatpush1.bf16.msra.mxu1 %v12407_v3  ;;  %v14498_v29 = vld [vmem:[#allocation18 + $0x10] sm:$0xff]  }
 0x8a8   :  { %1789 = vmatprep.subr.bf16.mxu0 %v12426_v4  ;;  %1832 = vmatprep.subr.bf16.mxu1 %v12428_v5  ;;  %v14499_v3 = vld [vmem:[#allocation18 + $0x90] sm:$0xff]   ;;  %v14500_v4 = vld [vmem:[#allocation18 + $0x48] sm:$0xff]  }
 0x8a9   :  { %v14501_v5 = vld [vmem:[#allocation18 + $0xc8] sm:$0xff]  }
 0x8aa   :  { %12435 = vmatmul.mubr.msk.bf16.vlgmr.msra.gmra.mxu0 %vm584_vm1, %v16183_v57  ;;  %12436 = vmatmul.mubr.msk.bf16.vlgmr.msra.gmra.mxu1 %vm584_vm1, %v16183_v57 }
 0x8ab   :  { %1790 = vmatpush1.bf16.msra.mxu0 %v12425_v8  ;;  %1833 = vmatpush1.bf16.msra.mxu1 %v12427_v9  ;;  %v14506_v8 = vld [vmem:[#allocation18] sm:$0xff]  }
 0x8ac   :  { %1791 = vmatprep.subr.bf16.mxu0 %v12410_v10  ;;  %1834 = vmatprep.subr.bf16.mxu1 %v12412_v11  ;;  %v14507_v9 = vld [vmem:[#allocation18 + $0x80] sm:$0xff]   ;;  %v14508_v10 = vld [vmem:[#allocation18 + $0x178] sm:$0xff]  }
 0x8ad   :  { %1809 = vmatprep.mubr.bf16.mxu0 %v15687_v27  ;;  %1852 = vmatprep.mubr.bf16.mxu1 %v15687_v27  ;;  %v14509_v11 = vld [vmem:[#allocation18 + $0x1f8] sm:$0xff]  }
 0x8af   :  { %1792 = vmatpush1.bf16.msra.mxu0 %v12409_v17  ;;  %1835 = vmatpush1.bf16.msra.mxu1 %v12411_v19  ;;  %v16220_v17 = vsub.s32 2, %v16208_v12  ;;  %v16223_v19 = vld [vmem:[%s17099_s9] sm:$0xff] }
 0x8b0   :  { %1875 = vmatprep.subr.bf16.mxu0 %v12430_v20  ;;  %1918 = vmatprep.subr.bf16.mxu1 %v12432_v21  ;;  %v1369_v38 = vrot.slane %v16223_v19, %v16211_v14  ;;  %v1377_v22 = vrot.slane %v16223_v19, %v16214_v15  ;;  %v1365_v23 = vrot.slane %v16223_v19, %v16217_v16 }
 0x8b1   :  { %v1373_v25 = vrot.slane %v16223_v19, %v16220_v17 }
 0x8b2   :  { %12437 = vmatmul.mubr.msk.bf16.vlgmr.msra.gmra.mxu0 %vm584_vm1, %v16183_v57  ;;  %12438 = vmatmul.mubr.msk.bf16.vlgmr.msra.gmra.mxu1 %vm584_vm1, %v16183_v57 }
 0x8b3   :  { %1876 = vmatpush1.bf16.msra.mxu0 %v12429_v28  ;;  %1919 = vmatpush1.bf16.msra.mxu1 %v12431_v31 }
 0x8b4   :  { %1877 = vmatprep.subr.bf16.mxu0 %v12414_v33  ;;  %1920 = vmatprep.subr.bf16.mxu1 %v12416_v34  ;;  %v16234_v34 = vsub.s32 5, %v16208_v12 }
 0x8b5   :  { %1895 = vmatprep.mubr.bf16.mxu0 %v15687_v27  ;;  %1938 = vmatprep.mubr.bf16.mxu1 %v15687_v27 }
 0x8b7   :  { %1878 = vmatpush1.bf16.msra.mxu0 %v12413_v35  ;;  %1921 = vmatpush1.bf16.msra.mxu1 %v12415_v36 }
 0x8b8   :  { %13262 = vmatprep.subr.bf16.mxu0 %v14476_v37  ;;  %13284 = vmatprep.subr.bf16.mxu1 %v14477_v40 }
 0x8ba   :  { %12439 = vmatmul.mubr.msk.bf16.vlgmr.msra.gmra.mxu0 %vm584_vm1, %v16183_v57  ;;  %12440 = vmatmul.mubr.msk.bf16.vlgmr.msra.gmra.mxu1 %vm584_vm1, %v16183_v57  ;;  %v14491_v57 = vld [vmem:[#allocation18 + $0xa0] sm:$0xff]  }
 0x8bb   :  { %13263 = vmatpush3.bf16.msra.mxu0 %v14478_v41  ;;  %13285 = vmatpush3.bf16.msra.mxu1 %v14479_v42 }
 0x8bc   :  { %13264 = vmatprep.subr.bf16.mxu0 %v14480_v43  ;;  %13286 = vmatprep.subr.bf16.mxu1 %v14481_v44 }
 0x8bf   :  { %13265 = vmatpush3.bf16.msra.mxu0 %v14482_v45  ;;  %13287 = vmatpush3.bf16.msra.mxu1 %v14483_v46  ;;  %v16237_v45 = vsub.s32 7, %v16208_v12 }
 0x8c0   :  { %13266 = vmatprep.subr.bf16.mxu0 %v14484_v48  ;;  %13288 = vmatprep.subr.bf16.mxu1 %v14485_v49 }
 0x8c3   :  { %13267 = vmatpush3.bf16.msra.mxu0 %v14486_v50  ;;  %13289 = vmatpush3.bf16.msra.mxu1 %v14487_v51 }
 0x8c4   :  { %13268 = vmatprep.subr.bf16.mxu0 %v14488_v52  ;;  %13290 = vmatprep.subr.bf16.mxu1 %v14489_v53  ;;  %v1385_v53 = vrot.slane %v16223_v19, %v16234_v34 }
 0x8c7   :  { %13269 = vmatpush3.bf16.msra.mxu0 %v14490_v54  ;;  %13291 = vmatpush3.bf16.msra.mxu1 %v14491_v57 }
 0x8c8   :  { %13270 = vmatprep.subr.bf16.mxu0 %v14492_v58  ;;  %13292 = vmatprep.subr.bf16.mxu1 %v14493_v59 }
 0x8cb   :  { %13271 = vmatpush3.bf16.msra.mxu0 %v14494_v60  ;;  %13293 = vmatpush3.bf16.msra.mxu1 %v14495_v61 }
 0x8cc   :  { %13272 = vmatprep.subr.bf16.mxu0 %v14496_v62  ;;  %13294 = vmatprep.subr.bf16.mxu1 %v14497_v2  ;;  %v1393_v2 = vrot.slane %v16223_v19, %v16237_v45 }
 0x8cf   :  { %13273 = vmatpush3.bf16.msra.mxu0 %v14498_v29  ;;  %13295 = vmatpush3.bf16.msra.mxu1 %v14499_v3 }
 0x8d0   :  { %13274 = vmatprep.subr.bf16.mxu0 %v14500_v4  ;;  %13296 = vmatprep.subr.bf16.mxu1 %v14501_v5  ;;  %v14510_v5 = vld [vmem:[#allocation18 + $0x138] sm:$0xff]  }
 0x8d3   :  { %13275 = vmatpush3.bf16.msra.mxu0 %v14502_v30  ;;  %13297 = vmatpush3.bf16.msra.mxu1 %v14503_v32  ;;  %v14511_v30 = vld [vmem:[#allocation18 + $0x1b8] sm:$0xff]  }
 0x8d4   :  { %13276 = vmatprep.subr.bf16.mxu0 %v14504_v6  ;;  %13298 = vmatprep.subr.bf16.mxu1 %v14505_v7 }
 0x8d7   :  { %13277 = vmatpush3.bf16.msra.mxu0 %v14506_v8  ;;  %13299 = vmatpush3.bf16.msra.mxu1 %v14507_v9  ;;  %v14512_v9 = vld [vmem:[#allocation18 + $0x170] sm:$0xff]  }
 0x8d8   :  { %13306 = vmatprep.subr.bf16.mxu0 %v14508_v10  ;;  %13328 = vmatprep.subr.bf16.mxu1 %v14509_v11  ;;  %v14513_v10 = vld [vmem:[#allocation18 + $0x1f0] sm:$0xff]  }
 0x962   :  { %v1639_v20 = vpop.f32.mrf.mxu0  ;;  %v1682_v21 = vpop.f32.mrf.mxu1 }
 0x963   :  { %v1640_v41 = vadd.f32 %v1639_v20, %v1365_v23  ;;  %v1683_v42 = vadd.f32 %v1682_v21, %v1373_v25 }
 0x964   :  { %v1641_v26 = vpop.f32.mrf.mxu0  ;;  %v1684_v28 = vpop.f32.mrf.mxu1 }
 0x965   :  { %v1642_v35 = vadd.f32 %v1641_v26, %v1369_v38  ;;  %v1685_v36 = vadd.f32 %v1684_v28, %v1377_v22  ;;  %v1949_v60 = vmax.f32 %v1640_v41, 0.0  ;;  %v1951_v61 = vmax.f32 %v1683_v42, 0.0  ;;  %v14515_v26 = vld [vmem:[#allocation18 + $0x1b0] sm:$0xff]   ;;  %v14516_v28 = vld [vmem:[#allocation18 + $0x168] sm:$0xff]  }
 0x966   :  { %v1643_v31 = vpop.f32.mrf.mxu0  ;;  %v1686_v33 = vpop.f32.mrf.mxu1  ;;  %v14518_v41 = vld [vmem:[#allocation18 + $0x128] sm:$0xff]  }
 0x967   :  { %v1644_v37 = vadd.f32 %v1643_v31, %v1365_v23  ;;  %v1687_v40 = vadd.f32 %v1686_v33, %v1373_v25  ;;  %v1950_v54 = vmax.f32 %v1642_v35, 0.0  ;;  %v1952_v57 = vmax.f32 %v1685_v36, 0.0  ;;  %v14514_v25 = vld [vmem:[#allocation18 + $0x130] sm:$0xff]   ;;  %v14517_v31 = vld [vmem:[#allocation18 + $0x1e8] sm:$0xff]  }
 0x968   :  { %v1645_v43 = vpop.f32.mrf.mxu0  ;;  %v1688_v44 = vpop.f32.mrf.mxu1  ;;  %v14519_v42 = vld [vmem:[#allocation18 + $0x1a8] sm:$0xff]  }
 0x969   :  { %v1646_v46 = vadd.f32 %v1645_v43, %v1369_v38  ;;  %v1689_v48 = vadd.f32 %v1688_v44, %v1377_v22  ;;  %v1965_v49 = vmax.f32 %v1644_v37, 0.0  ;;  %v1967_v50 = vmax.f32 %v1687_v40, 0.0  ;;  %v14520_v44 = vld [vmem:[#allocation18 + $0x160] sm:$0xff]  }
 0x96a   :  { %v16239_v51 = vpop.f32.mrf.mxu0  ;;  %v16241_v52 = vpop.f32.mrf.mxu1 }
 0x96b   :  { %v1966_v58 = vmax.f32 %v1646_v46, 0.0  ;;  %v1968_v59 = vmax.f32 %v1689_v48, 0.0  ;;  %v1981_v32 = vpack.c.bf16 %v1965_v49, %v1949_v60  ;;  %v1983_v6 = vpack.c.bf16 %v1967_v50, %v1951_v61  ;;  %v14521_v46 = vld [vmem:[#allocation18 + $0x1e0] sm:$0xff]   ;;  %v14526_v60 = vld [vmem:[#allocation18 + $0x118] sm:$0xff]  }
 0x96c   :  { %v1727_v62 = vpop.f32.mrf.mxu0  ;;  %v1770_v29 = vpop.f32.mrf.mxu1  ;;  %v14522_v50 = vld [vmem:[#allocation18 + $0x120] sm:$0xff]   ;;  %v14527_v61 = vld [vmem:[#allocation18 + $0x198] sm:$0xff]  }
 0x96d   :  { %v1982_v3 = vpack.c.bf16 %v1966_v58, %v1950_v54  ;;  %v1984_v4 = vpack.c.bf16 %v1968_v59, %v1952_v57  ;;  %v1728_v11 = vadd.f32 %v1727_v62, %v1385_v53  ;;  %v1771_v20 = vadd.f32 %v1770_v29, %v1393_v2  ;;  %v14524_v54 = vld [vmem:[#allocation18 + $0x158] sm:$0xff]   ;;  %v14528_v62 = vld [vmem:[#allocation18 + $0x150] sm:$0xff]  }
 0x96e   :  { %v16247_v7 = vpop.f32.mrf.mxu0  ;;  %v16249_v8 = vpop.f32.mrf.mxu1  ;;  %v14525_v57 = vld [vmem:[#allocation18 + $0x1d8] sm:$0xff]   ;;  %v16256_v29 = vsub.s32 4, %v16208_v12 }
 0x96f   :  { %3060 = vmatprep.mubr.bf16.mxu0 %v1982_v3  ;;  %3101 = vmatprep.mubr.bf16.mxu1 %v1984_v4  ;;  %v1954_v33 = vmax.f32 %v1728_v11, 0.0  ;;  %v1956_v37 = vmax.f32 %v1771_v20, 0.0  ;;  %v16259_v3 = vsub.s32 6, %v16208_v12  ;;  %v16270_v12 = vld [vmem:[%s17099_s9 + $0x8] sm:$0xff] }
 0x970   :  { %v1731_v21 = vpop.f32.mrf.mxu0  ;;  %v1774_v38 = vpop.f32.mrf.mxu1  ;;  %3061 = vmatmul.mubr.bf16.vlgmr.msra.gmra.mxu0 %v1981_v32  ;;  %3102 = vmatmul.mubr.bf16.vlgmr.msra.gmra.mxu1 %v1983_v6  ;;  %v14531_v32 = vld [vmem:[#allocation18 + $0x190] sm:$0xff]   ;;  %v14532_v6 = vld [vmem:[#allocation18 + $0x148] sm:$0xff]  }
 0x971   :  { %v1732_v22 = vadd.f32 %v1731_v21, %v1385_v53  ;;  %v1775_v23 = vadd.f32 %v1774_v38, %v1393_v2  ;;  %13307 = vmatpush3.bf16.msra.mxu0 %v14510_v5  ;;  %13329 = vmatpush3.bf16.msra.mxu1 %v14511_v30  ;;  %v14523_v53 = vld [vmem:[#allocation18 + $0x1a0] sm:$0xff]   ;;  %v14529_v2 = vld [vmem:[#allocation18 + $0x1d0] sm:$0xff]   ;;  %v1389_v11 = vrot.slane %v16223_v19, %v16259_v3 }
 0x972   :  { %13308 = vmatprep.subr.bf16.mxu0 %v14512_v9  ;;  %13330 = vmatprep.subr.bf16.mxu1 %v14513_v10  ;;  %v16251_v48 = vpop.f32.mrf.mxu0  ;;  %v16253_v49 = vpop.f32.mrf.mxu1  ;;  %v14530_v30 = vld [vmem:[#allocation18 + $0x110] sm:$0xff]   ;;  %v14533_v9 = vld [vmem:[#allocation18 + $0x1c8] sm:$0xff]   ;;  %v1381_v10 = vrot.slane %v16223_v19, %v16256_v29  ;;  %v1401_v21 = vrot.slane %v16270_v12, %v16211_v14  ;;  %v14536_v19 = vld [vmem:[#allocation18 + $0x140] sm:$0xff]  }
 0x973   :  { %v1970_v35 = vmax.f32 %v1732_v22, 0.0  ;;  %v1972_v36 = vmax.f32 %v1775_v23, 0.0  ;;  %v14534_v22 = vld [vmem:[#allocation18 + $0x108] sm:$0xff]  }
 0x974   :  { %v1813_v58 = vpop.f32.mrf.mxu0  ;;  %v1856_v59 = vpop.f32.mrf.mxu1  ;;  %v14535_v23 = vld [vmem:[#allocation18 + $0x188] sm:$0xff]  }
 0x975   :  { %13309 = vmatpush3.bf16.msra.mxu0 %v14514_v25  ;;  %13331 = vmatpush3.bf16.msra.mxu1 %v14515_v26  ;;  %v1986_v40 = vpack.c.bf16 %v1970_v35, %v1954_v33  ;;  %v1988_v43 = vpack.c.bf16 %v1972_v36, %v1956_v37  ;;  %v1730_v25 = vadd.f32 %v16247_v7, %v1381_v10  ;;  %v14539_v7 = vld [vmem:[#allocation18 + $0x180] sm:$0xff]  }
 0x976   :  { %13310 = vmatprep.subr.bf16.mxu0 %v14516_v28  ;;  %13332 = vmatprep.subr.bf16.mxu1 %v14517_v31  ;;  %v16261_v4 = vpop.f32.mrf.mxu0  ;;  %v16263_v5 = vpop.f32.mrf.mxu1  ;;  %v1773_v26 = vadd.f32 %v16249_v8, %v1389_v11  ;;  %v1409_v28 = vrot.slane %v16270_v12, %v16214_v15  ;;  %v14537_v31 = vld [vmem:[#allocation18 + $0x1c0] sm:$0xff]   ;;  %v1726_v35 = vadd.f32 %v16239_v51, %v1381_v10  ;;  %v14548_v10 = vld [vmem:[#allocation18 + $0x268] sm:$0xff]  }
 0x977   :  { %3142 = vmatprep.mubr.bf16.mxu0 %v1986_v40  ;;  %3183 = vmatprep.mubr.bf16.mxu1 %v1988_v43  ;;  %v1769_v36 = vadd.f32 %v16241_v52, %v1389_v11  ;;  %v1814_v40 = vadd.f32 %v1813_v58, %v1401_v21  ;;  %v14542_v52 = vld [vmem:[#allocation18 + $0x238] sm:$0xff]   ;;  %v14549_v11 = vld [vmem:[#allocation18 + $0x2e8] sm:$0xff]  }
 0x978   :  { %v1817_v20 = vpop.f32.mrf.mxu0  ;;  %v1860_v38 = vpop.f32.mrf.mxu1  ;;  %v1971_v8 = vmax.f32 %v1773_v26, 0.0  ;;  %v1857_v43 = vadd.f32 %v1856_v59, %v1409_v28  ;;  %v14544_v59 = vld [vmem:[#allocation18 + $0x270] sm:$0xff]  }
 0x979   :  { %13311 = vmatpush3.bf16.msra.mxu0 %v14518_v41  ;;  %13333 = vmatpush3.bf16.msra.mxu1 %v14519_v42  ;;  %v1818_v33 = vadd.f32 %v1817_v20, %v1401_v21  ;;  %v1861_v37 = vadd.f32 %v1860_v38, %v1409_v28  ;;  %v14538_v41 = vld [vmem:[#allocation18 + $0x100] sm:$0xff]   ;;  %v1969_v42 = vmax.f32 %v1730_v25, 0.0  ;;  %v1958_v51 = vmax.f32 %v1814_v40, 0.0  ;;  %v14550_v20 = vld [vmem:[#allocation18 + $0x228] sm:$0xff]   ;;  %v14560_v40 = vld [vmem:[#allocation18 + $0x250] sm:$0xff]  }
 0x97a   :  { %13312 = vmatprep.subr.bf16.mxu0 %v14520_v44  ;;  %13334 = vmatprep.subr.bf16.mxu1 %v14521_v46  ;;  %v14540_v44 = vld [vmem:[#allocation18 + $0x278] sm:$0xff]   ;;  %v14551_v21 = vld [vmem:[#allocation18 + $0x2a8] sm:$0xff]   ;;  %v14552_v38 = vld [vmem:[#allocation18 + $0x260] sm:$0xff]   ;;  %v16282_v26 = vpop.f32.mrf.mxu1 }
 0x97b   :  { %v14541_v46 = vld [vmem:[#allocation18 + $0x2f8] sm:$0xff]   ;;  %v14554_v25 = vld [vmem:[#allocation18 + $0x220] sm:$0xff]  }
 0x97c   :  { %v14555_v28 = vld [vmem:[#allocation18 + $0x2a0] sm:$0xff]  }
 0x97d   :  { %13313 = vmatpush3.bf16.msra.mxu0 %v14522_v50  ;;  %13335 = vmatpush3.bf16.msra.mxu1 %v14523_v53  ;;  %v1974_v50 = vmax.f32 %v1818_v33, 0.0  ;;  %v1953_v53 = vmax.f32 %v1726_v35, 0.0  ;;  %v14558_v35 = vld [vmem:[#allocation18 + $0x218] sm:$0xff]  }
 0x97e   :  { %13314 = vmatprep.subr.bf16.mxu0 %v14524_v54  ;;  %13336 = vmatprep.subr.bf16.mxu1 %v14525_v57  ;;  %v1955_v54 = vmax.f32 %v1769_v36, 0.0  ;;  %v1976_v57 = vmax.f32 %v1861_v37, 0.0  ;;  %v1942_v36 = vpop.f32.mrf.mxu1  ;;  %v14559_v37 = vld [vmem:[#allocation18 + $0x298] sm:$0xff]  }
 0x97f   :  { %v1985_v58 = vpack.c.bf16 %v1969_v42, %v1953_v53  ;;  %v14562_v42 = vld [vmem:[#allocation18 + $0x210] sm:$0xff]   ;;  %v1405_v53 = vrot.slane %v16270_v12, %v16220_v17 }
 0x981   :  { %13315 = vmatpush3.bf16.msra.mxu0 %v14526_v60  ;;  %13337 = vmatpush3.bf16.msra.mxu1 %v14527_v61  ;;  %v1987_v60 = vpack.c.bf16 %v1971_v8, %v1955_v54  ;;  %v1960_v61 = vmax.f32 %v1857_v43, 0.0  ;;  %v16286_v8 = vpop.f32.mrf.mxu1  ;;  %v14563_v43 = vld [vmem:[#allocation18 + $0x290] sm:$0xff]  }
 0x982   :  { %13316 = vmatprep.subr.bf16.mxu0 %v14528_v62  ;;  %13338 = vmatprep.subr.bf16.mxu1 %v14529_v2  ;;  %v14543_v62 = vld [vmem:[#allocation18 + $0x2b8] sm:$0xff]   ;;  %v1990_v2 = vpack.c.bf16 %v1974_v50, %v1958_v51  ;;  %v1397_v50 = vrot.slane %v16270_v12, %v16217_v16 }
 0x984   :  { %v1816_v51 = vadd.f32 %v16261_v4, %v1397_v50  ;;  %v1855_v4 = vadd.f32 %v16253_v49, %v1405_v53 }
 0x985   :  { %13317 = vmatpush3.bf16.msra.mxu0 %v14530_v30  ;;  %13339 = vmatpush3.bf16.msra.mxu1 %v14531_v32  ;;  %v14545_v30 = vld [vmem:[#allocation18 + $0x2f0] sm:$0xff]   ;;  %v1992_v32 = vpack.c.bf16 %v1976_v57, %v1960_v61  ;;  %v14566_v57 = vld [vmem:[#allocation18 + $0x208] sm:$0xff]   ;;  %v14568_v61 = vld [vmem:[#allocation18 + $0x240] sm:$0xff]  }
 0x986   :  { %13318 = vmatprep.subr.bf16.mxu0 %v14532_v6  ;;  %13340 = vmatprep.subr.bf16.mxu1 %v14533_v9  ;;  %v14546_v6 = vld [vmem:[#allocation18 + $0x230] sm:$0xff]  }
 0x987   :  { %v14547_v9 = vld [vmem:[#allocation18 + $0x2b0] sm:$0xff]  }
 0x989   :  { %13319 = vmatpush3.bf16.msra.mxu0 %v14534_v22  ;;  %13341 = vmatpush3.bf16.msra.mxu1 %v14535_v23  ;;  %v14553_v22 = vld [vmem:[#allocation18 + $0x2e0] sm:$0xff]   ;;  %v16280_v23 = vpop.f32.mrf.mxu0 }
 0x98a   :  { %13320 = vmatprep.subr.bf16.mxu0 %v14536_v19  ;;  %13342 = vmatprep.subr.bf16.mxu1 %v14537_v31  ;;  %v14556_v19 = vld [vmem:[#allocation18 + $0x258] sm:$0xff]  }
 0x98b   :  { %v14557_v31 = vld [vmem:[#allocation18 + $0x2d8] sm:$0xff]   ;;  %v1899_v33 = vpop.f32.mrf.mxu0 }
 0x98d   :  { %13321 = vmatpush3.bf16.msra.mxu0 %v14538_v41  ;;  %13343 = vmatpush3.bf16.msra.mxu1 %v14539_v7  ;;  %v14561_v41 = vld [vmem:[#allocation18 + $0x2d0] sm:$0xff]   ;;  %v16284_v7 = vpop.f32.mrf.mxu0 }
 0x98e   :  { %13350 = vmatprep.subr.bf16.mxu0 %v14540_v44  ;;  %13372 = vmatprep.subr.bf16.mxu1 %v14541_v46  ;;  %v14564_v44 = vld [vmem:[#allocation18 + $0x248] sm:$0xff]  }
 0x98f   :  { %v14565_v46 = vld [vmem:[#allocation18 + $0x2c8] sm:$0xff]   ;;  %v1903_v54 = vpop.f32.mrf.mxu0 }
 0x990   :  { %3143 = vmatmul.mubr.bf16.vlgmr.msra.gmra.mxu0 %v1985_v58  ;;  %3184 = vmatmul.mubr.bf16.vlgmr.msra.gmra.mxu1 %v1987_v60  ;;  %v1946_v58 = vpop.f32.mrf.mxu1  ;;  %v14567_v60 = vld [vmem:[#allocation18 + $0x288] sm:$0xff]  }
 0x991   :  { %13351 = vmatpush3.bf16.msra.mxu0 %v14542_v52  ;;  %3224 = vmatprep.mubr.bf16.mxu0 %v1990_v2  ;;  %v1417_v52 = vrot.slane %v16270_v12, %v16234_v34  ;;  %v1425_v2 = vrot.slane %v16270_v12, %v16237_v45 }
 0x992   :  { %13373 = vmatpush3.bf16.msra.mxu1 %v14543_v62  ;;  %3265 = vmatprep.mubr.bf16.mxu1 %v1992_v32  ;;  %v1859_v62 = vadd.f32 %v16263_v5, %v1405_v53  ;;  %v14581_v53 = vld [vmem:[#allocation18 + $0x3e8] sm:$0xff]  }
 0x993   :  { %13352 = vmatprep.subr.bf16.mxu0 %v14544_v59  ;;  %13374 = vmatprep.subr.bf16.mxu1 %v14545_v30  ;;  %v14569_v59 = vld [vmem:[#allocation18 + $0x2c0] sm:$0xff]   ;;  %v1812_v30 = vadd.f32 %v16251_v48, %v1397_v50  ;;  %v1904_v32 = vadd.f32 %v1903_v54, %v1417_v52  ;;  %v14580_v50 = vld [vmem:[#allocation18 + $0x368] sm:$0xff]  }
 0x994   :  { %v1975_v5 = vmax.f32 %v1859_v62, 0.0  ;;  %v14582_v54 = vld [vmem:[#allocation18 + $0x328] sm:$0xff]   ;;  %v14589_v62 = vld [vmem:[#allocation18 + $0x3d8] sm:$0xff]  }
 0x995   :  { %13353 = vmatpush3.bf16.msra.mxu0 %v14546_v6  ;;  %v1947_v6 = vadd.f32 %v1946_v58, %v1425_v2  ;;  %v14586_v58 = vld [vmem:[#allocation18 + $0x320] sm:$0xff]  }
 0x996   :  { %13375 = vmatpush3.bf16.msra.mxu1 %v14547_v9  ;;  %13354 = vmatprep.subr.bf16.mxu0 %v14548_v10  ;;  %v14570_v9 = vld [vmem:[#allocation18 + $0x200] sm:$0xff]   ;;  %v1973_v10 = vmax.f32 %v1816_v51, 0.0 }
 0x997   :  { %13376 = vmatprep.subr.bf16.mxu1 %v14549_v11  ;;  %v1900_v11 = vadd.f32 %v1899_v33, %v1417_v52  ;;  %v1980_v48 = vmax.f32 %v1947_v6, 0.0  ;;  %v14584_v51 = vld [vmem:[#allocation18 + $0x360] sm:$0xff]   ;;  %v14595_v6 = vld [vmem:[#allocation18 + $0x390] sm:$0xff]  }
 0x998   :  { %v14585_v52 = vld [vmem:[#allocation18 + $0x3e0] sm:$0xff]  }
 0x999   :  { %13355 = vmatpush3.bf16.msra.mxu0 %v14550_v20  ;;  %v14571_v20 = vld [vmem:[#allocation18 + $0x280] sm:$0xff]  }
 0x99a   :  { %13377 = vmatpush3.bf16.msra.mxu1 %v14551_v21  ;;  %13356 = vmatprep.subr.bf16.mxu0 %v14552_v38  ;;  %v14572_v21 = vld [vmem:[#allocation18 + $0x378] sm:$0xff]   ;;  %v1943_v38 = vadd.f32 %v1942_v36, %v1425_v2  ;;  %v14577_v36 = vld [vmem:[#allocation18 + $0x3f0] sm:$0xff]  }
 0x99b   :  { %13378 = vmatprep.subr.bf16.mxu1 %v14553_v22  ;;  %v14573_v22 = vld [vmem:[#allocation18 + $0x3f8] sm:$0xff]  }
 0x99c   :  { %v14590_v2 = vld [vmem:[#allocation18 + $0x318] sm:$0xff]  }
 0x99d   :  { %13357 = vmatpush3.bf16.msra.mxu0 %v14554_v25  ;;  %v1957_v25 = vmax.f32 %v1812_v30, 0.0  ;;  %v14592_v30 = vld [vmem:[#allocation18 + $0x350] sm:$0xff]  }
 0x99e   :  { %13379 = vmatpush3.bf16.msra.mxu1 %v14555_v28  ;;  %13358 = vmatprep.subr.bf16.mxu0 %v14556_v19  ;;  %v1978_v28 = vmax.f32 %v1904_v32, 0.0  ;;  %v1959_v19 = vmax.f32 %v1855_v4, 0.0  ;;  %v14593_v32 = vld [vmem:[#allocation18 + $0x3d0] sm:$0xff]  }
 0x99f   :  { %13380 = vmatprep.subr.bf16.mxu1 %v14557_v31  ;;  %v14574_v31 = vld [vmem:[#allocation18 + $0x338] sm:$0xff]   ;;  %v1989_v49 = vpack.c.bf16 %v1973_v10, %v1957_v25  ;;  %v14594_v4 = vld [vmem:[#allocation18 + $0x310] sm:$0xff]   ;;  %v14597_v10 = vld [vmem:[#allocation18 + $0x3c8] sm:$0xff]  }
 0x9a0   :  { %v1991_v33 = vpack.c.bf16 %v1975_v5, %v1959_v19 }
 0x9a1   :  { %13359 = vmatpush3.bf16.msra.mxu0 %v14558_v35  ;;  %v1962_v35 = vmax.f32 %v1900_v11, 0.0  ;;  %v1413_v11 = vrot.slane %v16270_v12, %v16256_v29 }
 0x9a2   :  { %13381 = vmatpush3.bf16.msra.mxu1 %v14559_v37  ;;  %13360 = vmatprep.subr.bf16.mxu0 %v14560_v40  ;;  %v14575_v37 = vld [vmem:[#allocation18 + $0x3b8] sm:$0xff]   ;;  %v1964_v40 = vmax.f32 %v1943_v38, 0.0  ;;  %v14599_v38 = vld [vmem:[#allocation18 + $0x388] sm:$0xff]  }
 0x9a3   :  { %13382 = vmatprep.subr.bf16.mxu1 %v14561_v41  ;;  %v14576_v41 = vld [vmem:[#allocation18 + $0x370] sm:$0xff]   ;;  %v1902_v5 = vadd.f32 %v16284_v7, %v1413_v11  ;;  %v1898_v19 = vadd.f32 %v16280_v23, %v1413_v11 }
 0x9a5   :  { %13361 = vmatpush3.bf16.msra.mxu0 %v14562_v42  ;;  %v1994_v42 = vpack.c.bf16 %v1978_v28, %v1962_v35  ;;  %v14601_v28 = vld [vmem:[#allocation18 + $0x3c0] sm:$0xff]   ;;  %v1961_v7 = vmax.f32 %v1898_v19, 0.0 }
 0x9a6   :  { %13383 = vmatpush3.bf16.msra.mxu1 %v14563_v43  ;;  %13362 = vmatprep.subr.bf16.mxu0 %v14564_v44  ;;  %v1996_v43 = vpack.c.bf16 %v1980_v48, %v1964_v40  ;;  %v14578_v44 = vld [vmem:[#allocation18 + $0x330] sm:$0xff]  }
 0x9a7   :  { %13384 = vmatprep.subr.bf16.mxu1 %v14565_v46  ;;  %v14579_v46 = vld [vmem:[#allocation18 + $0x3b0] sm:$0xff]  }
 0x9a9   :  { %13363 = vmatpush3.bf16.msra.mxu0 %v14566_v57  ;;  %v14583_v57 = vld [vmem:[#allocation18 + $0x3a8] sm:$0xff]  }
 0x9aa   :  { %13385 = vmatpush3.bf16.msra.mxu1 %v14567_v60  ;;  %13364 = vmatprep.subr.bf16.mxu0 %v14568_v61  ;;  %v14587_v60 = vld [vmem:[#allocation18 + $0x3a0] sm:$0xff]   ;;  %v14588_v61 = vld [vmem:[#allocation18 + $0x358] sm:$0xff]  }
 0x9ab   :  { %13386 = vmatprep.subr.bf16.mxu1 %v14569_v59  ;;  %v14591_v59 = vld [vmem:[#allocation18 + $0x398] sm:$0xff]  }
 0x9ad   :  { %13365 = vmatpush3.bf16.msra.mxu0 %v14570_v9  ;;  %v14596_v9 = vld [vmem:[#allocation18 + $0x348] sm:$0xff]  }
 0x9ae   :  { %13387 = vmatpush3.bf16.msra.mxu1 %v14571_v20  ;;  %13394 = vmatprep.subr.bf16.mxu0 %v14572_v21  ;;  %v1421_v20 = vrot.slane %v16270_v12, %v16259_v3  ;;  %v14598_v21 = vld [vmem:[#allocation18 + $0x308] sm:$0xff]   ;;  %v14603_v12 = vld [vmem:[#allocation18 + $0x380] sm:$0xff]  }
 0x9af   :  { %13416 = vmatprep.subr.bf16.mxu1 %v14573_v22  ;;  %v14600_v22 = vld [vmem:[#allocation18 + $0x340] sm:$0xff]  }
 0x9b0   :  { %3225 = vmatmul.mubr.bf16.vlgmr.msra.gmra.mxu0 %v1989_v49  ;;  %v1945_v25 = vadd.f32 %v16286_v8, %v1421_v20  ;;  %v1941_v48 = vadd.f32 %v16282_v26, %v1421_v20  ;;  %v1977_v49 = vmax.f32 %v1902_v5, 0.0 }
 0x9b1   :  { %3266 = vmatmul.mubr.bf16.vlgmr.msra.gmra.mxu1 %v1991_v33  ;;  %13395 = vmatpush3.bf16.msra.mxu0 %v14574_v31  ;;  %v14602_v31 = vld [vmem:[#allocation18 + $0x300] sm:$0xff]  }
 0x9b2   :  { %3306 = vmatprep.mubr.bf16.mxu0 %v1994_v42  ;;  %13417 = vmatpush3.bf16.msra.mxu1 %v14575_v37  ;;  %v1979_v35 = vmax.f32 %v1945_v25, 0.0  ;;  %v1963_v37 = vmax.f32 %v1941_v48, 0.0  ;;  %v1993_v33 = vpack.c.bf16 %v1977_v49, %v1961_v7 }
 0x9b3   :  { %3347 = vmatprep.mubr.bf16.mxu1 %v1996_v43  ;;  %13396 = vmatprep.subr.bf16.mxu0 %v14576_v41 }
 0x9b4   :  { %13418 = vmatprep.subr.bf16.mxu1 %v14577_v36  ;;  %v1995_v8 = vpack.c.bf16 %v1979_v35, %v1963_v37 }
 0x9b5   :  { %13397 = vmatpush3.bf16.msra.mxu0 %v14578_v44 }
 0x9b6   :  { %13419 = vmatpush3.bf16.msra.mxu1 %v14579_v46  ;;  %13398 = vmatprep.subr.bf16.mxu0 %v14580_v50 }
 0x9b7   :  { %13420 = vmatprep.subr.bf16.mxu1 %v14581_v53 }
 0x9b9   :  { %13399 = vmatpush3.bf16.msra.mxu0 %v14582_v54 }
 0x9ba   :  { %13421 = vmatpush3.bf16.msra.mxu1 %v14583_v57  ;;  %13400 = vmatprep.subr.bf16.mxu0 %v14584_v51 }
 0x9bb   :  { %13422 = vmatprep.subr.bf16.mxu1 %v14585_v52 }
 0x9bd   :  { %13401 = vmatpush3.bf16.msra.mxu0 %v14586_v58 }
 0x9be   :  { %13423 = vmatpush3.bf16.msra.mxu1 %v14587_v60  ;;  %13402 = vmatprep.subr.bf16.mxu0 %v14588_v61  ;;  %v12441_v60 = vld [vmem:[%s17100_s10] ss:$0 sm:$0xff] }
 0x9bf   :  { %13424 = vmatprep.subr.bf16.mxu1 %v14589_v62 }
 0x9c1   :  { %13403 = vmatpush3.bf16.msra.mxu0 %v14590_v2 }
 0x9c2   :  { %13425 = vmatpush3.bf16.msra.mxu1 %v14591_v59  ;;  %13404 = vmatprep.subr.bf16.mxu0 %v14592_v30 }
 0x9c3   :  { %13426 = vmatprep.subr.bf16.mxu1 %v14593_v32 }
 0x9c5   :  { %13405 = vmatpush3.bf16.msra.mxu0 %v14594_v4 }
 0x9c6   :  { %13427 = vmatpush3.bf16.msra.mxu1 %v14595_v6  ;;  %13406 = vmatprep.subr.bf16.mxu0 %v14596_v9 }
 0x9c7   :  { %13428 = vmatprep.subr.bf16.mxu1 %v14597_v10 }
 0x9c9   :  { %13407 = vmatpush3.bf16.msra.mxu0 %v14598_v21 }
 0x9ca   :  { %13429 = vmatpush3.bf16.msra.mxu1 %v14599_v38  ;;  %13408 = vmatprep.subr.bf16.mxu0 %v14600_v22 }
 0x9cb   :  { %13430 = vmatprep.subr.bf16.mxu1 %v14601_v28 }
 0x9cd   :  { %13409 = vmatpush3.bf16.msra.mxu0 %v14602_v31 }
 0x9ce   :  { %13431 = vmatpush3.bf16.msra.mxu1 %v14603_v12  ;;  %14143 = vmatprep.subr.bf16.mxu0 %v15684_v0 }
 0x9cf   :  { %14151 = vmatprep.subr.bf16.mxu1 %v15684_v0 }
 0x9d0   :  { %3307 = vmatmul.mubr.bf16.vlgmr.msra.gmra.mxu0 %v1993_v33 }
 0x9d1   :  { %3348 = vmatmul.mubr.bf16.vlgmr.msra.gmra.mxu1 %v1995_v8  ;;  %14147 = vmatprep.mubr.msk.bf16.mxu0 %vm15685_vm0, %v15684_v0 }
 0x9d2   :  { %14155 = vmatprep.mubr.msk.bf16.mxu1 %vm15685_vm0, %v15684_v0 }
 0xa30   :  { %v13278_v23 = vpop.f32.mrf.mxu0  ;;  %v13300_v26 = vpop.f32.mrf.mxu1 }
 0xa32   :  { %v13279_v40 = vpop.f32.mrf.mxu0  ;;  %v13301_v41 = vpop.f32.mrf.mxu1 }
 0xa33   :  { %v13280_v58 = vadd.f32 %v13279_v40, %v13278_v23  ;;  %v13302_v4 = vadd.f32 %v13301_v41, %v13300_v26 }
 0xa34   :  { %v13281_v42 = vpop.f32.mrf.mxu0  ;;  %v13303_v36 = vpop.f32.mrf.mxu1 }
 0xa35   :  { %v3063_v2 = vadd.f32 %v13280_v58, %v12441_v60 }
 0xa36   :  { %v13282_v43 = vpop.f32.mrf.mxu0  ;;  %v13304_v46 = vpop.f32.mrf.mxu1 }
 0xa37   :  { %v13283_v59 = vadd.f32 %v13282_v43, %v13281_v42  ;;  %v3104_v9 = vadd.f32 %v13302_v4, %v3063_v2  ;;  %v13305_v21 = vadd.f32 %v13304_v46, %v13303_v36 }
 0xa39   :  { %v3066_v10 = vadd.f32 %v13283_v59, %v12441_v60 }
 0xa3b   :  { %v3107_v22 = vadd.f32 %v13305_v21, %v3066_v10 }
 0xa50   :  { %v13322_v44 = vpop.f32.mrf.mxu0  ;;  %v13344_v50 = vpop.f32.mrf.mxu1 }
 0xa52   :  { %v13323_v53 = vpop.f32.mrf.mxu0  ;;  %v13345_v54 = vpop.f32.mrf.mxu1 }
 0xa53   :  { %v13324_v6 = vadd.f32 %v13323_v53, %v13322_v44  ;;  %v13346_v25 = vadd.f32 %v13345_v54, %v13344_v50 }
 0xa54   :  { %v13325_v57 = vpop.f32.mrf.mxu0  ;;  %v13347_v51 = vpop.f32.mrf.mxu1 }
 0xa55   :  { %v3145_v5 = vadd.f32 %v13324_v6, %v3104_v9 }
 0xa56   :  { %v13326_v52 = vpop.f32.mrf.mxu0  ;;  %v13348_v62 = vpop.f32.mrf.mxu1 }
 0xa57   :  { %v13327_v38 = vadd.f32 %v13326_v52, %v13325_v57  ;;  %v3186_v31 = vadd.f32 %v13346_v25, %v3145_v5  ;;  %v13349_v12 = vadd.f32 %v13348_v62, %v13347_v51  ;;  %v14604_v25 = vld [vmem:[#allocation10 + $0x18] sm:$0xff]  }
 0xa58   :  { %14144 = vmatpush3.bf16.msra.mxu0 %v14604_v25 }
 0xa59   :  { %v3148_v49 = vadd.f32 %v13327_v38, %v3107_v22  ;;  %14145 = vmatprep.subr.bf16.mxu0 %v15684_v0 }
 0xa5b   :  { %v3189_v8 = vadd.f32 %v13349_v12, %v3148_v49 }
 0xa70   :  { %v13366_v61 = vpop.f32.mrf.mxu0 }
 0xa71   :  { %v13388_v30 = vpop.f32.mrf.mxu1 }
 0xa72   :  { %v13367_v32 = vpop.f32.mrf.mxu0 }
 0xa73   :  { %v13389_v11 = vpop.f32.mrf.mxu1  ;;  %v13368_v28 = vadd.f32 %v13367_v32, %v13366_v61 }
 0xa74   :  { %v13369_v20 = vpop.f32.mrf.mxu0  ;;  %v13390_v23 = vadd.f32 %v13389_v11, %v13388_v30 }
 0xa75   :  { %v13391_v19 = vpop.f32.mrf.mxu1  ;;  %v3227_v35 = vadd.f32 %v13368_v28, %v3186_v31  ;;  %v14605_v28 = vld [vmem:[#allocation12 + $0x18] sm:$0xff]  }
 0xa76   :  { %v13370_v48 = vpop.f32.mrf.mxu0  ;;  %14152 = vmatpush3.bf16.msra.mxu1 %v14605_v28 }
 0xa77   :  { %v13371_v7 = vadd.f32 %v13370_v48, %v13369_v20  ;;  %v13392_v37 = vpop.f32.mrf.mxu1  ;;  %v3268_v41 = vadd.f32 %v13390_v23, %v3227_v35  ;;  %14153 = vmatprep.subr.bf16.mxu1 %v15684_v0 }
 0xa78   :  { %v13393_v46 = vadd.f32 %v13392_v37, %v13391_v19  ;;  %v14607_v19 = vld [vmem:[#allocation12 + $0x10] sm:$0xff]  }
 0xa79   :  { %v3230_v42 = vadd.f32 %v13371_v7, %v3189_v8  ;;  %v12570_v8 = vld [vmem:[%s17101_s19] ss:$0 sm:$0xff] }
 0xa7a   :  { %14154 = vmatpush3.bf16.msra.mxu1 %v14607_v19 }
 0xa7b   :  { %v3271_v52 = vadd.f32 %v13393_v46, %v3230_v42 }
 0xa90   :  { %v13410_v33 = vpop.f32.mrf.mxu0 }
 0xa91   :  { %v13432_v26 = vpop.f32.mrf.mxu1 }
 0xa92   :  { %v13411_v40 = vpop.f32.mrf.mxu0 }
 0xa93   :  { %v13412_v36 = vadd.f32 %v13411_v40, %v13410_v33  ;;  %v13433_v43 = vpop.f32.mrf.mxu1 }
 0xa94   :  { %v13413_v44 = vpop.f32.mrf.mxu0  ;;  %v13434_v53 = vadd.f32 %v13433_v43, %v13432_v26 }
 0xa95   :  { %v3309_v50 = vadd.f32 %v13412_v36, %v3268_v41  ;;  %v13435_v54 = vpop.f32.mrf.mxu1  ;;  %v12571_v41 = vld [vmem:[%s17102_s12] ss:$0 sm:$0xff] }
 0xa96   :  { %v13414_v57 = vpop.f32.mrf.mxu0 }
 0xa97   :  { %v3350_v51 = vadd.f32 %v13434_v53, %v3309_v50  ;;  %v13415_v58 = vadd.f32 %v13414_v57, %v13413_v44  ;;  %v13436_v60 = vpop.f32.mrf.mxu1  ;;  %v14608_v44 = vld [vmem:[#allocation13 + $0x18] sm:$0xff]   ;;  %v14609_v50 = vld [vmem:[#allocation13 + $0x10] sm:$0xff]  }
 0xa98   :  { %v13437_v62 = vadd.f32 %v13436_v60, %v13435_v54  ;;  %v12573_v53 = vld [vmem:[%s17093_s3 + $0x1] ss:$0 sm:$0xff]  ;;  %s17120_s3 = sld [smem:[#allocation80_spill]] }
 0xa99   :  { %v3312_v61 = vadd.f32 %v13415_v58, %v3271_v52  ;;  %v3356_v2 = vadd.f32 %v3350_v51, %v16177_v55  ;;  %v12578_v60 = vld [vmem:[%s17094_s4 + $0x1] ss:$0 sm:$0xff]  ;;  %s17121_s4 = sld [smem:[#allocation79_spill]] }
 0xa9b   :  { %v3353_v59 = vadd.f32 %v13437_v62, %v3312_v61  ;;  %v3360_v30 = vsel %vm584_vm1, %v3356_v2, 0.0 }
 0xa9c   :  { %3361 = vadd.xlane.f32.xlu0 %v3360_v30 }
 0xa9d   :  { %v3357_v32 = vadd.f32 %v3353_v59, %v16179_v56  ;;  %v14606_v56 = vld [vmem:[#allocation10 + $0x10] sm:$0xff]  }
 0xa9e   :  { %14146 = vmatpush3.bf16.msra.mxu0 %v14606_v56 }
 0xa9f   :  { %v3363_v4 = vsel %vm584_vm1, %v3357_v32, 0.0  ;;  %14159 = vmatprep.subr.bf16.mxu0 %v15684_v0 }
 0xaa0   :  { %3364 = vadd.xlane.f32.xlu1 %v3363_v4 }
 0xb25   :  { %v3362_v6 = vpop.xlane.xlu0 %3361 }
 0xb26   :  { %v3366_v9 = vmul.f32 0.03125, %v3362_v6 }
 0xb28   :  { %v3368_v10 = vsub.f32 %v3356_v2, %v3366_v9 }
 0xb29   :  { %v3365_v11 = vpop.xlane.xlu1 %3364 }
 0xb2a   :  { %v3367_v20 = vmul.f32 0.03125, %v3365_v11  ;;  %v3370_v21 = vmul.f32 %v3368_v10, %v3368_v10 }
 0xb2c   :  { %v3369_v5 = vsub.f32 %v3357_v32, %v3367_v20  ;;  %v3372_v38 = vsel %vm584_vm1, %v3370_v21, 0.0  ;;  %v12583_v21 = vld [vmem:[%s17095_s2 + $0x1] ss:$0 sm:$0xff] }
 0xb2d   :  { %3373 = vadd.xlane.f32.xlu0 %v3372_v38 }
 0xb2e   :  { %v3371_v55 = vmul.f32 %v3369_v5, %v3369_v5 }
 0xb30   :  { %v3375_v22 = vsel %vm584_vm1, %v3371_v55, 0.0 }
 0xb31   :  { %3376 = vadd.xlane.f32.xlu1 %v3375_v22 }
 0xbb6   :  { %v3374_v48 = vpop.xlane.xlu0 %3373 }
 0xbb7   :  { %v3378_v31 = vmul.f32 0.03125, %v3374_v48 }
 0xbb9   :  { %v3380_v49 = vadd.f32 1e-05, %v3378_v31 }
 0xbba   :  { %v3377_v12 = vpop.xlane.xlu1 %3376 }
 0xbbb   :  { %15061 = vrsqrt.f32 %v3380_v49  ;;  %v3379_v35 = vmul.f32 0.03125, %v3377_v12 }
 0xbbd   :  { %v3381_v7 = vadd.f32 1e-05, %v3379_v35 }
 0xbbf   :  { %15063 = vrsqrt.f32 %v3381_v7 }
 0xbc8   :  { %v15062_v37 = vpop.eup %15061 }
 0xbc9   :  { %v3384_v33 = vmul.f32 %v15062_v37, %v3368_v10 }
 0xbcb   :  { %v3392_v40 = vmul.f32 %v12570_v8, %v3384_v33 }
 0xbcc   :  { %v15064_v23 = vpop.eup %15063 }
 0xbcd   :  { %v3385_v26 = vmul.f32 %v15064_v23, %v3369_v5  ;;  %v16326_v36 = vadd.f32 %v12571_v41, %v3392_v40 }
 0xbcf   :  { %v3393_v42 = vmul.f32 %v12570_v8, %v3385_v26 }
 0xbd1   :  { %v16328_v43 = vadd.f32 %v12571_v41, %v3393_v42 }
 0xbd3   :  { %v3402_v46 = vpack.c.bf16 %v16328_v43, %v16326_v36 }
 0xbd5   :  { %14148 = vmatmul.mubr.msk.bf16.vlgmr.msra.gmra.mxu0 %vm584_vm1, %v3402_v46  ;;  %14156 = vmatmul.mubr.msk.bf16.vlgmr.msra.gmra.mxu1 %vm584_vm1, %v3402_v46 }
 0xbd6   :  { %14160 = vmatpush3.bf16.msra.mxu0 %v14608_v44  ;;  %14163 = vmatprep.mubr.msk.bf16.mxu0 %vm15685_vm0, %v15684_v0 }
 0xbd7   :  { %14161 = vmatprep.subr.bf16.mxu0 %v15684_v0 }
 0xbda   :  { %14162 = vmatpush3.bf16.msra.mxu0 %v14609_v50 }
 0xbdd   :  { %14164 = vmatmul.mubr.msk.bf16.vlgmr.msra.gmra.mxu0 %vm584_vm1, %v3402_v46 }
 0xc95   :  { %v3465_v54 = vpop.f32.mrf.mxu0  ;;  %v3531_v57 = vpop.f32.mrf.mxu1 }
 0xc96   :  { %v3466_v58 = vadd.f32 %v12573_v53, %v3465_v54  ;;  %v3532_v30 = vadd.f32 %v12578_v60, %v3531_v57 }
 0xc97   :  { %v14149_v52 = vpop.f32.mrf.mxu0  ;;  %v14157_v51 = vpop.f32.mrf.mxu1 }
 0xc98   :  { %v3604_v6 = vmul.f32 %v16080_v47, %v3466_v58  ;;  %v3606_v19 = vmul.f32 %v16092_v63, %v3466_v58  ;;  %v3608_v31 = vmul.f32 %v16096_v1, %v3466_v58  ;;  %v3610_v37 = vmul.f32 %v16107_v13, %v3466_v58 }
 0xc99   :  { %v3468_v61 = vpop.f32.mrf.mxu0  ;;  %v3534_v62 = vpop.f32.mrf.mxu1 }
 0xc9a   :  { %v3469_v2 = vadd.f32 %v12573_v53, %v3468_v61  ;;  %v3535_v59 = vadd.f32 %v12578_v60, %v3534_v62 }
 0xc9b   :  { %v14150_v32 = vpop.f32.mrf.mxu0  ;;  %v14158_v4 = vpop.f32.mrf.mxu1 }
 0xc9c   :  { %v3605_v9 = vmul.f32 %v16080_v47, %v3469_v2  ;;  %v3616_v10 = vpack.c.bf16 %v3535_v59, %v3532_v30  ;;  %v3607_v55 = vmul.f32 %v16092_v63, %v3469_v2  ;;  %v3609_v25 = vmul.f32 %v16096_v1, %v3469_v2 }
 0xc9d   :  { %v3597_v11 = vpop.f32.mrf.mxu0  ;;  %v3611_v7 = vmul.f32 %v16107_v13, %v3469_v2 }
 0xc9e   :  { %v3612_v20 = vpack.c.bf16 %v3605_v9, %v3604_v6  ;;  %14376 = vmatprep.subr.msk.bf16.mxu1 %vm584_vm1, %v3616_v10  ;;  %v3630_v38 = vsel %vm584_vm1, %v3616_v10, 0  ;;  %v3598_v28 = vadd.f32 %v12583_v21, %v3597_v11  ;;  %v3613_v12 = vpack.c.bf16 %v3607_v55, %v3606_v19 }
 0xc9f   :  { %v14165_v5 = vpop.f32.mrf.mxu0  ;;  %14168 = vmatpush3.bf16.xpose.msra.mxu1 %v3630_v38  ;;  %v3614_v35 = vpack.c.bf16 %v3609_v25, %v3608_v31  ;;  %v3615_v33 = vpack.c.bf16 %v3611_v7, %v3610_v37 }
 0xca0   :  { %14169 = vmatprep.mubr.msk.bf16.mxu1 %vm584_vm1, %v3612_v20  ;;  %14187 = vmatprep.subr.bf16.mxu1 %v15684_v0 }
 0xca1   :  { %v3600_v22 = vpop.f32.mrf.mxu0 }
 0xca2   :  { %v3601_v56 = vadd.f32 %v12583_v21, %v3600_v22 }
 0xca3   :  { %v14166_v48 = vpop.f32.mrf.mxu0 }
 0xca4   :  { %v3805_v49 = vpack.c.bf16 %v3601_v56, %v3598_v28 }
 0xca6   :  { %14177 = vmatprep.subr.bf16.mxu0 %v3805_v49  ;;  %14170 = vmatmul.mubr.msk.bf16.vlgmr.msra.gmra.mxu1 %vm584_vm1, %v3613_v12 }
 0xca7   :  { %14178 = vmatpush3.bf16.msra.mxu0 %v3805_v49  ;;  %14173 = vmatprep.mubr.msk.bf16.mxu1 %vm584_vm1, %v3614_v35 }
 0xcae   :  { %14174 = vmatmul.mubr.msk.bf16.gmra.mxu1 %vm584_vm1, %v3615_v33 }
 0xcaf   :  { %14191 = vmatprep.mubr.msk.bf16.mxu1 %vm15685_vm0, %v15684_v0 }
 0xd66   :  { %v14171_v8 = vpop.f32.mrf.mxu1 }
 0xd67   :  { %v3699_v26 = vmul.f32 0.35355338, %v14171_v8 }
 0xd68   :  { %v3666_v23 = vpop.f32.mrf.mxu1 }
 0xd69   :  { %v3697_v40 = vmul.f32 0.35355338, %v3666_v23  ;;  %v3707_v54 = vadd.f32 %v3699_v26, %v16118_v18 }
 0xd6a   :  { %v14172_v41 = vpop.f32.mrf.mxu1 }
 0xd6b   :  { %v3705_v42 = vadd.f32 %v3697_v40, %v16118_v18  ;;  %v3700_v44 = vmul.f32 0.35355338, %v14172_v41  ;;  %v3719_v62 = vsel %vm1023_vm6, %v3707_v54, -inf }
 0xd6c   :  { %v3669_v46 = vpop.f32.mrf.mxu1 }
 0xd6d   :  { %v3698_v50 = vmul.f32 0.35355338, %v3669_v46  ;;  %v3713_v53 = vsel %vm1023_vm6, %v3705_v42, -inf  ;;  %v3708_v58 = vadd.f32 %v3700_v44, %v16124_v24 }
 0xd6e   :  { %3714 = vmax.xlane.f32.xlu0 %v3713_v53  ;;  %v14175_v57 = vpop.f32.mrf.mxu1 }
 0xd6f   :  { %v3706_v52 = vadd.f32 %v3698_v50, %v16124_v24  ;;  %v3703_v60 = vmul.f32 0.35355338, %v14175_v57  ;;  %v3722_v4 = vsel %vm1023_vm6, %v3708_v58, -inf }
 0xd70   :  { %v3682_v51 = vpop.f32.mrf.mxu1 }
 0xd71   :  { %v3701_v61 = vmul.f32 0.35355338, %v3682_v51  ;;  %v3716_v2 = vsel %vm1023_vm6, %v3706_v52, -inf  ;;  %v3711_v11 = vadd.f32 %v3703_v60, %v16118_v18 }
 0xd72   :  { %3720 = vmax.xlane.f32.xlu0 %v3719_v62  ;;  %3717 = vmax.xlane.f32.xlu1 %v3716_v2  ;;  %v14176_v59 = vpop.f32.mrf.mxu1 }
 0xd73   :  { %v3709_v30 = vadd.f32 %v3701_v61, %v16118_v18  ;;  %v3704_v6 = vmul.f32 0.35355338, %v14176_v59  ;;  %v3731_v21 = vsel %vm1023_vm6, %v3711_v11, -inf }
 0xd74   :  { %v3685_v32 = vpop.f32.mrf.mxu1 }
 0xd75   :  { %v3702_v9 = vmul.f32 0.35355338, %v3685_v32  ;;  %v3725_v10 = vsel %vm1023_vm6, %v3709_v30, -inf  ;;  %v3712_v38 = vadd.f32 %v3704_v6, %v16124_v24 }
 0xd76   :  { %3723 = vmax.xlane.f32.xlu1 %v3722_v4  ;;  %3726 = vmax.xlane.f32.xlu0 %v3725_v10 }
 0xd77   :  { %v3710_v20 = vadd.f32 %v3702_v9, %v16124_v24  ;;  %v3734_v55 = vsel %vm1023_vm6, %v3712_v38, -inf }
 0xd79   :  { %v3728_v5 = vsel %vm1023_vm6, %v3710_v20, -inf }
 0xd7a   :  { %3732 = vmax.xlane.f32.xlu0 %v3731_v21  ;;  %3729 = vmax.xlane.f32.xlu1 %v3728_v5 }
 0xd7e   :  { %3735 = vmax.xlane.f32.xlu1 %v3734_v55 }
 0xdf7   :  { %v3715_v22 = vpop.xlane.xlu0 %3714 }
 0xdf8   :  { %v3737_v25 = vsub.f32 %v3705_v42, %v3715_v22 }
 0xdfa   :  { %v3745_v28 = vmul.f32 1.442695, %v3737_v25 }
 0xdfb   :  { %v3721_v56 = vpop.xlane.xlu0 %3720  ;;  %v3718_v19 = vpop.xlane.xlu1 %3717 }
 0xdfc   :  { %15065 = vpow2.f32 %v3745_v28  ;;  %v3739_v48 = vsub.f32 %v3707_v54, %v3721_v56  ;;  %v3738_v31 = vsub.f32 %v3706_v52, %v3718_v19 }
 0xdfe   :  { %v3749_v49 = vmul.f32 1.442695, %v3739_v48  ;;  %v3747_v12 = vmul.f32 1.442695, %v3738_v31 }
 0xdff   :  { %v3724_v35 = vpop.xlane.xlu1 %3723  ;;  %v3727_v7 = vpop.xlane.xlu0 %3726 }
 0xe00   :  { %15067 = vpow2.f32 %v3749_v49  ;;  %v3740_v37 = vsub.f32 %v3708_v58, %v3724_v35  ;;  %v3741_v33 = vsub.f32 %v3709_v30, %v3727_v7 }
 0xe01   :  { %15069 = vpow2.f32 %v3747_v12 }
 0xe02   :  { %v3751_v8 = vmul.f32 1.442695, %v3740_v37  ;;  %v3753_v23 = vmul.f32 1.442695, %v3741_v33 }
 0xe03   :  { %v3733_v26 = vpop.xlane.xlu0 %3732  ;;  %v3730_v40 = vpop.xlane.xlu1 %3729 }
 0xe04   :  { %15071 = vpow2.f32 %v3751_v8  ;;  %v3743_v41 = vsub.f32 %v3711_v11, %v3733_v26  ;;  %v3742_v42 = vsub.f32 %v3710_v20, %v3730_v40 }
 0xe05   :  { %15073 = vpow2.f32 %v3753_v23 }
 0xe06   :  { %v3757_v44 = vmul.f32 1.442695, %v3743_v41  ;;  %v3755_v46 = vmul.f32 1.442695, %v3742_v42 }
 0xe07   :  { %v3736_v50 = vpop.xlane.xlu1 %3735 }
 0xe08   :  { %15075 = vpow2.f32 %v3757_v44  ;;  %v3744_v53 = vsub.f32 %v3712_v38, %v3736_v50 }
 0xe09   :  { %v15066_v54 = vpop.eup %15065  ;;  %15077 = vpow2.f32 %v3755_v46 }
 0xe0a   :  { %v3759_v57 = vmul.f32 1.442695, %v3744_v53  ;;  %v3761_v52 = vsel %vm1023_vm6, %v15066_v54, 0.0 }
 0xe0b   :  { %3762 = vadd.xlane.f32.xlu0 %v3761_v52 }
 0xe0c   :  { %15079 = vpow2.f32 %v3759_v57  ;;  %v14611_v57 = vld [vmem:[#allocation15 + $0x10] sm:$0xff]  }
 0xe0d   :  { %v15068_v51 = vpop.eup %15067 }
 0xe0e   :  { %v15070_v58 = vpop.eup %15069  ;;  %v3767_v60 = vsel %vm1023_vm6, %v15068_v51, 0.0 }
 0xe0f   :  { %3768 = vadd.xlane.f32.xlu0 %v3767_v60  ;;  %v3764_v61 = vsel %vm1023_vm6, %v15070_v58, 0.0 }
 0xe10   :  { %3765 = vadd.xlane.f32.xlu1 %v3764_v61 }
 0xe11   :  { %v15072_v62 = vpop.eup %15071 }
 0xe12   :  { %v15074_v2 = vpop.eup %15073  ;;  %v3770_v59 = vsel %vm1023_vm6, %v15072_v62, 0.0 }
 0xe13   :  { %v3773_v30 = vsel %vm1023_vm6, %v15074_v2, 0.0 }
 0xe14   :  { %3774 = vadd.xlane.f32.xlu0 %v3773_v30  ;;  %3771 = vadd.xlane.f32.xlu1 %v3770_v59 }
 0xe15   :  { %v15076_v32 = vpop.eup %15075 }
 0xe16   :  { %v15078_v4 = vpop.eup %15077  ;;  %v3779_v6 = vsel %vm1023_vm6, %v15076_v32, 0.0 }
 0xe17   :  { %v3776_v9 = vsel %vm1023_vm6, %v15078_v4, 0.0 }
 0xe18   :  { %3780 = vadd.xlane.f32.xlu0 %v3779_v6  ;;  %3777 = vadd.xlane.f32.xlu1 %v3776_v9 }
 0xe19   :  { %v15080_v10 = vpop.eup %15079 }
 0xe1a   :  { %v3782_v11 = vsel %vm1023_vm6, %v15080_v10, 0.0 }
 0xe1c   :  { %3783 = vadd.xlane.f32.xlu1 %v3782_v11 }
 0xe94   :  { %v3763_v20 = vpop.xlane.xlu0 %3762 }
 0xe95   :  { %15081 = vrcp.f32 %v3763_v20 }
 0xe98   :  { %v3769_v21 = vpop.xlane.xlu0 %3768 }
 0xe99   :  { %v3766_v5 = vpop.xlane.xlu1 %3765 }
 0xe9a   :  { %15083 = vrcp.f32 %v3766_v5 }
 0xe9b   :  { %15085 = vrcp.f32 %v3769_v21 }
 0xe9d   :  { %v3775_v38 = vpop.xlane.xlu0 %3774  ;;  %v3772_v55 = vpop.xlane.xlu1 %3771 }
 0xe9e   :  { %15087 = vrcp.f32 %v3772_v55 }
 0xe9f   :  { %15089 = vrcp.f32 %v3775_v38 }
 0xea1   :  { %v3781_v22 = vpop.xlane.xlu0 %3780  ;;  %v3778_v25 = vpop.xlane.xlu1 %3777 }
 0xea2   :  { %15091 = vrcp.f32 %v3778_v25  ;;  %v15082_v28 = vpop.eup %15081 }
 0xea3   :  { %15093 = vrcp.f32 %v3781_v22  ;;  %v3786_v48 = vmul.f32 %v15082_v28, %v15066_v54  ;;  %v14610_v54 = vld [vmem:[#allocation15 + $0x18] sm:$0xff]  }
 0xea4   :  { %14188 = vmatpush3.bf16.msra.mxu1 %v14610_v54  ;;  %v4035_v54 = vld [vmem:[#allocation16 + $0x180] sm:$0xff] }
 0xea5   :  { %v3784_v56 = vpop.xlane.xlu1 %3783  ;;  %14189 = vmatprep.subr.bf16.mxu1 %v15684_v0 }
 0xea6   :  { %15095 = vrcp.f32 %v3784_v56  ;;  %v12596_v56 = vld [vmem:[%s17096_s25 + $0x1] ss:$0 sm:$0xff] }
 0xea7   :  { %v15084_v19 = vpop.eup %15083 }
 0xea8   :  { %v3788_v31 = vmul.f32 %v15084_v19, %v15070_v58  ;;  %v15086_v49 = vpop.eup %15085  ;;  %14190 = vmatpush3.bf16.msra.mxu1 %v14611_v57  ;;  %v4043_v57 = vld [vmem:[#allocation16 + $0x1c0] sm:$0xff] }
 0xea9   :  { %v3790_v7 = vmul.f32 %v15086_v49, %v15068_v51 }
 0xeaa   :  { %v3801_v12 = vpack.c.bf16 %v3788_v31, %v3786_v48 }
 0xeab   :  { %v15088_v35 = vpop.eup %15087 }
 0xeac   :  { %14179 = vmatprep.mubr.msk.bf16.mxu0 %vm1023_vm6, %v3801_v12  ;;  %v3792_v37 = vmul.f32 %v15088_v35, %v15072_v62  ;;  %v15090_v33 = vpop.eup %15089 }
 0xead   :  { %v3794_v40 = vmul.f32 %v15090_v33, %v15074_v2 }
 0xeae   :  { %v3802_v8 = vpack.c.bf16 %v3792_v37, %v3790_v7 }
 0xeaf   :  { %v15092_v23 = vpop.eup %15091 }
 0xeb0   :  { %v15094_v26 = vpop.eup %15093  ;;  %14180 = vmatmul.mubr.msk.bf16.vlgmr.msra.gmra.mxu0 %vm1023_vm6, %v3802_v8  ;;  %v3796_v41 = vmul.f32 %v15092_v23, %v15078_v4 }
 0xeb1   :  { %v3798_v46 = vmul.f32 %v15094_v26, %v15076_v32 }
 0xeb2   :  { %v3803_v44 = vpack.c.bf16 %v3796_v41, %v3794_v40 }
 0xeb3   :  { %v15096_v42 = vpop.eup %15095 }
 0xeb4   :  { %v3800_v50 = vmul.f32 %v15096_v42, %v15080_v10  ;;  %14183 = vmatprep.mubr.msk.bf16.mxu0 %vm1023_vm6, %v3803_v44 }
 0xeb6   :  { %v3804_v53 = vpack.c.bf16 %v3800_v50, %v3798_v46 }
 0xeb8   :  { %14184 = vmatmul.mubr.msk.bf16.gmra.mxu0 %vm1023_vm6, %v3804_v53 }
 0xeb9   :  { %4331 = vmatprep.mubr.bf16.mxu0 %v15687_v27 }
 0xf70   :  { %v14181_v52 = vpop.f32.mrf.mxu0 }
 0xf71   :  { %v3887_v59 = vmul.f32 %v14181_v52, %v16092_v63  ;;  %v12623_v52 = vcombine.high %v4035_v54, %v4043_v57 }
 0xf72   :  { %v3852_v51 = vpop.f32.mrf.mxu0 }
 0xf73   :  { %v3883_v62 = vmul.f32 %v16080_v47, %v3852_v51  ;;  %v4044_v51 = vld [vmem:[#allocation16 + $0x1c8] sm:$0xff]  ;;  %4311 = vmatprep.subr.bf16.mxu0 %v12623_v52 }
 0xf74   :  { %v14182_v58 = vpop.f32.mrf.mxu0  ;;  %v4040_v52 = vld [vmem:[#allocation16 + $0x1a8] sm:$0xff] }
 0xf75   :  { %v3889_v6 = vadd.f32 %v3887_v59, %v3883_v62  ;;  %v3888_v9 = vmul.f32 %v14182_v58, %v16092_v63  ;;  %v12622_v58 = vcombine.low %v4035_v54, %v4043_v57  ;;  %v4019_v62 = vld [vmem:[#allocation16 + $0x100] sm:$0xff]  ;;  %v4020_v59 = vld [vmem:[#allocation16 + $0x108] sm:$0xff] }
 0xf76   :  { %v3855_v60 = vpop.f32.mrf.mxu0  ;;  %v4039_v57 = vld [vmem:[#allocation16 + $0x1a0] sm:$0xff] }
 0xf77   :  { %v3884_v30 = vmul.f32 %v16080_v47, %v3855_v60  ;;  %4312 = vmatpush1.bf16.msra.mxu0 %v12622_v58 }
 0xf78   :  { %v14185_v61 = vpop.f32.mrf.mxu0 }
 0xf79   :  { %v3890_v11 = vadd.f32 %v3888_v9, %v3884_v30  ;;  %v3895_v5 = vmul.f32 %v14185_v61, %v16107_v13 }
 0xf7a   :  { %v3868_v2 = vpop.f32.mrf.mxu0 }
 0xf7b   :  { %v3891_v32 = vmul.f32 %v16096_v1, %v3868_v2  ;;  %v4027_v2 = vld [vmem:[#allocation16 + $0x140] sm:$0xff] }
 0xf7c   :  { %v14186_v4 = vpop.f32.mrf.mxu0  ;;  %v12607_v30 = vcombine.high %v4019_v62, %v4027_v2 }
 0xf7d   :  { %v3893_v20 = vadd.f32 %v3891_v32, %v3889_v6  ;;  %v3896_v38 = vmul.f32 %v14186_v4, %v16107_v13  ;;  %v4028_v32 = vld [vmem:[#allocation16 + $0x148] sm:$0xff]  ;;  %v12606_v4 = vcombine.low %v4019_v62, %v4027_v2  ;;  %v4023_v62 = vld [vmem:[#allocation16 + $0x120] sm:$0xff] }
 0xf7e   :  { %v3871_v10 = vpop.f32.mrf.mxu0  ;;  %v12608_v6 = vcombine.low %v4020_v59, %v4028_v32  ;;  %v12609_v9 = vcombine.high %v4020_v59, %v4028_v32  ;;  %4313 = vmatprep.subr.bf16.mxu0 %v12607_v30  ;;  %v4031_v2 = vld [vmem:[#allocation16 + $0x160] sm:$0xff]  ;;  %v4024_v59 = vld [vmem:[#allocation16 + $0x128] sm:$0xff] }
 0xf7f   :  { %v3892_v21 = vmul.f32 %v16096_v1, %v3871_v10  ;;  %v3897_v22 = vadd.f32 %v3895_v5, %v3893_v20  ;;  %4314 = vmatpush1.bf16.msra.mxu0 %v12606_v4  ;;  %v4037_v10 = vld [vmem:[#allocation16 + $0x190] sm:$0xff]  ;;  %v4038_v20 = vld [vmem:[#allocation16 + $0x198] sm:$0xff]  ;;  %v4032_v30 = vld [vmem:[#allocation16 + $0x168] sm:$0xff] }
 0xf80   :  { %v4046_v5 = vld [vmem:[#allocation16 + $0x1d8] sm:$0xff] }
 0xf81   :  { %v3894_v55 = vadd.f32 %v3892_v21, %v3890_v11  ;;  %v4045_v11 = vld [vmem:[#allocation16 + $0x1d0] sm:$0xff] }
 0xf82   :  { %v12627_v21 = vcombine.high %v4037_v10, %v4045_v11 }
 0xf83   :  { %v3898_v25 = vadd.f32 %v3896_v38, %v3894_v55  ;;  %v12626_v38 = vcombine.low %v4037_v10, %v4045_v11  ;;  %v12628_v55 = vcombine.low %v4038_v20, %v4046_v5  ;;  %v4041_v10 = vld [vmem:[#allocation16 + $0x1b0] sm:$0xff] }
 0xf84   :  { %4397 = vmatprep.subr.bf16.mxu0 %v12627_v21  ;;  %v4049_v11 = vld [vmem:[#allocation16 + $0x1f0] sm:$0xff]  ;;  %v4050_v21 = vld [vmem:[#allocation16 + $0x1f8] sm:$0xff] }
 0xf85   :  { %v3899_v28 = vpack.c.bf16 %v3898_v25, %v3897_v22  ;;  %v12629_v22 = vcombine.high %v4038_v20, %v4046_v5  ;;  %v4042_v20 = vld [vmem:[#allocation16 + $0x1b8] sm:$0xff]  ;;  %v12614_v5 = vcombine.low %v4023_v62, %v4031_v2 }
 0xf87   :  { %14192 = vmatmul.mubr.msk.bf16.vlgmr.msra.gmra.mxu1 %vm584_vm1, %v3899_v28 }
 0xf88   :  { %4374 = vmatprep.mubr.bf16.mxu1 %v15687_v27 }
0x1047   :  { %v3962_v19 = vpop.f32.mrf.mxu1 }
0x1048   :  { %v3963_v48 = vadd.f32 %v12596_v56, %v3962_v19 }
0x1049   :  { %v14193_v31 = vpop.f32.mrf.mxu1 }
0x104a   :  { %v3969_v49 = vadd.f32 %v3963_v48, %v16326_v36 }
0x104b   :  { %v3965_v12 = vpop.f32.mrf.mxu1 }
0x104c   :  { %v3966_v35 = vadd.f32 %v12596_v56, %v3965_v12  ;;  %v3975_v7 = vsel %vm584_vm1, %v3969_v49, 0.0 }
0x104d   :  { %3976 = vadd.xlane.f32.xlu0 %v3975_v7  ;;  %v14194_v37 = vpop.f32.mrf.mxu1 }
0x104e   :  { %v3970_v33 = vadd.f32 %v3966_v35, %v16328_v43  ;;  %v4036_v43 = vld [vmem:[#allocation16 + $0x188] sm:$0xff]  ;;  %v12602_v35 = vld [vmem:[%s17097_s14 + $0x1] ss:$0 sm:$0xff] }
0x104f   :  { %v12624_v60 = vcombine.low %v4036_v43, %v4044_v51  ;;  %v12625_v61 = vcombine.high %v4036_v43, %v4044_v51  ;;  %v4047_v43 = vld [vmem:[#allocation16 + $0x1e0] sm:$0xff] }
0x1050   :  { %v3978_v8 = vsel %vm584_vm1, %v3970_v33, 0.0  ;;  %v12630_v32 = vcombine.low %v4039_v57, %v4047_v43 }
0x1051   :  { %3979 = vadd.xlane.f32.xlu1 %v3978_v8  ;;  %4354 = vmatprep.subr.bf16.mxu1 %v12625_v61  ;;  %v12603_v8 = vld [vmem:[%s17098_s7 + $0x1] ss:$0 sm:$0xff] }
0x1052   :  { %4355 = vmatpush1.bf16.msra.mxu1 %v12624_v60  ;;  %v12631_v60 = vcombine.high %v4039_v57, %v4047_v43  ;;  %v14622_v57 = vld [vmem:[#allocation18 + $0x428] sm:$0xff]  }
0x1053   :  { %4356 = vmatprep.subr.bf16.mxu1 %v12609_v9  ;;  %v12617_v9 = vcombine.high %v4024_v59, %v4032_v30  ;;  %v14623_v43 = vld [vmem:[#allocation18 + $0x4a8] sm:$0xff]  }
0x1056   :  { %4357 = vmatpush1.bf16.msra.mxu1 %v12608_v6  ;;  %v12615_v6 = vcombine.high %v4023_v62, %v4031_v2  ;;  %v14631_v62 = vld [vmem:[#allocation18 + $0x498] sm:$0xff]   ;;  %v14632_v2 = vld [vmem:[#allocation18 + $0x450] sm:$0xff]  }
0x1057   :  { %4440 = vmatprep.subr.bf16.mxu1 %v12629_v22  ;;  %v12637_v22 = vcombine.high %v4042_v20, %v4050_v21 }
0x10d6   :  { %v3977_v23 = vpop.xlane.xlu0 %3976 }
0x10d7   :  { %v3981_v26 = vmul.f32 0.03125, %v3977_v23 }
0x10d9   :  { %v3983_v40 = vsub.f32 %v3969_v49, %v3981_v26  ;;  %v4021_v26 = vld [vmem:[#allocation16 + $0x110] sm:$0xff] }
0x10da   :  { %v3980_v41 = vpop.xlane.xlu1 %3979 }
0x10db   :  { %v3982_v42 = vmul.f32 0.03125, %v3980_v41  ;;  %v3985_v44 = vmul.f32 %v3983_v40, %v3983_v40  ;;  %v4029_v41 = vld [vmem:[#allocation16 + $0x150] sm:$0xff] }
0x10dc   :  { %v12611_v54 = vcombine.high %v4021_v26, %v4029_v41  ;;  %v12610_v51 = vcombine.low %v4021_v26, %v4029_v41  ;;  %v14616_v26 = vld [vmem:[#allocation18 + $0x470] sm:$0xff]  }
0x10dd   :  { %v3984_v46 = vsub.f32 %v3970_v33, %v3982_v42  ;;  %v3987_v36 = vsel %vm584_vm1, %v3985_v44, 0.0  ;;  %v4022_v42 = vld [vmem:[#allocation16 + $0x118] sm:$0xff]  ;;  %v14617_v41 = vld [vmem:[#allocation18 + $0x4f0] sm:$0xff]  }
0x10de   :  { %3988 = vadd.xlane.f32.xlu0 %v3987_v36  ;;  %v4030_v44 = vld [vmem:[#allocation16 + $0x158] sm:$0xff] }
0x10df   :  { %v3986_v50 = vmul.f32 %v3984_v46, %v3984_v46  ;;  %v12612_v58 = vcombine.low %v4022_v42, %v4030_v44 }
0x10e1   :  { %v3990_v53 = vsel %vm584_vm1, %v3986_v50, 0.0 }
0x10e2   :  { %3991 = vadd.xlane.f32.xlu1 %v3990_v53 }
0x1167   :  { %v3989_v25 = vpop.xlane.xlu0 %3988 }
0x1168   :  { %v3993_v28 = vmul.f32 0.03125, %v3989_v25  ;;  %v4025_v25 = vld [vmem:[#allocation16 + $0x130] sm:$0xff] }
0x116a   :  { %v3995_v56 = vadd.f32 1e-05, %v3993_v28  ;;  %v4033_v28 = vld [vmem:[#allocation16 + $0x170] sm:$0xff] }
0x116b   :  { %v3992_v19 = vpop.xlane.xlu1 %3991 }
0x116c   :  { %15097 = vrsqrt.f32 %v3995_v56  ;;  %v3994_v48 = vmul.f32 0.03125, %v3992_v19  ;;  %v4026_v56 = vld [vmem:[#allocation16 + $0x138] sm:$0xff] }
0x116d   :  { %v4034_v19 = vld [vmem:[#allocation16 + $0x178] sm:$0xff] }
0x116e   :  { %v3996_v31 = vadd.f32 1e-05, %v3994_v48  ;;  %v12634_v48 = vcombine.low %v4041_v10, %v4049_v11 }
0x1170   :  { %15099 = vrsqrt.f32 %v3996_v31  ;;  %v12636_v31 = vcombine.low %v4042_v20, %v4050_v21  ;;  %v14641_v20 = vld [vmem:[#allocation18 + $0x4c0] sm:$0xff]  }
0x1171   :  { %v14642_v21 = vld [vmem:[#allocation18 + $0x400] sm:$0xff]  }
0x1179   :  { %v15098_v49 = vpop.eup %15097 }
0x117a   :  { %v3999_v12 = vmul.f32 %v15098_v49, %v3983_v40  ;;  %v12613_v40 = vcombine.high %v4022_v42, %v4030_v44  ;;  %v12619_v49 = vcombine.high %v4025_v25, %v4033_v28  ;;  %v14618_v42 = vld [vmem:[#allocation18 + $0x430] sm:$0xff]  }
0x117b   :  { %v14619_v44 = vld [vmem:[#allocation18 + $0x4b0] sm:$0xff]  }
0x117c   :  { %v4007_v37 = vmul.f32 %v12602_v35, %v3999_v12  ;;  %v12621_v12 = vcombine.high %v4026_v56, %v4034_v19 }
0x117d   :  { %v15100_v7 = vpop.eup %15099 }
0x117e   :  { %v4000_v33 = vmul.f32 %v15100_v7, %v3984_v46  ;;  %v16407_v36 = vadd.f32 %v12603_v8, %v4007_v37  ;;  %v4048_v46 = vld [vmem:[#allocation16 + $0x1e8] sm:$0xff]  ;;  %v12620_v7 = vcombine.low %v4026_v56, %v4034_v19  ;;  %v14612_v37 = vld [vmem:[#allocation18 + $0x478] sm:$0xff]  }
0x117f   :  { %v12633_v61 = vcombine.high %v4040_v52, %v4048_v46  ;;  %v12632_v4 = vcombine.low %v4040_v52, %v4048_v46  ;;  %v14624_v52 = vld [vmem:[#allocation18 + $0x460] sm:$0xff]  }
0x1180   :  { %v4008_v23 = vmul.f32 %v12602_v35, %v4000_v33  ;;  %v12618_v35 = vcombine.low %v4025_v25, %v4033_v28  ;;  %v14613_v33 = vld [vmem:[#allocation18 + $0x4f8] sm:$0xff]   ;;  %v14625_v46 = vld [vmem:[#allocation18 + $0x4e0] sm:$0xff]  }
0x1182   :  { %v16409_v50 = vadd.f32 %v12603_v8, %v4008_v23  ;;  %v14614_v8 = vld [vmem:[#allocation18 + $0x438] sm:$0xff]  }
0x1183   :  { %v14615_v23 = vld [vmem:[#allocation18 + $0x4b8] sm:$0xff]  }
0x1184   :  { %v16413_v53 = vpack.c.bf16 %v16409_v50, %v16407_v36 }
0x1186   :  { %12638 = vmatmul.mubr.msk.bf16.vlgmr.msra.gmra.mxu0 %vm584_vm1, %v16413_v53  ;;  %12639 = vmatmul.mubr.msk.bf16.vlgmr.msra.gmra.mxu1 %vm584_vm1, %v16413_v53 }
0x1187   :  { %4398 = vmatpush1.bf16.msra.mxu0 %v12626_v38  ;;  %4441 = vmatpush1.bf16.msra.mxu1 %v12628_v55  ;;  %v12616_v38 = vcombine.low %v4024_v59, %v4032_v30  ;;  %v12635_v55 = vcombine.high %v4041_v10, %v4049_v11  ;;  %v14633_v59 = vld [vmem:[#allocation18 + $0x4d0] sm:$0xff]   ;;  %v14639_v10 = vld [vmem:[#allocation18 + $0x488] sm:$0xff]   ;;  %v14640_v11 = vld [vmem:[#allocation18 + $0x440] sm:$0xff]  }
0x1188   :  { %4399 = vmatprep.subr.bf16.mxu0 %v12611_v54  ;;  %4442 = vmatprep.subr.bf16.mxu1 %v12613_v40  ;;  %v14620_v54 = vld [vmem:[#allocation18 + $0x468] sm:$0xff]   ;;  %v14634_v30 = vld [vmem:[#allocation18 + $0x410] sm:$0xff]  }
0x1189   :  { %4417 = vmatprep.mubr.bf16.mxu0 %v15687_v27  ;;  %4460 = vmatprep.mubr.bf16.mxu1 %v15687_v27  ;;  %v14621_v40 = vld [vmem:[#allocation18 + $0x4e8] sm:$0xff]  }
0x118b   :  { %4400 = vmatpush1.bf16.msra.mxu0 %v12610_v51  ;;  %4443 = vmatpush1.bf16.msra.mxu1 %v12612_v58  ;;  %v14626_v51 = vld [vmem:[#allocation18 + $0x420] sm:$0xff]   ;;  %v14628_v58 = vld [vmem:[#allocation18 + $0x458] sm:$0xff]  }
0x118c   :  { %4483 = vmatprep.subr.bf16.mxu0 %v12631_v60  ;;  %4526 = vmatprep.subr.bf16.mxu1 %v12633_v61  ;;  %v14629_v60 = vld [vmem:[#allocation18 + $0x4d8] sm:$0xff]  }
0x118d   :  { %v14630_v61 = vld [vmem:[#allocation18 + $0x418] sm:$0xff]  }
0x118e   :  { %12640 = vmatmul.mubr.msk.bf16.vlgmr.msra.gmra.mxu0 %vm584_vm1, %v16413_v53  ;;  %12641 = vmatmul.mubr.msk.bf16.vlgmr.msra.gmra.mxu1 %vm584_vm1, %v16413_v53 }
0x118f   :  { %4484 = vmatpush1.bf16.msra.mxu0 %v12630_v32  ;;  %4527 = vmatpush1.bf16.msra.mxu1 %v12632_v4  ;;  %v14635_v32 = vld [vmem:[#allocation18 + $0x490] sm:$0xff]   ;;  %v14636_v4 = vld [vmem:[#allocation18 + $0x448] sm:$0xff]  }
0x1190   :  { %4485 = vmatprep.subr.bf16.mxu0 %v12615_v6  ;;  %4528 = vmatprep.subr.bf16.mxu1 %v12617_v9  ;;  %v14637_v6 = vld [vmem:[#allocation18 + $0x4c8] sm:$0xff]  }
0x1191   :  { %4503 = vmatprep.mubr.bf16.mxu0 %v15687_v27  ;;  %4546 = vmatprep.mubr.bf16.mxu1 %v15687_v27  ;;  %v14638_v9 = vld [vmem:[#allocation18 + $0x408] sm:$0xff]  }
0x1193   :  { %4486 = vmatpush1.bf16.msra.mxu0 %v12614_v5  ;;  %4529 = vmatpush1.bf16.msra.mxu1 %v12616_v38  ;;  %v14643_v5 = vld [vmem:[#allocation18 + $0x480] sm:$0xff]   ;;  %v14644_v38 = vld [vmem:[#allocation18 + $0x578] sm:$0xff]  }
0x1194   :  { %4569 = vmatprep.subr.bf16.mxu0 %v12635_v55  ;;  %4612 = vmatprep.subr.bf16.mxu1 %v12637_v22  ;;  %v14645_v55 = vld [vmem:[#allocation18 + $0x5f8] sm:$0xff]   ;;  %v16438_v22 = vld [vmem:[%s17099_s9 + $0x10] sm:$0xff] }
0x1195   :  { %v4063_v56 = vrot.slane %v16438_v22, %v16211_v14  ;;  %v4071_v19 = vrot.slane %v16438_v22, %v16214_v15 }
0x1196   :  { %12642 = vmatmul.mubr.msk.bf16.vlgmr.msra.gmra.mxu0 %vm584_vm1, %v16413_v53  ;;  %12643 = vmatmul.mubr.msk.bf16.vlgmr.msra.gmra.mxu1 %vm584_vm1, %v16413_v53 }
0x1197   :  { %4570 = vmatpush1.bf16.msra.mxu0 %v12634_v48  ;;  %4613 = vmatpush1.bf16.msra.mxu1 %v12636_v31  ;;  %v4059_v48 = vrot.slane %v16438_v22, %v16217_v16  ;;  %v4067_v31 = vrot.slane %v16438_v22, %v16220_v17 }
0x1198   :  { %4571 = vmatprep.subr.bf16.mxu0 %v12619_v49  ;;  %4614 = vmatprep.subr.bf16.mxu1 %v12621_v12 }
0x1199   :  { %4589 = vmatprep.mubr.bf16.mxu0 %v15687_v27  ;;  %4632 = vmatprep.mubr.bf16.mxu1 %v15687_v27 }
0x119b   :  { %4572 = vmatpush1.bf16.msra.mxu0 %v12618_v35  ;;  %4615 = vmatpush1.bf16.msra.mxu1 %v12620_v7 }
0x119c   :  { %13460 = vmatprep.subr.bf16.mxu0 %v14612_v37  ;;  %13482 = vmatprep.subr.bf16.mxu1 %v14613_v33 }
0x119e   :  { %12644 = vmatmul.mubr.msk.bf16.vlgmr.msra.gmra.mxu0 %vm584_vm1, %v16413_v53  ;;  %12645 = vmatmul.mubr.msk.bf16.vlgmr.msra.gmra.mxu1 %vm584_vm1, %v16413_v53  ;;  %v14627_v53 = vld [vmem:[#allocation18 + $0x4a0] sm:$0xff]  }
0x119f   :  { %13461 = vmatpush3.bf16.msra.mxu0 %v14614_v8  ;;  %13483 = vmatpush3.bf16.msra.mxu1 %v14615_v23 }
0x11a0   :  { %13462 = vmatprep.subr.bf16.mxu0 %v14616_v26  ;;  %13484 = vmatprep.subr.bf16.mxu1 %v14617_v41 }
0x11a3   :  { %13463 = vmatpush3.bf16.msra.mxu0 %v14618_v42  ;;  %13485 = vmatpush3.bf16.msra.mxu1 %v14619_v44 }
0x11a4   :  { %13464 = vmatprep.subr.bf16.mxu0 %v14620_v54  ;;  %13486 = vmatprep.subr.bf16.mxu1 %v14621_v40 }
0x11a7   :  { %13465 = vmatpush3.bf16.msra.mxu0 %v14622_v57  ;;  %13487 = vmatpush3.bf16.msra.mxu1 %v14623_v43 }
0x11a8   :  { %13466 = vmatprep.subr.bf16.mxu0 %v14624_v52  ;;  %13488 = vmatprep.subr.bf16.mxu1 %v14625_v46 }
0x11ab   :  { %13467 = vmatpush3.bf16.msra.mxu0 %v14626_v51  ;;  %13489 = vmatpush3.bf16.msra.mxu1 %v14627_v53  ;;  %v4079_v51 = vrot.slane %v16438_v22, %v16234_v34 }
0x11ac   :  { %13468 = vmatprep.subr.bf16.mxu0 %v14628_v58  ;;  %13490 = vmatprep.subr.bf16.mxu1 %v14629_v60 }
0x11af   :  { %13469 = vmatpush3.bf16.msra.mxu0 %v14630_v61  ;;  %13491 = vmatpush3.bf16.msra.mxu1 %v14631_v62 }
0x11b0   :  { %13470 = vmatprep.subr.bf16.mxu0 %v14632_v2  ;;  %13492 = vmatprep.subr.bf16.mxu1 %v14633_v59 }
0x11b3   :  { %13471 = vmatpush3.bf16.msra.mxu0 %v14634_v30  ;;  %13493 = vmatpush3.bf16.msra.mxu1 %v14635_v32  ;;  %v4087_v30 = vrot.slane %v16438_v22, %v16237_v45 }
0x11b4   :  { %13472 = vmatprep.subr.bf16.mxu0 %v14636_v4  ;;  %13494 = vmatprep.subr.bf16.mxu1 %v14637_v6 }
0x11b7   :  { %13473 = vmatpush3.bf16.msra.mxu0 %v14638_v9  ;;  %13495 = vmatpush3.bf16.msra.mxu1 %v14639_v10  ;;  %v14646_v9 = vld [vmem:[#allocation18 + $0x538] sm:$0xff]  }
0x11b8   :  { %13474 = vmatprep.subr.bf16.mxu0 %v14640_v11  ;;  %13496 = vmatprep.subr.bf16.mxu1 %v14641_v20  ;;  %v14647_v10 = vld [vmem:[#allocation18 + $0x5b8] sm:$0xff]  }
0x11bb   :  { %13475 = vmatpush3.bf16.msra.mxu0 %v14642_v21  ;;  %13497 = vmatpush3.bf16.msra.mxu1 %v14643_v5 }
0x11bc   :  { %13504 = vmatprep.subr.bf16.mxu0 %v14644_v38  ;;  %13526 = vmatprep.subr.bf16.mxu1 %v14645_v55  ;;  %v14648_v38 = vld [vmem:[#allocation18 + $0x570] sm:$0xff]  }
0x11bd   :  { %v14649_v55 = vld [vmem:[#allocation18 + $0x5f0] sm:$0xff]  }
0x1246   :  { %v4333_v25 = vpop.f32.mrf.mxu0  ;;  %v4376_v28 = vpop.f32.mrf.mxu1 }
0x1247   :  { %v4334_v26 = vadd.f32 %v4333_v25, %v4059_v48  ;;  %v4377_v41 = vadd.f32 %v4376_v28, %v4067_v31 }
0x1248   :  { %v4335_v49 = vpop.f32.mrf.mxu0  ;;  %v4378_v12 = vpop.f32.mrf.mxu1 }
0x1249   :  { %v4336_v37 = vadd.f32 %v4335_v49, %v4063_v56  ;;  %v4379_v33 = vadd.f32 %v4378_v12, %v4071_v19  ;;  %v4643_v62 = vmax.f32 %v4334_v26, 0.0  ;;  %v4645_v2 = vmax.f32 %v4377_v41, 0.0  ;;  %v14650_v49 = vld [vmem:[#allocation18 + $0x530] sm:$0xff]   ;;  %v14654_v41 = vld [vmem:[#allocation18 + $0x528] sm:$0xff]  }
0x124a   :  { %v4337_v35 = vpop.f32.mrf.mxu0  ;;  %v4380_v7 = vpop.f32.mrf.mxu1  ;;  %v14651_v12 = vld [vmem:[#allocation18 + $0x5b0] sm:$0xff]  }
0x124b   :  { %v4338_v8 = vadd.f32 %v4337_v35, %v4059_v48  ;;  %v4381_v23 = vadd.f32 %v4380_v7, %v4067_v31  ;;  %v4644_v53 = vmax.f32 %v4336_v37, 0.0  ;;  %v4646_v58 = vmax.f32 %v4379_v33, 0.0  ;;  %v14652_v35 = vld [vmem:[#allocation18 + $0x568] sm:$0xff]  }
0x124c   :  { %v4339_v42 = vpop.f32.mrf.mxu0  ;;  %v4382_v44 = vpop.f32.mrf.mxu1  ;;  %v14653_v7 = vld [vmem:[#allocation18 + $0x5e8] sm:$0xff]  }
0x124d   :  { %v4340_v54 = vadd.f32 %v4339_v42, %v4063_v56  ;;  %v4383_v40 = vadd.f32 %v4382_v44, %v4071_v19  ;;  %v4659_v57 = vmax.f32 %v4338_v8, 0.0  ;;  %v4661_v43 = vmax.f32 %v4381_v23, 0.0  ;;  %v14655_v42 = vld [vmem:[#allocation18 + $0x5a8] sm:$0xff]  }
0x124e   :  { %v16448_v52 = vpop.f32.mrf.mxu0  ;;  %v16450_v46 = vpop.f32.mrf.mxu1 }
0x124f   :  { %v4660_v60 = vmax.f32 %v4340_v54, 0.0  ;;  %v4662_v61 = vmax.f32 %v4383_v40, 0.0  ;;  %v4675_v11 = vpack.c.bf16 %v4659_v57, %v4643_v62  ;;  %v4677_v20 = vpack.c.bf16 %v4661_v43, %v4645_v2  ;;  %v14656_v54 = vld [vmem:[#allocation18 + $0x560] sm:$0xff]   ;;  %v14662_v2 = vld [vmem:[#allocation18 + $0x518] sm:$0xff]  }
0x1250   :  { %v4421_v59 = vpop.f32.mrf.mxu0  ;;  %v4464_v32 = vpop.f32.mrf.mxu1  ;;  %v14657_v40 = vld [vmem:[#allocation18 + $0x5e0] sm:$0xff]  }
0x1251   :  { %v4676_v4 = vpack.c.bf16 %v4660_v60, %v4644_v53  ;;  %v4678_v6 = vpack.c.bf16 %v4662_v61, %v4646_v58  ;;  %v4422_v25 = vadd.f32 %v4421_v59, %v4079_v51  ;;  %v4465_v28 = vadd.f32 %v4464_v32, %v4087_v30  ;;  %v14659_v53 = vld [vmem:[#allocation18 + $0x5a0] sm:$0xff]   ;;  %v14660_v58 = vld [vmem:[#allocation18 + $0x558] sm:$0xff]   ;;  %v14665_v32 = vld [vmem:[#allocation18 + $0x5d0] sm:$0xff]  }
0x1252   :  { %v16456_v21 = vpop.f32.mrf.mxu0  ;;  %v16458_v5 = vpop.f32.mrf.mxu1  ;;  %v14661_v60 = vld [vmem:[#allocation18 + $0x5d8] sm:$0xff]  }
0x1253   :  { %5756 = vmatprep.mubr.bf16.mxu0 %v4676_v4  ;;  %5797 = vmatprep.mubr.bf16.mxu1 %v4678_v6  ;;  %v4648_v37 = vmax.f32 %v4422_v25, 0.0  ;;  %v4650_v23 = vmax.f32 %v4465_v28, 0.0  ;;  %v14663_v59 = vld [vmem:[#allocation18 + $0x598] sm:$0xff]  }
0x1254   :  { %v4425_v56 = vpop.f32.mrf.mxu0  ;;  %v4468_v19 = vpop.f32.mrf.mxu1  ;;  %5757 = vmatmul.mubr.bf16.vlgmr.msra.gmra.mxu0 %v4675_v11  ;;  %5798 = vmatmul.mubr.bf16.vlgmr.msra.gmra.mxu1 %v4677_v20  ;;  %v14668_v11 = vld [vmem:[#allocation18 + $0x548] sm:$0xff]   ;;  %v16473_v25 = vld [vmem:[%s17099_s9 + $0x18] sm:$0xff] }
0x1255   :  { %v4426_v48 = vadd.f32 %v4425_v56, %v4079_v51  ;;  %v4469_v31 = vadd.f32 %v4468_v19, %v4087_v30  ;;  %13505 = vmatpush3.bf16.msra.mxu0 %v14646_v9  ;;  %13527 = vmatpush3.bf16.msra.mxu1 %v14647_v10  ;;  %v14658_v51 = vld [vmem:[#allocation18 + $0x520] sm:$0xff]   ;;  %v14664_v30 = vld [vmem:[#allocation18 + $0x550] sm:$0xff]   ;;  %v14669_v20 = vld [vmem:[#allocation18 + $0x5c8] sm:$0xff]   ;;  %v4095_v56 = vrot.slane %v16473_v25, %v16211_v14 }
0x1256   :  { %13506 = vmatprep.subr.bf16.mxu0 %v14648_v38  ;;  %13528 = vmatprep.subr.bf16.mxu1 %v14649_v55  ;;  %v16460_v57 = vpop.f32.mrf.mxu0  ;;  %v16462_v43 = vpop.f32.mrf.mxu1  ;;  %v14666_v9 = vld [vmem:[#allocation18 + $0x510] sm:$0xff]   ;;  %v4075_v38 = vrot.slane %v16438_v22, %v16256_v29  ;;  %v4083_v55 = vrot.slane %v16438_v22, %v16259_v3  ;;  %v14672_v22 = vld [vmem:[#allocation18 + $0x540] sm:$0xff]  }
0x1257   :  { %v4664_v33 = vmax.f32 %v4426_v48, 0.0  ;;  %v4666_v8 = vmax.f32 %v4469_v31, 0.0  ;;  %v14667_v10 = vld [vmem:[#allocation18 + $0x590] sm:$0xff]   ;;  %v14670_v48 = vld [vmem:[#allocation18 + $0x508] sm:$0xff]  }
0x1258   :  { %v4507_v61 = vpop.f32.mrf.mxu0  ;;  %v4550_v62 = vpop.f32.mrf.mxu1  ;;  %v14671_v31 = vld [vmem:[#allocation18 + $0x588] sm:$0xff]  }
0x1259   :  { %13507 = vmatpush3.bf16.msra.mxu0 %v14650_v49  ;;  %13529 = vmatpush3.bf16.msra.mxu1 %v14651_v12  ;;  %v4680_v26 = vpack.c.bf16 %v4664_v33, %v4648_v37  ;;  %v4682_v44 = vpack.c.bf16 %v4666_v8, %v4650_v23  ;;  %v4424_v49 = vadd.f32 %v16456_v21, %v4075_v38  ;;  %v14675_v21 = vld [vmem:[#allocation18 + $0x580] sm:$0xff]  }
0x125a   :  { %13508 = vmatprep.subr.bf16.mxu0 %v14652_v35  ;;  %13530 = vmatprep.subr.bf16.mxu1 %v14653_v7  ;;  %v16464_v4 = vpop.f32.mrf.mxu0  ;;  %v16466_v6 = vpop.f32.mrf.mxu1  ;;  %v4467_v12 = vadd.f32 %v16458_v5, %v4083_v55  ;;  %v4103_v35 = vrot.slane %v16473_v25, %v16214_v15  ;;  %v14673_v7 = vld [vmem:[#allocation18 + $0x5c0] sm:$0xff]   ;;  %v4420_v33 = vadd.f32 %v16448_v52, %v4075_v38  ;;  %v14684_v38 = vld [vmem:[#allocation18 + $0x668] sm:$0xff]  }
0x125b   :  { %5838 = vmatprep.mubr.bf16.mxu0 %v4680_v26  ;;  %5879 = vmatprep.mubr.bf16.mxu1 %v4682_v44  ;;  %v4463_v8 = vadd.f32 %v16450_v46, %v4083_v55  ;;  %v4508_v26 = vadd.f32 %v4507_v61, %v4095_v56  ;;  %v14678_v46 = vld [vmem:[#allocation18 + $0x638] sm:$0xff]   ;;  %v14685_v55 = vld [vmem:[#allocation18 + $0x6e8] sm:$0xff]  }
0x125c   :  { %v4511_v28 = vpop.f32.mrf.mxu0  ;;  %v4554_v19 = vpop.f32.mrf.mxu1  ;;  %v4665_v5 = vmax.f32 %v4467_v12, 0.0  ;;  %v4551_v44 = vadd.f32 %v4550_v62, %v4103_v35  ;;  %v14680_v62 = vld [vmem:[#allocation18 + $0x670] sm:$0xff]  }
0x125d   :  { %13509 = vmatpush3.bf16.msra.mxu0 %v14654_v41  ;;  %13531 = vmatpush3.bf16.msra.mxu1 %v14655_v42  ;;  %v4512_v37 = vadd.f32 %v4511_v28, %v4095_v56  ;;  %v4555_v23 = vadd.f32 %v4554_v19, %v4103_v35  ;;  %v14674_v41 = vld [vmem:[#allocation18 + $0x500] sm:$0xff]   ;;  %v4663_v42 = vmax.f32 %v4424_v49, 0.0  ;;  %v4652_v52 = vmax.f32 %v4508_v26, 0.0  ;;  %v14686_v28 = vld [vmem:[#allocation18 + $0x628] sm:$0xff]   ;;  %v14696_v26 = vld [vmem:[#allocation18 + $0x650] sm:$0xff]  }
0x125e   :  { %13510 = vmatprep.subr.bf16.mxu0 %v14656_v54  ;;  %13532 = vmatprep.subr.bf16.mxu1 %v14657_v40  ;;  %v14676_v54 = vld [vmem:[#allocation18 + $0x678] sm:$0xff]   ;;  %v14687_v56 = vld [vmem:[#allocation18 + $0x6a8] sm:$0xff]   ;;  %v14688_v19 = vld [vmem:[#allocation18 + $0x660] sm:$0xff]   ;;  %v16485_v12 = vpop.f32.mrf.mxu1 }
0x125f   :  { %v14677_v40 = vld [vmem:[#allocation18 + $0x6f8] sm:$0xff]   ;;  %v14690_v49 = vld [vmem:[#allocation18 + $0x620] sm:$0xff]  }
0x1260   :  { %v14691_v35 = vld [vmem:[#allocation18 + $0x6a0] sm:$0xff]  }
0x1261   :  { %13511 = vmatpush3.bf16.msra.mxu0 %v14658_v51  ;;  %13533 = vmatpush3.bf16.msra.mxu1 %v14659_v53  ;;  %v4668_v51 = vmax.f32 %v4512_v37, 0.0  ;;  %v4647_v53 = vmax.f32 %v4420_v33, 0.0  ;;  %v14694_v33 = vld [vmem:[#allocation18 + $0x618] sm:$0xff]  }
0x1262   :  { %13512 = vmatprep.subr.bf16.mxu0 %v14660_v58  ;;  %13534 = vmatprep.subr.bf16.mxu1 %v14661_v60  ;;  %v4649_v58 = vmax.f32 %v4463_v8, 0.0  ;;  %v4670_v60 = vmax.f32 %v4555_v23, 0.0  ;;  %v4636_v8 = vpop.f32.mrf.mxu1  ;;  %v14695_v23 = vld [vmem:[#allocation18 + $0x698] sm:$0xff]  }
0x1263   :  { %v4679_v61 = vpack.c.bf16 %v4663_v42, %v4647_v53  ;;  %v14698_v42 = vld [vmem:[#allocation18 + $0x610] sm:$0xff]   ;;  %v4099_v53 = vrot.slane %v16473_v25, %v16220_v17 }
0x1265   :  { %13513 = vmatpush3.bf16.msra.mxu0 %v14662_v2  ;;  %13535 = vmatpush3.bf16.msra.mxu1 %v14663_v59  ;;  %v4681_v2 = vpack.c.bf16 %v4665_v5, %v4649_v58  ;;  %v4654_v59 = vmax.f32 %v4551_v44, 0.0  ;;  %v16489_v5 = vpop.f32.mrf.mxu1  ;;  %v14699_v44 = vld [vmem:[#allocation18 + $0x690] sm:$0xff]  }
0x1266   :  { %13514 = vmatprep.subr.bf16.mxu0 %v14664_v30  ;;  %13536 = vmatprep.subr.bf16.mxu1 %v14665_v32  ;;  %v14679_v30 = vld [vmem:[#allocation18 + $0x6b8] sm:$0xff]   ;;  %v4684_v32 = vpack.c.bf16 %v4668_v51, %v4652_v52  ;;  %v4091_v51 = vrot.slane %v16473_v25, %v16217_v16 }
0x1268   :  { %v4510_v52 = vadd.f32 %v16464_v4, %v4091_v51  ;;  %v4549_v4 = vadd.f32 %v16462_v43, %v4099_v53 }
0x1269   :  { %13515 = vmatpush3.bf16.msra.mxu0 %v14666_v9  ;;  %13537 = vmatpush3.bf16.msra.mxu1 %v14667_v10  ;;  %v14681_v9 = vld [vmem:[#allocation18 + $0x6f0] sm:$0xff]   ;;  %v4686_v10 = vpack.c.bf16 %v4670_v60, %v4654_v59  ;;  %v14702_v60 = vld [vmem:[#allocation18 + $0x608] sm:$0xff]   ;;  %v14704_v59 = vld [vmem:[#allocation18 + $0x640] sm:$0xff]  }
0x126a   :  { %13516 = vmatprep.subr.bf16.mxu0 %v14668_v11  ;;  %13538 = vmatprep.subr.bf16.mxu1 %v14669_v20  ;;  %v14682_v11 = vld [vmem:[#allocation18 + $0x630] sm:$0xff]  }
0x126b   :  { %v14683_v20 = vld [vmem:[#allocation18 + $0x6b0] sm:$0xff]  }
0x126d   :  { %13517 = vmatpush3.bf16.msra.mxu0 %v14670_v48  ;;  %13539 = vmatpush3.bf16.msra.mxu1 %v14671_v31  ;;  %v14689_v48 = vld [vmem:[#allocation18 + $0x6e0] sm:$0xff]   ;;  %v16483_v31 = vpop.f32.mrf.mxu0 }
0x126e   :  { %13518 = vmatprep.subr.bf16.mxu0 %v14672_v22  ;;  %13540 = vmatprep.subr.bf16.mxu1 %v14673_v7  ;;  %v14692_v22 = vld [vmem:[#allocation18 + $0x658] sm:$0xff]  }
0x126f   :  { %v14693_v7 = vld [vmem:[#allocation18 + $0x6d8] sm:$0xff]   ;;  %v4593_v37 = vpop.f32.mrf.mxu0 }
0x1271   :  { %13519 = vmatpush3.bf16.msra.mxu0 %v14674_v41  ;;  %13541 = vmatpush3.bf16.msra.mxu1 %v14675_v21  ;;  %v14697_v41 = vld [vmem:[#allocation18 + $0x6d0] sm:$0xff]   ;;  %v16487_v21 = vpop.f32.mrf.mxu0 }
0x1272   :  { %13548 = vmatprep.subr.bf16.mxu0 %v14676_v54  ;;  %13570 = vmatprep.subr.bf16.mxu1 %v14677_v40  ;;  %v14700_v54 = vld [vmem:[#allocation18 + $0x648] sm:$0xff]  }
0x1273   :  { %v14701_v40 = vld [vmem:[#allocation18 + $0x6c8] sm:$0xff]   ;;  %v4597_v58 = vpop.f32.mrf.mxu0 }
0x1274   :  { %5839 = vmatmul.mubr.bf16.vlgmr.msra.gmra.mxu0 %v4679_v61  ;;  %5880 = vmatmul.mubr.bf16.vlgmr.msra.gmra.mxu1 %v4681_v2  ;;  %v4640_v61 = vpop.f32.mrf.mxu1  ;;  %v14703_v2 = vld [vmem:[#allocation18 + $0x688] sm:$0xff]  }
0x1275   :  { %13549 = vmatpush3.bf16.msra.mxu0 %v14678_v46  ;;  %5920 = vmatprep.mubr.bf16.mxu0 %v4684_v32  ;;  %v4111_v46 = vrot.slane %v16473_v25, %v16234_v34  ;;  %v4119_v32 = vrot.slane %v16473_v25, %v16237_v45 }
0x1276   :  { %13571 = vmatpush3.bf16.msra.mxu1 %v14679_v30  ;;  %5961 = vmatprep.mubr.bf16.mxu1 %v4686_v10  ;;  %v4553_v30 = vadd.f32 %v16466_v6, %v4099_v53  ;;  %v14717_v53 = vld [vmem:[#allocation18 + $0x7e8] sm:$0xff]  }
0x1277   :  { %13550 = vmatprep.subr.bf16.mxu0 %v14680_v62  ;;  %13572 = vmatprep.subr.bf16.mxu1 %v14681_v9  ;;  %v14705_v62 = vld [vmem:[#allocation18 + $0x6c0] sm:$0xff]   ;;  %v4506_v9 = vadd.f32 %v16460_v57, %v4091_v51  ;;  %v4598_v10 = vadd.f32 %v4597_v58, %v4111_v46  ;;  %v14716_v51 = vld [vmem:[#allocation18 + $0x768] sm:$0xff]  }
0x1278   :  { %v4669_v6 = vmax.f32 %v4553_v30, 0.0  ;;  %v14718_v58 = vld [vmem:[#allocation18 + $0x728] sm:$0xff]   ;;  %v14725_v30 = vld [vmem:[#allocation18 + $0x7d8] sm:$0xff]  }
0x1279   :  { %13551 = vmatpush3.bf16.msra.mxu0 %v14682_v11  ;;  %v4641_v11 = vadd.f32 %v4640_v61, %v4119_v32  ;;  %v14722_v61 = vld [vmem:[#allocation18 + $0x720] sm:$0xff]  }
0x127a   :  { %13573 = vmatpush3.bf16.msra.mxu1 %v14683_v20  ;;  %13552 = vmatprep.subr.bf16.mxu0 %v14684_v38  ;;  %v14706_v20 = vld [vmem:[#allocation18 + $0x600] sm:$0xff]   ;;  %v4667_v38 = vmax.f32 %v4510_v52, 0.0 }
0x127b   :  { %13574 = vmatprep.subr.bf16.mxu1 %v14685_v55  ;;  %v4594_v55 = vadd.f32 %v4593_v37, %v4111_v46  ;;  %v4674_v57 = vmax.f32 %v4641_v11, 0.0  ;;  %v14720_v52 = vld [vmem:[#allocation18 + $0x760] sm:$0xff]   ;;  %v14731_v11 = vld [vmem:[#allocation18 + $0x790] sm:$0xff]  }
0x127c   :  { %v14721_v46 = vld [vmem:[#allocation18 + $0x7e0] sm:$0xff]  }
0x127d   :  { %13553 = vmatpush3.bf16.msra.mxu0 %v14686_v28  ;;  %v14707_v28 = vld [vmem:[#allocation18 + $0x680] sm:$0xff]  }
0x127e   :  { %13575 = vmatpush3.bf16.msra.mxu1 %v14687_v56  ;;  %13554 = vmatprep.subr.bf16.mxu0 %v14688_v19  ;;  %v14708_v56 = vld [vmem:[#allocation18 + $0x778] sm:$0xff]   ;;  %v4637_v19 = vadd.f32 %v4636_v8, %v4119_v32  ;;  %v14713_v8 = vld [vmem:[#allocation18 + $0x7f0] sm:$0xff]  }
0x127f   :  { %13576 = vmatprep.subr.bf16.mxu1 %v14689_v48  ;;  %v14709_v48 = vld [vmem:[#allocation18 + $0x7f8] sm:$0xff]  }
0x1280   :  { %v14726_v32 = vld [vmem:[#allocation18 + $0x718] sm:$0xff]  }
0x1281   :  { %13555 = vmatpush3.bf16.msra.mxu0 %v14690_v49  ;;  %v4651_v49 = vmax.f32 %v4506_v9, 0.0  ;;  %v14728_v9 = vld [vmem:[#allocation18 + $0x750] sm:$0xff]  }
0x1282   :  { %13577 = vmatpush3.bf16.msra.mxu1 %v14691_v35  ;;  %13556 = vmatprep.subr.bf16.mxu0 %v14692_v22  ;;  %v4672_v35 = vmax.f32 %v4598_v10, 0.0  ;;  %v4653_v22 = vmax.f32 %v4549_v4, 0.0  ;;  %v14729_v10 = vld [vmem:[#allocation18 + $0x7d0] sm:$0xff]  }
0x1283   :  { %13578 = vmatprep.subr.bf16.mxu1 %v14693_v7  ;;  %v14710_v7 = vld [vmem:[#allocation18 + $0x738] sm:$0xff]   ;;  %v4683_v43 = vpack.c.bf16 %v4667_v38, %v4651_v49  ;;  %v14730_v4 = vld [vmem:[#allocation18 + $0x710] sm:$0xff]   ;;  %v14733_v38 = vld [vmem:[#allocation18 + $0x7c8] sm:$0xff]  }
0x1284   :  { %v4685_v37 = vpack.c.bf16 %v4669_v6, %v4653_v22 }
0x1285   :  { %13557 = vmatpush3.bf16.msra.mxu0 %v14694_v33  ;;  %v4656_v33 = vmax.f32 %v4594_v55, 0.0  ;;  %v4107_v55 = vrot.slane %v16473_v25, %v16256_v29 }
0x1286   :  { %13579 = vmatpush3.bf16.msra.mxu1 %v14695_v23  ;;  %13558 = vmatprep.subr.bf16.mxu0 %v14696_v26  ;;  %v14711_v23 = vld [vmem:[#allocation18 + $0x7b8] sm:$0xff]   ;;  %v4658_v26 = vmax.f32 %v4637_v19, 0.0  ;;  %v14735_v19 = vld [vmem:[#allocation18 + $0x788] sm:$0xff]  }
0x1287   :  { %13580 = vmatprep.subr.bf16.mxu1 %v14697_v41  ;;  %v14712_v41 = vld [vmem:[#allocation18 + $0x770] sm:$0xff]   ;;  %v4596_v6 = vadd.f32 %v16487_v21, %v4107_v55  ;;  %v4592_v22 = vadd.f32 %v16483_v31, %v4107_v55 }
0x1288   :  { %v14741_v31 = vld [vmem:[#allocation25] sm:$0xff]  }
0x1289   :  { %13559 = vmatpush3.bf16.msra.mxu0 %v14698_v42  ;;  %v4688_v42 = vpack.c.bf16 %v4672_v35, %v4656_v33  ;;  %v14737_v35 = vld [vmem:[#allocation18 + $0x7c0] sm:$0xff]   ;;  %v4655_v21 = vmax.f32 %v4592_v22, 0.0 }
0x128a   :  { %13581 = vmatpush3.bf16.msra.mxu1 %v14699_v44  ;;  %13560 = vmatprep.subr.bf16.mxu0 %v14700_v54  ;;  %v4690_v44 = vpack.c.bf16 %v4674_v57, %v4658_v26  ;;  %v14714_v54 = vld [vmem:[#allocation18 + $0x730] sm:$0xff]  }
0x128b   :  { %13582 = vmatprep.subr.bf16.mxu1 %v14701_v40  ;;  %v14715_v40 = vld [vmem:[#allocation18 + $0x7b0] sm:$0xff]  }
0x128d   :  { %13561 = vmatpush3.bf16.msra.mxu0 %v14702_v60  ;;  %v14719_v60 = vld [vmem:[#allocation18 + $0x7a8] sm:$0xff]  }
0x128e   :  { %13583 = vmatpush3.bf16.msra.mxu1 %v14703_v2  ;;  %13562 = vmatprep.subr.bf16.mxu0 %v14704_v59  ;;  %v14723_v2 = vld [vmem:[#allocation18 + $0x7a0] sm:$0xff]   ;;  %v14724_v59 = vld [vmem:[#allocation18 + $0x758] sm:$0xff]  }
0x128f   :  { %13584 = vmatprep.subr.bf16.mxu1 %v14705_v62  ;;  %v14727_v62 = vld [vmem:[#allocation18 + $0x798] sm:$0xff]  }
0x1291   :  { %13563 = vmatpush3.bf16.msra.mxu0 %v14706_v20  ;;  %v14732_v20 = vld [vmem:[#allocation18 + $0x748] sm:$0xff]  }
0x1292   :  { %13585 = vmatpush3.bf16.msra.mxu1 %v14707_v28  ;;  %13592 = vmatprep.subr.bf16.mxu0 %v14708_v56  ;;  %v4115_v28 = vrot.slane %v16473_v25, %v16259_v3  ;;  %v14734_v56 = vld [vmem:[#allocation18 + $0x708] sm:$0xff]   ;;  %v14739_v25 = vld [vmem:[#allocation18 + $0x780] sm:$0xff]  }
0x1293   :  { %13614 = vmatprep.subr.bf16.mxu1 %v14709_v48  ;;  %v14736_v48 = vld [vmem:[#allocation18 + $0x740] sm:$0xff]  }
0x1294   :  { %5921 = vmatmul.mubr.bf16.vlgmr.msra.gmra.mxu0 %v4683_v43  ;;  %v4639_v49 = vadd.f32 %v16489_v5, %v4115_v28  ;;  %v4635_v57 = vadd.f32 %v16485_v12, %v4115_v28  ;;  %v4671_v43 = vmax.f32 %v4596_v6, 0.0  ;;  %v14740_v5 = vld [vmem:[#allocation25 + $0x8] sm:$0xff]   ;;  %v6177_v12 = vld [vmem:[#allocation24] sm:$0xf] }
0x1295   :  { %5962 = vmatmul.mubr.bf16.vlgmr.msra.gmra.mxu1 %v4685_v37  ;;  %13593 = vmatpush3.bf16.msra.mxu0 %v14710_v7  ;;  %v14738_v7 = vld [vmem:[#allocation18 + $0x700] sm:$0xff]  }
0x1296   :  { %6002 = vmatprep.mubr.bf16.mxu0 %v4688_v42  ;;  %13615 = vmatpush3.bf16.msra.mxu1 %v14711_v23  ;;  %v4673_v33 = vmax.f32 %v4639_v49, 0.0  ;;  %v4657_v23 = vmax.f32 %v4635_v57, 0.0  ;;  %v4687_v37 = vpack.c.bf16 %v4671_v43, %v4655_v21  ;;  %v14743_v42 = vld [vmem:[#allocation21 + $0x8] sm:$0xff]  }
0x1297   :  { %6043 = vmatprep.mubr.bf16.mxu1 %v4690_v44  ;;  %13594 = vmatprep.subr.bf16.mxu0 %v14712_v41  ;;  %v14742_v41 = vld [vmem:[#allocation21 + $0x10] sm:$0xff]   ;;  %v6100_v44 = vld [vmem:[#allocation19] sm:$0xff] }
0x1298   :  { %13616 = vmatprep.subr.bf16.mxu1 %v14713_v8  ;;  %v4689_v26 = vpack.c.bf16 %v4673_v33, %v4657_v23  ;;  %v14744_v8 = vld [vmem:[#allocation21] sm:$0xff]  }
0x1299   :  { %13595 = vmatpush3.bf16.msra.mxu0 %v14714_v54  ;;  %v6101_v54 = vpack.c.bf16 %v6100_v44, %v6100_v44 }
0x129a   :  { %13617 = vmatpush3.bf16.msra.mxu1 %v14715_v40  ;;  %13596 = vmatprep.subr.bf16.mxu0 %v14716_v51 }
0x129b   :  { %13618 = vmatprep.subr.bf16.mxu1 %v14717_v53  ;;  %v12647_v53 = vld [vmem:[%s17100_s10 + $0x1] ss:$0 sm:$0xff] }
0x129d   :  { %13597 = vmatpush3.bf16.msra.mxu0 %v14718_v58 }
0x129e   :  { %13619 = vmatpush3.bf16.msra.mxu1 %v14719_v60  ;;  %13598 = vmatprep.subr.bf16.mxu0 %v14720_v52 }
0x129f   :  { %13620 = vmatprep.subr.bf16.mxu1 %v14721_v46 }
0x12a1   :  { %13599 = vmatpush3.bf16.msra.mxu0 %v14722_v61 }
0x12a2   :  { %13621 = vmatpush3.bf16.msra.mxu1 %v14723_v2  ;;  %13600 = vmatprep.subr.bf16.mxu0 %v14724_v59 }
0x12a3   :  { %13622 = vmatprep.subr.bf16.mxu1 %v14725_v30 }
0x12a5   :  { %13601 = vmatpush3.bf16.msra.mxu0 %v14726_v32 }
0x12a6   :  { %13623 = vmatpush3.bf16.msra.mxu1 %v14727_v62  ;;  %13602 = vmatprep.subr.bf16.mxu0 %v14728_v9 }
0x12a7   :  { %13624 = vmatprep.subr.bf16.mxu1 %v14729_v10 }
0x12a9   :  { %13603 = vmatpush3.bf16.msra.mxu0 %v14730_v4 }
0x12aa   :  { %13625 = vmatpush3.bf16.msra.mxu1 %v14731_v11  ;;  %13604 = vmatprep.subr.bf16.mxu0 %v14732_v20 }
0x12ab   :  { %13626 = vmatprep.subr.bf16.mxu1 %v14733_v38 }
0x12ad   :  { %13605 = vmatpush3.bf16.msra.mxu0 %v14734_v56 }
0x12ae   :  { %13627 = vmatpush3.bf16.msra.mxu1 %v14735_v19  ;;  %13606 = vmatprep.subr.bf16.mxu0 %v14736_v48 }
0x12af   :  { %13628 = vmatprep.subr.bf16.mxu1 %v14737_v35 }
0x12b1   :  { %13607 = vmatpush3.bf16.msra.mxu0 %v14738_v7 }
0x12b2   :  { %13629 = vmatpush3.bf16.msra.mxu1 %v14739_v25  ;;  %14195 = vmatprep.subr.bf16.mxu0 %v15684_v0 }
0x12b3   :  { %14205 = vmatprep.subr.bf16.mxu1 %v15684_v0 }
0x12b4   :  { %6003 = vmatmul.mubr.bf16.vlgmr.msra.gmra.mxu0 %v4687_v37 }
0x12b5   :  { %6044 = vmatmul.mubr.bf16.vlgmr.msra.gmra.mxu1 %v4689_v26  ;;  %14201 = vmatprep.mubr.msk.bf16.mxu0 %vm15685_vm0, %v15684_v0 }
0x12b6   :  { %14206 = vmatpush3.bf16.msra.mxu1 %v14740_v5  ;;  %14209 = vmatprep.mubr.msk.bf16.mxu1 %vm15685_vm0, %v15684_v0 }
0x12b7   :  { %14207 = vmatprep.subr.bf16.mxu1 %v15684_v0  ;;  %14196 = vmatpush3.bf16.msra.mxu0 %v14742_v41 }
0x12b8   :  { %14197 = vmatprep.subr.bf16.mxu0 %v15684_v0 }
0x12ba   :  { %14208 = vmatpush3.bf16.msra.mxu1 %v14741_v31 }
0x12bb   :  { %14213 = vmatprep.subr.bf16.mxu1 %v15684_v0  ;;  %14198 = vmatpush3.bf16.msra.mxu0 %v14743_v42 }
0x12bc   :  { %14199 = vmatprep.subr.bf16.mxu0 %v15684_v0 }
0x12bd   :  { %14210 = vmatmul.mubr.msk.bf16.vlgmr.msra.gmra.mxu1 %vm584_vm1, %v6177_v12 }
0x12be   :  { %14215 = vmatprep.mubr.msk.bf16.mxu1 %vm15685_vm0, %v15684_v0 }
0x12bf   :  { %14200 = vmatpush3.bf16.msra.mxu0 %v14744_v8 }
0x12c0   :  { %14219 = vmatprep.subr.bf16.mxu0 %v15684_v0 }
0x12c2   :  { %14202 = vmatmul.mubr.msk.bf16.vlgmr.msra.gmra.mxu0 %vm6133_vm5, %v6101_v54 }
0x12c3   :  { %14223 = vmatprep.mubr.msk.bf16.mxu0 %vm15685_vm0, %v15684_v0 }
0x1314   :  { %v13476_v40 = vpop.f32.mrf.mxu0  ;;  %v13498_v51 = vpop.f32.mrf.mxu1 }
0x1316   :  { %v13477_v58 = vpop.f32.mrf.mxu0  ;;  %v13499_v60 = vpop.f32.mrf.mxu1 }
0x1317   :  { %v13478_v52 = vadd.f32 %v13477_v58, %v13476_v40  ;;  %v13500_v46 = vadd.f32 %v13499_v60, %v13498_v51 }
0x1318   :  { %v13479_v61 = vpop.f32.mrf.mxu0  ;;  %v13501_v2 = vpop.f32.mrf.mxu1 }
0x1319   :  { %v5759_v59 = vadd.f32 %v13478_v52, %v12647_v53 }
0x131a   :  { %v13480_v30 = vpop.f32.mrf.mxu0  ;;  %v13502_v32 = vpop.f32.mrf.mxu1 }
0x131b   :  { %v5800_v62 = vadd.f32 %v13500_v46, %v5759_v59  ;;  %v13481_v9 = vadd.f32 %v13480_v30, %v13479_v61  ;;  %v13503_v4 = vadd.f32 %v13502_v32, %v13501_v2 }
0x131d   :  { %v5762_v10 = vadd.f32 %v13481_v9, %v12647_v53 }
0x131f   :  { %v5803_v11 = vadd.f32 %v13503_v4, %v5762_v10 }
0x1334   :  { %v13520_v20 = vpop.f32.mrf.mxu0  ;;  %v13542_v38 = vpop.f32.mrf.mxu1 }
0x1336   :  { %v13521_v55 = vpop.f32.mrf.mxu0  ;;  %v13543_v28 = vpop.f32.mrf.mxu1 }
0x1337   :  { %v13522_v56 = vadd.f32 %v13521_v55, %v13520_v20  ;;  %v13544_v6 = vadd.f32 %v13543_v28, %v13542_v38  ;;  %v6237_v28 = vld [vmem:[#allocation22] sm:$0xff] }
0x1338   :  { %v13523_v19 = vpop.f32.mrf.mxu0  ;;  %v13545_v48 = vpop.f32.mrf.mxu1 }
0x1339   :  { %v5841_v49 = vadd.f32 %v13522_v56, %v5800_v62 }
0x133a   :  { %v13524_v35 = vpop.f32.mrf.mxu0  ;;  %v13546_v22 = vpop.f32.mrf.mxu1 }
0x133b   :  { %v5882_v57 = vadd.f32 %v13544_v6, %v5841_v49  ;;  %v13525_v7 = vadd.f32 %v13524_v35, %v13523_v19  ;;  %v13547_v25 = vadd.f32 %v13546_v22, %v13545_v48  ;;  %v6238_v49 = vpack.c.bf16 %v6237_v28, %v6237_v28 }
0x133d   :  { %v5844_v43 = vadd.f32 %v13525_v7, %v5803_v11 }
0x133f   :  { %v5885_v33 = vadd.f32 %v13547_v25, %v5844_v43  ;;  %v14745_v43 = vld [vmem:[#allocation27 + $0x8] sm:$0xff]  }
0x1340   :  { %v14746_v25 = vld [vmem:[#allocation28 + $0x8] sm:$0xff]   ;;  %14220 = vmatpush3.bf16.msra.mxu0 %v14745_v43 }
0x1341   :  { %14221 = vmatprep.subr.bf16.mxu0 %v15684_v0 }
0x1354   :  { %v13564_v21 = vpop.f32.mrf.mxu0 }
0x1355   :  { %v13586_v23 = vpop.f32.mrf.mxu1 }
0x1356   :  { %v13565_v37 = vpop.f32.mrf.mxu0 }
0x1357   :  { %v13566_v5 = vadd.f32 %v13565_v37, %v13564_v21  ;;  %v13587_v26 = vpop.f32.mrf.mxu1  ;;  %v14748_v37 = vld [vmem:[#allocation28] sm:$0xff]  }
0x1358   :  { %v13567_v31 = vpop.f32.mrf.mxu0  ;;  %v13588_v41 = vadd.f32 %v13587_v26, %v13586_v23  ;;  %v14747_v23 = vld [vmem:[#allocation27] sm:$0xff]  }
0x1359   :  { %v5923_v12 = vadd.f32 %v13566_v5, %v5882_v57  ;;  %v13589_v42 = vpop.f32.mrf.mxu1  ;;  %14222 = vmatpush3.bf16.msra.mxu0 %v14747_v23  ;;  %v12780_v5 = vld [vmem:[%s17103_s6] ss:$0 sm:$0xff] }
0x135a   :  { %v13568_v8 = vpop.f32.mrf.mxu0  ;;  %14235 = vmatprep.subr.bf16.mxu0 %v15684_v0  ;;  %v12788_v26 = vld [vmem:[%s17104_s11] ss:$0 sm:$0xff] }
0x135b   :  { %v5964_v44 = vadd.f32 %v13588_v41, %v5923_v12  ;;  %v13569_v54 = vadd.f32 %v13568_v8, %v13567_v31  ;;  %v13590_v40 = vpop.f32.mrf.mxu1 }
0x135c   :  { %v13591_v51 = vadd.f32 %v13590_v40, %v13589_v42 }
0x135d   :  { %v5926_v53 = vadd.f32 %v13569_v54, %v5885_v33  ;;  %v14749_v54 = vld [vmem:[%s17105_s15 + $0x8] sm:$0xff]  }
0x135f   :  { %v5967_v58 = vadd.f32 %v13591_v51, %v5926_v53  ;;  %v14750_v53 = vld [vmem:[%s17105_s15] sm:$0xff]  }
0x1374   :  { %v13608_v60 = vpop.f32.mrf.mxu0 }
0x1375   :  { %v13630_v52 = vpop.f32.mrf.mxu1 }
0x1376   :  { %v13609_v46 = vpop.f32.mrf.mxu0 }
0x1377   :  { %v13610_v61 = vadd.f32 %v13609_v46, %v13608_v60  ;;  %v13631_v2 = vpop.f32.mrf.mxu1 }
0x1378   :  { %v13611_v59 = vpop.f32.mrf.mxu0  ;;  %v13632_v32 = vadd.f32 %v13631_v2, %v13630_v52 }
0x1379   :  { %v6005_v30 = vadd.f32 %v13610_v61, %v5964_v44  ;;  %v13633_v62 = vpop.f32.mrf.mxu1 }
0x137a   :  { %v13612_v9 = vpop.f32.mrf.mxu0 }
0x137b   :  { %v16528_v10 = vadd.f32 %v13632_v32, %v6005_v30  ;;  %v13613_v4 = vadd.f32 %v13612_v9, %v13611_v59  ;;  %v13634_v11 = vpop.f32.mrf.mxu1  ;;  %v12794_v59 = vld [vmem:[%s17107_s21] ss:$0 sm:$0xff] }
0x137c   :  { %v13635_v20 = vadd.f32 %v13634_v11, %v13633_v62 }
0x137d   :  { %v6008_v38 = vadd.f32 %v13613_v4, %v5967_v58  ;;  %v6231_v55 = vpop.f32.mrf.mxu1  ;;  %v12790_v58 = vld [vmem:[%s17106_s16] ss:$0 sm:$0xff] }
0x137e   :  { %v6239_v56 = vpack.c.bf16 %v6231_v55, %v6231_v55 }
0x137f   :  { %v16530_v6 = vadd.f32 %v13635_v20, %v6008_v38  ;;  %v14211_v19 = vpop.f32.mrf.mxu1 }
0x1380   :  { %v6251_v48 = vsel %vm642_vm3, %v6239_v56, 0 }
0x1381   :  { %v6234_v35 = vpop.f32.mrf.mxu1  ;;  %14214 = vmatpush3.bf16.msra.mxu1 %v6251_v48  ;;  %v12798_v48 = vld [vmem:[%s17108_s29] ss:$0 sm:$0xff] }
0x1382   :  { %14227 = vmatprep.subr.bf16.mxu1 %v15684_v0  ;;  %v6171_v57 = vpop.f32.mrf.mxu0 }
0x1383   :  { %v14212_v22 = vpop.f32.mrf.mxu1  ;;  %v16542_v12 = vadd.f32 %v12780_v5, %v6171_v57 }
0x1384   :  { %14216 = vmatmul.mubr.msk.bf16.vlgmr.msra.gmra.mxu1 %vm638_vm4, %v6238_v49  ;;  %v14203_v7 = vpop.f32.mrf.mxu0 }
0x1385   :  { %14231 = vmatprep.mubr.msk.bf16.mxu1 %vm15685_vm0, %v15684_v0  ;;  %14228 = vmatpush3.bf16.msra.mxu1 %v14746_v25 }
0x1386   :  { %v6174_v33 = vpop.f32.mrf.mxu0  ;;  %14229 = vmatprep.subr.bf16.mxu1 %v15684_v0 }
0x1388   :  { %v14204_v21 = vpop.f32.mrf.mxu0 }
0x1389   :  { %14230 = vmatpush3.bf16.msra.mxu1 %v14748_v37 }
0x1444   :  { %v6287_v31 = vpop.f32.mrf.mxu1 }
0x1445   :  { %v16544_v41 = vadd.f32 %v12788_v26, %v6287_v31 }
0x1446   :  { %v14217_v42 = vpop.f32.mrf.mxu1 }
0x1447   :  { %v6293_v8 = vmax.f32 %v16544_v41, 0.0  ;;  %v6924_v41 = vld [vmem:[#allocation30 + $0xc0] sm:$0xff] }
0x1448   :  { %v6290_v44 = vpop.f32.mrf.mxu1 }
0x1449   :  { %v6294_v40 = vpack.c.bf16 %v6293_v8, %v16542_v12 }
0x144a   :  { %v14218_v51 = vpop.f32.mrf.mxu1 }
0x144b   :  { %14224 = vmatmul.mubr.msk.bf16.vlgmr.msra.gmra.mxu0 %vm584_vm1, %v6294_v40  ;;  %14232 = vmatmul.mubr.msk.bf16.vlgmr.msra.gmra.mxu1 %vm584_vm1, %v6294_v40 }
0x144c   :  { %14236 = vmatpush3.bf16.msra.mxu0 %v14749_v54  ;;  %14239 = vmatprep.mubr.msk.bf16.mxu0 %vm15685_vm0, %v15684_v0 }
0x144d   :  { %14237 = vmatprep.subr.bf16.mxu0 %v15684_v0 }
0x1450   :  { %14238 = vmatpush3.bf16.msra.mxu0 %v14750_v53 }
0x1453   :  { %14240 = vmatmul.mubr.msk.bf16.vlgmr.msra.gmra.mxu0 %vm584_vm1, %v6294_v40 }
0x150b   :  { %v6355_v60 = vpop.f32.mrf.mxu0  ;;  %v6419_v52 = vpop.f32.mrf.mxu1 }
0x150c   :  { %v6356_v2 = vadd.f32 %v12790_v58, %v6355_v60  ;;  %v6420_v4 = vadd.f32 %v12794_v59, %v6419_v52 }
0x150d   :  { %v14225_v46 = vpop.f32.mrf.mxu0  ;;  %v14233_v61 = vpop.f32.mrf.mxu1 }
0x150e   :  { %v6490_v38 = vmul.f32 %v16080_v47, %v6356_v2  ;;  %v6492_v33 = vmul.f32 %v16092_v63, %v6356_v2  ;;  %v6494_v23 = vmul.f32 %v16096_v1, %v6356_v2  ;;  %v6496_v42 = vmul.f32 %v16107_v13, %v6356_v2 }
0x150f   :  { %v6358_v30 = vpop.f32.mrf.mxu0  ;;  %v6422_v32 = vpop.f32.mrf.mxu1 }
0x1510   :  { %v6359_v62 = vadd.f32 %v12790_v58, %v6358_v30  ;;  %v6423_v9 = vadd.f32 %v12794_v59, %v6422_v32 }
0x1511   :  { %v14226_v11 = vpop.f32.mrf.mxu0  ;;  %v14234_v20 = vpop.f32.mrf.mxu1 }
0x1512   :  { %v6491_v55 = vmul.f32 %v16080_v47, %v6359_v62  ;;  %v6502_v28 = vpack.c.bf16 %v6423_v9, %v6420_v4  ;;  %v6493_v22 = vmul.f32 %v16092_v63, %v6359_v62  ;;  %v6495_v7 = vmul.f32 %v16096_v1, %v6359_v62 }
0x1513   :  { %v6483_v56 = vpop.f32.mrf.mxu0  ;;  %v6497_v31 = vmul.f32 %v16107_v13, %v6359_v62 }
0x1514   :  { %v6498_v19 = vpack.c.bf16 %v6491_v55, %v6490_v38  ;;  %14377 = vmatprep.subr.msk.bf16.mxu1 %vm584_vm1, %v6502_v28  ;;  %v6516_v35 = vsel %vm584_vm1, %v6502_v28, 0  ;;  %v6484_v43 = vadd.f32 %v12798_v48, %v6483_v56  ;;  %v6499_v5 = vpack.c.bf16 %v6493_v22, %v6492_v33 }
0x1515   :  { %v14241_v49 = vpop.f32.mrf.mxu0  ;;  %14244 = vmatpush3.bf16.xpose.msra.mxu1 %v6516_v35  ;;  %v6500_v26 = vpack.c.bf16 %v6495_v7, %v6494_v23  ;;  %v6501_v44 = vpack.c.bf16 %v6497_v31, %v6496_v42 }
0x1516   :  { %14245 = vmatprep.mubr.msk.bf16.mxu1 %vm584_vm1, %v6498_v19  ;;  %14263 = vmatprep.subr.bf16.mxu1 %v15684_v0 }
0x1517   :  { %v6486_v57 = vpop.f32.mrf.mxu0 }
0x1518   :  { %v6487_v25 = vadd.f32 %v12798_v48, %v6486_v57 }
0x1519   :  { %v14242_v21 = vpop.f32.mrf.mxu0 }
0x151a   :  { %v6691_v37 = vpack.c.bf16 %v6487_v25, %v6484_v43 }
0x151c   :  { %14253 = vmatprep.subr.bf16.mxu0 %v6691_v37  ;;  %14246 = vmatmul.mubr.msk.bf16.vlgmr.msra.gmra.mxu1 %vm584_vm1, %v6499_v5 }
0x151d   :  { %14254 = vmatpush3.bf16.msra.mxu0 %v6691_v37  ;;  %14249 = vmatprep.mubr.msk.bf16.mxu1 %vm584_vm1, %v6500_v26 }
0x1524   :  { %14250 = vmatmul.mubr.msk.bf16.gmra.mxu1 %vm584_vm1, %v6501_v44 }
0x1525   :  { %14267 = vmatprep.mubr.msk.bf16.mxu1 %vm15685_vm0, %v15684_v0 }
0x15dc   :  { %v14247_v54 = vpop.f32.mrf.mxu1 }
0x15dd   :  { %v6585_v51 = vmul.f32 0.35355338, %v14247_v54 }
0x15de   :  { %v6552_v40 = vpop.f32.mrf.mxu1 }
0x15df   :  { %v6583_v53 = vmul.f32 0.35355338, %v6552_v40  ;;  %v6593_v2 = vadd.f32 %v6585_v51, %v16118_v18 }
0x15e0   :  { %v14248_v58 = vpop.f32.mrf.mxu1 }
0x15e1   :  { %v6591_v60 = vadd.f32 %v6583_v53, %v16118_v18  ;;  %v6586_v52 = vmul.f32 0.35355338, %v14248_v58  ;;  %v6605_v20 = vsel %vm1023_vm6, %v6593_v2, -inf }
0x15e2   :  { %v6555_v46 = vpop.f32.mrf.mxu1 }
0x15e3   :  { %v6584_v61 = vmul.f32 0.35355338, %v6555_v46  ;;  %v6599_v59 = vsel %vm1023_vm6, %v6591_v60, -inf  ;;  %v6594_v9 = vadd.f32 %v6586_v52, %v16124_v24 }
0x15e4   :  { %6600 = vmax.xlane.f32.xlu0 %v6599_v59  ;;  %v14251_v30 = vpop.f32.mrf.mxu1 }
0x15e5   :  { %v6592_v32 = vadd.f32 %v6584_v61, %v16124_v24  ;;  %v6589_v4 = vmul.f32 0.35355338, %v14251_v30  ;;  %v6608_v19 = vsel %vm1023_vm6, %v6594_v9, -inf }
0x15e6   :  { %v6568_v62 = vpop.f32.mrf.mxu1 }
0x15e7   :  { %v6587_v11 = vmul.f32 0.35355338, %v6568_v62  ;;  %v6602_v38 = vsel %vm1023_vm6, %v6592_v32, -inf  ;;  %v6597_v22 = vadd.f32 %v6589_v4, %v16118_v18 }
0x15e8   :  { %6606 = vmax.xlane.f32.xlu0 %v6605_v20  ;;  %6603 = vmax.xlane.f32.xlu1 %v6602_v38  ;;  %v14252_v55 = vpop.f32.mrf.mxu1 }
0x15e9   :  { %v6595_v28 = vadd.f32 %v6587_v11, %v16118_v18  ;;  %v6590_v48 = vmul.f32 0.35355338, %v14252_v55  ;;  %v6617_v7 = vsel %vm1023_vm6, %v6597_v22, -inf }
0x15ea   :  { %v6571_v56 = vpop.f32.mrf.mxu1 }
0x15eb   :  { %v6588_v49 = vmul.f32 0.35355338, %v6571_v56  ;;  %v6611_v35 = vsel %vm1023_vm6, %v6595_v28, -inf  ;;  %v6598_v25 = vadd.f32 %v6590_v48, %v16124_v24 }
0x15ec   :  { %6609 = vmax.xlane.f32.xlu1 %v6608_v19  ;;  %6612 = vmax.xlane.f32.xlu0 %v6611_v35 }
0x15ed   :  { %v6596_v57 = vadd.f32 %v6588_v49, %v16124_v24  ;;  %v6620_v33 = vsel %vm1023_vm6, %v6598_v25, -inf }
0x15ef   :  { %v6614_v43 = vsel %vm1023_vm6, %v6596_v57, -inf }
0x15f0   :  { %6618 = vmax.xlane.f32.xlu0 %v6617_v7  ;;  %6615 = vmax.xlane.f32.xlu1 %v6614_v43 }
0x15f4   :  { %6621 = vmax.xlane.f32.xlu1 %v6620_v33 }
0x166d   :  { %v6601_v21 = vpop.xlane.xlu0 %6600 }
0x166e   :  { %v6623_v23 = vsub.f32 %v6591_v60, %v6601_v21 }
0x1670   :  { %v6631_v37 = vmul.f32 1.442695, %v6623_v23 }
0x1671   :  { %v6607_v5 = vpop.xlane.xlu0 %6606  ;;  %v6604_v26 = vpop.xlane.xlu1 %6603 }
0x1672   :  { %15101 = vpow2.f32 %v6631_v37  ;;  %v6625_v31 = vsub.f32 %v6593_v2, %v6607_v5  ;;  %v6624_v42 = vsub.f32 %v6592_v32, %v6604_v26 }
0x1674   :  { %v6635_v44 = vmul.f32 1.442695, %v6625_v31  ;;  %v6633_v54 = vmul.f32 1.442695, %v6624_v42 }
0x1675   :  { %v6610_v40 = vpop.xlane.xlu1 %6609  ;;  %v6613_v51 = vpop.xlane.xlu0 %6612 }
0x1676   :  { %15103 = vpow2.f32 %v6635_v44  ;;  %v6626_v53 = vsub.f32 %v6594_v9, %v6610_v40  ;;  %v6627_v58 = vsub.f32 %v6595_v28, %v6613_v51 }
0x1677   :  { %15105 = vpow2.f32 %v6633_v54 }
0x1678   :  { %v6637_v52 = vmul.f32 1.442695, %v6626_v53  ;;  %v6639_v46 = vmul.f32 1.442695, %v6627_v58 }
0x1679   :  { %v6619_v61 = vpop.xlane.xlu0 %6618  ;;  %v6616_v59 = vpop.xlane.xlu1 %6615 }
0x167a   :  { %15107 = vpow2.f32 %v6637_v52  ;;  %v6629_v60 = vsub.f32 %v6597_v22, %v6619_v61  ;;  %v6628_v30 = vsub.f32 %v6596_v57, %v6616_v59 }
0x167b   :  { %15109 = vpow2.f32 %v6639_v46 }
0x167c   :  { %v6643_v62 = vmul.f32 1.442695, %v6629_v60  ;;  %v6641_v4 = vmul.f32 1.442695, %v6628_v30 }
0x167d   :  { %v6622_v2 = vpop.xlane.xlu1 %6621 }
0x167e   :  { %15111 = vpow2.f32 %v6643_v62  ;;  %v6630_v32 = vsub.f32 %v6598_v25, %v6622_v2 }
0x167f   :  { %v15102_v11 = vpop.eup %15101  ;;  %15113 = vpow2.f32 %v6641_v4 }
0x1680   :  { %v6645_v20 = vmul.f32 1.442695, %v6630_v32  ;;  %v6647_v9 = vsel %vm1023_vm6, %v15102_v11, 0.0 }
0x1681   :  { %6648 = vadd.xlane.f32.xlu0 %v6647_v9 }
0x1682   :  { %15115 = vpow2.f32 %v6645_v20 }
0x1683   :  { %v15104_v38 = vpop.eup %15103 }
0x1684   :  { %v15106_v55 = vpop.eup %15105  ;;  %v6653_v28 = vsel %vm1023_vm6, %v15104_v38, 0.0 }
0x1685   :  { %6654 = vadd.xlane.f32.xlu0 %v6653_v28  ;;  %v6650_v56 = vsel %vm1023_vm6, %v15106_v55, 0.0 }
0x1686   :  { %6651 = vadd.xlane.f32.xlu1 %v6650_v56  ;;  %v14752_v56 = vld [vmem:[%s17109_s27] sm:$0xff]  }
0x1687   :  { %v15108_v19 = vpop.eup %15107 }
0x1688   :  { %v15110_v48 = vpop.eup %15109  ;;  %v6656_v49 = vsel %vm1023_vm6, %v15108_v19, 0.0 }
0x1689   :  { %v6659_v35 = vsel %vm1023_vm6, %v15110_v48, 0.0 }
0x168a   :  { %6660 = vadd.xlane.f32.xlu0 %v6659_v35  ;;  %6657 = vadd.xlane.f32.xlu1 %v6656_v49 }
0x168b   :  { %v15112_v22 = vpop.eup %15111 }
0x168c   :  { %v15114_v57 = vpop.eup %15113  ;;  %v6665_v7 = vsel %vm1023_vm6, %v15112_v22, 0.0 }
0x168d   :  { %v6662_v43 = vsel %vm1023_vm6, %v15114_v57, 0.0 }
0x168e   :  { %6666 = vadd.xlane.f32.xlu0 %v6665_v7  ;;  %6663 = vadd.xlane.f32.xlu1 %v6662_v43 }
0x168f   :  { %v15116_v25 = vpop.eup %15115 }
0x1690   :  { %v6668_v33 = vsel %vm1023_vm6, %v15116_v25, 0.0 }
0x1692   :  { %6669 = vadd.xlane.f32.xlu1 %v6668_v33 }
0x170a   :  { %v6649_v21 = vpop.xlane.xlu0 %6648 }
0x170b   :  { %15117 = vrcp.f32 %v6649_v21 }
0x170e   :  { %v6655_v23 = vpop.xlane.xlu0 %6654 }
0x170f   :  { %v6652_v37 = vpop.xlane.xlu1 %6651 }
0x1710   :  { %15119 = vrcp.f32 %v6652_v37 }
0x1711   :  { %15121 = vrcp.f32 %v6655_v23 }
0x1713   :  { %v6661_v5 = vpop.xlane.xlu0 %6660  ;;  %v6658_v26 = vpop.xlane.xlu1 %6657 }
0x1714   :  { %15123 = vrcp.f32 %v6658_v26 }
0x1715   :  { %15125 = vrcp.f32 %v6661_v5 }
0x1717   :  { %v6667_v31 = vpop.xlane.xlu0 %6666  ;;  %v6664_v42 = vpop.xlane.xlu1 %6663 }
0x1718   :  { %15127 = vrcp.f32 %v6664_v42  ;;  %v15118_v44 = vpop.eup %15117 }
0x1719   :  { %15129 = vrcp.f32 %v6667_v31  ;;  %v6672_v51 = vmul.f32 %v15118_v44, %v15102_v11 }
0x171b   :  { %v6670_v54 = vpop.xlane.xlu1 %6669 }
0x171c   :  { %15131 = vrcp.f32 %v6670_v54 }
0x171d   :  { %v15120_v40 = vpop.eup %15119 }
0x171e   :  { %v6674_v53 = vmul.f32 %v15120_v40, %v15106_v55  ;;  %v15122_v58 = vpop.eup %15121 }
0x171f   :  { %v6676_v61 = vmul.f32 %v15122_v58, %v15104_v38  ;;  %v14751_v38 = vld [vmem:[%s17109_s27 + $0x8] sm:$0xff]  }
0x1720   :  { %v6687_v52 = vpack.c.bf16 %v6674_v53, %v6672_v51  ;;  %14264 = vmatpush3.bf16.msra.mxu1 %v14751_v38 }
0x1721   :  { %v15124_v46 = vpop.eup %15123  ;;  %14265 = vmatprep.subr.bf16.mxu1 %v15684_v0 }
0x1722   :  { %14255 = vmatprep.mubr.msk.bf16.mxu0 %vm1023_vm6, %v6687_v52  ;;  %v6678_v59 = vmul.f32 %v15124_v46, %v15108_v19  ;;  %v15126_v60 = vpop.eup %15125  ;;  %v12810_v52 = vld [vmem:[%s17110_s18] ss:$0 sm:$0xff] }
0x1723   :  { %v6680_v2 = vmul.f32 %v15126_v60, %v15110_v48 }
0x1724   :  { %v6688_v30 = vpack.c.bf16 %v6678_v59, %v6676_v61  ;;  %14266 = vmatpush3.bf16.msra.mxu1 %v14752_v56 }
0x1725   :  { %v15128_v62 = vpop.eup %15127 }
0x1726   :  { %v15130_v4 = vpop.eup %15129  ;;  %14256 = vmatmul.mubr.msk.bf16.vlgmr.msra.gmra.mxu0 %vm1023_vm6, %v6688_v30  ;;  %v6682_v32 = vmul.f32 %v15128_v62, %v15114_v57 }
0x1727   :  { %v6684_v9 = vmul.f32 %v15130_v4, %v15112_v22 }
0x1728   :  { %v6689_v11 = vpack.c.bf16 %v6682_v32, %v6680_v2 }
0x1729   :  { %v15132_v20 = vpop.eup %15131 }
0x172a   :  { %v6686_v55 = vmul.f32 %v15132_v20, %v15116_v25  ;;  %14259 = vmatprep.mubr.msk.bf16.mxu0 %vm1023_vm6, %v6689_v11 }
0x172c   :  { %v6690_v28 = vpack.c.bf16 %v6686_v55, %v6684_v9 }
0x172e   :  { %14260 = vmatmul.mubr.msk.bf16.gmra.mxu0 %vm1023_vm6, %v6690_v28 }
0x172f   :  { %7211 = vmatprep.mubr.bf16.mxu0 %v15687_v27 }
0x17e6   :  { %v14257_v19 = vpop.f32.mrf.mxu0 }
0x17e7   :  { %v6773_v43 = vmul.f32 %v14257_v19, %v16092_v63 }
0x17e8   :  { %v6738_v48 = vpop.f32.mrf.mxu0 }
0x17e9   :  { %v6769_v22 = vmul.f32 %v16080_v47, %v6738_v48 }
0x17ea   :  { %v14258_v49 = vpop.f32.mrf.mxu0 }
0x17eb   :  { %v6775_v23 = vadd.f32 %v6773_v43, %v6769_v22  ;;  %v6774_v37 = vmul.f32 %v14258_v49, %v16092_v63  ;;  %v6925_v22 = vld [vmem:[#allocation30 + $0xc8] sm:$0xff] }
0x17ec   :  { %v6741_v35 = vpop.f32.mrf.mxu0 }
0x17ed   :  { %v6770_v25 = vmul.f32 %v16080_v47, %v6741_v35  ;;  %v6916_v35 = vld [vmem:[#allocation30 + $0x80] sm:$0xff] }
0x17ee   :  { %v14261_v57 = vpop.f32.mrf.mxu0 }
0x17ef   :  { %v6776_v26 = vadd.f32 %v6774_v37, %v6770_v25  ;;  %v6781_v44 = vmul.f32 %v14261_v57, %v16107_v13  ;;  %v12833_v57 = vcombine.high %v6916_v35, %v6924_v41 }
0x17f0   :  { %v6754_v7 = vpop.f32.mrf.mxu0 }
0x17f1   :  { %v6777_v33 = vmul.f32 %v16096_v1, %v6754_v7  ;;  %v12832_v7 = vcombine.low %v6916_v35, %v6924_v41  ;;  %7191 = vmatprep.subr.bf16.mxu0 %v12833_v57  ;;  %v6911_v35 = vld [vmem:[#allocation30 + $0x58] sm:$0xff] }
0x17f2   :  { %v14262_v21 = vpop.f32.mrf.mxu0 }
0x17f3   :  { %v6779_v31 = vadd.f32 %v6777_v33, %v6775_v23  ;;  %v6782_v54 = vmul.f32 %v14262_v21, %v16107_v13  ;;  %7192 = vmatpush1.bf16.msra.mxu0 %v12832_v7  ;;  %v6900_v33 = vld [vmem:[#allocation30] sm:$0xff]  ;;  %v6901_v23 = vld [vmem:[#allocation30 + $0x8] sm:$0xff] }
0x17f4   :  { %v6757_v5 = vpop.f32.mrf.mxu0  ;;  %v6908_v21 = vld [vmem:[#allocation30 + $0x40] sm:$0xff] }
0x17f5   :  { %v6778_v42 = vmul.f32 %v16096_v1, %v6757_v5  ;;  %v6783_v51 = vadd.f32 %v6781_v44, %v6779_v31  ;;  %v12817_v37 = vcombine.high %v6900_v33, %v6908_v21  ;;  %v6909_v5 = vld [vmem:[#allocation30 + $0x48] sm:$0xff]  ;;  %v6918_v44 = vld [vmem:[#allocation30 + $0x90] sm:$0xff]  ;;  %v6920_v7 = vld [vmem:[#allocation30 + $0xa0] sm:$0xff] }
0x17f6   :  { %v12818_v31 = vcombine.low %v6901_v23, %v6909_v5 }
0x17f7   :  { %v6780_v40 = vadd.f32 %v6778_v42, %v6776_v26  ;;  %v12816_v26 = vcombine.low %v6900_v33, %v6908_v21  ;;  %v12819_v42 = vcombine.high %v6901_v23, %v6909_v5  ;;  %7193 = vmatprep.subr.bf16.mxu0 %v12817_v37  ;;  %v6904_v5 = vld [vmem:[#allocation30 + $0x20] sm:$0xff] }
0x17f9   :  { %v6784_v53 = vadd.f32 %v6782_v54, %v6780_v40  ;;  %7194 = vmatpush1.bf16.msra.mxu0 %v12816_v26  ;;  %v6926_v54 = vld [vmem:[#allocation30 + $0xd0] sm:$0xff]  ;;  %v6919_v40 = vld [vmem:[#allocation30 + $0x98] sm:$0xff]  ;;  %v6912_v26 = vld [vmem:[#allocation30 + $0x60] sm:$0xff] }
0x17fb   :  { %v6785_v58 = vpack.c.bf16 %v6784_v53, %v6783_v51  ;;  %v12837_v51 = vcombine.high %v6918_v44, %v6926_v54  ;;  %v6927_v53 = vld [vmem:[#allocation30 + $0xd8] sm:$0xff] }
0x17fd   :  { %14268 = vmatmul.mubr.msk.bf16.vlgmr.msra.gmra.mxu1 %vm584_vm1, %v6785_v58  ;;  %v12836_v58 = vcombine.low %v6918_v44, %v6926_v54  ;;  %7277 = vmatprep.subr.bf16.mxu0 %v12837_v51 }
0x17fe   :  { %7254 = vmatprep.mubr.bf16.mxu1 %v15687_v27 }
0x18bd   :  { %v6846_v46 = vpop.f32.mrf.mxu1 }
0x18be   :  { %v6847_v61 = vadd.f32 %v12810_v52, %v6846_v46  ;;  %v12839_v46 = vcombine.high %v6919_v40, %v6927_v53 }
0x18bf   :  { %v14269_v59 = vpop.f32.mrf.mxu1 }
0x18c0   :  { %v6853_v60 = vadd.f32 %v6847_v61, %v16542_v12 }
0x18c1   :  { %v6849_v30 = vpop.f32.mrf.mxu1 }
0x18c2   :  { %v6850_v62 = vadd.f32 %v12810_v52, %v6849_v30  ;;  %v6857_v4 = vsel %vm584_vm1, %v6853_v60, 0.0  ;;  %v12838_v52 = vcombine.low %v6919_v40, %v6927_v53  ;;  %v12825_v40 = vcombine.high %v6904_v5, %v6912_v26  ;;  %v6922_v53 = vld [vmem:[#allocation30 + $0xb0] sm:$0xff] }
0x18c3   :  { %6858 = vadd.xlane.f32.xlu0 %v6857_v4  ;;  %v14270_v2 = vpop.f32.mrf.mxu1 }
0x18c4   :  { %v6854_v32 = vadd.f32 %v6850_v62, %v6293_v8  ;;  %v6917_v8 = vld [vmem:[#allocation30 + $0x88] sm:$0xff] }
0x18c5   :  { %v12834_v43 = vcombine.low %v6917_v8, %v6925_v22  ;;  %v12835_v25 = vcombine.high %v6917_v8, %v6925_v22 }
0x18c6   :  { %v6860_v20 = vsel %vm584_vm1, %v6854_v32, 0.0 }
0x18c7   :  { %6861 = vadd.xlane.f32.xlu1 %v6860_v20  ;;  %7234 = vmatprep.subr.bf16.mxu1 %v12835_v25  ;;  %v12814_v20 = vld [vmem:[%s17111_s23] ss:$0 sm:$0xff]  ;;  %v6921_v25 = vld [vmem:[#allocation30 + $0xa8] sm:$0xff] }
0x18c8   :  { %7235 = vmatpush1.bf16.msra.mxu1 %v12834_v43  ;;  %v6928_v43 = vld [vmem:[#allocation30 + $0xe0] sm:$0xff] }
0x18c9   :  { %7236 = vmatprep.subr.bf16.mxu1 %v12819_v42  ;;  %v12841_v23 = vcombine.high %v6920_v7, %v6928_v43  ;;  %v6913_v42 = vld [vmem:[#allocation30 + $0x68] sm:$0xff]  ;;  %v12840_v44 = vcombine.low %v6920_v7, %v6928_v43  ;;  %v14759_v7 = vld [vmem:[#allocation31 + $0x30] sm:$0xff]  }
0x18ca   :  { %v14760_v43 = vld [vmem:[#allocation31 + $0xb0] sm:$0xff]  }
0x18cc   :  { %7237 = vmatpush1.bf16.msra.mxu1 %v12818_v31  ;;  %v6905_v31 = vld [vmem:[#allocation30 + $0x28] sm:$0xff] }
0x18cd   :  { %7320 = vmatprep.subr.bf16.mxu1 %v12839_v46  ;;  %v12827_v51 = vcombine.high %v6905_v31, %v6913_v42  ;;  %v6931_v46 = vld [vmem:[#allocation30 + $0xf8] sm:$0xff] }
0x194c   :  { %v6859_v11 = vpop.xlane.xlu0 %6858 }
0x194d   :  { %v6863_v9 = vmul.f32 0.03125, %v6859_v11 }
0x194f   :  { %v6865_v55 = vsub.f32 %v6853_v60, %v6863_v9 }
0x1950   :  { %v6862_v28 = vpop.xlane.xlu1 %6861 }
0x1951   :  { %v6864_v38 = vmul.f32 0.03125, %v6862_v28  ;;  %v6867_v56 = vmul.f32 %v6865_v55, %v6865_v55 }
0x1953   :  { %v6866_v19 = vsub.f32 %v6854_v32, %v6864_v38  ;;  %v6869_v12 = vsel %vm584_vm1, %v6867_v56, 0.0  ;;  %v12815_v38 = vld [vmem:[%s17112_s26] ss:$0 sm:$0xff] }
0x1954   :  { %6870 = vadd.xlane.f32.xlu0 %v6869_v12  ;;  %v6902_v12 = vld [vmem:[#allocation30 + $0x10] sm:$0xff] }
0x1955   :  { %v6868_v48 = vmul.f32 %v6866_v19, %v6866_v19 }
0x1957   :  { %v6872_v49 = vsel %vm584_vm1, %v6868_v48, 0.0  ;;  %v6910_v48 = vld [vmem:[#allocation30 + $0x50] sm:$0xff] }
0x1958   :  { %6873 = vadd.xlane.f32.xlu1 %v6872_v49  ;;  %v6903_v49 = vld [vmem:[#allocation30 + $0x18] sm:$0xff]  ;;  %v12821_v22 = vcombine.high %v6902_v12, %v6910_v48  ;;  %v12820_v33 = vcombine.low %v6902_v12, %v6910_v48 }
0x1959   :  { %v12822_v21 = vcombine.low %v6903_v49, %v6911_v35  ;;  %v14753_v12 = vld [vmem:[#allocation31 + $0x78] sm:$0xff]  }
0x195a   :  { %v14754_v48 = vld [vmem:[#allocation31 + $0xf8] sm:$0xff]  }
0x19dd   :  { %v6871_v61 = vpop.xlane.xlu0 %6870 }
0x19de   :  { %v6875_v59 = vmul.f32 0.03125, %v6871_v61  ;;  %v12824_v61 = vcombine.low %v6904_v5, %v6912_v26  ;;  %v14767_v5 = vld [vmem:[#allocation31 + $0x20] sm:$0xff]   ;;  %v14769_v26 = vld [vmem:[#allocation31 + $0x58] sm:$0xff]  }
0x19e0   :  { %v6877_v60 = vadd.f32 1e-05, %v6875_v59  ;;  %v12826_v59 = vcombine.low %v6905_v31, %v6913_v42  ;;  %v14770_v31 = vld [vmem:[#allocation31 + $0xd8] sm:$0xff]  }
0x19e1   :  { %v6874_v30 = vpop.xlane.xlu1 %6873  ;;  %v14771_v42 = vld [vmem:[#allocation31 + $0x18] sm:$0xff]  }
0x19e2   :  { %15133 = vrsqrt.f32 %v6877_v60  ;;  %v6876_v62 = vmul.f32 0.03125, %v6874_v30 }
0x19e4   :  { %v6878_v4 = vadd.f32 1e-05, %v6876_v62  ;;  %v6906_v62 = vld [vmem:[#allocation30 + $0x30] sm:$0xff] }
0x19e6   :  { %15135 = vrsqrt.f32 %v6878_v4  ;;  %v6914_v4 = vld [vmem:[#allocation30 + $0x70] sm:$0xff] }
0x19ef   :  { %v15134_v2 = vpop.eup %15133 }
0x19f0   :  { %v6881_v32 = vmul.f32 %v15134_v2, %v6865_v55  ;;  %v12823_v55 = vcombine.high %v6903_v49, %v6911_v35  ;;  %v6907_v2 = vld [vmem:[#allocation30 + $0x38] sm:$0xff] }
0x19f1   :  { %v14755_v49 = vld [vmem:[#allocation31 + $0x38] sm:$0xff]  }
0x19f2   :  { %v6889_v9 = vmul.f32 %v12814_v20, %v6881_v32  ;;  %v6915_v32 = vld [vmem:[#allocation30 + $0x78] sm:$0xff] }
0x19f3   :  { %v15136_v11 = vpop.eup %15135  ;;  %v14756_v35 = vld [vmem:[#allocation31 + $0xb8] sm:$0xff]  }
0x19f4   :  { %v6882_v28 = vmul.f32 %v15136_v11, %v6866_v19  ;;  %v16630_v41 = vadd.f32 %v12815_v38, %v6889_v9  ;;  %v6929_v19 = vld [vmem:[#allocation30 + $0xe8] sm:$0xff]  ;;  %v12829_v9 = vcombine.high %v6906_v62, %v6914_v4 }
0x19f5   :  { %v12843_v37 = vcombine.high %v6921_v25, %v6929_v19  ;;  %v12842_v54 = vcombine.low %v6921_v25, %v6929_v19  ;;  %v14761_v25 = vld [vmem:[#allocation31 + $0x68] sm:$0xff]  }
0x19f6   :  { %v6890_v56 = vmul.f32 %v12814_v20, %v6882_v28  ;;  %v12831_v28 = vcombine.high %v6907_v2, %v6915_v32  ;;  %v14762_v19 = vld [vmem:[#allocation31 + $0xe8] sm:$0xff]  }
0x19f8   :  { %v16632_v8 = vadd.f32 %v12815_v38, %v6890_v56  ;;  %v12828_v38 = vcombine.low %v6906_v62, %v6914_v4  ;;  %v12830_v56 = vcombine.low %v6907_v2, %v6915_v32  ;;  %v14784_v62 = vld [vmem:[#allocation31 + $0x80] sm:$0xff]   ;;  %v14785_v4 = vld [vmem:[#allocation31 + $0x178] sm:$0xff]  }
0x19f9   :  { %v14786_v2 = vld [vmem:[#allocation31 + $0x1f8] sm:$0xff]   ;;  %v16661_v32 = vld [vmem:[%s17113_s28] sm:$0xff] }
0x19fa   :  { %v16636_v57 = vpack.c.bf16 %v16632_v8, %v16630_v41 }
0x19fc   :  { %12848 = vmatmul.mubr.msk.bf16.vlgmr.msra.gmra.mxu0 %vm584_vm1, %v16636_v57  ;;  %12849 = vmatmul.mubr.msk.bf16.vlgmr.msra.gmra.mxu1 %vm584_vm1, %v16636_v57 }
0x19fd   :  { %7278 = vmatpush1.bf16.msra.mxu0 %v12836_v58  ;;  %7321 = vmatpush1.bf16.msra.mxu1 %v12838_v52  ;;  %v6930_v58 = vld [vmem:[#allocation30 + $0xf0] sm:$0xff]  ;;  %v6923_v52 = vld [vmem:[#allocation30 + $0xb8] sm:$0xff] }
0x19fe   :  { %7279 = vmatprep.subr.bf16.mxu0 %v12821_v22  ;;  %7322 = vmatprep.subr.bf16.mxu1 %v12823_v55  ;;  %v12845_v60 = vcombine.high %v6922_v53, %v6930_v58  ;;  %v12847_v30 = vcombine.high %v6923_v52, %v6931_v46  ;;  %v12844_v20 = vcombine.low %v6922_v53, %v6930_v58  ;;  %v14757_v22 = vld [vmem:[#allocation31 + $0x70] sm:$0xff]   ;;  %v14777_v58 = vld [vmem:[#allocation31 + $0x48] sm:$0xff]  }
0x19ff   :  { %7297 = vmatprep.mubr.bf16.mxu0 %v15687_v27  ;;  %7340 = vmatprep.mubr.bf16.mxu1 %v15687_v27  ;;  %v12846_v11 = vcombine.low %v6923_v52, %v6931_v46  ;;  %v14758_v55 = vld [vmem:[#allocation31 + $0xf0] sm:$0xff]   ;;  %v14778_v52 = vld [vmem:[#allocation31 + $0xc8] sm:$0xff]  }
0x1a00   :  { %v14776_v53 = vld [vmem:[#allocation31 + $0x90] sm:$0xff]   ;;  %v14779_v46 = vld [vmem:[#allocation31 + $0x8] sm:$0xff]  }
0x1a01   :  { %7280 = vmatpush1.bf16.msra.mxu0 %v12820_v33  ;;  %7323 = vmatpush1.bf16.msra.mxu1 %v12822_v21  ;;  %v14763_v33 = vld [vmem:[#allocation31 + $0x28] sm:$0xff]  }
0x1a02   :  { %7363 = vmatprep.subr.bf16.mxu0 %v12841_v23  ;;  %7406 = vmatprep.subr.bf16.mxu1 %v12843_v37  ;;  %v14764_v21 = vld [vmem:[#allocation31 + $0xa8] sm:$0xff]   ;;  %v14765_v23 = vld [vmem:[#allocation31 + $0x60] sm:$0xff]  }
0x1a03   :  { %v14766_v37 = vld [vmem:[#allocation31 + $0xe0] sm:$0xff]  }
0x1a04   :  { %12850 = vmatmul.mubr.msk.bf16.vlgmr.msra.gmra.mxu0 %vm584_vm1, %v16636_v57  ;;  %12851 = vmatmul.mubr.msk.bf16.vlgmr.msra.gmra.mxu1 %vm584_vm1, %v16636_v57 }
0x1a05   :  { %7364 = vmatpush1.bf16.msra.mxu0 %v12840_v44  ;;  %7407 = vmatpush1.bf16.msra.mxu1 %v12842_v54  ;;  %v14772_v44 = vld [vmem:[#allocation31 + $0x98] sm:$0xff]   ;;  %v14773_v54 = vld [vmem:[#allocation31 + $0x50] sm:$0xff]  }
0x1a06   :  { %7365 = vmatprep.subr.bf16.mxu0 %v12825_v40  ;;  %7408 = vmatprep.subr.bf16.mxu1 %v12827_v51  ;;  %v14774_v40 = vld [vmem:[#allocation31 + $0xd0] sm:$0xff]  }
0x1a07   :  { %7383 = vmatprep.mubr.bf16.mxu0 %v15687_v27  ;;  %7426 = vmatprep.mubr.bf16.mxu1 %v15687_v27  ;;  %v14775_v51 = vld [vmem:[#allocation31 + $0x10] sm:$0xff]  }
0x1a09   :  { %7366 = vmatpush1.bf16.msra.mxu0 %v12824_v61  ;;  %7409 = vmatpush1.bf16.msra.mxu1 %v12826_v59  ;;  %v14780_v61 = vld [vmem:[#allocation31 + $0x88] sm:$0xff]   ;;  %v14781_v59 = vld [vmem:[#allocation31 + $0x40] sm:$0xff]  }
0x1a0a   :  { %7449 = vmatprep.subr.bf16.mxu0 %v12845_v60  ;;  %7492 = vmatprep.subr.bf16.mxu1 %v12847_v30  ;;  %v14782_v60 = vld [vmem:[#allocation31 + $0xc0] sm:$0xff]  }
0x1a0b   :  { %v14783_v30 = vld [vmem:[#allocation31] sm:$0xff]  }
0x1a0c   :  { %12852 = vmatmul.mubr.msk.bf16.vlgmr.msra.gmra.mxu0 %vm584_vm1, %v16636_v57  ;;  %12853 = vmatmul.mubr.msk.bf16.vlgmr.msra.gmra.mxu1 %vm584_vm1, %v16636_v57 }
0x1a0d   :  { %7450 = vmatpush1.bf16.msra.mxu0 %v12844_v20  ;;  %7493 = vmatpush1.bf16.msra.mxu1 %v12846_v11 }
0x1a0e   :  { %7451 = vmatprep.subr.bf16.mxu0 %v12829_v9  ;;  %7494 = vmatprep.subr.bf16.mxu1 %v12831_v28  ;;  %v6943_v9 = vrot.slane %v16661_v32, %v16211_v14  ;;  %v6951_v28 = vrot.slane %v16661_v32, %v16214_v15 }
0x1a0f   :  { %7469 = vmatprep.mubr.bf16.mxu0 %v15687_v27  ;;  %7512 = vmatprep.mubr.bf16.mxu1 %v15687_v27 }
0x1a11   :  { %7452 = vmatpush1.bf16.msra.mxu0 %v12828_v38  ;;  %7495 = vmatpush1.bf16.msra.mxu1 %v12830_v56  ;;  %v6939_v38 = vrot.slane %v16661_v32, %v16217_v16  ;;  %v6947_v56 = vrot.slane %v16661_v32, %v16220_v17 }
0x1a12   :  { %13667 = vmatprep.subr.bf16.mxu0 %v14753_v12  ;;  %13689 = vmatprep.subr.bf16.mxu1 %v14754_v48 }
0x1a14   :  { %12854 = vmatmul.mubr.msk.bf16.vlgmr.msra.gmra.mxu0 %vm584_vm1, %v16636_v57  ;;  %12855 = vmatmul.mubr.msk.bf16.vlgmr.msra.gmra.mxu1 %vm584_vm1, %v16636_v57  ;;  %v14768_v57 = vld [vmem:[#allocation31 + $0xa0] sm:$0xff]  }
0x1a15   :  { %13668 = vmatpush3.bf16.msra.mxu0 %v14755_v49  ;;  %13690 = vmatpush3.bf16.msra.mxu1 %v14756_v35 }
0x1a16   :  { %13669 = vmatprep.subr.bf16.mxu0 %v14757_v22  ;;  %13691 = vmatprep.subr.bf16.mxu1 %v14758_v55 }
0x1a19   :  { %13670 = vmatpush3.bf16.msra.mxu0 %v14759_v7  ;;  %13692 = vmatpush3.bf16.msra.mxu1 %v14760_v43 }
0x1a1a   :  { %13671 = vmatprep.subr.bf16.mxu0 %v14761_v25  ;;  %13693 = vmatprep.subr.bf16.mxu1 %v14762_v19 }
0x1a1d   :  { %13672 = vmatpush3.bf16.msra.mxu0 %v14763_v33  ;;  %13694 = vmatpush3.bf16.msra.mxu1 %v14764_v21 }
0x1a1e   :  { %13673 = vmatprep.subr.bf16.mxu0 %v14765_v23  ;;  %13695 = vmatprep.subr.bf16.mxu1 %v14766_v37 }
0x1a21   :  { %13674 = vmatpush3.bf16.msra.mxu0 %v14767_v5  ;;  %13696 = vmatpush3.bf16.msra.mxu1 %v14768_v57 }
0x1a22   :  { %13675 = vmatprep.subr.bf16.mxu0 %v14769_v26  ;;  %13697 = vmatprep.subr.bf16.mxu1 %v14770_v31 }
0x1a25   :  { %13676 = vmatpush3.bf16.msra.mxu0 %v14771_v42  ;;  %13698 = vmatpush3.bf16.msra.mxu1 %v14772_v44  ;;  %v6959_v42 = vrot.slane %v16661_v32, %v16234_v34  ;;  %v6967_v44 = vrot.slane %v16661_v32, %v16237_v45 }
0x1a26   :  { %13677 = vmatprep.subr.bf16.mxu0 %v14773_v54  ;;  %13699 = vmatprep.subr.bf16.mxu1 %v14774_v40 }
0x1a29   :  { %13678 = vmatpush3.bf16.msra.mxu0 %v14775_v51  ;;  %13700 = vmatpush3.bf16.msra.mxu1 %v14776_v53 }
0x1a2a   :  { %13679 = vmatprep.subr.bf16.mxu0 %v14777_v58  ;;  %13701 = vmatprep.subr.bf16.mxu1 %v14778_v52 }
0x1a2d   :  { %13680 = vmatpush3.bf16.msra.mxu0 %v14779_v46  ;;  %13702 = vmatpush3.bf16.msra.mxu1 %v14780_v61 }
0x1a2e   :  { %13681 = vmatprep.subr.bf16.mxu0 %v14781_v59  ;;  %13703 = vmatprep.subr.bf16.mxu1 %v14782_v60 }
0x1a31   :  { %13682 = vmatpush3.bf16.msra.mxu0 %v14783_v30  ;;  %13704 = vmatpush3.bf16.msra.mxu1 %v14784_v62  ;;  %v14787_v30 = vld [vmem:[#allocation31 + $0x138] sm:$0xff]  }
0x1a32   :  { %13711 = vmatprep.subr.bf16.mxu0 %v14785_v4  ;;  %13733 = vmatprep.subr.bf16.mxu1 %v14786_v2  ;;  %v14788_v62 = vld [vmem:[#allocation31 + $0x1b8] sm:$0xff]  }
0x1abc   :  { %v7213_v20 = vpop.f32.mrf.mxu0  ;;  %v7256_v11 = vpop.f32.mrf.mxu1 }
0x1abd   :  { %v7214_v25 = vadd.f32 %v7213_v20, %v6939_v38  ;;  %v7257_v19 = vadd.f32 %v7256_v11, %v6947_v56 }
0x1abe   :  { %v7215_v12 = vpop.f32.mrf.mxu0  ;;  %v7258_v48 = vpop.f32.mrf.mxu1 }
0x1abf   :  { %v7216_v22 = vadd.f32 %v7215_v12, %v6943_v9  ;;  %v7259_v55 = vadd.f32 %v7258_v48, %v6951_v28  ;;  %v7523_v58 = vmax.f32 %v7214_v25, 0.0  ;;  %v7525_v52 = vmax.f32 %v7257_v19, 0.0 }
0x1ac0   :  { %v7217_v49 = vpop.f32.mrf.mxu0  ;;  %v7260_v35 = vpop.f32.mrf.mxu1 }
0x1ac1   :  { %v7218_v7 = vadd.f32 %v7217_v49, %v6939_v38  ;;  %v7261_v43 = vadd.f32 %v7260_v35, %v6947_v56  ;;  %v7524_v54 = vmax.f32 %v7216_v22, 0.0  ;;  %v7526_v40 = vmax.f32 %v7259_v55, 0.0  ;;  %v14791_v22 = vld [vmem:[#allocation31 + $0x130] sm:$0xff]  }
0x1ac2   :  { %v7219_v33 = vpop.f32.mrf.mxu0  ;;  %v7262_v21 = vpop.f32.mrf.mxu1  ;;  %v14792_v55 = vld [vmem:[#allocation31 + $0x1b0] sm:$0xff]  }
0x1ac3   :  { %v7220_v23 = vadd.f32 %v7219_v33, %v6943_v9  ;;  %v7263_v37 = vadd.f32 %v7262_v21, %v6951_v28  ;;  %v7539_v5 = vmax.f32 %v7218_v7, 0.0  ;;  %v7541_v57 = vmax.f32 %v7261_v43, 0.0  ;;  %v14789_v9 = vld [vmem:[#allocation31 + $0x170] sm:$0xff]   ;;  %v14793_v7 = vld [vmem:[#allocation31 + $0x168] sm:$0xff]  }
0x1ac4   :  { %v16671_v26 = vpop.f32.mrf.mxu0  ;;  %v16673_v31 = vpop.f32.mrf.mxu1  ;;  %v14790_v28 = vld [vmem:[#allocation31 + $0x1f0] sm:$0xff]   ;;  %v14794_v21 = vld [vmem:[#allocation31 + $0x1e8] sm:$0xff]  }
0x1ac5   :  { %v7540_v51 = vmax.f32 %v7220_v23, 0.0  ;;  %v7542_v53 = vmax.f32 %v7263_v37, 0.0  ;;  %v7555_v4 = vpack.c.bf16 %v7539_v5, %v7523_v58  ;;  %v7557_v2 = vpack.c.bf16 %v7541_v57, %v7525_v52  ;;  %v14795_v5 = vld [vmem:[#allocation31 + $0x128] sm:$0xff]   ;;  %v14801_v58 = vld [vmem:[#allocation31 + $0x158] sm:$0xff]  }
0x1ac6   :  { %v7301_v46 = vpop.f32.mrf.mxu0  ;;  %v7344_v61 = vpop.f32.mrf.mxu1  ;;  %v14796_v57 = vld [vmem:[#allocation31 + $0x1a8] sm:$0xff]   ;;  %v14802_v52 = vld [vmem:[#allocation31 + $0x1d8] sm:$0xff]  }
0x1ac7   :  { %v7556_v59 = vpack.c.bf16 %v7540_v51, %v7524_v54  ;;  %v7558_v60 = vpack.c.bf16 %v7542_v53, %v7526_v40  ;;  %v7302_v38 = vadd.f32 %v7301_v46, %v6959_v42  ;;  %v7345_v56 = vadd.f32 %v7344_v61, %v6967_v44  ;;  %v14799_v40 = vld [vmem:[#allocation31 + $0x120] sm:$0xff]   ;;  %v14803_v61 = vld [vmem:[#allocation31 + $0x118] sm:$0xff]  }
0x1ac8   :  { %v16679_v20 = vpop.f32.mrf.mxu0  ;;  %v16681_v11 = vpop.f32.mrf.mxu1  ;;  %v14800_v53 = vld [vmem:[#allocation31 + $0x1a0] sm:$0xff]  }
0x1ac9   :  { %8634 = vmatprep.mubr.bf16.mxu0 %v7556_v59  ;;  %8675 = vmatprep.mubr.bf16.mxu1 %v7558_v60  ;;  %v7528_v43 = vmax.f32 %v7302_v38, 0.0  ;;  %v7530_v25 = vmax.f32 %v7345_v56, 0.0  ;;  %v14804_v60 = vld [vmem:[#allocation31 + $0x198] sm:$0xff]   ;;  %v14809_v38 = vld [vmem:[#allocation31 + $0x148] sm:$0xff]  }
0x1aca   :  { %v7305_v12 = vpop.f32.mrf.mxu0  ;;  %v7348_v48 = vpop.f32.mrf.mxu1  ;;  %8635 = vmatmul.mubr.bf16.vlgmr.msra.gmra.mxu0 %v7555_v4  ;;  %8676 = vmatmul.mubr.bf16.vlgmr.msra.gmra.mxu1 %v7557_v2  ;;  %v14807_v2 = vld [vmem:[#allocation31 + $0x110] sm:$0xff]   ;;  %v14810_v56 = vld [vmem:[#allocation31 + $0x1c8] sm:$0xff]  }
0x1acb   :  { %v7306_v49 = vadd.f32 %v7305_v12, %v6959_v42  ;;  %v7349_v35 = vadd.f32 %v7348_v48, %v6967_v44  ;;  %13712 = vmatpush3.bf16.msra.mxu0 %v14787_v30  ;;  %13734 = vmatpush3.bf16.msra.mxu1 %v14788_v62  ;;  %v14797_v42 = vld [vmem:[#allocation31 + $0x160] sm:$0xff]   ;;  %v14805_v30 = vld [vmem:[#allocation31 + $0x150] sm:$0xff]   ;;  %v6955_v12 = vrot.slane %v16661_v32, %v16256_v29 }
0x1acc   :  { %13713 = vmatprep.subr.bf16.mxu0 %v14789_v9  ;;  %13735 = vmatprep.subr.bf16.mxu1 %v14790_v28  ;;  %v14798_v44 = vld [vmem:[#allocation31 + $0x1e0] sm:$0xff]   ;;  %v16683_v54 = vpop.f32.mrf.mxu0  ;;  %v16685_v51 = vpop.f32.mrf.mxu1  ;;  %v14806_v62 = vld [vmem:[#allocation31 + $0x1d0] sm:$0xff]   ;;  %v6963_v48 = vrot.slane %v16661_v32, %v16259_v3 }
0x1acd   :  { %v7544_v19 = vmax.f32 %v7306_v49, 0.0  ;;  %v7546_v33 = vmax.f32 %v7349_v35, 0.0  ;;  %v14808_v28 = vld [vmem:[#allocation31 + $0x190] sm:$0xff]   ;;  %v16696_v49 = vld [vmem:[%s17113_s28 + $0x8] sm:$0xff] }
0x1ace   :  { %v7387_v46 = vpop.f32.mrf.mxu0  ;;  %v7430_v59 = vpop.f32.mrf.mxu1  ;;  %v6983_v32 = vrot.slane %v16696_v49, %v16214_v15 }
0x1acf   :  { %v7560_v23 = vpack.c.bf16 %v7544_v19, %v7528_v43  ;;  %v7562_v37 = vpack.c.bf16 %v7546_v33, %v7530_v25  ;;  %13714 = vmatpush3.bf16.msra.mxu0 %v14791_v22  ;;  %13736 = vmatpush3.bf16.msra.mxu1 %v14792_v55  ;;  %v14811_v22 = vld [vmem:[#allocation31 + $0x108] sm:$0xff]   ;;  %v7304_v55 = vadd.f32 %v16679_v20, %v6955_v12  ;;  %v14813_v19 = vld [vmem:[#allocation31 + $0x140] sm:$0xff]  }
0x1ad0   :  { %13715 = vmatprep.subr.bf16.mxu0 %v14793_v7  ;;  %13737 = vmatprep.subr.bf16.mxu1 %v14794_v21  ;;  %v16687_v4 = vpop.f32.mrf.mxu0  ;;  %v16689_v9 = vpop.f32.mrf.mxu1  ;;  %v6975_v7 = vrot.slane %v16696_v49, %v16211_v14  ;;  %v14812_v25 = vld [vmem:[#allocation31 + $0x188] sm:$0xff]   ;;  %v7347_v33 = vadd.f32 %v16681_v11, %v6963_v48  ;;  %v14814_v21 = vld [vmem:[#allocation31 + $0x1c0] sm:$0xff]   ;;  %v7343_v20 = vadd.f32 %v16673_v31, %v6963_v48 }
0x1ad1   :  { %8716 = vmatprep.mubr.bf16.mxu0 %v7560_v23  ;;  %8757 = vmatprep.mubr.bf16.mxu1 %v7562_v37  ;;  %v7300_v23 = vadd.f32 %v16671_v26, %v6955_v12 }
0x1ad2   :  { %v7391_v35 = vpop.f32.mrf.mxu0  ;;  %v7434_v43 = vpop.f32.mrf.mxu1  ;;  %v7545_v11 = vmax.f32 %v7347_v33, 0.0  ;;  %v14830_v33 = vld [vmem:[#allocation31 + $0x2e0] sm:$0xff]  }
0x1ad3   :  { %13716 = vmatpush3.bf16.msra.mxu0 %v14795_v5  ;;  %13738 = vmatpush3.bf16.msra.mxu1 %v14796_v57  ;;  %v7392_v37 = vadd.f32 %v7391_v35, %v6975_v7  ;;  %v7435_v5 = vadd.f32 %v7434_v43, %v6983_v32  ;;  %v14815_v57 = vld [vmem:[#allocation31 + $0x100] sm:$0xff]   ;;  %v14823_v35 = vld [vmem:[#allocation31 + $0x230] sm:$0xff]   ;;  %v14827_v43 = vld [vmem:[#allocation31 + $0x228] sm:$0xff]  }
0x1ad4   :  { %13717 = vmatprep.subr.bf16.mxu0 %v14797_v42  ;;  %13739 = vmatprep.subr.bf16.mxu1 %v14798_v44  ;;  %v7543_v42 = vmax.f32 %v7304_v55, 0.0  ;;  %v7388_v44 = vadd.f32 %v7387_v46, %v6975_v7  ;;  %v14825_v55 = vld [vmem:[#allocation31 + $0x268] sm:$0xff]  }
0x1ad5   :  { %v7550_v26 = vmax.f32 %v7435_v5, 0.0  ;;  %v14826_v7 = vld [vmem:[#allocation31 + $0x2e8] sm:$0xff]   ;;  %v14834_v5 = vld [vmem:[#allocation31 + $0x2d8] sm:$0xff]  }
0x1ad7   :  { %13718 = vmatpush3.bf16.msra.mxu0 %v14799_v40  ;;  %13740 = vmatpush3.bf16.msra.mxu1 %v14800_v53  ;;  %v14816_v40 = vld [vmem:[#allocation31 + $0x180] sm:$0xff]   ;;  %v14817_v53 = vld [vmem:[#allocation31 + $0x278] sm:$0xff]  }
0x1ad8   :  { %13719 = vmatprep.subr.bf16.mxu0 %v14801_v58  ;;  %13741 = vmatprep.subr.bf16.mxu1 %v14802_v52  ;;  %v7431_v58 = vadd.f32 %v7430_v59, %v6983_v32  ;;  %v14818_v52 = vld [vmem:[#allocation31 + $0x2f8] sm:$0xff]   ;;  %v14822_v59 = vld [vmem:[#allocation31 + $0x2f0] sm:$0xff]   ;;  %v16706_v32 = vpop.f32.mrf.mxu0 }
0x1adb   :  { %13720 = vmatpush3.bf16.msra.mxu0 %v14803_v61  ;;  %13742 = vmatpush3.bf16.msra.mxu1 %v14804_v60  ;;  %v7527_v61 = vmax.f32 %v7300_v23, 0.0  ;;  %v7548_v60 = vmax.f32 %v7392_v37, 0.0  ;;  %v16708_v23 = vpop.f32.mrf.mxu1  ;;  %v14832_v37 = vld [vmem:[#allocation31 + $0x2a0] sm:$0xff]  }
0x1adc   :  { %13721 = vmatprep.subr.bf16.mxu0 %v14805_v30  ;;  %13743 = vmatprep.subr.bf16.mxu1 %v14806_v62  ;;  %v7529_v30 = vmax.f32 %v7343_v20, 0.0  ;;  %v14819_v62 = vld [vmem:[#allocation31 + $0x238] sm:$0xff]  }
0x1add   :  { %v7559_v31 = vpack.c.bf16 %v7543_v42, %v7527_v61  ;;  %v14833_v20 = vld [vmem:[#allocation31 + $0x258] sm:$0xff]  }
0x1ade   :  { %v7561_v46 = vpack.c.bf16 %v7545_v11, %v7529_v30  ;;  %v14835_v42 = vld [vmem:[#allocation31 + $0x218] sm:$0xff]   ;;  %v14838_v11 = vld [vmem:[#allocation31 + $0x2d0] sm:$0xff]   ;;  %v14841_v30 = vld [vmem:[#allocation31 + $0x248] sm:$0xff]  }
0x1adf   :  { %13722 = vmatpush3.bf16.msra.mxu0 %v14807_v2  ;;  %13744 = vmatpush3.bf16.msra.mxu1 %v14808_v28  ;;  %v7532_v2 = vmax.f32 %v7388_v44, 0.0  ;;  %v14820_v28 = vld [vmem:[#allocation31 + $0x2b8] sm:$0xff]   ;;  %v7516_v44 = vpop.f32.mrf.mxu1 }
0x1ae0   :  { %13723 = vmatprep.subr.bf16.mxu0 %v14809_v38  ;;  %13745 = vmatprep.subr.bf16.mxu1 %v14810_v56  ;;  %v7534_v38 = vmax.f32 %v7431_v58, 0.0  ;;  %v14821_v56 = vld [vmem:[#allocation31 + $0x270] sm:$0xff]  }
0x1ae1   :  { %v7564_v12 = vpack.c.bf16 %v7548_v60, %v7532_v2  ;;  %v16712_v61 = vpop.f32.mrf.mxu1  ;;  %v14840_v60 = vld [vmem:[#allocation31 + $0x290] sm:$0xff]  }
0x1ae2   :  { %v7566_v48 = vpack.c.bf16 %v7550_v26, %v7534_v38  ;;  %v14842_v26 = vld [vmem:[#allocation31 + $0x2c8] sm:$0xff]   ;;  %v6991_v38 = vrot.slane %v16696_v49, %v16234_v34 }
0x1ae3   :  { %13724 = vmatpush3.bf16.msra.mxu0 %v14811_v22  ;;  %13746 = vmatpush3.bf16.msra.mxu1 %v14812_v25  ;;  %v14824_v22 = vld [vmem:[#allocation31 + $0x2b0] sm:$0xff]   ;;  %v14828_v25 = vld [vmem:[#allocation31 + $0x2a8] sm:$0xff]  }
0x1ae4   :  { %13725 = vmatprep.subr.bf16.mxu0 %v14813_v19  ;;  %13747 = vmatprep.subr.bf16.mxu1 %v14814_v21  ;;  %v14829_v19 = vld [vmem:[#allocation31 + $0x260] sm:$0xff]  }
0x1ae5   :  { %v14831_v21 = vld [vmem:[#allocation31 + $0x220] sm:$0xff]  }
0x1ae7   :  { %13726 = vmatpush3.bf16.msra.mxu0 %v14815_v57  ;;  %13748 = vmatpush3.bf16.msra.mxu1 %v14816_v40  ;;  %v7473_v57 = vpop.f32.mrf.mxu0  ;;  %v14836_v40 = vld [vmem:[#allocation31 + $0x298] sm:$0xff]  }
0x1ae8   :  { %13755 = vmatprep.subr.bf16.mxu0 %v14817_v53  ;;  %13777 = vmatprep.subr.bf16.mxu1 %v14818_v52  ;;  %v14837_v53 = vld [vmem:[#allocation31 + $0x250] sm:$0xff]  }
0x1ae9   :  { %v16710_v58 = vpop.f32.mrf.mxu0  ;;  %v14839_v52 = vld [vmem:[#allocation31 + $0x210] sm:$0xff]  }
0x1aea   :  { %8717 = vmatmul.mubr.bf16.vlgmr.msra.gmra.mxu0 %v7559_v31  ;;  %8758 = vmatmul.mubr.bf16.vlgmr.msra.gmra.mxu1 %v7561_v46  ;;  %v6979_v31 = vrot.slane %v16696_v49, %v16220_v17 }
0x1aeb   :  { %13756 = vmatpush3.bf16.msra.mxu0 %v14819_v62  ;;  %8798 = vmatprep.mubr.bf16.mxu0 %v7564_v12  ;;  %v6971_v62 = vrot.slane %v16696_v49, %v16217_v16  ;;  %v7477_v2 = vpop.f32.mrf.mxu0  ;;  %v14844_v12 = vld [vmem:[#allocation31 + $0x288] sm:$0xff]  }
0x1aec   :  { %13778 = vmatpush3.bf16.msra.mxu1 %v14820_v28  ;;  %8839 = vmatprep.mubr.bf16.mxu1 %v7566_v48  ;;  %v14843_v28 = vld [vmem:[#allocation31 + $0x208] sm:$0xff]   ;;  %v7433_v48 = vadd.f32 %v16689_v9, %v6979_v31 }
0x1aed   :  { %13757 = vmatprep.subr.bf16.mxu0 %v14821_v56  ;;  %13779 = vmatprep.subr.bf16.mxu1 %v14822_v59  ;;  %v7390_v46 = vadd.f32 %v16687_v4, %v6971_v62  ;;  %v7520_v56 = vpop.f32.mrf.mxu1  ;;  %v14845_v59 = vld [vmem:[#allocation31 + $0x240] sm:$0xff]   ;;  %v7429_v4 = vadd.f32 %v16685_v51, %v6979_v31 }
0x1aee   :  { %v7549_v9 = vmax.f32 %v7433_v48, 0.0  ;;  %v14862_v48 = vld [vmem:[#allocation31 + $0x3e0] sm:$0xff]  }
0x1aef   :  { %13758 = vmatpush3.bf16.msra.mxu0 %v14823_v35  ;;  %v6999_v35 = vrot.slane %v16696_v49, %v16237_v45 }
0x1af0   :  { %13780 = vmatpush3.bf16.msra.mxu1 %v14824_v22  ;;  %13759 = vmatprep.subr.bf16.mxu0 %v14825_v55  ;;  %v14846_v22 = vld [vmem:[#allocation31 + $0x2c0] sm:$0xff]   ;;  %v7386_v55 = vadd.f32 %v16683_v54, %v6971_v62 }
0x1af1   :  { %13781 = vmatprep.subr.bf16.mxu1 %v14826_v7  ;;  %v7478_v7 = vadd.f32 %v7477_v2, %v6991_v38  ;;  %v14855_v2 = vld [vmem:[#allocation31 + $0x330] sm:$0xff]  }
0x1af3   :  { %13760 = vmatpush3.bf16.msra.mxu0 %v14827_v43  ;;  %v7521_v43 = vadd.f32 %v7520_v56, %v6999_v35  ;;  %v14859_v56 = vld [vmem:[#allocation31 + $0x328] sm:$0xff]  }
0x1af4   :  { %13782 = vmatpush3.bf16.msra.mxu1 %v14828_v25  ;;  %13761 = vmatprep.subr.bf16.mxu0 %v14829_v19  ;;  %v14847_v25 = vld [vmem:[#allocation31 + $0x200] sm:$0xff]   ;;  %v7547_v19 = vmax.f32 %v7390_v46, 0.0  ;;  %v14857_v46 = vld [vmem:[#allocation31 + $0x368] sm:$0xff]  }
0x1af5   :  { %13783 = vmatprep.subr.bf16.mxu1 %v14830_v33  ;;  %v7474_v33 = vadd.f32 %v7473_v57, %v6991_v38  ;;  %v7554_v54 = vmax.f32 %v7521_v43, 0.0  ;;  %v14858_v38 = vld [vmem:[#allocation31 + $0x3e8] sm:$0xff]   ;;  %v14868_v43 = vld [vmem:[#allocation31 + $0x398] sm:$0xff]  }
0x1af7   :  { %13762 = vmatpush3.bf16.msra.mxu0 %v14831_v21  ;;  %v14848_v21 = vld [vmem:[#allocation31 + $0x280] sm:$0xff]  }
0x1af8   :  { %13784 = vmatpush3.bf16.msra.mxu1 %v14832_v37  ;;  %13763 = vmatprep.subr.bf16.mxu0 %v14833_v20  ;;  %v14849_v37 = vld [vmem:[#allocation31 + $0x378] sm:$0xff]   ;;  %v7517_v20 = vadd.f32 %v7516_v44, %v6999_v35  ;;  %v14854_v44 = vld [vmem:[#allocation31 + $0x3f0] sm:$0xff]   ;;  %v14863_v35 = vld [vmem:[#allocation31 + $0x320] sm:$0xff]  }
0x1af9   :  { %13785 = vmatprep.subr.bf16.mxu1 %v14834_v5  ;;  %v14850_v5 = vld [vmem:[#allocation31 + $0x3f8] sm:$0xff]  }
0x1afb   :  { %13764 = vmatpush3.bf16.msra.mxu0 %v14835_v42  ;;  %v7531_v42 = vmax.f32 %v7386_v55, 0.0  ;;  %v14865_v55 = vld [vmem:[#allocation31 + $0x358] sm:$0xff]  }
0x1afc   :  { %13786 = vmatpush3.bf16.msra.mxu1 %v14836_v40  ;;  %13765 = vmatprep.subr.bf16.mxu0 %v14837_v53  ;;  %v7552_v40 = vmax.f32 %v7478_v7, 0.0  ;;  %v7533_v53 = vmax.f32 %v7429_v4, 0.0  ;;  %v14866_v7 = vld [vmem:[#allocation31 + $0x3d8] sm:$0xff]  }
0x1afd   :  { %13787 = vmatprep.subr.bf16.mxu1 %v14838_v11  ;;  %v14851_v11 = vld [vmem:[#allocation31 + $0x338] sm:$0xff]   ;;  %v7563_v51 = vpack.c.bf16 %v7547_v19, %v7531_v42  ;;  %v14870_v19 = vld [vmem:[#allocation31 + $0x3d0] sm:$0xff]   ;;  %v14875_v42 = vld [vmem:[#allocation31 + $0x308] sm:$0xff]  }
0x1afe   :  { %v7565_v57 = vpack.c.bf16 %v7549_v9, %v7533_v53  ;;  %v14867_v4 = vld [vmem:[#allocation31 + $0x318] sm:$0xff]   ;;  %v14874_v9 = vld [vmem:[#allocation31 + $0x3c8] sm:$0xff]  }
0x1aff   :  { %13766 = vmatpush3.bf16.msra.mxu0 %v14839_v52  ;;  %v7536_v52 = vmax.f32 %v7474_v33, 0.0  ;;  %v14871_v33 = vld [vmem:[#allocation31 + $0x310] sm:$0xff]   ;;  %v14876_v53 = vld [vmem:[#allocation31 + $0x388] sm:$0xff]  }
0x1b00   :  { %13788 = vmatpush3.bf16.msra.mxu1 %v14840_v60  ;;  %13767 = vmatprep.subr.bf16.mxu0 %v14841_v30  ;;  %v14852_v60 = vld [vmem:[#allocation31 + $0x3b8] sm:$0xff]   ;;  %v7538_v30 = vmax.f32 %v7517_v20, 0.0  ;;  %v6987_v20 = vrot.slane %v16696_v49, %v16256_v29 }
0x1b01   :  { %13789 = vmatprep.subr.bf16.mxu1 %v14842_v26  ;;  %v14853_v26 = vld [vmem:[#allocation31 + $0x370] sm:$0xff]   ;;  %v7568_v62 = vpack.c.bf16 %v7552_v40, %v7536_v52 }
0x1b02   :  { %v7570_v31 = vpack.c.bf16 %v7554_v54, %v7538_v30  ;;  %v7476_v40 = vadd.f32 %v16710_v58, %v6987_v20  ;;  %v14877_v54 = vld [vmem:[#allocation31 + $0x340] sm:$0xff]   ;;  %v7472_v52 = vadd.f32 %v16706_v32, %v6987_v20 }
0x1b03   :  { %13768 = vmatpush3.bf16.msra.mxu0 %v14843_v28  ;;  %v14856_v28 = vld [vmem:[#allocation31 + $0x3b0] sm:$0xff]  }
0x1b04   :  { %13790 = vmatpush3.bf16.msra.mxu1 %v14844_v12  ;;  %13769 = vmatprep.subr.bf16.mxu0 %v14845_v59  ;;  %v14860_v12 = vld [vmem:[#allocation31 + $0x3a8] sm:$0xff]   ;;  %v14861_v59 = vld [vmem:[#allocation31 + $0x360] sm:$0xff]   ;;  %v7551_v30 = vmax.f32 %v7476_v40, 0.0  ;;  %v7535_v58 = vmax.f32 %v7472_v52, 0.0 }
0x1b05   :  { %13791 = vmatprep.subr.bf16.mxu1 %v14846_v22  ;;  %v14864_v22 = vld [vmem:[#allocation31 + $0x3a0] sm:$0xff]  }
0x1b07   :  { %13770 = vmatpush3.bf16.msra.mxu0 %v14847_v25  ;;  %v14869_v25 = vld [vmem:[#allocation31 + $0x350] sm:$0xff]  }
0x1b08   :  { %13792 = vmatpush3.bf16.msra.mxu1 %v14848_v21  ;;  %13799 = vmatprep.subr.bf16.mxu0 %v14849_v37  ;;  %v14872_v21 = vld [vmem:[#allocation31 + $0x390] sm:$0xff]   ;;  %v14873_v37 = vld [vmem:[#allocation31 + $0x348] sm:$0xff]  }
0x1b09   :  { %13821 = vmatprep.subr.bf16.mxu1 %v14850_v5  ;;  %v6995_v5 = vrot.slane %v16696_v49, %v16259_v3  ;;  %v14880_v49 = vld [vmem:[#allocation31 + $0x380] sm:$0xff]  }
0x1b0a   :  { %8799 = vmatmul.mubr.bf16.vlgmr.msra.gmra.mxu0 %v7563_v51  ;;  %v14878_v51 = vld [vmem:[#allocation31 + $0x3c0] sm:$0xff]  }
0x1b0b   :  { %8840 = vmatmul.mubr.bf16.vlgmr.msra.gmra.mxu1 %v7565_v57  ;;  %13800 = vmatpush3.bf16.msra.mxu0 %v14851_v11  ;;  %v7519_v11 = vadd.f32 %v16712_v61, %v6995_v5  ;;  %v14879_v57 = vld [vmem:[#allocation31 + $0x300] sm:$0xff]  }
0x1b0c   :  { %8880 = vmatprep.mubr.bf16.mxu0 %v7568_v62  ;;  %13822 = vmatpush3.bf16.msra.mxu1 %v14852_v60  ;;  %v7515_v60 = vadd.f32 %v16708_v23, %v6995_v5 }
0x1b0d   :  { %8921 = vmatprep.mubr.bf16.mxu1 %v7570_v31  ;;  %13801 = vmatprep.subr.bf16.mxu0 %v14853_v26  ;;  %v7553_v26 = vmax.f32 %v7519_v11, 0.0 }
0x1b0e   :  { %13823 = vmatprep.subr.bf16.mxu1 %v14854_v44  ;;  %v7537_v62 = vmax.f32 %v7515_v60, 0.0  ;;  %v7567_v44 = vpack.c.bf16 %v7551_v30, %v7535_v58 }
0x1b0f   :  { %13802 = vmatpush3.bf16.msra.mxu0 %v14855_v2 }
0x1b10   :  { %13824 = vmatpush3.bf16.msra.mxu1 %v14856_v28  ;;  %13803 = vmatprep.subr.bf16.mxu0 %v14857_v46  ;;  %v7569_v61 = vpack.c.bf16 %v7553_v26, %v7537_v62 }
0x1b11   :  { %13825 = vmatprep.subr.bf16.mxu1 %v14858_v38 }
0x1b13   :  { %13804 = vmatpush3.bf16.msra.mxu0 %v14859_v56 }
0x1b14   :  { %13826 = vmatpush3.bf16.msra.mxu1 %v14860_v12  ;;  %13805 = vmatprep.subr.bf16.mxu0 %v14861_v59 }
0x1b15   :  { %13827 = vmatprep.subr.bf16.mxu1 %v14862_v48 }
0x1b17   :  { %13806 = vmatpush3.bf16.msra.mxu0 %v14863_v35 }
0x1b18   :  { %13828 = vmatpush3.bf16.msra.mxu1 %v14864_v22  ;;  %13807 = vmatprep.subr.bf16.mxu0 %v14865_v55 }
0x1b19   :  { %13829 = vmatprep.subr.bf16.mxu1 %v14866_v7 }
0x1b1b   :  { %13808 = vmatpush3.bf16.msra.mxu0 %v14867_v4 }
0x1b1c   :  { %13830 = vmatpush3.bf16.msra.mxu1 %v14868_v43  ;;  %13809 = vmatprep.subr.bf16.mxu0 %v14869_v25  ;;  %v12856_v43 = vld [vmem:[%s17114_s5] ss:$0 sm:$0xff] }
0x1b1d   :  { %13831 = vmatprep.subr.bf16.mxu1 %v14870_v19 }
0x1b1f   :  { %13810 = vmatpush3.bf16.msra.mxu0 %v14871_v33 }
0x1b20   :  { %13832 = vmatpush3.bf16.msra.mxu1 %v14872_v21  ;;  %13811 = vmatprep.subr.bf16.mxu0 %v14873_v37 }
0x1b21   :  { %13833 = vmatprep.subr.bf16.mxu1 %v14874_v9 }
0x1b23   :  { %13812 = vmatpush3.bf16.msra.mxu0 %v14875_v42 }
0x1b24   :  { %13834 = vmatpush3.bf16.msra.mxu1 %v14876_v53  ;;  %13813 = vmatprep.subr.bf16.mxu0 %v14877_v54 }
0x1b25   :  { %13835 = vmatprep.subr.bf16.mxu1 %v14878_v51 }
0x1b27   :  { %13814 = vmatpush3.bf16.msra.mxu0 %v14879_v57 }
0x1b28   :  { %13836 = vmatpush3.bf16.msra.mxu1 %v14880_v49  ;;  %14271 = vmatprep.subr.bf16.mxu0 %v15684_v0 }
0x1b29   :  { %14279 = vmatprep.subr.bf16.mxu1 %v15684_v0 }
0x1b2a   :  { %8881 = vmatmul.mubr.bf16.vlgmr.msra.gmra.mxu0 %v7567_v44 }
0x1b2b   :  { %8922 = vmatmul.mubr.bf16.vlgmr.msra.gmra.mxu1 %v7569_v61  ;;  %14275 = vmatprep.mubr.msk.bf16.mxu0 %vm15685_vm0, %v15684_v0 }
0x1b2c   :  { %14283 = vmatprep.mubr.msk.bf16.mxu1 %vm15685_vm0, %v15684_v0 }
0x1b8a   :  { %v13683_v32 = vpop.f32.mrf.mxu0  ;;  %v13705_v23 = vpop.f32.mrf.mxu1 }
0x1b8c   :  { %v13684_v31 = vpop.f32.mrf.mxu0  ;;  %v13706_v2 = vpop.f32.mrf.mxu1 }
0x1b8d   :  { %v13685_v4 = vadd.f32 %v13684_v31, %v13683_v32  ;;  %v13707_v20 = vadd.f32 %v13706_v2, %v13705_v23 }
0x1b8e   :  { %v13686_v28 = vpop.f32.mrf.mxu0  ;;  %v13708_v46 = vpop.f32.mrf.mxu1 }
0x1b8f   :  { %v8637_v33 = vadd.f32 %v13685_v4, %v12856_v43 }
0x1b90   :  { %v13687_v38 = vpop.f32.mrf.mxu0  ;;  %v13709_v12 = vpop.f32.mrf.mxu1 }
0x1b91   :  { %v13688_v21 = vadd.f32 %v13687_v38, %v13686_v28  ;;  %v8678_v42 = vadd.f32 %v13707_v20, %v8637_v33  ;;  %v13710_v11 = vadd.f32 %v13709_v12, %v13708_v46 }
0x1b93   :  { %v8640_v40 = vadd.f32 %v13688_v21, %v12856_v43 }
0x1b95   :  { %v8681_v60 = vadd.f32 %v13710_v11, %v8640_v40 }
0x1baa   :  { %v13727_v56 = vpop.f32.mrf.mxu0  ;;  %v13749_v59 = vpop.f32.mrf.mxu1 }
0x1bac   :  { %v13728_v48 = vpop.f32.mrf.mxu0  ;;  %v13750_v35 = vpop.f32.mrf.mxu1 }
0x1bad   :  { %v13729_v5 = vadd.f32 %v13728_v48, %v13727_v56  ;;  %v13751_v57 = vadd.f32 %v13750_v35, %v13749_v59 }
0x1bae   :  { %v13730_v22 = vpop.f32.mrf.mxu0  ;;  %v13752_v55 = vpop.f32.mrf.mxu1 }
0x1baf   :  { %v8719_v51 = vadd.f32 %v13729_v5, %v8678_v42 }
0x1bb0   :  { %v13731_v7 = vpop.f32.mrf.mxu0  ;;  %v13753_v19 = vpop.f32.mrf.mxu1 }
0x1bb1   :  { %v13732_v52 = vadd.f32 %v13731_v7, %v13730_v22  ;;  %v8760_v58 = vadd.f32 %v13751_v57, %v8719_v51  ;;  %v13754_v44 = vadd.f32 %v13753_v19, %v13752_v55 }
0x1bb3   :  { %v8722_v62 = vadd.f32 %v13732_v52, %v8681_v60 }
0x1bb5   :  { %v8763_v2 = vadd.f32 %v13754_v44, %v8722_v62  ;;  %v14882_v62 = vld [vmem:[#allocation28 + $0x18] sm:$0xff]   ;;  %v14884_v44 = vld [vmem:[#allocation28 + $0x10] sm:$0xff]  }
0x1bb6   :  { %14280 = vmatpush3.bf16.msra.mxu1 %v14882_v62 }
0x1bb7   :  { %14281 = vmatprep.subr.bf16.mxu1 %v15684_v0 }
0x1bba   :  { %14282 = vmatpush3.bf16.msra.mxu1 %v14884_v44 }
0x1bca   :  { %v13771_v25 = vpop.f32.mrf.mxu0 }
0x1bcb   :  { %v13793_v37 = vpop.f32.mrf.mxu1 }
0x1bcc   :  { %v13772_v9 = vpop.f32.mrf.mxu0 }
0x1bcd   :  { %v13794_v53 = vpop.f32.mrf.mxu1  ;;  %v13773_v30 = vadd.f32 %v13772_v9, %v13771_v25 }
0x1bce   :  { %v13774_v54 = vpop.f32.mrf.mxu0  ;;  %v13795_v28 = vadd.f32 %v13794_v53, %v13793_v37 }
0x1bcf   :  { %v13796_v49 = vpop.f32.mrf.mxu1  ;;  %v8801_v61 = vadd.f32 %v13773_v30, %v8760_v58  ;;  %v14881_v58 = vld [vmem:[#allocation27 + $0x18] sm:$0xff]  }
0x1bd0   :  { %v13775_v26 = vpop.f32.mrf.mxu0  ;;  %14272 = vmatpush3.bf16.msra.mxu0 %v14881_v58 }
0x1bd1   :  { %v13776_v32 = vadd.f32 %v13775_v26, %v13774_v54  ;;  %v13797_v31 = vpop.f32.mrf.mxu1  ;;  %v8842_v48 = vadd.f32 %v13795_v28, %v8801_v61  ;;  %14273 = vmatprep.subr.bf16.mxu0 %v15684_v0 }
0x1bd2   :  { %v13798_v59 = vadd.f32 %v13797_v31, %v13796_v49 }
0x1bd3   :  { %v8804_v46 = vadd.f32 %v13776_v32, %v8763_v2 }
0x1bd5   :  { %v8845_v33 = vadd.f32 %v13798_v59, %v8804_v46 }
0x1bea   :  { %v13815_v23 = vpop.f32.mrf.mxu0 }
0x1beb   :  { %v13837_v38 = vpop.f32.mrf.mxu1 }
0x1bec   :  { %v13816_v56 = vpop.f32.mrf.mxu0 }
0x1bed   :  { %v13817_v12 = vadd.f32 %v13816_v56, %v13815_v23  ;;  %v13838_v22 = vpop.f32.mrf.mxu1 }
0x1bee   :  { %v13818_v7 = vpop.f32.mrf.mxu0  ;;  %v13839_v4 = vadd.f32 %v13838_v22, %v13837_v38 }
0x1bef   :  { %v8883_v35 = vadd.f32 %v13817_v12, %v8842_v48  ;;  %v13840_v43 = vpop.f32.mrf.mxu1  ;;  %v12985_v48 = vld [vmem:[%s17115_s17] ss:$0 sm:$0xff] }
0x1bf0   :  { %v13819_v25 = vpop.f32.mrf.mxu0 }
0x1bf1   :  { %v8924_v55 = vadd.f32 %v13839_v4, %v8883_v35  ;;  %v13820_v19 = vadd.f32 %v13819_v25, %v13818_v7  ;;  %v13841_v21 = vpop.f32.mrf.mxu1  ;;  %v12986_v7 = vld [vmem:[%s17116_s24] ss:$0 sm:$0xff] }
0x1bf2   :  { %v13842_v20 = vadd.f32 %v13841_v21, %v13840_v43  ;;  %v14885_v43 = vld [vmem:[%s17105_s15 + $0x18] sm:$0xff]  }
0x1bf3   :  { %v8886_v9 = vadd.f32 %v13820_v19, %v8845_v33  ;;  %v8930_v37 = vadd.f32 %v8924_v55, %v16630_v41  ;;  %v14886_v33 = vld [vmem:[%s17105_s15 + $0x10] sm:$0xff]   ;;  %v12988_v55 = vld [vmem:[%s17106_s16 + $0x1] ss:$0 sm:$0xff] }
0x1bf5   :  { %v8927_v5 = vadd.f32 %v13842_v20, %v8886_v9  ;;  %v8934_v42 = vsel %vm584_vm1, %v8930_v37, 0.0 }
0x1bf6   :  { %8935 = vadd.xlane.f32.xlu0 %v8934_v42 }
0x1bf7   :  { %v8931_v40 = vadd.f32 %v8927_v5, %v16632_v8  ;;  %v14883_v8 = vld [vmem:[#allocation27 + $0x10] sm:$0xff]   ;;  %v12993_v5 = vld [vmem:[%s17107_s21 + $0x1] ss:$0 sm:$0xff] }
0x1bf8   :  { %14274 = vmatpush3.bf16.msra.mxu0 %v14883_v8 }
0x1bf9   :  { %v8937_v53 = vsel %vm584_vm1, %v8931_v40, 0.0  ;;  %14287 = vmatprep.subr.bf16.mxu0 %v15684_v0 }
0x1bfa   :  { %8938 = vadd.xlane.f32.xlu1 %v8937_v53 }
0x1c7f   :  { %v8936_v54 = vpop.xlane.xlu0 %8935 }
0x1c80   :  { %v8940_v11 = vmul.f32 0.03125, %v8936_v54 }
0x1c82   :  { %v8942_v51 = vsub.f32 %v8930_v37, %v8940_v11 }
0x1c83   :  { %v8939_v52 = vpop.xlane.xlu1 %8938 }
0x1c84   :  { %v8941_v60 = vmul.f32 0.03125, %v8939_v52  ;;  %v8944_v57 = vmul.f32 %v8942_v51, %v8942_v51 }
0x1c86   :  { %v8943_v30 = vsub.f32 %v8931_v40, %v8941_v60  ;;  %v8946_v49 = vsel %vm584_vm1, %v8944_v57, 0.0 }
0x1c87   :  { %8947 = vadd.xlane.f32.xlu0 %v8946_v49 }
0x1c88   :  { %v8945_v41 = vmul.f32 %v8943_v30, %v8943_v30 }
0x1c8a   :  { %v8949_v26 = vsel %vm584_vm1, %v8945_v41, 0.0 }
0x1c8b   :  { %8950 = vadd.xlane.f32.xlu1 %v8949_v26  ;;  %v13002_v26 = vld [vmem:[%s17108_s29 + $0x1] ss:$0 sm:$0xff] }
0x1d10   :  { %v8948_v61 = vpop.xlane.xlu0 %8947 }
0x1d11   :  { %v8952_v32 = vmul.f32 0.03125, %v8948_v61 }
0x1d13   :  { %v8954_v31 = vadd.f32 1e-05, %v8952_v32 }
0x1d14   :  { %v8951_v23 = vpop.xlane.xlu1 %8950 }
0x1d15   :  { %15137 = vrsqrt.f32 %v8954_v31  ;;  %v8953_v2 = vmul.f32 0.03125, %v8951_v23 }
0x1d17   :  { %v8955_v28 = vadd.f32 1e-05, %v8953_v2 }
0x1d19   :  { %15139 = vrsqrt.f32 %v8955_v28 }
0x1d22   :  { %v15138_v38 = vpop.eup %15137 }
0x1d23   :  { %v8958_v56 = vmul.f32 %v15138_v38, %v8942_v51 }
0x1d25   :  { %v8966_v12 = vmul.f32 %v12985_v48, %v8958_v56 }
0x1d26   :  { %v15140_v46 = vpop.eup %15139 }
0x1d27   :  { %v8959_v22 = vmul.f32 %v15140_v46, %v8943_v30  ;;  %v16752_v35 = vadd.f32 %v12986_v7, %v8966_v12 }
0x1d29   :  { %v8967_v59 = vmul.f32 %v12985_v48, %v8959_v22 }
0x1d2b   :  { %v16754_v4 = vadd.f32 %v12986_v7, %v8967_v59 }
0x1d2d   :  { %v8976_v25 = vpack.c.bf16 %v16754_v4, %v16752_v35 }
0x1d2f   :  { %14276 = vmatmul.mubr.msk.bf16.vlgmr.msra.gmra.mxu0 %vm584_vm1, %v8976_v25  ;;  %14284 = vmatmul.mubr.msk.bf16.vlgmr.msra.gmra.mxu1 %vm584_vm1, %v8976_v25 }
0x1d30   :  { %14288 = vmatpush3.bf16.msra.mxu0 %v14885_v43  ;;  %14291 = vmatprep.mubr.msk.bf16.mxu0 %vm15685_vm0, %v15684_v0 }
0x1d31   :  { %14289 = vmatprep.subr.bf16.mxu0 %v15684_v0 }
0x1d34   :  { %14290 = vmatpush3.bf16.msra.mxu0 %v14886_v33 }
0x1d37   :  { %14292 = vmatmul.mubr.msk.bf16.vlgmr.msra.gmra.mxu0 %vm584_vm1, %v8976_v25 }
0x1def   :  { %v9039_v19 = vpop.f32.mrf.mxu0  ;;  %v9105_v21 = vpop.f32.mrf.mxu1 }
0x1df0   :  { %v9040_v37 = vadd.f32 %v12988_v55, %v9039_v19  ;;  %v9106_v11 = vadd.f32 %v12993_v5, %v9105_v21 }
0x1df1   :  { %v14277_v9 = vpop.f32.mrf.mxu0  ;;  %v14285_v20 = vpop.f32.mrf.mxu1 }
0x1df2   :  { %v9178_v60 = vmul.f32 %v16080_v47, %v9040_v37  ;;  %v9180_v23 = vmul.f32 %v16092_v63, %v9040_v37  ;;  %v9182_v28 = vmul.f32 %v16096_v1, %v9040_v37  ;;  %v9184_v12 = vmul.f32 %v16107_v13, %v9040_v37 }
0x1df3   :  { %v9042_v42 = vpop.f32.mrf.mxu0  ;;  %v9108_v40 = vpop.f32.mrf.mxu1 }
0x1df4   :  { %v9043_v53 = vadd.f32 %v12988_v55, %v9042_v42  ;;  %v9109_v54 = vadd.f32 %v12993_v5, %v9108_v40 }
0x1df5   :  { %v14278_v51 = vpop.f32.mrf.mxu0  ;;  %v14286_v52 = vpop.f32.mrf.mxu1 }
0x1df6   :  { %v9179_v57 = vmul.f32 %v16080_v47, %v9043_v53  ;;  %v9190_v30 = vpack.c.bf16 %v9109_v54, %v9106_v11  ;;  %v9181_v8 = vmul.f32 %v16092_v63, %v9043_v53  ;;  %v9183_v61 = vmul.f32 %v16096_v1, %v9043_v53 }
0x1df7   :  { %v9171_v49 = vpop.f32.mrf.mxu0  ;;  %v9185_v46 = vmul.f32 %v16107_v13, %v9043_v53 }
0x1df8   :  { %v9186_v41 = vpack.c.bf16 %v9179_v57, %v9178_v60  ;;  %14378 = vmatprep.subr.msk.bf16.mxu1 %vm584_vm1, %v9190_v30  ;;  %v9204_v62 = vsel %vm584_vm1, %v9190_v30, 0  ;;  %v9172_v32 = vadd.f32 %v13002_v26, %v9171_v49  ;;  %v9187_v56 = vpack.c.bf16 %v9181_v8, %v9180_v23 }
0x1df9   :  { %v14293_v58 = vpop.f32.mrf.mxu0  ;;  %14296 = vmatpush3.bf16.xpose.msra.mxu1 %v9204_v62  ;;  %v9188_v48 = vpack.c.bf16 %v9183_v61, %v9182_v28  ;;  %v9189_v22 = vpack.c.bf16 %v9185_v46, %v9184_v12 }
0x1dfa   :  { %14297 = vmatprep.mubr.msk.bf16.mxu1 %vm584_vm1, %v9186_v41  ;;  %14315 = vmatprep.subr.bf16.mxu1 %v15684_v0 }
0x1dfb   :  { %v9174_v44 = vpop.f32.mrf.mxu0 }
0x1dfc   :  { %v9175_v31 = vadd.f32 %v13002_v26, %v9174_v44 }
0x1dfd   :  { %v14294_v2 = vpop.f32.mrf.mxu0 }
0x1dfe   :  { %v9379_v38 = vpack.c.bf16 %v9175_v31, %v9172_v32 }
0x1e00   :  { %14305 = vmatprep.subr.bf16.mxu0 %v9379_v38  ;;  %14298 = vmatmul.mubr.msk.bf16.vlgmr.msra.gmra.mxu1 %vm584_vm1, %v9187_v56 }
0x1e01   :  { %14306 = vmatpush3.bf16.msra.mxu0 %v9379_v38  ;;  %14301 = vmatprep.mubr.msk.bf16.mxu1 %vm584_vm1, %v9188_v48 }
0x1e08   :  { %14302 = vmatmul.mubr.msk.bf16.gmra.mxu1 %vm584_vm1, %v9189_v22 }
0x1e09   :  { %14319 = vmatprep.mubr.msk.bf16.mxu1 %vm15685_vm0, %v15684_v0 }
0x1ec0   :  { %v14299_v7 = vpop.f32.mrf.mxu1 }
0x1ec1   :  { %v9273_v43 = vmul.f32 0.35355338, %v14299_v7 }
0x1ec2   :  { %v9240_v59 = vpop.f32.mrf.mxu1 }
0x1ec3   :  { %v9271_v25 = vmul.f32 0.35355338, %v9240_v59  ;;  %v9281_v37 = vadd.f32 %v9273_v43, %v16118_v18 }
0x1ec4   :  { %v14300_v33 = vpop.f32.mrf.mxu1 }
0x1ec5   :  { %v9279_v55 = vadd.f32 %v9271_v25, %v16118_v18  ;;  %v9274_v19 = vmul.f32 0.35355338, %v14300_v33  ;;  %v9293_v51 = vsel %vm1023_vm6, %v9281_v37, -inf }
0x1ec6   :  { %v9243_v21 = vpop.f32.mrf.mxu1 }
0x1ec7   :  { %v9272_v9 = vmul.f32 0.35355338, %v9243_v21  ;;  %v9287_v20 = vsel %vm1023_vm6, %v9279_v55, -inf  ;;  %v9282_v53 = vadd.f32 %v9274_v19, %v16124_v24 }
0x1ec8   :  { %9288 = vmax.xlane.f32.xlu0 %v9287_v20  ;;  %v14303_v5 = vpop.f32.mrf.mxu1 }
0x1ec9   :  { %v9280_v42 = vadd.f32 %v9272_v9, %v16124_v24  ;;  %v9277_v54 = vmul.f32 0.35355338, %v14303_v5  ;;  %v9296_v49 = vsel %vm1023_vm6, %v9282_v53, -inf }
0x1eca   :  { %v9256_v40 = vpop.f32.mrf.mxu1 }
0x1ecb   :  { %v9275_v11 = vmul.f32 0.35355338, %v9256_v40  ;;  %v9290_v52 = vsel %vm1023_vm6, %v9280_v42, -inf  ;;  %v9285_v62 = vadd.f32 %v9277_v54, %v16118_v18 }
0x1ecc   :  { %9294 = vmax.xlane.f32.xlu0 %v9293_v51  ;;  %9291 = vmax.xlane.f32.xlu1 %v9290_v52  ;;  %v14304_v60 = vpop.f32.mrf.mxu1 }
0x1ecd   :  { %v9283_v57 = vadd.f32 %v9275_v11, %v16118_v18  ;;  %v9278_v41 = vmul.f32 0.35355338, %v14304_v60  ;;  %v9305_v44 = vsel %vm1023_vm6, %v9285_v62, -inf }
0x1ece   :  { %v9259_v30 = vpop.f32.mrf.mxu1 }
0x1ecf   :  { %v9276_v26 = vmul.f32 0.35355338, %v9259_v30  ;;  %v9299_v58 = vsel %vm1023_vm6, %v9283_v57, -inf  ;;  %v9286_v32 = vadd.f32 %v9278_v41, %v16124_v24 }
0x1ed0   :  { %9297 = vmax.xlane.f32.xlu1 %v9296_v49  ;;  %9300 = vmax.xlane.f32.xlu0 %v9299_v58 }
0x1ed1   :  { %v9284_v8 = vadd.f32 %v9276_v26, %v16124_v24  ;;  %v9308_v31 = vsel %vm1023_vm6, %v9286_v32, -inf }
0x1ed3   :  { %v9302_v61 = vsel %vm1023_vm6, %v9284_v8, -inf }
0x1ed4   :  { %9306 = vmax.xlane.f32.xlu0 %v9305_v44  ;;  %9303 = vmax.xlane.f32.xlu1 %v9302_v61 }
0x1ed8   :  { %9309 = vmax.xlane.f32.xlu1 %v9308_v31 }
0x1f51   :  { %v9289_v23 = vpop.xlane.xlu0 %9288 }
0x1f52   :  { %v9311_v2 = vsub.f32 %v9279_v55, %v9289_v23 }
0x1f54   :  { %v9319_v28 = vmul.f32 1.442695, %v9311_v2 }
0x1f55   :  { %v9295_v38 = vpop.xlane.xlu0 %9294  ;;  %v9292_v18 = vpop.xlane.xlu1 %9291 }
0x1f56   :  { %15141 = vpow2.f32 %v9319_v28  ;;  %v9313_v56 = vsub.f32 %v9281_v37, %v9295_v38  ;;  %v9312_v48 = vsub.f32 %v9280_v42, %v9292_v18 }
0x1f58   :  { %v9323_v46 = vmul.f32 1.442695, %v9313_v56  ;;  %v9321_v12 = vmul.f32 1.442695, %v9312_v48 }
0x1f59   :  { %v9298_v22 = vpop.xlane.xlu1 %9297  ;;  %v9301_v7 = vpop.xlane.xlu0 %9300 }
0x1f5a   :  { %15143 = vpow2.f32 %v9323_v46  ;;  %v9314_v59 = vsub.f32 %v9282_v53, %v9298_v22  ;;  %v9315_v24 = vsub.f32 %v9283_v57, %v9301_v7 }
0x1f5b   :  { %15145 = vpow2.f32 %v9321_v12 }
0x1f5c   :  { %v9325_v43 = vmul.f32 1.442695, %v9314_v59  ;;  %v9327_v25 = vmul.f32 1.442695, %v9315_v24 }
0x1f5d   :  { %v9307_v33 = vpop.xlane.xlu0 %9306  ;;  %v9304_v19 = vpop.xlane.xlu1 %9303 }
0x1f5e   :  { %15147 = vpow2.f32 %v9325_v43  ;;  %v9317_v55 = vsub.f32 %v9285_v62, %v9307_v33  ;;  %v9316_v21 = vsub.f32 %v9284_v8, %v9304_v19 }
0x1f5f   :  { %15149 = vpow2.f32 %v9327_v25 }
0x1f60   :  { %v9331_v9 = vmul.f32 1.442695, %v9317_v55  ;;  %v9329_v20 = vmul.f32 1.442695, %v9316_v21 }
0x1f61   :  { %v9310_v37 = vpop.xlane.xlu1 %9309 }
0x1f62   :  { %15151 = vpow2.f32 %v9331_v9  ;;  %v9318_v5 = vsub.f32 %v9286_v32, %v9310_v37 }
0x1f63   :  { %v15142_v42 = vpop.eup %15141  ;;  %15153 = vpow2.f32 %v9329_v20 }
0x1f64   :  { %v9333_v40 = vmul.f32 1.442695, %v9318_v5  ;;  %v9335_v53 = vsel %vm1023_vm6, %v15142_v42, 0.0 }
0x1f65   :  { %9336 = vadd.xlane.f32.xlu0 %v9335_v53  ;;  %v14887_v53 = vld [vmem:[%s17109_s27 + $0x18] sm:$0xff]  }
0x1f66   :  { %15155 = vpow2.f32 %v9333_v40  ;;  %14316 = vmatpush3.bf16.msra.mxu1 %v14887_v53 }
0x1f67   :  { %v15144_v54 = vpop.eup %15143  ;;  %14317 = vmatprep.subr.bf16.mxu1 %v15684_v0 }
0x1f68   :  { %v15146_v11 = vpop.eup %15145  ;;  %v9341_v51 = vsel %vm1023_vm6, %v15144_v54, 0.0 }
0x1f69   :  { %9342 = vadd.xlane.f32.xlu0 %v9341_v51  ;;  %v9338_v52 = vsel %vm1023_vm6, %v15146_v11, 0.0 }
0x1f6a   :  { %9339 = vadd.xlane.f32.xlu1 %v9338_v52 }
0x1f6b   :  { %v15148_v60 = vpop.eup %15147 }
0x1f6c   :  { %v15150_v57 = vpop.eup %15149  ;;  %v9344_v30 = vsel %vm1023_vm6, %v15148_v60, 0.0 }
0x1f6d   :  { %v9347_v49 = vsel %vm1023_vm6, %v15150_v57, 0.0 }
0x1f6e   :  { %9348 = vadd.xlane.f32.xlu0 %v9347_v49  ;;  %9345 = vadd.xlane.f32.xlu1 %v9344_v30 }
0x1f6f   :  { %v15152_v41 = vpop.eup %15151 }
0x1f70   :  { %v15154_v26 = vpop.eup %15153  ;;  %v9353_v58 = vsel %vm1023_vm6, %v15152_v41, 0.0 }
0x1f71   :  { %v9350_v62 = vsel %vm1023_vm6, %v15154_v26, 0.0 }
0x1f72   :  { %9354 = vadd.xlane.f32.xlu0 %v9353_v58  ;;  %9351 = vadd.xlane.f32.xlu1 %v9350_v62 }
0x1f73   :  { %v15156_v8 = vpop.eup %15155 }
0x1f74   :  { %v9356_v44 = vsel %vm1023_vm6, %v15156_v8, 0.0 }
0x1f76   :  { %9357 = vadd.xlane.f32.xlu1 %v9356_v44 }
0x1fee   :  { %v9337_v61 = vpop.xlane.xlu0 %9336 }
0x1fef   :  { %15157 = vrcp.f32 %v9337_v61 }
0x1ff2   :  { %v9343_v32 = vpop.xlane.xlu0 %9342 }
0x1ff3   :  { %v9340_v31 = vpop.xlane.xlu1 %9339 }
0x1ff4   :  { %15159 = vrcp.f32 %v9340_v31 }
0x1ff5   :  { %15161 = vrcp.f32 %v9343_v32 }
0x1ff7   :  { %v9349_v23 = vpop.xlane.xlu0 %9348  ;;  %v9346_v2 = vpop.xlane.xlu1 %9345 }
0x1ff8   :  { %15163 = vrcp.f32 %v9346_v2 }
0x1ff9   :  { %15165 = vrcp.f32 %v9349_v23 }
0x1ffb   :  { %v9355_v28 = vpop.xlane.xlu0 %9354  ;;  %v9352_v38 = vpop.xlane.xlu1 %9351 }
0x1ffc   :  { %15167 = vrcp.f32 %v9352_v38  ;;  %v15158_v18 = vpop.eup %15157 }
0x1ffd   :  { %15169 = vrcp.f32 %v9355_v28  ;;  %v9360_v46 = vmul.f32 %v15158_v18, %v15142_v42 }
0x1fff   :  { %v9358_v56 = vpop.xlane.xlu1 %9357 }
0x2000   :  { %15171 = vrcp.f32 %v9358_v56 }
0x2001   :  { %v15160_v48 = vpop.eup %15159 }
0x2002   :  { %v9362_v12 = vmul.f32 %v15160_v48, %v15146_v11  ;;  %v15162_v22 = vpop.eup %15161  ;;  %v13019_v48 = vld [vmem:[%s17110_s18 + $0x1] ss:$0 sm:$0xff] }
0x2003   :  { %v9364_v24 = vmul.f32 %v15162_v22, %v15144_v54  ;;  %v14888_v54 = vld [vmem:[%s17109_s27 + $0x10] sm:$0xff]  }
0x2004   :  { %v9375_v7 = vpack.c.bf16 %v9362_v12, %v9360_v46  ;;  %14318 = vmatpush3.bf16.msra.mxu1 %v14888_v54  ;;  %v9609_v54 = vld [vmem:[#allocation30 + $0x180] sm:$0xff] }
0x2005   :  { %v15164_v59 = vpop.eup %15163 }
0x2006   :  { %14307 = vmatprep.mubr.msk.bf16.mxu0 %vm1023_vm6, %v9375_v7  ;;  %v9366_v43 = vmul.f32 %v15164_v59, %v15148_v60  ;;  %v15166_v25 = vpop.eup %15165 }
0x2007   :  { %v9368_v21 = vmul.f32 %v15166_v25, %v15150_v57 }
0x2008   :  { %v9376_v33 = vpack.c.bf16 %v9366_v43, %v9364_v24 }
0x2009   :  { %v15168_v19 = vpop.eup %15167 }
0x200a   :  { %v15170_v55 = vpop.eup %15169  ;;  %14308 = vmatmul.mubr.msk.bf16.vlgmr.msra.gmra.mxu0 %vm1023_vm6, %v9376_v33  ;;  %v9370_v9 = vmul.f32 %v15168_v19, %v15154_v26 }
0x200b   :  { %v9372_v5 = vmul.f32 %v15170_v55, %v15152_v41 }
0x200c   :  { %v9377_v37 = vpack.c.bf16 %v9370_v9, %v9368_v21 }
0x200d   :  { %v15172_v20 = vpop.eup %15171 }
0x200e   :  { %v9374_v42 = vmul.f32 %v15172_v20, %v15156_v8  ;;  %14311 = vmatprep.mubr.msk.bf16.mxu0 %vm1023_vm6, %v9377_v37  ;;  %v16836_v37 = vadd.f32 %v16528_v10, %v16407_v36  ;;  %v9617_v36 = vld [vmem:[#allocation30 + $0x1c0] sm:$0xff]  ;;  %v9610_v10 = vld [vmem:[#allocation30 + $0x188] sm:$0xff] }
0x2010   :  { %v9378_v40 = vpack.c.bf16 %v9374_v42, %v9372_v5  ;;  %v6058_v42 = vsel %vm584_vm1, %v16836_v37, 0.0 }
0x2012   :  { %14312 = vmatmul.mubr.msk.bf16.gmra.mxu0 %vm1023_vm6, %v9378_v40  ;;  %v16843_v40 = vadd.f32 %v16530_v6, %v16409_v50  ;;  %v9601_v50 = vld [vmem:[#allocation30 + $0x140] sm:$0xff]  ;;  %v9594_v6 = vld [vmem:[#allocation30 + $0x108] sm:$0xff] }
0x2013   :  { %9905 = vmatprep.mubr.bf16.mxu0 %v15687_v27 }
0x2014   :  { %v6061_v53 = vsel %vm584_vm1, %v16843_v40, 0.0 }
0x20ca   :  { %v14309_v11 = vpop.f32.mrf.mxu0 }
0x20cb   :  { %v9461_v41 = vmul.f32 %v14309_v11, %v16092_v63  ;;  %v13046_v11 = vcombine.high %v9609_v54, %v9617_v36 }
0x20cc   :  { %v9426_v51 = vpop.f32.mrf.mxu0 }
0x20cd   :  { %v9457_v30 = vmul.f32 %v16080_v47, %v9426_v51  ;;  %v9618_v51 = vld [vmem:[#allocation30 + $0x1c8] sm:$0xff]  ;;  %9885 = vmatprep.subr.bf16.mxu0 %v13046_v11 }
0x20ce   :  { %v14310_v52 = vpop.f32.mrf.mxu0 }
0x20cf   :  { %v9463_v8 = vadd.f32 %v9461_v41, %v9457_v30  ;;  %v9462_v44 = vmul.f32 %v14310_v52, %v16092_v63  ;;  %v13045_v52 = vcombine.low %v9609_v54, %v9617_v36  ;;  %v9593_v30 = vld [vmem:[#allocation30 + $0x100] sm:$0xff]  ;;  %v9602_v41 = vld [vmem:[#allocation30 + $0x148] sm:$0xff] }
0x20d0   :  { %v9429_v60 = vpop.f32.mrf.mxu0 }
0x20d1   :  { %v9458_v26 = vmul.f32 %v16080_v47, %v9429_v60  ;;  %v13047_v60 = vcombine.low %v9610_v10, %v9618_v51  ;;  %9886 = vmatpush1.bf16.msra.mxu0 %v13045_v52  ;;  %v9605_v52 = vld [vmem:[#allocation30 + $0x160] sm:$0xff] }
0x20d2   :  { %v14313_v57 = vpop.f32.mrf.mxu0 }
0x20d3   :  { %v9464_v32 = vadd.f32 %v9462_v44, %v9458_v26  ;;  %v9469_v2 = vmul.f32 %v14313_v57, %v16107_v13  ;;  %v13048_v57 = vcombine.high %v9610_v10, %v9618_v51  ;;  %v13029_v26 = vcombine.low %v9593_v30, %v9601_v50  ;;  %v9619_v44 = vld [vmem:[#allocation30 + $0x1d0] sm:$0xff]  ;;  %v9597_v51 = vld [vmem:[#allocation30 + $0x120] sm:$0xff] }
0x20d4   :  { %v9442_v49 = vpop.f32.mrf.mxu0 }
0x20d5   :  { %v9465_v58 = vmul.f32 %v16096_v1, %v9442_v49  ;;  %9928 = vmatprep.subr.bf16.mxu1 %v13048_v57  ;;  %v13030_v49 = vcombine.high %v9593_v30, %v9601_v50  ;;  %v9606_v57 = vld [vmem:[#allocation30 + $0x168] sm:$0xff] }
0x20d6   :  { %v14314_v62 = vpop.f32.mrf.mxu0 }
0x20d7   :  { %v9467_v31 = vadd.f32 %v9465_v58, %v9463_v8  ;;  %v9470_v28 = vmul.f32 %v14314_v62, %v16107_v13  ;;  %v13031_v58 = vcombine.low %v9594_v6, %v9602_v41  ;;  %v13032_v62 = vcombine.high %v9594_v6, %v9602_v41  ;;  %9887 = vmatprep.subr.bf16.mxu0 %v13030_v49  ;;  %v9611_v8 = vld [vmem:[#allocation30 + $0x190] sm:$0xff] }
0x20d8   :  { %v9445_v61 = vpop.f32.mrf.mxu0  ;;  %9888 = vmatpush1.bf16.msra.mxu0 %v13029_v26  ;;  %v13038_v6 = vcombine.high %v9597_v51, %v9605_v52  ;;  %v9615_v41 = vld [vmem:[#allocation30 + $0x1b0] sm:$0xff] }
0x20d9   :  { %v9466_v23 = vmul.f32 %v16096_v1, %v9445_v61  ;;  %v9471_v18 = vadd.f32 %v9469_v2, %v9467_v31  ;;  %v9612_v61 = vld [vmem:[#allocation30 + $0x198] sm:$0xff]  ;;  %v9623_v26 = vld [vmem:[#allocation30 + $0x1f0] sm:$0xff] }
0x20da   :  { %v9620_v31 = vld [vmem:[#allocation30 + $0x1d8] sm:$0xff] }
0x20db   :  { %v9468_v38 = vadd.f32 %v9466_v23, %v9464_v32  ;;  %v13050_v32 = vcombine.high %v9611_v8, %v9619_v44  ;;  %v13049_v23 = vcombine.low %v9611_v8, %v9619_v44  ;;  %v13051_v2 = vcombine.low %v9612_v61, %v9620_v31 }
0x20dc   :  { %v13037_v8 = vcombine.low %v9597_v51, %v9605_v52  ;;  %v14913_v51 = vld [vmem:[#allocation31 + $0x448] sm:$0xff]  }
0x20dd   :  { %v9472_v56 = vadd.f32 %v9470_v28, %v9468_v38  ;;  %v13052_v28 = vcombine.high %v9612_v61, %v9620_v31  ;;  %9971 = vmatprep.subr.bf16.mxu0 %v13050_v32  ;;  %v13058_v61 = vcombine.high %v9615_v41, %v9623_v26  ;;  %v9599_v31 = vld [vmem:[#allocation30 + $0x130] sm:$0xff]  ;;  %v14914_v52 = vld [vmem:[#allocation31 + $0x4c8] sm:$0xff]  }
0x20df   :  { %v9473_v47 = vpack.c.bf16 %v9472_v56, %v9471_v18 }
0x20e1   :  { %14320 = vmatmul.mubr.msk.bf16.vlgmr.msra.gmra.mxu1 %vm584_vm1, %v9473_v47 }
0x20e2   :  { %9948 = vmatprep.mubr.bf16.mxu1 %v15687_v27  ;;  %9929 = vmatpush1.bf16.msra.mxu1 %v13047_v60  ;;  %v9598_v60 = vld [vmem:[#allocation30 + $0x128] sm:$0xff] }
0x20e3   :  { %9930 = vmatprep.subr.bf16.mxu1 %v13032_v62  ;;  %v13040_v49 = vcombine.high %v9598_v60, %v9606_v57  ;;  %v9624_v62 = vld [vmem:[#allocation30 + $0x1f8] sm:$0xff]  ;;  %v13039_v44 = vcombine.low %v9598_v60, %v9606_v57  ;;  %v14915_v60 = vld [vmem:[#allocation31 + $0x408] sm:$0xff]  }
0x20e4   :  { %v14916_v57 = vld [vmem:[#allocation31 + $0x488] sm:$0xff]  }
0x20e6   :  { %9931 = vmatpush1.bf16.msra.mxu1 %v13031_v58  ;;  %v9616_v58 = vld [vmem:[#allocation30 + $0x1b8] sm:$0xff] }
0x20e7   :  { %10014 = vmatprep.subr.bf16.mxu1 %v13052_v28  ;;  %v13060_v32 = vcombine.high %v9616_v58, %v9624_v62  ;;  %v9608_v28 = vld [vmem:[#allocation30 + $0x178] sm:$0xff] }
0x21a1   :  { %v9536_v46 = vpop.f32.mrf.mxu1 }
0x21a2   :  { %v9537_v63 = vadd.f32 %v13019_v48, %v9536_v46 }
0x21a3   :  { %v14321_v12 = vpop.f32.mrf.mxu1 }
0x21a4   :  { %v9543_v22 = vadd.f32 %v9537_v63, %v16752_v35 }
0x21a5   :  { %v9539_v7 = vpop.f32.mrf.mxu1 }
0x21a6   :  { %v9540_v1 = vadd.f32 %v13019_v48, %v9539_v7  ;;  %v9549_v59 = vsel %vm584_vm1, %v9543_v22, 0.0 }
0x21a7   :  { %9550 = vadd.xlane.f32.xlu0 %v9549_v59  ;;  %v14322_v13 = vpop.f32.mrf.mxu1 }
0x21a8   :  { %v9544_v24 = vadd.f32 %v9540_v1, %v16754_v4  ;;  %v13026_v13 = vld [vmem:[%s17112_s26 + $0x1] ss:$0 sm:$0xff] }
0x21aa   :  { %v9552_v43 = vsel %vm584_vm1, %v9544_v24, 0.0 }
0x21ab   :  { %9553 = vadd.xlane.f32.xlu1 %v9552_v43  ;;  %v9595_v43 = vld [vmem:[#allocation30 + $0x110] sm:$0xff] }
0x2230   :  { %v9551_v25 = vpop.xlane.xlu0 %9550 }
0x2231   :  { %v9555_v33 = vmul.f32 0.03125, %v9551_v25  ;;  %v9603_v25 = vld [vmem:[#allocation30 + $0x150] sm:$0xff] }
0x2232   :  { %v13033_v54 = vcombine.low %v9595_v43, %v9603_v25 }
0x2233   :  { %v9557_v19 = vsub.f32 %v9543_v22, %v9555_v33  ;;  %v13025_v22 = vld [vmem:[%s17111_s23 + $0x1] ss:$0 sm:$0xff]  ;;  %v9596_v33 = vld [vmem:[#allocation30 + $0x118] sm:$0xff] }
0x2234   :  { %v9554_v55 = vpop.xlane.xlu1 %9553 }
0x2235   :  { %v9556_v21 = vmul.f32 0.03125, %v9554_v55  ;;  %v9559_v9 = vmul.f32 %v9557_v19, %v9557_v19  ;;  %v9604_v55 = vld [vmem:[#allocation30 + $0x158] sm:$0xff] }
0x2236   :  { %v13035_v36 = vcombine.low %v9596_v33, %v9604_v55 }
0x2237   :  { %v9558_v20 = vsub.f32 %v9544_v24, %v9556_v21  ;;  %v9561_v35 = vsel %vm584_vm1, %v9559_v9, 0.0 }
0x2238   :  { %9562 = vadd.xlane.f32.xlu0 %v9561_v35 }
0x2239   :  { %v9560_v5 = vmul.f32 %v9558_v20, %v9558_v20 }
0x223b   :  { %v9564_v4 = vsel %vm584_vm1, %v9560_v5, 0.0  ;;  %v13034_v5 = vcombine.high %v9595_v43, %v9603_v25  ;;  %v14898_v43 = vld [vmem:[#allocation31 + $0x4e8] sm:$0xff]  }
0x223c   :  { %9565 = vadd.xlane.f32.xlu1 %v9564_v4  ;;  %6059 = vadd.xlane.f32.xlu0 %v6058_v42  ;;  %v9613_v4 = vld [vmem:[#allocation30 + $0x1a0] sm:$0xff]  ;;  %v14899_v25 = vld [vmem:[#allocation31 + $0x428] sm:$0xff]  }
0x223d   :  { %v9621_v42 = vld [vmem:[#allocation30 + $0x1e0] sm:$0xff] }
0x223e   :  { %v13054_v10 = vcombine.high %v9613_v4, %v9621_v42  ;;  %v13053_v30 = vcombine.low %v9613_v4, %v9621_v42  ;;  %v14905_v4 = vld [vmem:[#allocation31 + $0x458] sm:$0xff]  }
0x223f   :  { %v14906_v42 = vld [vmem:[#allocation31 + $0x4d8] sm:$0xff]  }
0x2240   :  { %6062 = vadd.xlane.f32.xlu1 %v6061_v53  ;;  %v9614_v53 = vld [vmem:[#allocation30 + $0x1a8] sm:$0xff] }
0x22c1   :  { %v9563_v38 = vpop.xlane.xlu0 %9562 }
0x22c2   :  { %v9567_v18 = vmul.f32 0.03125, %v9563_v38  ;;  %v13057_v38 = vcombine.low %v9615_v41, %v9623_v26  ;;  %v14921_v41 = vld [vmem:[#allocation31 + $0x578] sm:$0xff]  }
0x22c3   :  { %v14922_v26 = vld [vmem:[#allocation31 + $0x5f8] sm:$0xff]  }
0x22c4   :  { %v9569_v56 = vadd.f32 1e-05, %v9567_v18  ;;  %v13059_v18 = vcombine.low %v9616_v58, %v9624_v62  ;;  %v16880_v58 = vld [vmem:[%s17113_s28 + $0x10] sm:$0xff] }
0x22c5   :  { %v9566_v47 = vpop.xlane.xlu1 %9565 }
0x22c6   :  { %15173 = vrsqrt.f32 %v9569_v56  ;;  %v9568_v48 = vmul.f32 0.03125, %v9566_v47 }
0x22c8   :  { %v9570_v46 = vadd.f32 1e-05, %v9568_v48 }
0x22ca   :  { %15175 = vrsqrt.f32 %v9570_v46 }
0x22d3   :  { %v15174_v63 = vpop.eup %15173 }
0x22d4   :  { %v9573_v12 = vmul.f32 %v15174_v63, %v9557_v19  ;;  %v13036_v19 = vcombine.high %v9596_v33, %v9604_v55  ;;  %v14889_v63 = vld [vmem:[#allocation31 + $0x478] sm:$0xff]   ;;  %v14900_v33 = vld [vmem:[#allocation31 + $0x4a8] sm:$0xff]   ;;  %v14901_v55 = vld [vmem:[#allocation31 + $0x460] sm:$0xff]  }
0x22d6   :  { %v9581_v1 = vmul.f32 %v13025_v22, %v9573_v12  ;;  %v14890_v12 = vld [vmem:[#allocation31 + $0x4f8] sm:$0xff]  }
0x22d7   :  { %v15176_v7 = vpop.eup %15175 }
0x22d8   :  { %v9574_v59 = vmul.f32 %v15176_v7, %v9558_v20  ;;  %v16849_v21 = vadd.f32 %v13026_v13, %v9581_v1  ;;  %v9622_v20 = vld [vmem:[#allocation30 + $0x1e8] sm:$0xff]  ;;  %v14892_v7 = vld [vmem:[#allocation31 + $0x4b8] sm:$0xff]   ;;  %v14893_v1 = vld [vmem:[#allocation31 + $0x470] sm:$0xff]  }
0x22d9   :  { %v13056_v11 = vcombine.high %v9614_v53, %v9622_v20  ;;  %v13055_v50 = vcombine.low %v9614_v53, %v9622_v20  ;;  %v14907_v53 = vld [vmem:[#allocation31 + $0x418] sm:$0xff]  }
0x22da   :  { %v9582_v24 = vmul.f32 %v13025_v22, %v9574_v59  ;;  %v14891_v22 = vld [vmem:[#allocation31 + $0x438] sm:$0xff]   ;;  %v14894_v59 = vld [vmem:[#allocation31 + $0x4f0] sm:$0xff]  }
0x22db   :  { %v14908_v20 = vld [vmem:[#allocation31 + $0x498] sm:$0xff]  }
0x22dc   :  { %v16851_v9 = vadd.f32 %v13026_v13, %v9582_v24  ;;  %v14895_v13 = vld [vmem:[#allocation31 + $0x430] sm:$0xff]  }
0x22dd   :  { %v14896_v24 = vld [vmem:[#allocation31 + $0x4b0] sm:$0xff]  }
0x22de   :  { %v16855_v35 = vpack.c.bf16 %v16851_v9, %v16849_v21 }
0x22e0   :  { %13061 = vmatmul.mubr.msk.bf16.vlgmr.msra.gmra.mxu0 %vm584_vm1, %v16855_v35  ;;  %13062 = vmatmul.mubr.msk.bf16.vlgmr.msra.gmra.mxu1 %vm584_vm1, %v16855_v35 }
0x22e1   :  { %9972 = vmatpush1.bf16.msra.mxu0 %v13049_v23  ;;  %10015 = vmatpush1.bf16.msra.mxu1 %v13051_v2  ;;  %v9607_v23 = vld [vmem:[#allocation30 + $0x170] sm:$0xff]  ;;  %v9600_v2 = vld [vmem:[#allocation30 + $0x138] sm:$0xff] }
0x22e2   :  { %9973 = vmatprep.subr.bf16.mxu0 %v13034_v5  ;;  %10016 = vmatprep.subr.bf16.mxu1 %v13036_v19  ;;  %v13042_v56 = vcombine.high %v9599_v31, %v9607_v23  ;;  %v13044_v47 = vcombine.high %v9600_v2, %v9608_v28  ;;  %v13041_v48 = vcombine.low %v9599_v31, %v9607_v23  ;;  %v14902_v5 = vld [vmem:[#allocation31 + $0x4e0] sm:$0xff]  }
0x22e3   :  { %9991 = vmatprep.mubr.bf16.mxu0 %v15687_v27  ;;  %10034 = vmatprep.mubr.bf16.mxu1 %v15687_v27  ;;  %v13043_v46 = vcombine.low %v9600_v2, %v9608_v28  ;;  %v14903_v19 = vld [vmem:[#allocation31 + $0x420] sm:$0xff]   ;;  %v9641_v31 = vrot.slane %v16880_v58, %v16220_v17 }
0x22e5   :  { %9974 = vmatpush1.bf16.msra.mxu0 %v13033_v54  ;;  %10017 = vmatpush1.bf16.msra.mxu1 %v13035_v36  ;;  %v14909_v54 = vld [vmem:[#allocation31 + $0x450] sm:$0xff]  }
0x22e6   :  { %10057 = vmatprep.subr.bf16.mxu0 %v13054_v10  ;;  %10100 = vmatprep.subr.bf16.mxu1 %v13056_v11  ;;  %v14910_v36 = vld [vmem:[#allocation31 + $0x4d0] sm:$0xff]  }
0x22e7   :  { %v14911_v10 = vld [vmem:[#allocation31 + $0x410] sm:$0xff]  }
0x22e8   :  { %13063 = vmatmul.mubr.msk.bf16.vlgmr.msra.gmra.mxu0 %vm584_vm1, %v16855_v35  ;;  %13064 = vmatmul.mubr.msk.bf16.vlgmr.msra.gmra.mxu1 %vm584_vm1, %v16855_v35  ;;  %v14912_v11 = vld [vmem:[#allocation31 + $0x490] sm:$0xff]  }
0x22e9   :  { %10058 = vmatpush1.bf16.msra.mxu0 %v13053_v30  ;;  %10101 = vmatpush1.bf16.msra.mxu1 %v13055_v50  ;;  %v14917_v30 = vld [vmem:[#allocation31 + $0x440] sm:$0xff]  }
0x22ea   :  { %10059 = vmatprep.subr.bf16.mxu0 %v13038_v6  ;;  %10102 = vmatprep.subr.bf16.mxu1 %v13040_v49  ;;  %v14918_v50 = vld [vmem:[#allocation31 + $0x4c0] sm:$0xff]  }
0x22eb   :  { %10077 = vmatprep.mubr.bf16.mxu0 %v15687_v27  ;;  %10120 = vmatprep.mubr.bf16.mxu1 %v15687_v27  ;;  %v14919_v6 = vld [vmem:[#allocation31 + $0x400] sm:$0xff]  }
0x22ec   :  { %v14920_v49 = vld [vmem:[#allocation31 + $0x480] sm:$0xff]  }
0x22ed   :  { %10060 = vmatpush1.bf16.msra.mxu0 %v13037_v8  ;;  %10103 = vmatpush1.bf16.msra.mxu1 %v13039_v44  ;;  %v9637_v44 = vrot.slane %v16880_v58, %v16211_v14 }
0x22ee   :  { %10143 = vmatprep.subr.bf16.mxu0 %v13058_v61  ;;  %10186 = vmatprep.subr.bf16.mxu1 %v13060_v32  ;;  %v9645_v61 = vrot.slane %v16880_v58, %v16214_v15  ;;  %v9633_v32 = vrot.slane %v16880_v58, %v16217_v16 }
0x22f0   :  { %13065 = vmatmul.mubr.msk.bf16.vlgmr.msra.gmra.mxu0 %vm584_vm1, %v16855_v35  ;;  %13066 = vmatmul.mubr.msk.bf16.vlgmr.msra.gmra.mxu1 %vm584_vm1, %v16855_v35 }
0x22f1   :  { %10144 = vmatpush1.bf16.msra.mxu0 %v13057_v38  ;;  %10187 = vmatpush1.bf16.msra.mxu1 %v13059_v18 }
0x22f2   :  { %10145 = vmatprep.subr.bf16.mxu0 %v13042_v56  ;;  %10188 = vmatprep.subr.bf16.mxu1 %v13044_v47 }
0x22f3   :  { %10163 = vmatprep.mubr.bf16.mxu0 %v15687_v27  ;;  %10206 = vmatprep.mubr.bf16.mxu1 %v15687_v27  ;;  %v14897_v27 = vld [vmem:[#allocation31 + $0x468] sm:$0xff]  }
0x22f5   :  { %10146 = vmatpush1.bf16.msra.mxu0 %v13041_v48  ;;  %10189 = vmatpush1.bf16.msra.mxu1 %v13043_v46 }
0x22f6   :  { %13865 = vmatprep.subr.bf16.mxu0 %v14889_v63  ;;  %13887 = vmatprep.subr.bf16.mxu1 %v14890_v12 }
0x22f8   :  { %13067 = vmatmul.mubr.msk.bf16.vlgmr.msra.gmra.mxu0 %vm584_vm1, %v16855_v35  ;;  %13068 = vmatmul.mubr.msk.bf16.vlgmr.msra.gmra.mxu1 %vm584_vm1, %v16855_v35  ;;  %v14904_v35 = vld [vmem:[#allocation31 + $0x4a0] sm:$0xff]  }
0x22f9   :  { %13866 = vmatpush3.bf16.msra.mxu0 %v14891_v22  ;;  %13888 = vmatpush3.bf16.msra.mxu1 %v14892_v7 }
0x22fa   :  { %13867 = vmatprep.subr.bf16.mxu0 %v14893_v1  ;;  %13889 = vmatprep.subr.bf16.mxu1 %v14894_v59 }
0x22fd   :  { %13868 = vmatpush3.bf16.msra.mxu0 %v14895_v13  ;;  %13890 = vmatpush3.bf16.msra.mxu1 %v14896_v24 }
0x22fe   :  { %13869 = vmatprep.subr.bf16.mxu0 %v14897_v27  ;;  %13891 = vmatprep.subr.bf16.mxu1 %v14898_v43  ;;  %v9653_v43 = vrot.slane %v16880_v58, %v16234_v34 }
0x2301   :  { %13870 = vmatpush3.bf16.msra.mxu0 %v14899_v25  ;;  %13892 = vmatpush3.bf16.msra.mxu1 %v14900_v33  ;;  %v9661_v25 = vrot.slane %v16880_v58, %v16237_v45 }
0x2302   :  { %13871 = vmatprep.subr.bf16.mxu0 %v14901_v55  ;;  %13893 = vmatprep.subr.bf16.mxu1 %v14902_v5 }
0x2305   :  { %13872 = vmatpush3.bf16.msra.mxu0 %v14903_v19  ;;  %13894 = vmatpush3.bf16.msra.mxu1 %v14904_v35 }
0x2306   :  { %13873 = vmatprep.subr.bf16.mxu0 %v14905_v4  ;;  %13895 = vmatprep.subr.bf16.mxu1 %v14906_v42 }
0x2309   :  { %13874 = vmatpush3.bf16.msra.mxu0 %v14907_v53  ;;  %13896 = vmatpush3.bf16.msra.mxu1 %v14908_v20 }
0x230a   :  { %13875 = vmatprep.subr.bf16.mxu0 %v14909_v54  ;;  %13897 = vmatprep.subr.bf16.mxu1 %v14910_v36  ;;  %v14923_v36 = vld [vmem:[#allocation31 + $0x538] sm:$0xff]  }
0x230d   :  { %13876 = vmatpush3.bf16.msra.mxu0 %v14911_v10  ;;  %13898 = vmatpush3.bf16.msra.mxu1 %v14912_v11  ;;  %v14924_v10 = vld [vmem:[#allocation31 + $0x5b8] sm:$0xff]  }
0x230e   :  { %13877 = vmatprep.subr.bf16.mxu0 %v14913_v51  ;;  %13899 = vmatprep.subr.bf16.mxu1 %v14914_v52 }
0x2311   :  { %13878 = vmatpush3.bf16.msra.mxu0 %v14915_v60  ;;  %13900 = vmatpush3.bf16.msra.mxu1 %v14916_v57  ;;  %v14925_v57 = vld [vmem:[#allocation31 + $0x570] sm:$0xff]  }
0x2312   :  { %13879 = vmatprep.subr.bf16.mxu0 %v14917_v30  ;;  %13901 = vmatprep.subr.bf16.mxu1 %v14918_v50  ;;  %v14926_v30 = vld [vmem:[#allocation31 + $0x5f0] sm:$0xff]  }
0x2315   :  { %13880 = vmatpush3.bf16.msra.mxu0 %v14919_v6  ;;  %13902 = vmatpush3.bf16.msra.mxu1 %v14920_v49 }
0x2316   :  { %13909 = vmatprep.subr.bf16.mxu0 %v14921_v41  ;;  %13931 = vmatprep.subr.bf16.mxu1 %v14922_v26 }
0x23a0   :  { %v9907_v62 = vpop.f32.mrf.mxu0  ;;  %v9950_v8 = vpop.f32.mrf.mxu1 }
0x23a1   :  { %v9908_v46 = vadd.f32 %v9907_v62, %v9633_v32  ;;  %v9951_v63 = vadd.f32 %v9950_v8, %v9641_v31  ;;  %v14927_v8 = vld [vmem:[#allocation31 + $0x530] sm:$0xff]  }
0x23a2   :  { %v9909_v23 = vpop.f32.mrf.mxu0  ;;  %v9952_v2 = vpop.f32.mrf.mxu1 }
0x23a3   :  { %v9910_v18 = vadd.f32 %v9909_v23, %v9637_v44  ;;  %v9953_v56 = vadd.f32 %v9952_v2, %v9645_v61  ;;  %v10217_v35 = vmax.f32 %v9908_v46, 0.0  ;;  %v10219_v4 = vmax.f32 %v9951_v63, 0.0  ;;  %v14934_v46 = vld [vmem:[#allocation31 + $0x5e0] sm:$0xff]  }
0x23a4   :  { %v9911_v28 = vpop.f32.mrf.mxu0  ;;  %v9954_v38 = vpop.f32.mrf.mxu1 }
0x23a5   :  { %v9912_v47 = vadd.f32 %v9911_v28, %v9633_v32  ;;  %v9955_v48 = vadd.f32 %v9954_v38, %v9641_v31  ;;  %v10218_v33 = vmax.f32 %v9910_v18, 0.0  ;;  %v10220_v55 = vmax.f32 %v9953_v56, 0.0  ;;  %v14930_v28 = vld [vmem:[#allocation31 + $0x5e8] sm:$0xff]  }
0x23a6   :  { %v9913_v12 = vpop.f32.mrf.mxu0  ;;  %v9956_v22 = vpop.f32.mrf.mxu1  ;;  %v14931_v56 = vld [vmem:[#allocation31 + $0x528] sm:$0xff]  }
0x23a7   :  { %v9914_v7 = vadd.f32 %v9913_v12, %v9637_v44  ;;  %v9957_v1 = vadd.f32 %v9956_v22, %v9645_v61  ;;  %v10233_v59 = vmax.f32 %v9912_v47, 0.0  ;;  %v10235_v13 = vmax.f32 %v9955_v48, 0.0  ;;  %v14928_v44 = vld [vmem:[#allocation31 + $0x5b0] sm:$0xff]   ;;  %v14929_v61 = vld [vmem:[#allocation31 + $0x568] sm:$0xff]   ;;  %v14933_v48 = vld [vmem:[#allocation31 + $0x560] sm:$0xff]  }
0x23a8   :  { %v16890_v24 = vpop.f32.mrf.mxu0  ;;  %v16892_v27 = vpop.f32.mrf.mxu1  ;;  %v14932_v47 = vld [vmem:[#allocation31 + $0x5a8] sm:$0xff]   ;;  %v14935_v12 = vld [vmem:[#allocation31 + $0x520] sm:$0xff]  }
0x23a9   :  { %v10234_v5 = vmax.f32 %v9914_v7, 0.0  ;;  %v10236_v19 = vmax.f32 %v9957_v1, 0.0  ;;  %v10249_v11 = vpack.c.bf16 %v10233_v59, %v10217_v35  ;;  %v10251_v51 = vpack.c.bf16 %v10235_v13, %v10219_v4  ;;  %v14936_v7 = vld [vmem:[#allocation31 + $0x5a0] sm:$0xff]   ;;  %v14937_v1 = vld [vmem:[#allocation31 + $0x558] sm:$0xff]   ;;  %v14943_v35 = vld [vmem:[#allocation31 + $0x510] sm:$0xff]  }
0x23aa   :  { %v9995_v42 = vpop.f32.mrf.mxu0  ;;  %v10038_v53 = vpop.f32.mrf.mxu1  ;;  %v14938_v59 = vld [vmem:[#allocation31 + $0x5d8] sm:$0xff]  }
0x23ab   :  { %v10250_v20 = vpack.c.bf16 %v10234_v5, %v10218_v33  ;;  %v10252_v54 = vpack.c.bf16 %v10236_v19, %v10220_v55  ;;  %v9996_v50 = vadd.f32 %v9995_v42, %v9653_v43  ;;  %v10039_v6 = vadd.f32 %v10038_v53, %v9661_v25  ;;  %v14940_v33 = vld [vmem:[#allocation31 + $0x598] sm:$0xff]   ;;  %v14941_v55 = vld [vmem:[#allocation31 + $0x550] sm:$0xff]   ;;  %v14945_v53 = vld [vmem:[#allocation31 + $0x548] sm:$0xff]  }
0x23ac   :  { %v16898_v52 = vpop.f32.mrf.mxu0  ;;  %v16900_v60 = vpop.f32.mrf.mxu1  ;;  %v14942_v5 = vld [vmem:[#allocation31 + $0x5d0] sm:$0xff]  }
0x23ad   :  { %11330 = vmatprep.mubr.bf16.mxu0 %v10250_v20  ;;  %11371 = vmatprep.mubr.bf16.mxu1 %v10252_v54  ;;  %v10222_v32 = vmax.f32 %v9996_v50, 0.0  ;;  %v10224_v31 = vmax.f32 %v10039_v6, 0.0  ;;  %v14944_v42 = vld [vmem:[#allocation31 + $0x590] sm:$0xff]   ;;  %v14946_v20 = vld [vmem:[#allocation31 + $0x5c8] sm:$0xff]   ;;  %v9649_v54 = vrot.slane %v16880_v58, %v16256_v29 }
0x23ae   :  { %v9999_v49 = vpop.f32.mrf.mxu0  ;;  %v10042_v41 = vpop.f32.mrf.mxu1  ;;  %11331 = vmatmul.mubr.bf16.vlgmr.msra.gmra.mxu0 %v10249_v11  ;;  %11372 = vmatmul.mubr.bf16.vlgmr.msra.gmra.mxu1 %v10251_v51  ;;  %v14947_v51 = vld [vmem:[#allocation31 + $0x508] sm:$0xff]  }
0x23af   :  { %v10000_v26 = vadd.f32 %v9999_v49, %v9653_v43  ;;  %v10043_v62 = vadd.f32 %v10042_v41, %v9661_v25  ;;  %13910 = vmatpush3.bf16.msra.mxu0 %v14923_v36  ;;  %13932 = vmatpush3.bf16.msra.mxu1 %v14924_v10  ;;  %v14939_v43 = vld [vmem:[#allocation31 + $0x518] sm:$0xff]   ;;  %v9657_v36 = vrot.slane %v16880_v58, %v16259_v3  ;;  %v14948_v6 = vld [vmem:[#allocation31 + $0x588] sm:$0xff]   ;;  %v14949_v49 = vld [vmem:[#allocation31 + $0x540] sm:$0xff]  }
0x23b0   :  { %13911 = vmatprep.subr.bf16.mxu0 %v14925_v57  ;;  %13933 = vmatprep.subr.bf16.mxu1 %v14926_v30  ;;  %v16902_v63 = vpop.f32.mrf.mxu0  ;;  %v16904_v22 = vpop.f32.mrf.mxu1  ;;  %v16915_v10 = vld [vmem:[%s17113_s28 + $0x18] sm:$0xff]  ;;  %v9998_v57 = vadd.f32 %v16898_v52, %v9649_v54 }
0x23b1   :  { %v10238_v23 = vmax.f32 %v10000_v26, 0.0  ;;  %v10240_v2 = vmax.f32 %v10043_v62, 0.0  ;;  %v9669_v30 = vrot.slane %v16915_v10, %v16211_v14  ;;  %v10041_v41 = vadd.f32 %v16900_v60, %v9657_v36  ;;  %v14950_v26 = vld [vmem:[#allocation31 + $0x5c0] sm:$0xff]  }
0x23b2   :  { %v10081_v13 = vpop.f32.mrf.mxu0  ;;  %v10124_v25 = vpop.f32.mrf.mxu1  ;;  %v9677_v58 = vrot.slane %v16915_v10, %v16214_v15  ;;  %v9994_v62 = vadd.f32 %v16890_v24, %v9649_v54  ;;  %v10037_v52 = vadd.f32 %v16892_v27, %v9657_v36  ;;  %v14951_v14 = vld [vmem:[#allocation31 + $0x500] sm:$0xff]   ;;  %v14954_v15 = vld [vmem:[#allocation31 + $0x6f8] sm:$0xff]  }
0x23b3   :  { %v10254_v38 = vpack.c.bf16 %v10238_v23, %v10222_v32  ;;  %v10256_v18 = vpack.c.bf16 %v10240_v2, %v10224_v31  ;;  %13912 = vmatpush3.bf16.msra.mxu0 %v14927_v8  ;;  %13934 = vmatpush3.bf16.msra.mxu1 %v14928_v44  ;;  %v10082_v32 = vadd.f32 %v10081_v13, %v9669_v30  ;;  %v14952_v31 = vld [vmem:[#allocation31 + $0x580] sm:$0xff]   ;;  %v14953_v23 = vld [vmem:[#allocation31 + $0x678] sm:$0xff]   ;;  %v10239_v60 = vmax.f32 %v10041_v41, 0.0  ;;  %v14973_v41 = vld [vmem:[#allocation31 + $0x650] sm:$0xff]  }
0x23b4   :  { %13913 = vmatprep.subr.bf16.mxu0 %v14929_v61  ;;  %13935 = vmatprep.subr.bf16.mxu1 %v14930_v28  ;;  %v16906_v19 = vpop.f32.mrf.mxu0  ;;  %v16908_v4 = vpop.f32.mrf.mxu1  ;;  %v10237_v61 = vmax.f32 %v9998_v57, 0.0  ;;  %v10125_v2 = vadd.f32 %v10124_v25, %v9677_v58  ;;  %v10221_v28 = vmax.f32 %v9994_v62, 0.0  ;;  %v14960_v25 = vld [vmem:[#allocation31 + $0x6b0] sm:$0xff]   ;;  %v14967_v54 = vld [vmem:[#allocation31 + $0x620] sm:$0xff]   ;;  %v14970_v57 = vld [vmem:[#allocation31 + $0x6d8] sm:$0xff]  }
0x23b5   :  { %11412 = vmatprep.mubr.bf16.mxu0 %v10254_v38  ;;  %11453 = vmatprep.mubr.bf16.mxu1 %v10256_v18  ;;  %v10223_v18 = vmax.f32 %v10037_v52, 0.0  ;;  %v14975_v62 = vld [vmem:[#allocation31 + $0x610] sm:$0xff]  }
0x23b6   :  { %v10085_v11 = vpop.f32.mrf.mxu0  ;;  %v10128_v50 = vpop.f32.mrf.mxu1  ;;  %v10253_v27 = vpack.c.bf16 %v10237_v61, %v10221_v28  ;;  %v14976_v52 = vld [vmem:[#allocation31 + $0x690] sm:$0xff]   ;;  %v9665_v61 = vrot.slane %v16915_v10, %v16217_v16  ;;  %v14980_v28 = vld [vmem:[#allocation31 + $0x688] sm:$0xff]   ;;  %v9693_v16 = vrot.slane %v16915_v10, %v16237_v45  ;;  %v14986_v45 = vld [vmem:[#allocation31 + $0x7f8] sm:$0xff]  }
0x23b7   :  { %13914 = vmatpush3.bf16.msra.mxu0 %v14931_v56  ;;  %13936 = vmatpush3.bf16.msra.mxu1 %v14932_v47  ;;  %v10086_v8 = vadd.f32 %v10085_v11, %v9669_v30  ;;  %v10129_v44 = vadd.f32 %v10128_v50, %v9677_v58  ;;  %v14955_v56 = vld [vmem:[#allocation31 + $0x638] sm:$0xff]   ;;  %v10226_v47 = vmax.f32 %v10082_v32, 0.0  ;;  %v14968_v11 = vld [vmem:[#allocation31 + $0x6a0] sm:$0xff]   ;;  %v14974_v58 = vld [vmem:[#allocation31 + $0x6d0] sm:$0xff]   ;;  %v9673_v32 = vrot.slane %v16915_v10, %v16220_v17 }
0x23b8   :  { %13915 = vmatprep.subr.bf16.mxu0 %v14933_v48  ;;  %13937 = vmatprep.subr.bf16.mxu1 %v14934_v46  ;;  %v14956_v48 = vld [vmem:[#allocation31 + $0x6b8] sm:$0xff]   ;;  %v10255_v46 = vpack.c.bf16 %v10239_v60, %v10223_v18  ;;  %v16927_v36 = vpop.f32.mrf.mxu1  ;;  %v10084_v60 = vadd.f32 %v16906_v19, %v9665_v61  ;;  %v14982_v17 = vld [vmem:[#allocation31 + $0x6c0] sm:$0xff]  }
0x23b9   :  { %v10242_v38 = vmax.f32 %v10086_v8, 0.0  ;;  %v10244_v24 = vmax.f32 %v10129_v44, 0.0  ;;  %v14971_v50 = vld [vmem:[#allocation31 + $0x618] sm:$0xff]   ;;  %v14977_v44 = vld [vmem:[#allocation31 + $0x648] sm:$0xff]   ;;  %v10127_v18 = vadd.f32 %v16908_v4, %v9673_v32  ;;  %v10123_v19 = vadd.f32 %v16904_v22, %v9673_v32  ;;  %v15005_v32 = vld [vmem:[#allocation31 + $0x750] sm:$0xff]  }
0x23bb   :  { %13916 = vmatpush3.bf16.msra.mxu0 %v14935_v12  ;;  %13938 = vmatpush3.bf16.msra.mxu1 %v14936_v7  ;;  %v10228_v12 = vmax.f32 %v10125_v2, 0.0  ;;  %v14957_v7 = vld [vmem:[#allocation31 + $0x670] sm:$0xff]   ;;  %v9685_v2 = vrot.slane %v16915_v10, %v16234_v34  ;;  %v14983_v34 = vld [vmem:[#allocation31 + $0x600] sm:$0xff]   ;;  %v10243_v4 = vmax.f32 %v10127_v18, 0.0  ;;  %v15011_v18 = vld [vmem:[#allocation31 + $0x708] sm:$0xff]  }
0x23bc   :  { %13917 = vmatprep.subr.bf16.mxu0 %v14937_v1  ;;  %13939 = vmatprep.subr.bf16.mxu1 %v14938_v59  ;;  %v10258_v1 = vpack.c.bf16 %v10242_v38, %v10226_v47  ;;  %v14958_v59 = vld [vmem:[#allocation31 + $0x6f0] sm:$0xff]   ;;  %v14981_v38 = vld [vmem:[#allocation31 + $0x640] sm:$0xff]   ;;  %v10241_v47 = vmax.f32 %v10084_v60, 0.0 }
0x23bd   :  { %v10260_v13 = vpack.c.bf16 %v10244_v24, %v10228_v12  ;;  %v10080_v24 = vadd.f32 %v16902_v63, %v9665_v61  ;;  %v14985_v12 = vld [vmem:[#allocation31 + $0x778] sm:$0xff]   ;;  %v15008_v60 = vld [vmem:[#allocation31 + $0x790] sm:$0xff]  }
0x23be   :  { %v15004_v61 = vld [vmem:[#allocation31 + $0x798] sm:$0xff]  }
0x23bf   :  { %13918 = vmatpush3.bf16.msra.mxu0 %v14939_v43  ;;  %13940 = vmatpush3.bf16.msra.mxu1 %v14940_v33  ;;  %v14959_v43 = vld [vmem:[#allocation31 + $0x630] sm:$0xff]   ;;  %v14961_v33 = vld [vmem:[#allocation31 + $0x668] sm:$0xff]  }
0x23c0   :  { %13919 = vmatprep.subr.bf16.mxu0 %v14941_v55  ;;  %13941 = vmatprep.subr.bf16.mxu1 %v14942_v5  ;;  %v14962_v55 = vld [vmem:[#allocation31 + $0x6e8] sm:$0xff]  }
0x23c1   :  { %v14963_v5 = vld [vmem:[#allocation31 + $0x628] sm:$0xff]  }
0x23c3   :  { %13920 = vmatpush3.bf16.msra.mxu0 %v14943_v35  ;;  %13942 = vmatpush3.bf16.msra.mxu1 %v14944_v42  ;;  %v14964_v35 = vld [vmem:[#allocation31 + $0x6a8] sm:$0xff]   ;;  %v14965_v42 = vld [vmem:[#allocation31 + $0x660] sm:$0xff]  }
0x23c4   :  { %13921 = vmatprep.subr.bf16.mxu0 %v14945_v53  ;;  %13943 = vmatprep.subr.bf16.mxu1 %v14946_v20  ;;  %v14966_v53 = vld [vmem:[#allocation31 + $0x6e0] sm:$0xff]   ;;  %v16925_v20 = vpop.f32.mrf.mxu0 }
0x23c6   :  { %v10167_v30 = vpop.f32.mrf.mxu0 }
0x23c7   :  { %13922 = vmatpush3.bf16.msra.mxu0 %v14947_v51  ;;  %13944 = vmatpush3.bf16.msra.mxu1 %v14948_v6  ;;  %v14969_v51 = vld [vmem:[#allocation31 + $0x658] sm:$0xff]   ;;  %v10210_v6 = vpop.f32.mrf.mxu1 }
0x23c8   :  { %13923 = vmatprep.subr.bf16.mxu0 %v14949_v49  ;;  %13945 = vmatprep.subr.bf16.mxu1 %v14950_v26  ;;  %v14972_v49 = vld [vmem:[#allocation31 + $0x698] sm:$0xff]   ;;  %v16929_v26 = vpop.f32.mrf.mxu0 }
0x23c9   :  { %v16931_v8 = vpop.f32.mrf.mxu1 }
0x23cb   :  { %13924 = vmatpush3.bf16.msra.mxu0 %v14951_v14  ;;  %13946 = vmatpush3.bf16.msra.mxu1 %v14952_v31  ;;  %v14978_v14 = vld [vmem:[#allocation31 + $0x6c8] sm:$0xff]   ;;  %v10171_v31 = vpop.f32.mrf.mxu0 }
0x23cc   :  { %13953 = vmatprep.subr.bf16.mxu0 %v14953_v23  ;;  %13975 = vmatprep.subr.bf16.mxu1 %v14954_v15  ;;  %v14979_v23 = vld [vmem:[#allocation31 + $0x608] sm:$0xff]   ;;  %v10214_v15 = vpop.f32.mrf.mxu1 }
0x23ce   :  { %11413 = vmatmul.mubr.bf16.vlgmr.msra.gmra.mxu0 %v10253_v27  ;;  %11454 = vmatmul.mubr.bf16.vlgmr.msra.gmra.mxu1 %v10255_v46  ;;  %v10215_v27 = vadd.f32 %v10214_v15, %v9693_v16  ;;  %v14984_v46 = vld [vmem:[#allocation31 + $0x680] sm:$0xff]   ;;  %v15010_v15 = vld [vmem:[#allocation31 + $0x7c8] sm:$0xff]  }
0x23cf   :  { %13954 = vmatpush3.bf16.msra.mxu0 %v14955_v56  ;;  %11494 = vmatprep.mubr.bf16.mxu0 %v10258_v1  ;;  %v10172_v56 = vadd.f32 %v10171_v31, %v9685_v2  ;;  %v10225_v1 = vmax.f32 %v10080_v24, 0.0  ;;  %v15006_v31 = vld [vmem:[#allocation31 + $0x7d0] sm:$0xff]   ;;  %v15013_v24 = vld [vmem:[#allocation31 + $0x740] sm:$0xff]  }
0x23d0   :  { %13976 = vmatpush3.bf16.msra.mxu1 %v14956_v48  ;;  %11535 = vmatprep.mubr.bf16.mxu1 %v10260_v13  ;;  %v10168_v48 = vadd.f32 %v10167_v30, %v9685_v2  ;;  %v10227_v13 = vmax.f32 %v10123_v19, 0.0  ;;  %v10248_v63 = vmax.f32 %v10215_v27, 0.0  ;;  %v14994_v30 = vld [vmem:[#allocation31 + $0x7e8] sm:$0xff]   ;;  %v15014_v19 = vld [vmem:[#allocation31 + $0x7c0] sm:$0xff]  }
0x23d1   :  { %13955 = vmatprep.subr.bf16.mxu0 %v14957_v7  ;;  %13977 = vmatprep.subr.bf16.mxu1 %v14958_v59  ;;  %v10211_v7 = vadd.f32 %v10210_v6, %v9693_v16  ;;  %v10246_v59 = vmax.f32 %v10172_v56, 0.0  ;;  %v10257_v22 = vpack.c.bf16 %v10241_v47, %v10225_v1  ;;  %v14996_v6 = vld [vmem:[#allocation31 + $0x7a8] sm:$0xff]  }
0x23d2   :  { %v15009_v2 = vld [vmem:[#allocation31 + $0x748] sm:$0xff]  }
0x23d3   :  { %13956 = vmatpush3.bf16.msra.mxu0 %v14959_v43  ;;  %v14987_v43 = vld [vmem:[#allocation31 + $0x738] sm:$0xff]  }
0x23d4   :  { %13978 = vmatpush3.bf16.msra.mxu1 %v14960_v25  ;;  %13957 = vmatprep.subr.bf16.mxu0 %v14961_v33  ;;  %v10230_v25 = vmax.f32 %v10168_v48, 0.0  ;;  %v14988_v33 = vld [vmem:[#allocation31 + $0x7b8] sm:$0xff]  }
0x23d5   :  { %13979 = vmatprep.subr.bf16.mxu1 %v14962_v55  ;;  %v10259_v55 = vpack.c.bf16 %v10243_v4, %v10227_v13 }
0x23d7   :  { %13958 = vmatpush3.bf16.msra.mxu0 %v14963_v5  ;;  %v10232_v5 = vmax.f32 %v10211_v7, 0.0 }
0x23d8   :  { %13980 = vmatpush3.bf16.msra.mxu1 %v14964_v35  ;;  %13959 = vmatprep.subr.bf16.mxu0 %v14965_v42  ;;  %v14989_v35 = vld [vmem:[#allocation31 + $0x770] sm:$0xff]   ;;  %v10262_v42 = vpack.c.bf16 %v10246_v59, %v10230_v25 }
0x23d9   :  { %13981 = vmatprep.subr.bf16.mxu1 %v14966_v53  ;;  %v14990_v53 = vld [vmem:[#allocation31 + $0x7f0] sm:$0xff]  }
0x23db   :  { %13960 = vmatpush3.bf16.msra.mxu0 %v14967_v54  ;;  %v10264_v54 = vpack.c.bf16 %v10248_v63, %v10232_v5 }
0x23dc   :  { %13982 = vmatpush3.bf16.msra.mxu1 %v14968_v11  ;;  %13961 = vmatprep.subr.bf16.mxu0 %v14969_v51  ;;  %v14991_v11 = vld [vmem:[#allocation31 + $0x730] sm:$0xff]  }
0x23dd   :  { %13983 = vmatprep.subr.bf16.mxu1 %v14970_v57  ;;  %v14992_v51 = vld [vmem:[#allocation31 + $0x7b0] sm:$0xff]   ;;  %v14993_v57 = vld [vmem:[#allocation31 + $0x768] sm:$0xff]  }
0x23df   :  { %13962 = vmatpush3.bf16.msra.mxu0 %v14971_v50  ;;  %v14995_v50 = vld [vmem:[#allocation31 + $0x728] sm:$0xff]  }
0x23e0   :  { %13984 = vmatpush3.bf16.msra.mxu1 %v14972_v49  ;;  %13963 = vmatprep.subr.bf16.mxu0 %v14973_v41  ;;  %v14997_v49 = vld [vmem:[#allocation31 + $0x760] sm:$0xff]  }
0x23e1   :  { %13985 = vmatprep.subr.bf16.mxu1 %v14974_v58  ;;  %v14998_v41 = vld [vmem:[#allocation31 + $0x7e0] sm:$0xff]  }
0x23e2   :  { %v14999_v58 = vld [vmem:[#allocation31 + $0x720] sm:$0xff]  }
0x23e3   :  { %13964 = vmatpush3.bf16.msra.mxu0 %v14975_v62  ;;  %v15000_v62 = vld [vmem:[#allocation31 + $0x7a0] sm:$0xff]  }
0x23e4   :  { %13986 = vmatpush3.bf16.msra.mxu1 %v14976_v52  ;;  %13965 = vmatprep.subr.bf16.mxu0 %v14977_v44  ;;  %v15001_v52 = vld [vmem:[#allocation31 + $0x758] sm:$0xff]  }
0x23e5   :  { %13987 = vmatprep.subr.bf16.mxu1 %v14978_v14  ;;  %v15002_v44 = vld [vmem:[#allocation31 + $0x7d8] sm:$0xff]  }
0x23e6   :  { %v15003_v14 = vld [vmem:[#allocation31 + $0x718] sm:$0xff]  }
0x23e7   :  { %13966 = vmatpush3.bf16.msra.mxu0 %v14979_v23  ;;  %v15007_v23 = vld [vmem:[#allocation31 + $0x710] sm:$0xff]  }
0x23e8   :  { %13988 = vmatpush3.bf16.msra.mxu1 %v14980_v28  ;;  %13967 = vmatprep.subr.bf16.mxu0 %v14981_v38  ;;  %v9681_v28 = vrot.slane %v16915_v10, %v16256_v29  ;;  %v9689_v38 = vrot.slane %v16915_v10, %v16259_v3  ;;  %v15015_v29 = vld [vmem:[#allocation31 + $0x700] sm:$0xff]  }
0x23e9   :  { %13989 = vmatprep.subr.bf16.mxu1 %v14982_v17  ;;  %v15012_v17 = vld [vmem:[#allocation31 + $0x788] sm:$0xff]   ;;  %v15016_v3 = vld [vmem:[#allocation31 + $0x780] sm:$0xff]  }
0x23ea   :  { %v10170_v16 = vadd.f32 %v16929_v26, %v9681_v28  ;;  %v10213_v56 = vadd.f32 %v16931_v8, %v9689_v38  ;;  %v10166_v27 = vadd.f32 %v16925_v20, %v9681_v28 }
0x23eb   :  { %13968 = vmatpush3.bf16.msra.mxu0 %v14983_v34  ;;  %v10209_v34 = vadd.f32 %v16927_v36, %v9689_v38 }
0x23ec   :  { %13990 = vmatpush3.bf16.msra.mxu1 %v14984_v46  ;;  %13997 = vmatprep.subr.bf16.mxu0 %v14985_v12  ;;  %v10245_v47 = vmax.f32 %v10170_v16, 0.0  ;;  %v10247_v10 = vmax.f32 %v10213_v56, 0.0  ;;  %v10229_v26 = vmax.f32 %v10166_v27, 0.0 }
0x23ed   :  { %14019 = vmatprep.subr.bf16.mxu1 %v14986_v45  ;;  %v10231_v48 = vmax.f32 %v10209_v34, 0.0 }
0x23ee   :  { %11495 = vmatmul.mubr.bf16.vlgmr.msra.gmra.mxu0 %v10257_v22  ;;  %v10261_v46 = vpack.c.bf16 %v10245_v47, %v10229_v26  ;;  %v6063_v26 = vpop.xlane.xlu1 %6062 }
0x23ef   :  { %11536 = vmatmul.mubr.bf16.vlgmr.msra.gmra.mxu1 %v10259_v55  ;;  %13998 = vmatpush3.bf16.msra.mxu0 %v14987_v43  ;;  %v10263_v8 = vpack.c.bf16 %v10247_v10, %v10231_v48 }
0x23f0   :  { %11576 = vmatprep.mubr.bf16.mxu0 %v10262_v42  ;;  %14020 = vmatpush3.bf16.msra.mxu1 %v14988_v33 }
0x23f1   :  { %11617 = vmatprep.mubr.bf16.mxu1 %v10264_v54  ;;  %13999 = vmatprep.subr.bf16.mxu0 %v14989_v35  ;;  %v13070_v35 = vld [vmem:[%s17114_s5 + $0x1] ss:$0 sm:$0xff] }
0x23f2   :  { %14021 = vmatprep.subr.bf16.mxu1 %v14990_v53 }
0x23f3   :  { %14000 = vmatpush3.bf16.msra.mxu0 %v14991_v11 }
0x23f4   :  { %14022 = vmatpush3.bf16.msra.mxu1 %v14992_v51  ;;  %14001 = vmatprep.subr.bf16.mxu0 %v14993_v57 }
0x23f5   :  { %14023 = vmatprep.subr.bf16.mxu1 %v14994_v30 }
0x23f7   :  { %14002 = vmatpush3.bf16.msra.mxu0 %v14995_v50 }
0x23f8   :  { %14024 = vmatpush3.bf16.msra.mxu1 %v14996_v6  ;;  %14003 = vmatprep.subr.bf16.mxu0 %v14997_v49 }
0x23f9   :  { %14025 = vmatprep.subr.bf16.mxu1 %v14998_v41 }
0x23fb   :  { %14004 = vmatpush3.bf16.msra.mxu0 %v14999_v58 }
0x23fc   :  { %14026 = vmatpush3.bf16.msra.mxu1 %v15000_v62  ;;  %14005 = vmatprep.subr.bf16.mxu0 %v15001_v52 }
0x23fd   :  { %14027 = vmatprep.subr.bf16.mxu1 %v15002_v44 }
0x23ff   :  { %14006 = vmatpush3.bf16.msra.mxu0 %v15003_v14 }
0x2400   :  { %14028 = vmatpush3.bf16.msra.mxu1 %v15004_v61  ;;  %14007 = vmatprep.subr.bf16.mxu0 %v15005_v32 }
0x2401   :  { %14029 = vmatprep.subr.bf16.mxu1 %v15006_v31 }
0x2403   :  { %14008 = vmatpush3.bf16.msra.mxu0 %v15007_v23 }
0x2404   :  { %14030 = vmatpush3.bf16.msra.mxu1 %v15008_v60  ;;  %14009 = vmatprep.subr.bf16.mxu0 %v15009_v2 }
0x2405   :  { %14031 = vmatprep.subr.bf16.mxu1 %v15010_v15  ;;  %v6060_v15 = vpop.xlane.xlu0 %6059 }
0x2406   :  { %v6064_v27 = vmul.f32 0.03125, %v6060_v15  ;;  %v12778_v15 = vld [vmem:[%s17101_s19 + $0x1] ss:$0 sm:$0xff] }
0x2407   :  { %14010 = vmatpush3.bf16.msra.mxu0 %v15011_v18 }
0x2408   :  { %14032 = vmatpush3.bf16.msra.mxu1 %v15012_v17  ;;  %14011 = vmatprep.subr.bf16.mxu0 %v15013_v24 }
0x2409   :  { %14033 = vmatprep.subr.bf16.mxu1 %v15014_v19 }
0x240b   :  { %14012 = vmatpush3.bf16.msra.mxu0 %v15015_v29 }
0x240c   :  { %14034 = vmatpush3.bf16.msra.mxu1 %v15016_v3 }
0x240e   :  { %11577 = vmatmul.mubr.bf16.vlgmr.msra.gmra.mxu0 %v10261_v46 }
0x240f   :  { %11618 = vmatmul.mubr.bf16.vlgmr.msra.gmra.mxu1 %v10263_v8 }
0x246e   :  { %v13881_v12 = vpop.f32.mrf.mxu0  ;;  %v13903_v20 = vpop.f32.mrf.mxu1 }
0x2470   :  { %v13882_v36 = vpop.f32.mrf.mxu0  ;;  %v13904_v4 = vpop.f32.mrf.mxu1 }
0x2471   :  { %v13883_v5 = vadd.f32 %v13882_v36, %v13881_v12  ;;  %v13905_v30 = vadd.f32 %v13904_v4, %v13903_v20  ;;  %v6066_v36 = vsub.f32 %v16836_v37, %v6064_v27 }
0x2472   :  { %v13884_v7 = vpop.f32.mrf.mxu0  ;;  %v13906_v45 = vpop.f32.mrf.mxu1 }
0x2473   :  { %v11333_v54 = vadd.f32 %v13883_v5, %v13070_v35  ;;  %v6068_v5 = vmul.f32 %v6066_v36, %v6066_v36 }
0x2474   :  { %v13885_v1 = vpop.f32.mrf.mxu0  ;;  %v13907_v13 = vpop.f32.mrf.mxu1 }
0x2475   :  { %v13886_v11 = vadd.f32 %v13885_v1, %v13884_v7  ;;  %v11374_v6 = vadd.f32 %v13905_v30, %v11333_v54  ;;  %v13908_v62 = vadd.f32 %v13907_v13, %v13906_v45  ;;  %v6065_v7 = vmul.f32 0.03125, %v6063_v26 }
0x2477   :  { %v11336_v49 = vadd.f32 %v13886_v11, %v13070_v35 }
0x2479   :  { %v11377_v14 = vadd.f32 %v13908_v62, %v11336_v49 }
0x248e   :  { %v13925_v59 = vpop.f32.mrf.mxu0  ;;  %v13947_v63 = vpop.f32.mrf.mxu1 }
0x2490   :  { %v13926_v43 = vpop.f32.mrf.mxu0  ;;  %v13948_v22 = vpop.f32.mrf.mxu1 }
0x2491   :  { %v13927_v50 = vadd.f32 %v13926_v43, %v13925_v59  ;;  %v13949_v61 = vadd.f32 %v13948_v22, %v13947_v63 }
0x2492   :  { %v13928_v25 = vpop.f32.mrf.mxu0  ;;  %v13950_v33 = vpop.f32.mrf.mxu1 }
0x2493   :  { %v11415_v52 = vadd.f32 %v13927_v50, %v11374_v6 }
0x2494   :  { %v13929_v55 = vpop.f32.mrf.mxu0  ;;  %v13951_v53 = vpop.f32.mrf.mxu1 }
0x2495   :  { %v13930_v44 = vadd.f32 %v13929_v55, %v13928_v25  ;;  %v11456_v60 = vadd.f32 %v13949_v61, %v11415_v52  ;;  %v13952_v28 = vadd.f32 %v13951_v53, %v13950_v33  ;;  %v6067_v25 = vsub.f32 %v16843_v40, %v6065_v7  ;;  %v11688_v40 = vld [vmem:[%s17118_s0] sm:$0xff] }
0x2497   :  { %v11418_v2 = vadd.f32 %v13930_v44, %v11377_v14  ;;  %v6069_v53 = vmul.f32 %v6067_v25, %v6067_v25 }
0x2499   :  { %v11459_v24 = vadd.f32 %v13952_v28, %v11418_v2  ;;  %v6073_v54 = vsel %vm584_vm1, %v6069_v53, 0.0 }
0x24ae   :  { %v13969_v42 = vpop.f32.mrf.mxu0 }
0x24af   :  { %v13991_v51 = vpop.f32.mrf.mxu1 }
0x24b0   :  { %v13970_v57 = vpop.f32.mrf.mxu0 }
0x24b1   :  { %v13992_v41 = vpop.f32.mrf.mxu1  ;;  %v13971_v32 = vadd.f32 %v13970_v57, %v13969_v42  ;;  %v6070_v42 = vsel %vm584_vm1, %v6068_v5, 0.0  ;;  %v15020_v5 = vld [vmem:[%s17119_s22 + $0x10] sm:$0xff]  }
0x24b2   :  { %v13972_v58 = vpop.f32.mrf.mxu0  ;;  %v13993_v56 = vadd.f32 %v13992_v41, %v13991_v51 }
0x24b3   :  { %v13994_v31 = vpop.f32.mrf.mxu1  ;;  %v11497_v38 = vadd.f32 %v13971_v32, %v11456_v60 }
0x24b4   :  { %v13973_v23 = vpop.f32.mrf.mxu0 }
0x24b5   :  { %v13974_v18 = vadd.f32 %v13973_v23, %v13972_v58  ;;  %v13995_v16 = vpop.f32.mrf.mxu1  ;;  %v11538_v29 = vadd.f32 %v13993_v56, %v11497_v38  ;;  %v12779_v38 = vld [vmem:[%s17102_s12 + $0x1] ss:$0 sm:$0xff] }
0x24b6   :  { %v13996_v46 = vadd.f32 %v13995_v16, %v13994_v31  ;;  %v11674_v56 = vld [vmem:[%s17117_s1] sm:$0xff] }
0x24b7   :  { %v11500_v47 = vadd.f32 %v13974_v18, %v11459_v24 }
0x24b9   :  { %v11541_v45 = vadd.f32 %v13996_v46, %v11500_v47 }
0x24ce   :  { %v14013_v17 = vpop.f32.mrf.mxu0 }
0x24cf   :  { %v14035_v19 = vpop.f32.mrf.mxu1 }
0x24d0   :  { %v14014_v34 = vpop.f32.mrf.mxu0 }
0x24d1   :  { %v14015_v3 = vadd.f32 %v14014_v34, %v14013_v17  ;;  %v14036_v10 = vpop.f32.mrf.mxu1  ;;  %v11689_v17 = vld [vmem:[%s17118_s0 + $0x8] sm:$0xff] }
0x24d2   :  { %v14016_v48 = vpop.f32.mrf.mxu0  ;;  %v14037_v12 = vadd.f32 %v14036_v10, %v14035_v19 }
0x24d3   :  { %v11579_v8 = vadd.f32 %v14015_v3, %v11538_v29  ;;  %v14038_v20 = vpop.f32.mrf.mxu1 }
0x24d4   :  { %v14017_v4 = vpop.f32.mrf.mxu0 }
0x24d5   :  { %v11620_v1 = vadd.f32 %v14037_v12, %v11579_v8  ;;  %v14018_v59 = vadd.f32 %v14017_v4, %v14016_v48  ;;  %v14039_v13 = vpop.f32.mrf.mxu1 }
0x24d6   :  { %v14040_v43 = vadd.f32 %v14039_v13, %v14038_v20 }
0x24d7   :  { %v11582_v63 = vadd.f32 %v14018_v59, %v11541_v45  ;;  %v11626_v22 = vadd.f32 %v11620_v1, %v16849_v21  ;;  %v11675_v21 = vld [vmem:[%s17117_s1 + $0x8] sm:$0xff]  ;;  %v13202_v45 = vld [vmem:[%s17116_s24 + $0x1] ss:$0 sm:$0xff] }
0x24d9   :  { %v11623_v33 = vadd.f32 %v14040_v43, %v11582_v63  ;;  %v11632_v55 = vsel %vm584_vm1, %v11626_v22, 0.0 }
0x24da   :  { %11633 = vadd.xlane.f32.xlu0 %v11632_v55  ;;  %v15019_v55 = vld [vmem:[%s17119_s22] sm:$0xff]  }
0x24db   :  { %v11627_v37 = vadd.f32 %v11623_v33, %v16851_v9  ;;  %v15018_v33 = vld [vmem:[%s17119_s22 + $0x18] sm:$0xff]  }
0x24dd   :  { %v11635_v35 = vsel %vm584_vm1, %v11627_v37, 0.0 }
0x24de   :  { %11636 = vadd.xlane.f32.xlu1 %v11635_v35  ;;  %6071 = vadd.xlane.f32.xlu0 %v6070_v42 }
0x24e2   :  { %6074 = vadd.xlane.f32.xlu1 %v6073_v54 }
0x24f3   :  { %11680 = vperm.xlu1 %14461, %v11675_v21  }
0x24f7   :  { %11691 = vperm.xlu1 %14461, %v11688_v40  }
0x2563   :  { %v11634_v11 = vpop.xlane.xlu0 %11633 }
0x2564   :  { %v11638_v51 = vmul.f32 0.03125, %v11634_v11 }
0x2566   :  { %v11640_v57 = vsub.f32 %v11626_v22, %v11638_v51 }
0x2567   :  { %v11637_v30 = vpop.xlane.xlu1 %11636  ;;  %v6072_v50 = vpop.xlane.xlu0 %6071 }
0x2568   :  { %v11639_v9 = vmul.f32 0.03125, %v11637_v30  ;;  %v6076_v6 = vmul.f32 0.03125, %v6072_v50  ;;  %v11642_v49 = vmul.f32 %v11640_v57, %v11640_v57 }
0x256a   :  { %v11641_v41 = vsub.f32 %v11627_v37, %v11639_v9  ;;  %v6078_v58 = vadd.f32 1e-05, %v6076_v6  ;;  %v11644_v62 = vsel %vm584_vm1, %v11642_v49, 0.0  ;;  %v15021_v49 = vld [vmem:[%s17120_s3 + $0x8] sm:$0xff]  }
0x256b   :  { %v6075_v52 = vpop.xlane.xlu1 %6074  ;;  %11645 = vadd.xlane.f32.xlu0 %v11644_v62 }
0x256c   :  { %15177 = vrsqrt.f32 %v6078_v58  ;;  %v6077_v44 = vmul.f32 0.03125, %v6075_v52  ;;  %v11643_v14 = vmul.f32 %v11641_v41, %v11641_v41 }
0x256e   :  { %v6079_v61 = vadd.f32 1e-05, %v6077_v44  ;;  %v11647_v32 = vsel %vm584_vm1, %v11643_v14, 0.0 }
0x256f   :  { %11648 = vadd.xlane.f32.xlu1 %v11647_v32  ;;  %v11681_v31 = vpop.permute.xlu1 %11680 }
0x2570   :  { %15179 = vrsqrt.f32 %v6079_v61  ;;  %vm11683_vm7 = vcmp.eq.s32.totalorder %v11681_v31, %v16072_v39  ;;  %v13221_v61 = vld [vmem:[%s17121_s4] ss:$0 sm:$0xff] }
0x2571   :  { %v13204_v12 = vsel %vm11683_vm7, 1.0, %v15684_v0 }
0x2573   :  { %v11692_v23 = vpop.permute.xlu1 %11691 }
0x2574   :  { %vm11696_vm3 = vcmp.eq.s32.totalorder %v11692_v23, %v16072_v39 }
0x2575   :  { %v13205_v60 = vsel %vm11696_vm3, 1.0, %v15684_v0 }
0x2576   :  { %14335 = vmatprep.mubr.msk.f32.mxu1 %vm638_vm4, %v13205_v60 }
0x2579   :  { %v15178_v2 = vpop.eup %15177 }
0x257a   :  { %v6082_v28 = vmul.f32 %v15178_v2, %v6066_v36  ;;  %v13201_v36 = vld [vmem:[%s17115_s17 + $0x1] ss:$0 sm:$0xff] }
0x257c   :  { %v6090_v18 = vmul.f32 %v12778_v15, %v6082_v28 }
0x257d   :  { %v15180_v16 = vpop.eup %15179 }
0x257e   :  { %v6098_v24 = vadd.f32 %v12779_v38, %v6090_v18  ;;  %v6083_v19 = vmul.f32 %v15180_v16, %v6067_v25 }
0x2580   :  { %11694 = vperm.xlu1 %14461, %v11689_v17   ;;  %14323 = vmatprep.subr.mxu0 %v6098_v24  ;;  %v6091_v27 = vmul.f32 %v12778_v15, %v6083_v19  ;;  %v15023_v17 = vld [vmem:[%s15956_s20 + $0x8] sm:$0xff]  }
0x2581   :  { %11677 = vperm.xlu0 %14460, %v11674_v56   ;;  %14324 = vmatpush3.msra.mxu0 %v6098_v24  ;;  %v15024_v24 = vld [vmem:[%s15956_s20] sm:$0xff]  }
0x2582   :  { %v6099_v34 = vadd.f32 %v12779_v38, %v6091_v27  ;;  %v13222_v56 = vld [vmem:[%s15951_s8] ss:$0 sm:$0xff] }
0x2584   :  { %14328 = vmatprep.subr.mxu0 %v6099_v34 }
0x25f4   :  { %v11646_v29 = vpop.xlane.xlu0 %11645 }
0x25f5   :  { %v11650_v47 = vmul.f32 0.03125, %v11646_v29 }
0x25f7   :  { %v11652_v3 = vadd.f32 1e-05, %v11650_v47 }
0x25f8   :  { %v11649_v10 = vpop.xlane.xlu1 %11648 }
0x25f9   :  { %15181 = vrsqrt.f32 %v11652_v3  ;;  %v11651_v26 = vmul.f32 0.03125, %v11649_v10 }
0x25fb   :  { %v11653_v48 = vadd.f32 1e-05, %v11651_v26 }
0x25fc   :  { %v11678_v46 = vpop.permute.xlu0 %11677  ;;  %v11695_v7 = vpop.permute.xlu1 %11694 }
0x25fd   :  { %15183 = vrsqrt.f32 %v11653_v48  ;;  %vm11682_vm8 = vcmp.eq.s32.totalorder %v11678_v46, %v16072_v39  ;;  %vm11697_vm9 = vcmp.eq.s32.totalorder %v11695_v7, %v16072_v39  ;;  %v15017_v39 = vld [vmem:[%s17119_s22 + $0x8] sm:$0xff]   ;;  %v13226_v46 = vld [vmem:[%s15961_s30] ss:$0 sm:$0xff] }
0x25fe   :  { %v13203_v8 = vsel %vm11682_vm8, 1.0, %v15684_v0  ;;  %v13206_v22 = vsel %vm11697_vm9, 1.0, %v15684_v0 }
0x25ff   :  { %14325 = vmatprep.mubr.msk.f32.mxu0 %vm638_vm4, %v13203_v8 }
0x2600   :  { %14326 = vmatmul.mubr.msk.f32.vlgmr.msra.gmra.mxu0 %vm638_vm4, %v13204_v12 }
0x2601   :  { %14329 = vmatpush3.msra.mxu0 %v6099_v34  ;;  %14330 = vmatprep.mubr.msk.f32.mxu0 %vm638_vm4, %v13203_v8 }
0x2604   :  { %14331 = vmatmul.mubr.msk.f32.vlgmr.msra.gmra.mxu0 %vm638_vm4, %v13204_v12 }
0x2605   :  { %14340 = vmatprep.mubr.msk.f32.mxu0 %vm638_vm4, %v13205_v60 }
0x2606   :  { %v15182_v20 = vpop.eup %15181 }
0x2607   :  { %v11656_v4 = vmul.f32 %v15182_v20, %v11640_v57 }
0x2609   :  { %v11664_v1 = vmul.f32 %v13201_v36, %v11656_v4 }
0x260a   :  { %v15184_v59 = vpop.eup %15183 }
0x260b   :  { %v11672_v13 = vadd.f32 %v13202_v45, %v11664_v1  ;;  %v11657_v63 = vmul.f32 %v15184_v59, %v11641_v41  ;;  %v15022_v41 = vld [vmem:[%s17120_s3] sm:$0xff]  }
0x260d   :  { %14333 = vmatprep.subr.mxu1 %v11672_v13  ;;  %v11665_v43 = vmul.f32 %v13201_v36, %v11657_v63 }
0x260e   :  { %14334 = vmatpush3.msra.mxu1 %v11672_v13 }
0x260f   :  { %14336 = vmatmul.mubr.msk.f32.vlgmr.msra.gmra.mxu1 %vm638_vm4, %v13206_v22  ;;  %v11673_v25 = vadd.f32 %v13202_v45, %v11665_v43  ;;  %14343 = vmatprep.subr.bf16.mxu1 %v15684_v0 }
0x2610   :  { %14347 = vmatprep.mubr.msk.bf16.mxu1 %vm15685_vm0, %v15684_v0  ;;  %14344 = vmatpush3.bf16.msra.mxu1 %v15018_v33 }
0x2611   :  { %14338 = vmatprep.subr.mxu0 %v11673_v25  ;;  %14345 = vmatprep.subr.bf16.mxu1 %v15684_v0 }
0x2612   :  { %14339 = vmatpush3.msra.mxu0 %v11673_v25 }
0x2613   :  { %14341 = vmatmul.mubr.msk.f32.vlgmr.msra.gmra.mxu0 %vm638_vm4, %v13206_v22  ;;  %14351 = vmatprep.subr.bf16.mxu0 %v15684_v0 }
0x2614   :  { %14355 = vmatprep.mubr.msk.bf16.mxu0 %vm15685_vm0, %v15684_v0  ;;  %14352 = vmatpush3.bf16.msra.mxu0 %v15017_v39 }
0x2615   :  { %14353 = vmatprep.subr.bf16.mxu0 %v15684_v0  ;;  %14346 = vmatpush3.bf16.msra.mxu1 %v15020_v5 }
0x2616   :  { %14359 = vmatprep.subr.bf16.mxu1 %v15684_v0 }
0x2618   :  { %14354 = vmatpush3.bf16.msra.mxu0 %v15019_v55 }
0x2619   :  { %14367 = vmatprep.subr.bf16.mxu0 %v15684_v0 }
0x26c0   :  { %v14327_v37 = vpop.f32.mrf.mxu0 }
0x26c2   :  { %v11774_v35 = vpop.f32.mrf.mxu0 }
0x26c4   :  { %v14332_v42 = vpop.f32.mrf.mxu0 }
0x26c6   :  { %v11849_v54 = vpop.f32.mrf.mxu0 }
0x26cf   :  { %v14337_v53 = vpop.f32.mrf.mxu1 }
0x26d0   :  { %v12015_v40 = vmul.f32 %v14337_v53, %v14327_v37 }
0x26d1   :  { %v11930_v21 = vpop.f32.mrf.mxu1 }
0x26d2   :  { %v12014_v11 = vmul.f32 %v11930_v21, %v11774_v35 }
0x26d3   :  { %v14342_v51 = vpop.f32.mrf.mxu0 }
0x26d4   :  { %v12018_v57 = vpack.c.bf16 %v12015_v40, %v12014_v11  ;;  %v12017_v50 = vmul.f32 %v14342_v51, %v14332_v42 }
0x26d5   :  { %v12005_v30 = vpop.f32.mrf.mxu0 }
0x26d6   :  { %v12016_v9 = vmul.f32 %v12005_v30, %v11849_v54  ;;  %14356 = vmatmul.mubr.msk.bf16.vlgmr.msra.gmra.mxu0 %vm584_vm1, %v12018_v57 }
0x26d7   :  { %14371 = vmatprep.mubr.msk.bf16.mxu0 %vm15685_vm0, %v15684_v0  ;;  %14368 = vmatpush3.bf16.msra.mxu0 %v15023_v17 }
0x26d8   :  { %v12023_v6 = vpack.c.bf16 %v12017_v50, %v12016_v9  ;;  %14369 = vmatprep.subr.bf16.mxu0 %v15684_v0 }
0x26da   :  { %14348 = vmatmul.mubr.msk.bf16.vlgmr.msra.gmra.mxu1 %vm584_vm1, %v12023_v6 }
0x26db   :  { %14363 = vmatprep.mubr.msk.bf16.mxu1 %vm15685_vm0, %v15684_v0  ;;  %14360 = vmatpush3.bf16.msra.mxu1 %v15021_v49 }
0x26dc   :  { %14361 = vmatprep.subr.bf16.mxu1 %v15684_v0  ;;  %14370 = vmatpush3.bf16.msra.mxu0 %v15024_v24 }
0x26df   :  { %14362 = vmatpush3.bf16.msra.mxu1 %v15022_v41 }
0x2796   :  { %v12133_v58 = vpop.f32.mrf.mxu0 }
0x2798   :  { %v14357_v62 = vpop.f32.mrf.mxu0 }
0x279a   :  { %v12077_v52 = vpop.f32.mrf.mxu1  ;;  %v12136_v44 = vpop.f32.mrf.mxu0 }
0x279b   :  { %v12134_v14 = vadd.f32 %v12133_v58, %v12077_v52 }
0x279c   :  { %v14349_v32 = vpop.f32.mrf.mxu1  ;;  %v14358_v31 = vpop.f32.mrf.mxu0 }
0x279d   :  { %v12147_v60 = vadd.f32 %v13221_v61, %v12134_v14 }
0x279e   :  { %v12080_v23 = vpop.f32.mrf.mxu1 }
0x279f   :  { %v12137_v2 = vadd.f32 %v12136_v44, %v12080_v23  ;;  %v12149_v38 = vmax.f32 %v12147_v60, 0.0 }
0x27a0   :  { %v14350_v15 = vpop.f32.mrf.mxu1 }
0x27a1   :  { %v12148_v28 = vadd.f32 %v13221_v61, %v12137_v2 }
0x27a3   :  { %v12150_v18 = vmax.f32 %v12148_v28, 0.0 }
0x27a5   :  { %v12151_v16 = vpack.c.bf16 %v12150_v18, %v12149_v38 }
0x27a7   :  { %14364 = vmatmul.mubr.msk.bf16.vlgmr.msra.gmra.mxu1 %vm584_vm1, %v12151_v16 }
0x2867   :  { %v12212_v19 = vpop.f32.mrf.mxu1 }
0x2868   :  { %v12213_v34 = vadd.f32 %v13222_v56, %v12212_v19 }
0x2869   :  { %v14365_v27 = vpop.f32.mrf.mxu1 }
0x286a   :  { %v12219_v10 = vmax.f32 %v12213_v34, 0.0 }
0x286b   :  { %v12215_v29 = vpop.f32.mrf.mxu1 }
0x286c   :  { %v12216_v47 = vadd.f32 %v13222_v56, %v12215_v29 }
0x286d   :  { %v14366_v3 = vpop.f32.mrf.mxu1 }
0x286e   :  { %v12220_v26 = vmax.f32 %v12216_v47, 0.0 }
0x2870   :  { %v12221_v48 = vpack.c.bf16 %v12220_v26, %v12219_v10 }
0x2872   :  { %14372 = vmatmul.mubr.msk.bf16.vlgmr.msra.gmra.mxu0 %vm584_vm1, %v12221_v48 }
0x2932   :  { %v12282_v8 = vpop.f32.mrf.mxu0 }
0x2933   :  { %v12283_v12 = vadd.f32 %v13226_v46, %v12282_v8 }
0x2934   :  { %v14373_v0 = vpop.f32.mrf.mxu0 }
0x2935   :  { %12289 = vst [vmem:[%s15966_s13] sm:$0xff] %v12283_v12 }
0x2936   :  { %v12285_v20 = vpop.f32.mrf.mxu0 }
0x2937   :  { %v12286_v36 = vadd.f32 %v13226_v46, %v12285_v20 }
0x2938   :  { %v14374_v4 = vpop.f32.mrf.mxu0 }
0x2939   :  { %12290 = vst [vmem:[%s15966_s13 + $0x8] sm:$0xff] %v12286_v36 }
0x293a   :  { %12295 = vsyncpa [#allocation3], 1 }
0x293b   :  { %12296 = vsyncpa [#allocation5], 1 }
0x293c   :  { %12297 = vsyncpa [#allocation8], 1 }
0x293d   :  { %12298 = vsyncpa [#allocation11], 1 }
0x293e   :  { %12299 = vsyncpa [#allocation14], 1 }
0x293f   :  { %12300 = vsyncpa [#allocation17], 1 }
0x2940   :  { %12301 = vsyncpa [#allocation20], 1 }
0x2941   :  { %12302 = vsyncpa [#allocation23], 1 }
0x2942   :  { %12303 = vsyncpa [#allocation26], 1 }
0x2943   :  { %12304 = vsyncpa [#allocation29], 1 }
0x2944   :  { %12305 = vsyncpa [#allocation32], 1 }

</bundles_post_ra>
